<compile_context>
chip_gen: v7x
topology: tpu7x:2x2x1
jax: 0.10.0
libtpu: 0.0.40
codegen_flags: <defaults>
</compile_context>

<pallas_src>
import functools

import numpy as np
import jax
import jax.numpy as jnp
from jax.experimental import pallas as pl
from jax.experimental.pallas import tpu as pltpu


# ----------------------------------------------------------------------------- #
# Bilinear (align_corners=True) helpers used by the pure-JAX reference.
# ----------------------------------------------------------------------------- #
def _bilinear_taps(n_in, n_out):
    """Static 2-tap (lo, hi, frac) per output position, torch align_corners=True."""
    if n_in == 1 or n_out == 1:
        lo = np.zeros(n_out, np.int64)
        return lo, lo.copy(), np.zeros(n_out, np.float64)
    src = np.arange(n_out, dtype=np.float64) * (n_in - 1) / (n_out - 1)
    lo = np.clip(np.floor(src).astype(np.int64), 0, n_in - 2)
    hi = lo + 1
    frac = src - lo
    return lo, hi, frac


def bilinear_matrix(n_in, n_out):
    """Dense row-interp matrix (rows sum to 1) for the reference path."""
    lo, hi, frac = _bilinear_taps(n_in, n_out)
    A = np.zeros((n_out, n_in), np.float64)
    A[np.arange(n_out), lo] += 1.0 - frac
    A[np.arange(n_out), hi] += frac
    return jnp.asarray(A, jnp.float32)


# ----------------------------------------------------------------------------- #
# Fused FeatureFusionBlock kernel (one batch element per grid step, NHWC inside).
# ----------------------------------------------------------------------------- #
def _ffb_kernel(x0_ref, x1_ref,
                w1a_ref, b1a_ref, w2a_ref, b2a_ref,      # resConfUnit1 conv1/conv2
                w1b_ref, b1b_ref, w2b_ref, b2b_ref,      # resConfUnit2 conv1/conv2
                wo_ref, bo_ref,                          # 1x1 out_conv
                out_ref,
                pad_ref, t_ref,
                *, compute_dtype=jnp.float32):
    # x0/x1 : (1, H, W, C) f32 NHWC blocks
    # w*    : (9, C, C)  compute_dtype  (tap = kh*3 + kw, then (Cin, Cout))
    # b*    : (1, C)     f32
    # wo    : (C, Cout)  compute_dtype ; bo: (1, Cout) f32
    # out   : (1, 2, H, 2, W, Cout) f32 -- out[0, hp, h, wp, w, :] is output
    #         pixel (2h + hp, 2w + wp) of the x2-upsampled image.
    # pad   : (H+2, W+2, C) compute_dtype scratch (zero border, reused 4x)
    # t     : (H*W, C) f32 scratch (fusion intermediate, lives across RCU2)
    _, H, W, C = x0_ref.shape
    Cout = wo_ref.shape[1]
    cdt = compute_dtype
    HW = H * W

    # Zero only the 1-pixel border; the interior is rewritten before every conv.
    pad_ref[0:1, :, :] = jnp.zeros((1, W + 2, C), cdt)
    pad_ref[H + 1:H + 2, :, :] = jnp.zeros((1, W + 2, C), cdt)
    pad_ref[:, 0:1, :] = jnp.zeros((H + 2, 1, C), cdt)
    pad_ref[:, W + 1:W + 2, :] = jnp.zeros((H + 2, 1, C), cdt)

    def conv3x3(inp_flat, w_ref, b_ref):
        # inp_flat: (H*W, C) f32 (already activated).  Nine accumulating
        # (H*W, C) @ (C, C) MXU matmuls read straight from the padded scratch.
        pad_ref[1:H + 1, 1:W + 1, :] = inp_flat.reshape(H, W, C).astype(cdt)
        acc = None
        for kh in range(3):
            for kw in range(3):
                patch = pad_ref[kh:kh + H, kw:kw + W, :].reshape(HW, C)
                p = jnp.dot(patch, w_ref[kh * 3 + kw],
                            preferred_element_type=jnp.float32)
                acc = p if acc is None else acc + p
        return acc + b_ref[...]            # (H*W, C) f32, bias broadcast over rows

    relu = lambda a: jnp.maximum(a, 0.0)   # TODO(synk): other activations unsupported

    x0 = x0_ref[0].reshape(HW, C)
    x1 = x1_ref[0].reshape(HW, C)

    # resConfUnit1(x1) + fusion skip add with x0  ->  t (explicit VMEM scratch).
    c1 = conv3x3(relu(x1), w1a_ref, b1a_ref)
    c2 = conv3x3(relu(c1), w2a_ref, b2a_ref)
    t_ref[...] = c2 + x1 + x0

    # resConfUnit2
    c3 = conv3x3(relu(t_ref[...]), w1b_ref, b1b_ref)
    c4 = conv3x3(relu(c3), w2b_ref, b2b_ref)
    r = c4 + t_ref[...]

    # 1x1 out_conv at LOW resolution (commutes exactly with the bilinear x2
    # upsample because every interpolation row sums to 1; bias included).
    z = jnp.dot(r.astype(cdt), wo_ref[...], preferred_element_type=jnp.float32)
    z = z + bo_ref[...]                     # (H*W, Cout) f32

    # ---- bilinear x2, align_corners=True, as vectorised shift + lerp ---------
    # output col 2k   = (k/(2W-1))        * z[:, k-1] + (1 - k/(2W-1))       * z[:, k]
    # output col 2k+1 = (1-(W-1-k)/(2W-1))* z[:, k]   + ((W-1-k)/(2W-1))     * z[:, k+1]
    # (same along H).  Coefficients on the wrapped/contaminated shift entries are
    # exactly zero, so the +-1 / +-W row shifts of the flat (H*W, Cout) slab are
    # exact.  All coefficients come from one 2-D sublane iota -> pure VPU work.
    row_i = jax.lax.broadcasted_iota(jnp.int32, (HW, 1), 0)              # r = h*W + w
    w_col = jax.lax.broadcasted_iota(jnp.int32, (W, 1), 0)               # 0..W-1
    w_i = jnp.tile(w_col, (H, 1))                                        # (H*W, 1)
    w_f = w_i.astype(jnp.float32)
    h_f = (row_i - w_i).astype(jnp.float32) * (1.0 / W)                  # == h

    inv2w = 1.0 / (2.0 * W - 1.0)
    inv2h = 1.0 / (2.0 * H - 1.0)
    aw = w_f * inv2w                       # coef on left  neighbour (even cols)
    bw = (W - 1.0 - w_f) * inv2w           # coef on right neighbour (odd cols)
    ah = h_f * inv2h                       # coef on upper neighbour (even rows)
    bh = (H - 1.0 - h_f) * inv2h           # coef on lower neighbour (odd rows)

    def shift_down(x, s):   # result[r] = x[r - s]   (first s rows garbage -> coef 0)
        return jnp.concatenate([x[:s], x[:-s]], axis=0)

    def shift_up(x, s):     # result[r] = x[r + s]   (last  s rows garbage -> coef 0)
        return jnp.concatenate([x[s:], x[-s:]], axis=0)

    w_even = aw * shift_down(z, 1) + (1.0 - aw) * z          # output cols 2k
    w_odd = (1.0 - bw) * z + bw * shift_up(z, 1)             # output cols 2k+1

    def up_h(x):
        ev = ah * shift_down(x, W) + (1.0 - ah) * x          # output rows 2k
        od = (1.0 - bh) * x + bh * shift_up(x, W)            # output rows 2k+1
        return ev, od

    ee, oe = up_h(w_even)
    eo, oo = up_h(w_odd)

    odt = out_ref.dtype
    out_ref[0, 0, :, 0] = ee.reshape(H, W, Cout).astype(odt)
    out_ref[0, 0, :, 1] = eo.reshape(H, W, Cout).astype(odt)
    out_ref[0, 1, :, 0] = oe.reshape(H, W, Cout).astype(odt)
    out_ref[0, 1, :, 1] = oo.reshape(H, W, Cout).astype(odt)


def _vmem_limit_bytes(H, W, C, Cout, cbytes):
    """Derive the scoped-VMEM limit from actual block/scratch sizes + headroom."""
    blocks = 2 * 2 * (H * W * C * 4)                  # x0/x1 blocks, double-buffered
    blocks += 2 * (4 * H * W * Cout * 4)              # output block, double-buffered
    weights = 4 * 9 * C * C * cbytes + C * Cout * cbytes + (4 * C + Cout) * 4
    scratch = (H + 2) * (W + 2) * C * cbytes + H * W * C * 4
    live = 12 * H * W * max(C, Cout) * 4              # loose f32 values (accs, lerps)
    need = blocks + weights + scratch + live + (4 << 20)
    try:
        cap = int(pltpu.get_tpu_info().vmem_capacity_bytes)
    except Exception:
        cap = 64 << 20
    return max(32 << 20, min(int(need), cap - (2 << 20)))


def feature_fusion_block(params, x0_nchw, x1_nchw, compute_dtype=jnp.float32):
    """FeatureFusionBlock.forward(xs[0], xs[1]); NCHW in / NCHW out like PyTorch.

    compute_dtype=jnp.bfloat16 puts weights and the padded-activation scratch in
    bf16 (MXU operands only; f32 accumulation and f32 elementwise everywhere).
    """
    N, C, H, W = x0_nchw.shape
    Cout = params["wo"].shape[1]
    cdt = compute_dtype
    cbytes = jnp.dtype(cdt).itemsize

    # Boundary layout change only (XLA copies); all compute is NHWC / lane-dense.
    x0 = jnp.transpose(x0_nchw, (0, 2, 3, 1))
    x1 = jnp.transpose(x1_nchw, (0, 2, 3, 1))

    def wtap(name):      # (3,3,Cin,Cout) -> (9, Cin, Cout), tap order = (kh, kw)
        return params[name].reshape(9, C, C).astype(cdt)

    # Whole-array VMEM operands: constant across the grid, kept out of the
    # double-buffered block pipeline.
    vmem_full = pl.BlockSpec(memory_space=pltpu.MemorySpace.VMEM)

    kernel = functools.partial(_ffb_kernel, compute_dtype=cdt)
    out = pl.pallas_call(
        kernel,
        out_shape=jax.ShapeDtypeStruct((N, 2, H, 2, W, Cout), jnp.float32),
        grid=(N,),
        in_specs=[
            pl.BlockSpec((1, H, W, C), lambda n: (n, 0, 0, 0)),   # x0
            pl.BlockSpec((1, H, W, C), lambda n: (n, 0, 0, 0)),   # x1
            vmem_full, vmem_full, vmem_full, vmem_full,           # rcu1 w1,b1,w2,b2
            vmem_full, vmem_full, vmem_full, vmem_full,           # rcu2 w1,b1,w2,b2
            vmem_full, vmem_full,                                 # out_conv w, b
        ],
        out_specs=pl.BlockSpec((1, 2, H, 2, W, Cout),
                               lambda n: (n, 0, 0, 0, 0, 0)),
        scratch_shapes=[
            pltpu.VMEM((H + 2, W + 2, C), cdt),    # zero-padded conv input (reused 4x)
            pltpu.VMEM((H * W, C), jnp.float32),   # fusion intermediate t
        ],
        compiler_params=pltpu.CompilerParams(
            dimension_semantics=("parallel",),
            vmem_limit_bytes=_vmem_limit_bytes(H, W, C, Cout, cbytes),
        ),
    )(x0, x1,
      wtap("rcu1_w1"), params["rcu1_b1"], wtap("rcu1_w2"), params["rcu1_b2"],
      wtap("rcu2_w1"), params["rcu2_b1"], wtap("rcu2_w2"), params["rcu2_b2"],
      params["wo"].astype(cdt), params["bo"])

    # (N, 2, H, 2, W, Cout): [n, hp, h, wp, w, c] = pixel (2h+hp, 2w+wp).
    # Pure XLA rearrange of the final HBM result -> NCHW.
    return jnp.transpose(out, (0, 5, 2, 1, 4, 3)).reshape(N, Cout, 2 * H, 2 * W)


# ----------------------------------------------------------------------------- #
# Parameters + pure-JAX reference (reference follows the original op order:
# RCUs -> bilinear upsample -> 1x1 out_conv, validating the commuted kernel).
# ----------------------------------------------------------------------------- #
def init_params(key, features):
    C = features                      # expand=False -> out_features == features
    ks = jax.random.split(key, 10)

    def conv_w(k):                    # layout (kh, kw, Cin, Cout)
        return (0.1 * jax.random.normal(k, (3, 3, C, C))).astype(jnp.float32)

    def bias(k):
        return (0.1 * jax.random.normal(k, (1, C))).astype(jnp.float32)

    return dict(
        rcu1_w1=conv_w(ks[0]), rcu1_b1=bias(ks[1]),
        rcu1_w2=conv_w(ks[2]), rcu1_b2=bias(ks[3]),
        rcu2_w1=conv_w(ks[4]), rcu2_b1=bias(ks[5]),
        rcu2_w2=conv_w(ks[6]), rcu2_b2=bias(ks[7]),
        wo=(0.1 * jax.random.normal(ks[8], (C, C))).astype(jnp.float32),
        bo=(0.1 * jax.random.normal(ks[9], (1, C))).astype(jnp.float32),
    )


def _conv3x3_ref(x, w, b):
    y = jax.lax.conv_general_dilated(
        x, w, (1, 1), "SAME",
        dimension_numbers=("NHWC", "HWIO", "NHWC"),
        precision=jax.lax.Precision.HIGHEST)
    return y + b.reshape(1, 1, 1, -1)


def _rcu_ref(x, w1, b1, w2, b2):
    c1 = _conv3x3_ref(jnp.maximum(x, 0.0), w1, b1)
    c2 = _conv3x3_ref(jnp.maximum(c1, 0.0), w2, b2)
    return c2 + x


def feature_fusion_ref(params, x0_nchw, x1_nchw):
    hp = jax.lax.Precision.HIGHEST
    x0 = jnp.transpose(x0_nchw, (0, 2, 3, 1))
    x1 = jnp.transpose(x1_nchw, (0, 2, 3, 1))
    out = x0 + _rcu_ref(x1, params["rcu1_w1"], params["rcu1_b1"],
                        params["rcu1_w2"], params["rcu1_b2"])
    out = _rcu_ref(out, params["rcu2_w1"], params["rcu2_b1"],
                   params["rcu2_w2"], params["rcu2_b2"])
    H, W = out.shape[1], out.shape[2]
    ah = bilinear_matrix(H, 2 * H)
    aw = bilinear_matrix(W, 2 * W)
    up = jnp.einsum("ih,nhwc->niwc", ah, out, precision=hp)
    up = jnp.einsum("jw,niwc->nijc", aw, up, precision=hp)
    y = jnp.einsum("nijc,cd->nijd", up, params["wo"], precision=hp)
    y = y + params["bo"].reshape(1, 1, 1, -1)
    return jnp.transpose(y, (0, 3, 1, 2))


if __name__ == "__main__":
    N, C, H, W = 2, 4, 16, 16
    key = jax.random.PRNGKey(0)
    k0, k1, kp = jax.random.split(key, 3)
    x0 = jax.random.normal(k0, (N, C, H, W), jnp.float32)
    x1 = jax.random.normal(k1, (N, C, H, W), jnp.float32)
    params = init_params(kp, C)

    y = jax.block_until_ready(feature_fusion_block(params, x0, x1))
    y_ref = jax.block_until_ready(feature_fusion_ref(params, x0, x1))
    assert y.shape == (N, C, 2 * H, 2 * W), y.shape
    err = float(np.max(np.abs(np.asarray(y) - np.asarray(y_ref))))
    assert np.allclose(np.asarray(y), np.asarray(y_ref), atol=1e-3, rtol=1e-3), err

    # Sanity-check the bf16 MXU path (weights + matmul operands in bf16, f32
    # accumulation / elementwise).  Loose tolerance: guards against gross errors,
    # not bit accuracy.
    y_bf16 = jax.block_until_ready(
        feature_fusion_block(params, x0, x1, compute_dtype=jnp.bfloat16))
    err_bf16 = float(np.max(np.abs(np.asarray(y_bf16) - np.asarray(y_ref))))
    assert np.allclose(np.asarray(y_bf16), np.asarray(y_ref),
                       atol=2e-1, rtol=2e-1), err_bf16

    print("KERNEL_OK")
</pallas_src>

<mosaic_0001>
module attributes {stable_mosaic.version = 11 : i64} {
  func.func @_ffb_kernel(%arg0: i32, %arg1: memref<1x16x16x4xf32, #tpu.memory_space<vmem>>, %arg2: memref<1x16x16x4xf32, #tpu.memory_space<vmem>>, %arg3: memref<9x4x4xf32, #tpu.memory_space<vmem>>, %arg4: memref<1x4xf32, #tpu.memory_space<vmem>>, %arg5: memref<9x4x4xf32, #tpu.memory_space<vmem>>, %arg6: memref<1x4xf32, #tpu.memory_space<vmem>>, %arg7: memref<9x4x4xf32, #tpu.memory_space<vmem>>, %arg8: memref<1x4xf32, #tpu.memory_space<vmem>>, %arg9: memref<9x4x4xf32, #tpu.memory_space<vmem>>, %arg10: memref<1x4xf32, #tpu.memory_space<vmem>>, %arg11: memref<4x4xf32, #tpu.memory_space<vmem>>, %arg12: memref<1x4xf32, #tpu.memory_space<vmem>>, %arg13: memref<1x2x16x2x16x4xf32, #tpu.memory_space<vmem>>, %arg14: memref<18x18x4xf32, #tpu.memory_space<vmem>>, %arg15: memref<256x4xf32, #tpu.memory_space<vmem>>) attributes {dimension_semantics = [#tpu.dimension_semantics<parallel>], iteration_bounds = array<i64: 2>, scalar_prefetch = 0 : i64, scratch_operands = 2 : i64, tpu.core_type = #tpu.core_type<tc>, window_params = [{transform_indices = @transform_0, window_bounds = array<i64: 1, 16, 16, 4>}, {transform_indices = @transform_1, window_bounds = array<i64: 1, 16, 16, 4>}, {pipeline_mode = #tpu.pipeline_mode<synchronous>, transform_indices = @transform_2, window_bounds = array<i64: 9, 4, 4>}, {pipeline_mode = #tpu.pipeline_mode<synchronous>, transform_indices = @transform_3, window_bounds = array<i64: 1, 4>}, {pipeline_mode = #tpu.pipeline_mode<synchronous>, transform_indices = @transform_4, window_bounds = array<i64: 9, 4, 4>}, {pipeline_mode = #tpu.pipeline_mode<synchronous>, transform_indices = @transform_5, window_bounds = array<i64: 1, 4>}, {pipeline_mode = #tpu.pipeline_mode<synchronous>, transform_indices = @transform_6, window_bounds = array<i64: 9, 4, 4>}, {pipeline_mode = #tpu.pipeline_mode<synchronous>, transform_indices = @transform_7, window_bounds = array<i64: 1, 4>}, {pipeline_mode = #tpu.pipeline_mode<synchronous>, transform_indices = @transform_8, window_bounds = array<i64: 9, 4, 4>}, {pipeline_mode = #tpu.pipeline_mode<synchronous>, transform_indices = @transform_9, window_bounds = array<i64: 1, 4>}, {pipeline_mode = #tpu.pipeline_mode<synchronous>, transform_indices = @transform_10, window_bounds = array<i64: 4, 4>}, {pipeline_mode = #tpu.pipeline_mode<synchronous>, transform_indices = @transform_11, window_bounds = array<i64: 1, 4>}, {transform_indices = @transform_12, window_bounds = array<i64: 1, 2, 16, 2, 16, 4>}]} {
    %cst = arith.constant 0.000000e+00 : f32
    %0 = vector.broadcast %cst : f32 to vector<1x18x4xf32>
    %c0 = arith.constant 0 : index
    %c0_0 = arith.constant 0 : index
    %c0_1 = arith.constant 0 : index
    %1 = vector.load %arg14[%c0, %c0_0, %c0_1] : memref<18x18x4xf32, #tpu.memory_space<vmem>>, vector<1x18x4xf32>
    tpu.vector_store %arg14[%c0, %c0_0, %c0_1], %0 {strides = array<i32>} : memref<18x18x4xf32, #tpu.memory_space<vmem>>, vector<1x18x4xf32>,
    %cst_2 = arith.constant 0.000000e+00 : f32
    %2 = vector.broadcast %cst_2 : f32 to vector<1x18x4xf32>
    %c17 = arith.constant 17 : index
    %c0_3 = arith.constant 0 : index
    %c0_4 = arith.constant 0 : index
    %3 = vector.load %arg14[%c17, %c0_3, %c0_4] : memref<18x18x4xf32, #tpu.memory_space<vmem>>, vector<1x18x4xf32>
    tpu.vector_store %arg14[%c17, %c0_3, %c0_4], %2 {strides = array<i32>} : memref<18x18x4xf32, #tpu.memory_space<vmem>>, vector<1x18x4xf32>,
    %cst_5 = arith.constant 0.000000e+00 : f32
    %4 = vector.broadcast %cst_5 : f32 to vector<18x1x4xf32>
    %c0_6 = arith.constant 0 : index
    %c0_7 = arith.constant 0 : index
    %c0_8 = arith.constant 0 : index
    %5 = vector.load %arg14[%c0_6, %c0_7, %c0_8] : memref<18x18x4xf32, #tpu.memory_space<vmem>>, vector<18x1x4xf32>
    tpu.vector_store %arg14[%c0_6, %c0_7, %c0_8], %4 {strides = array<i32>} : memref<18x18x4xf32, #tpu.memory_space<vmem>>, vector<18x1x4xf32>,
    %cst_9 = arith.constant 0.000000e+00 : f32
    %6 = vector.broadcast %cst_9 : f32 to vector<18x1x4xf32>
    %c0_10 = arith.constant 0 : index
    %c17_11 = arith.constant 17 : index
    %c0_12 = arith.constant 0 : index
    %7 = vector.load %arg14[%c0_10, %c17_11, %c0_12] : memref<18x18x4xf32, #tpu.memory_space<vmem>>, vector<18x1x4xf32>
    tpu.vector_store %arg14[%c0_10, %c17_11, %c0_12], %6 {strides = array<i32>} : memref<18x18x4xf32, #tpu.memory_space<vmem>>, vector<18x1x4xf32>,
    %c0_13 = arith.constant 0 : index
    %c0_14 = arith.constant 0 : index
    %c0_15 = arith.constant 0 : index
    %c0_16 = arith.constant 0 : index
    %8 = vector.load %arg1[%c0_13, %c0_14, %c0_15, %c0_16] : memref<1x16x16x4xf32, #tpu.memory_space<vmem>>, vector<1x16x16x4xf32>
    %9 = vector.shape_cast %8 : vector<1x16x16x4xf32> to vector<16x16x4xf32>
    %10 = vector.shape_cast %9 : vector<16x16x4xf32> to vector<256x4xf32>
    %c0_17 = arith.constant 0 : index
    %c0_18 = arith.constant 0 : index
    %c0_19 = arith.constant 0 : index
    %c0_20 = arith.constant 0 : index
    %11 = vector.load %arg2[%c0_17, %c0_18, %c0_19, %c0_20] : memref<1x16x16x4xf32, #tpu.memory_space<vmem>>, vector<1x16x16x4xf32>
    %12 = vector.shape_cast %11 : vector<1x16x16x4xf32> to vector<16x16x4xf32>
    %13 = vector.shape_cast %12 : vector<16x16x4xf32> to vector<256x4xf32>
    %cst_21 = arith.constant 0.000000e+00 : f32
    %14 = vector.broadcast %cst_21 : f32 to vector<256x4xf32>
    %15 = arith.maximumf %13, %14 : vector<256x4xf32>
    %16 = vector.shape_cast %15 : vector<256x4xf32> to vector<16x16x4xf32>
    %c1 = arith.constant 1 : index
    %c1_22 = arith.constant 1 : index
    %c0_23 = arith.constant 0 : index
    %17 = vector.load %arg14[%c1, %c1_22, %c0_23] : memref<18x18x4xf32, #tpu.memory_space<vmem>>, vector<16x16x4xf32>
    tpu.vector_store %arg14[%c1, %c1_22, %c0_23], %16 {strides = array<i32>} : memref<18x18x4xf32, #tpu.memory_space<vmem>>, vector<16x16x4xf32>,
    %c0_24 = arith.constant 0 : index
    %c0_25 = arith.constant 0 : index
    %c0_26 = arith.constant 0 : index
    %18 = vector.load %arg14[%c0_24, %c0_25, %c0_26] : memref<18x18x4xf32, #tpu.memory_space<vmem>>, vector<16x16x4xf32>
    %19 = vector.shape_cast %18 : vector<16x16x4xf32> to vector<256x4xf32>
    %c0_27 = arith.constant 0 : index
    %c0_28 = arith.constant 0 : index
    %c0_29 = arith.constant 0 : index
    %20 = vector.load %arg3[%c0_27, %c0_28, %c0_29] : memref<9x4x4xf32, #tpu.memory_space<vmem>>, vector<1x4x4xf32>
    %21 = vector.shape_cast %20 : vector<1x4x4xf32> to vector<4x4xf32>
    %cst_30 = arith.constant dense<0.000000e+00> : vector<256x4xf32>
    %22 = tpu.matmul %19, %21, %cst_30 {dimension_numbers = #tpu.dot_dimension_numbers<[1], [0], [0], [1], [0, 0, 1, 1], [], []>} : vector<256x4xf32>, vector<4x4xf32>, vector<256x4xf32> -> vector<256x4xf32>
    %c0_31 = arith.constant 0 : index
    %c1_32 = arith.constant 1 : index
    %c0_33 = arith.constant 0 : index
    %23 = vector.load %arg14[%c0_31, %c1_32, %c0_33] : memref<18x18x4xf32, #tpu.memory_space<vmem>>, vector<16x16x4xf32>
    %24 = vector.shape_cast %23 : vector<16x16x4xf32> to vector<256x4xf32>
    %c1_34 = arith.constant 1 : index
    %c0_35 = arith.constant 0 : index
    %c0_36 = arith.constant 0 : index
    %25 = vector.load %arg3[%c1_34, %c0_35, %c0_36] : memref<9x4x4xf32, #tpu.memory_space<vmem>>, vector<1x4x4xf32>
    %26 = vector.shape_cast %25 : vector<1x4x4xf32> to vector<4x4xf32>
    %cst_37 = arith.constant dense<0.000000e+00> : vector<256x4xf32>
    %27 = tpu.matmul %24, %26, %cst_37 {dimension_numbers = #tpu.dot_dimension_numbers<[1], [0], [0], [1], [0, 0, 1, 1], [], []>} : vector<256x4xf32>, vector<4x4xf32>, vector<256x4xf32> -> vector<256x4xf32>
    %28 = arith.addf %22, %27 : vector<256x4xf32>
    %c0_38 = arith.constant 0 : index
    %c2 = arith.constant 2 : index
    %c0_39 = arith.constant 0 : index
    %29 = vector.load %arg14[%c0_38, %c2, %c0_39] : memref<18x18x4xf32, #tpu.memory_space<vmem>>, vector<16x16x4xf32>
    %30 = vector.shape_cast %29 : vector<16x16x4xf32> to vector<256x4xf32>
    %c2_40 = arith.constant 2 : index
    %c0_41 = arith.constant 0 : index
    %c0_42 = arith.constant 0 : index
    %31 = vector.load %arg3[%c2_40, %c0_41, %c0_42] : memref<9x4x4xf32, #tpu.memory_space<vmem>>, vector<1x4x4xf32>
    %32 = vector.shape_cast %31 : vector<1x4x4xf32> to vector<4x4xf32>
    %cst_43 = arith.constant dense<0.000000e+00> : vector<256x4xf32>
    %33 = tpu.matmul %30, %32, %cst_43 {dimension_numbers = #tpu.dot_dimension_numbers<[1], [0], [0], [1], [0, 0, 1, 1], [], []>} : vector<256x4xf32>, vector<4x4xf32>, vector<256x4xf32> -> vector<256x4xf32>
    %34 = arith.addf %28, %33 : vector<256x4xf32>
    %c1_44 = arith.constant 1 : index
    %c0_45 = arith.constant 0 : index
    %c0_46 = arith.constant 0 : index
    %35 = vector.load %arg14[%c1_44, %c0_45, %c0_46] : memref<18x18x4xf32, #tpu.memory_space<vmem>>, vector<16x16x4xf32>
    %36 = vector.shape_cast %35 : vector<16x16x4xf32> to vector<256x4xf32>
    %c3 = arith.constant 3 : index
    %c0_47 = arith.constant 0 : index
    %c0_48 = arith.constant 0 : index
    %37 = vector.load %arg3[%c3, %c0_47, %c0_48] : memref<9x4x4xf32, #tpu.memory_space<vmem>>, vector<1x4x4xf32>
    %38 = vector.shape_cast %37 : vector<1x4x4xf32> to vector<4x4xf32>
    %cst_49 = arith.constant dense<0.000000e+00> : vector<256x4xf32>
    %39 = tpu.matmul %36, %38, %cst_49 {dimension_numbers = #tpu.dot_dimension_numbers<[1], [0], [0], [1], [0, 0, 1, 1], [], []>} : vector<256x4xf32>, vector<4x4xf32>, vector<256x4xf32> -> vector<256x4xf32>
    %40 = arith.addf %34, %39 : vector<256x4xf32>
    %c1_50 = arith.constant 1 : index
    %c1_51 = arith.constant 1 : index
    %c0_52 = arith.constant 0 : index
    %41 = vector.load %arg14[%c1_50, %c1_51, %c0_52] : memref<18x18x4xf32, #tpu.memory_space<vmem>>, vector<16x16x4xf32>
    %42 = vector.shape_cast %41 : vector<16x16x4xf32> to vector<256x4xf32>
    %c4 = arith.constant 4 : index
    %c0_53 = arith.constant 0 : index
    %c0_54 = arith.constant 0 : index
    %43 = vector.load %arg3[%c4, %c0_53, %c0_54] : memref<9x4x4xf32, #tpu.memory_space<vmem>>, vector<1x4x4xf32>
    %44 = vector.shape_cast %43 : vector<1x4x4xf32> to vector<4x4xf32>
    %cst_55 = arith.constant dense<0.000000e+00> : vector<256x4xf32>
    %45 = tpu.matmul %42, %44, %cst_55 {dimension_numbers = #tpu.dot_dimension_numbers<[1], [0], [0], [1], [0, 0, 1, 1], [], []>} : vector<256x4xf32>, vector<4x4xf32>, vector<256x4xf32> -> vector<256x4xf32>
    %46 = arith.addf %40, %45 : vector<256x4xf32>
    %c1_56 = arith.constant 1 : index
    %c2_57 = arith.constant 2 : index
    %c0_58 = arith.constant 0 : index
    %47 = vector.load %arg14[%c1_56, %c2_57, %c0_58] : memref<18x18x4xf32, #tpu.memory_space<vmem>>, vector<16x16x4xf32>
    %48 = vector.shape_cast %47 : vector<16x16x4xf32> to vector<256x4xf32>
    %c5 = arith.constant 5 : index
    %c0_59 = arith.constant 0 : index
    %c0_60 = arith.constant 0 : index
    %49 = vector.load %arg3[%c5, %c0_59, %c0_60] : memref<9x4x4xf32, #tpu.memory_space<vmem>>, vector<1x4x4xf32>
    %50 = vector.shape_cast %49 : vector<1x4x4xf32> to vector<4x4xf32>
    %cst_61 = arith.constant dense<0.000000e+00> : vector<256x4xf32>
    %51 = tpu.matmul %48, %50, %cst_61 {dimension_numbers = #tpu.dot_dimension_numbers<[1], [0], [0], [1], [0, 0, 1, 1], [], []>} : vector<256x4xf32>, vector<4x4xf32>, vector<256x4xf32> -> vector<256x4xf32>
    %52 = arith.addf %46, %51 : vector<256x4xf32>
    %c2_62 = arith.constant 2 : index
    %c0_63 = arith.constant 0 : index
    %c0_64 = arith.constant 0 : index
    %53 = vector.load %arg14[%c2_62, %c0_63, %c0_64] : memref<18x18x4xf32, #tpu.memory_space<vmem>>, vector<16x16x4xf32>
    %54 = vector.shape_cast %53 : vector<16x16x4xf32> to vector<256x4xf32>
    %c6 = arith.constant 6 : index
    %c0_65 = arith.constant 0 : index
    %c0_66 = arith.constant 0 : index
    %55 = vector.load %arg3[%c6, %c0_65, %c0_66] : memref<9x4x4xf32, #tpu.memory_space<vmem>>, vector<1x4x4xf32>
    %56 = vector.shape_cast %55 : vector<1x4x4xf32> to vector<4x4xf32>
    %cst_67 = arith.constant dense<0.000000e+00> : vector<256x4xf32>
    %57 = tpu.matmul %54, %56, %cst_67 {dimension_numbers = #tpu.dot_dimension_numbers<[1], [0], [0], [1], [0, 0, 1, 1], [], []>} : vector<256x4xf32>, vector<4x4xf32>, vector<256x4xf32> -> vector<256x4xf32>
    %58 = arith.addf %52, %57 : vector<256x4xf32>
    %c2_68 = arith.constant 2 : index
    %c1_69 = arith.constant 1 : index
    %c0_70 = arith.constant 0 : index
    %59 = vector.load %arg14[%c2_68, %c1_69, %c0_70] : memref<18x18x4xf32, #tpu.memory_space<vmem>>, vector<16x16x4xf32>
    %60 = vector.shape_cast %59 : vector<16x16x4xf32> to vector<256x4xf32>
    %c7 = arith.constant 7 : index
    %c0_71 = arith.constant 0 : index
    %c0_72 = arith.constant 0 : index
    %61 = vector.load %arg3[%c7, %c0_71, %c0_72] : memref<9x4x4xf32, #tpu.memory_space<vmem>>, vector<1x4x4xf32>
    %62 = vector.shape_cast %61 : vector<1x4x4xf32> to vector<4x4xf32>
    %cst_73 = arith.constant dense<0.000000e+00> : vector<256x4xf32>
    %63 = tpu.matmul %60, %62, %cst_73 {dimension_numbers = #tpu.dot_dimension_numbers<[1], [0], [0], [1], [0, 0, 1, 1], [], []>} : vector<256x4xf32>, vector<4x4xf32>, vector<256x4xf32> -> vector<256x4xf32>
    %64 = arith.addf %58, %63 : vector<256x4xf32>
    %c2_74 = arith.constant 2 : index
    %c2_75 = arith.constant 2 : index
    %c0_76 = arith.constant 0 : index
    %65 = vector.load %arg14[%c2_74, %c2_75, %c0_76] : memref<18x18x4xf32, #tpu.memory_space<vmem>>, vector<16x16x4xf32>
    %66 = vector.shape_cast %65 : vector<16x16x4xf32> to vector<256x4xf32>
    %c8 = arith.constant 8 : index
    %c0_77 = arith.constant 0 : index
    %c0_78 = arith.constant 0 : index
    %67 = vector.load %arg3[%c8, %c0_77, %c0_78] : memref<9x4x4xf32, #tpu.memory_space<vmem>>, vector<1x4x4xf32>
    %68 = vector.shape_cast %67 : vector<1x4x4xf32> to vector<4x4xf32>
    %cst_79 = arith.constant dense<0.000000e+00> : vector<256x4xf32>
    %69 = tpu.matmul %66, %68, %cst_79 {dimension_numbers = #tpu.dot_dimension_numbers<[1], [0], [0], [1], [0, 0, 1, 1], [], []>} : vector<256x4xf32>, vector<4x4xf32>, vector<256x4xf32> -> vector<256x4xf32>
    %70 = arith.addf %64, %69 : vector<256x4xf32>
    %c0_80 = arith.constant 0 : index
    %c0_81 = arith.constant 0 : index
    %71 = vector.load %arg4[%c0_80, %c0_81] : memref<1x4xf32, #tpu.memory_space<vmem>>, vector<1x4xf32>
    %72 = vector.broadcast %71 : vector<1x4xf32> to vector<256x4xf32>
    %73 = arith.addf %70, %72 : vector<256x4xf32>
    %cst_82 = arith.constant 0.000000e+00 : f32
    %74 = vector.broadcast %cst_82 : f32 to vector<256x4xf32>
    %75 = arith.maximumf %73, %74 : vector<256x4xf32>
    %76 = vector.shape_cast %75 : vector<256x4xf32> to vector<16x16x4xf32>
    %c1_83 = arith.constant 1 : index
    %c1_84 = arith.constant 1 : index
    %c0_85 = arith.constant 0 : index
    %77 = vector.load %arg14[%c1_83, %c1_84, %c0_85] : memref<18x18x4xf32, #tpu.memory_space<vmem>>, vector<16x16x4xf32>
    tpu.vector_store %arg14[%c1_83, %c1_84, %c0_85], %76 {strides = array<i32>} : memref<18x18x4xf32, #tpu.memory_space<vmem>>, vector<16x16x4xf32>,
    %c0_86 = arith.constant 0 : index
    %c0_87 = arith.constant 0 : index
    %c0_88 = arith.constant 0 : index
    %78 = vector.load %arg14[%c0_86, %c0_87, %c0_88] : memref<18x18x4xf32, #tpu.memory_space<vmem>>, vector<16x16x4xf32>
    %79 = vector.shape_cast %78 : vector<16x16x4xf32> to vector<256x4xf32>
    %c0_89 = arith.constant 0 : index
    %c0_90 = arith.constant 0 : index
    %c0_91 = arith.constant 0 : index
    %80 = vector.load %arg5[%c0_89, %c0_90, %c0_91] : memref<9x4x4xf32, #tpu.memory_space<vmem>>, vector<1x4x4xf32>
    %81 = vector.shape_cast %80 : vector<1x4x4xf32> to vector<4x4xf32>
    %cst_92 = arith.constant dense<0.000000e+00> : vector<256x4xf32>
    %82 = tpu.matmul %79, %81, %cst_92 {dimension_numbers = #tpu.dot_dimension_numbers<[1], [0], [0], [1], [0, 0, 1, 1], [], []>} : vector<256x4xf32>, vector<4x4xf32>, vector<256x4xf32> -> vector<256x4xf32>
    %c0_93 = arith.constant 0 : index
    %c1_94 = arith.constant 1 : index
    %c0_95 = arith.constant 0 : index
    %83 = vector.load %arg14[%c0_93, %c1_94, %c0_95] : memref<18x18x4xf32, #tpu.memory_space<vmem>>, vector<16x16x4xf32>
    %84 = vector.shape_cast %83 : vector<16x16x4xf32> to vector<256x4xf32>
    %c1_96 = arith.constant 1 : index
    %c0_97 = arith.constant 0 : index
    %c0_98 = arith.constant 0 : index
    %85 = vector.load %arg5[%c1_96, %c0_97, %c0_98] : memref<9x4x4xf32, #tpu.memory_space<vmem>>, vector<1x4x4xf32>
    %86 = vector.shape_cast %85 : vector<1x4x4xf32> to vector<4x4xf32>
    %cst_99 = arith.constant dense<0.000000e+00> : vector<256x4xf32>
    %87 = tpu.matmul %84, %86, %cst_99 {dimension_numbers = #tpu.dot_dimension_numbers<[1], [0], [0], [1], [0, 0, 1, 1], [], []>} : vector<256x4xf32>, vector<4x4xf32>, vector<256x4xf32> -> vector<256x4xf32>
    %88 = arith.addf %82, %87 : vector<256x4xf32>
    %c0_100 = arith.constant 0 : index
    %c2_101 = arith.constant 2 : index
    %c0_102 = arith.constant 0 : index
    %89 = vector.load %arg14[%c0_100, %c2_101, %c0_102] : memref<18x18x4xf32, #tpu.memory_space<vmem>>, vector<16x16x4xf32>
    %90 = vector.shape_cast %89 : vector<16x16x4xf32> to vector<256x4xf32>
    %c2_103 = arith.constant 2 : index
    %c0_104 = arith.constant 0 : index
    %c0_105 = arith.constant 0 : index
    %91 = vector.load %arg5[%c2_103, %c0_104, %c0_105] : memref<9x4x4xf32, #tpu.memory_space<vmem>>, vector<1x4x4xf32>
    %92 = vector.shape_cast %91 : vector<1x4x4xf32> to vector<4x4xf32>
    %cst_106 = arith.constant dense<0.000000e+00> : vector<256x4xf32>
    %93 = tpu.matmul %90, %92, %cst_106 {dimension_numbers = #tpu.dot_dimension_numbers<[1], [0], [0], [1], [0, 0, 1, 1], [], []>} : vector<256x4xf32>, vector<4x4xf32>, vector<256x4xf32> -> vector<256x4xf32>
    %94 = arith.addf %88, %93 : vector<256x4xf32>
    %c1_107 = arith.constant 1 : index
    %c0_108 = arith.constant 0 : index
    %c0_109 = arith.constant 0 : index
    %95 = vector.load %arg14[%c1_107, %c0_108, %c0_109] : memref<18x18x4xf32, #tpu.memory_space<vmem>>, vector<16x16x4xf32>
    %96 = vector.shape_cast %95 : vector<16x16x4xf32> to vector<256x4xf32>
    %c3_110 = arith.constant 3 : index
    %c0_111 = arith.constant 0 : index
    %c0_112 = arith.constant 0 : index
    %97 = vector.load %arg5[%c3_110, %c0_111, %c0_112] : memref<9x4x4xf32, #tpu.memory_space<vmem>>, vector<1x4x4xf32>
    %98 = vector.shape_cast %97 : vector<1x4x4xf32> to vector<4x4xf32>
    %cst_113 = arith.constant dense<0.000000e+00> : vector<256x4xf32>
    %99 = tpu.matmul %96, %98, %cst_113 {dimension_numbers = #tpu.dot_dimension_numbers<[1], [0], [0], [1], [0, 0, 1, 1], [], []>} : vector<256x4xf32>, vector<4x4xf32>, vector<256x4xf32> -> vector<256x4xf32>
    %100 = arith.addf %94, %99 : vector<256x4xf32>
    %c1_114 = arith.constant 1 : index
    %c1_115 = arith.constant 1 : index
    %c0_116 = arith.constant 0 : index
    %101 = vector.load %arg14[%c1_114, %c1_115, %c0_116] : memref<18x18x4xf32, #tpu.memory_space<vmem>>, vector<16x16x4xf32>
    %102 = vector.shape_cast %101 : vector<16x16x4xf32> to vector<256x4xf32>
    %c4_117 = arith.constant 4 : index
    %c0_118 = arith.constant 0 : index
    %c0_119 = arith.constant 0 : index
    %103 = vector.load %arg5[%c4_117, %c0_118, %c0_119] : memref<9x4x4xf32, #tpu.memory_space<vmem>>, vector<1x4x4xf32>
    %104 = vector.shape_cast %103 : vector<1x4x4xf32> to vector<4x4xf32>
    %cst_120 = arith.constant dense<0.000000e+00> : vector<256x4xf32>
    %105 = tpu.matmul %102, %104, %cst_120 {dimension_numbers = #tpu.dot_dimension_numbers<[1], [0], [0], [1], [0, 0, 1, 1], [], []>} : vector<256x4xf32>, vector<4x4xf32>, vector<256x4xf32> -> vector<256x4xf32>
    %106 = arith.addf %100, %105 : vector<256x4xf32>
    %c1_121 = arith.constant 1 : index
    %c2_122 = arith.constant 2 : index
    %c0_123 = arith.constant 0 : index
    %107 = vector.load %arg14[%c1_121, %c2_122, %c0_123] : memref<18x18x4xf32, #tpu.memory_space<vmem>>, vector<16x16x4xf32>
    %108 = vector.shape_cast %107 : vector<16x16x4xf32> to vector<256x4xf32>
    %c5_124 = arith.constant 5 : index
    %c0_125 = arith.constant 0 : index
    %c0_126 = arith.constant 0 : index
    %109 = vector.load %arg5[%c5_124, %c0_125, %c0_126] : memref<9x4x4xf32, #tpu.memory_space<vmem>>, vector<1x4x4xf32>
    %110 = vector.shape_cast %109 : vector<1x4x4xf32> to vector<4x4xf32>
    %cst_127 = arith.constant dense<0.000000e+00> : vector<256x4xf32>
    %111 = tpu.matmul %108, %110, %cst_127 {dimension_numbers = #tpu.dot_dimension_numbers<[1], [0], [0], [1], [0, 0, 1, 1], [], []>} : vector<256x4xf32>, vector<4x4xf32>, vector<256x4xf32> -> vector<256x4xf32>
    %112 = arith.addf %106, %111 : vector<256x4xf32>
    %c2_128 = arith.constant 2 : index
    %c0_129 = arith.constant 0 : index
    %c0_130 = arith.constant 0 : index
    %113 = vector.load %arg14[%c2_128, %c0_129, %c0_130] : memref<18x18x4xf32, #tpu.memory_space<vmem>>, vector<16x16x4xf32>
    %114 = vector.shape_cast %113 : vector<16x16x4xf32> to vector<256x4xf32>
    %c6_131 = arith.constant 6 : index
    %c0_132 = arith.constant 0 : index
    %c0_133 = arith.constant 0 : index
    %115 = vector.load %arg5[%c6_131, %c0_132, %c0_133] : memref<9x4x4xf32, #tpu.memory_space<vmem>>, vector<1x4x4xf32>
    %116 = vector.shape_cast %115 : vector<1x4x4xf32> to vector<4x4xf32>
    %cst_134 = arith.constant dense<0.000000e+00> : vector<256x4xf32>
    %117 = tpu.matmul %114, %116, %cst_134 {dimension_numbers = #tpu.dot_dimension_numbers<[1], [0], [0], [1], [0, 0, 1, 1], [], []>} : vector<256x4xf32>, vector<4x4xf32>, vector<256x4xf32> -> vector<256x4xf32>
    %118 = arith.addf %112, %117 : vector<256x4xf32>
    %c2_135 = arith.constant 2 : index
    %c1_136 = arith.constant 1 : index
    %c0_137 = arith.constant 0 : index
    %119 = vector.load %arg14[%c2_135, %c1_136, %c0_137] : memref<18x18x4xf32, #tpu.memory_space<vmem>>, vector<16x16x4xf32>
    %120 = vector.shape_cast %119 : vector<16x16x4xf32> to vector<256x4xf32>
    %c7_138 = arith.constant 7 : index
    %c0_139 = arith.constant 0 : index
    %c0_140 = arith.constant 0 : index
    %121 = vector.load %arg5[%c7_138, %c0_139, %c0_140] : memref<9x4x4xf32, #tpu.memory_space<vmem>>, vector<1x4x4xf32>
    %122 = vector.shape_cast %121 : vector<1x4x4xf32> to vector<4x4xf32>
    %cst_141 = arith.constant dense<0.000000e+00> : vector<256x4xf32>
    %123 = tpu.matmul %120, %122, %cst_141 {dimension_numbers = #tpu.dot_dimension_numbers<[1], [0], [0], [1], [0, 0, 1, 1], [], []>} : vector<256x4xf32>, vector<4x4xf32>, vector<256x4xf32> -> vector<256x4xf32>
    %124 = arith.addf %118, %123 : vector<256x4xf32>
    %c2_142 = arith.constant 2 : index
    %c2_143 = arith.constant 2 : index
    %c0_144 = arith.constant 0 : index
    %125 = vector.load %arg14[%c2_142, %c2_143, %c0_144] : memref<18x18x4xf32, #tpu.memory_space<vmem>>, vector<16x16x4xf32>
    %126 = vector.shape_cast %125 : vector<16x16x4xf32> to vector<256x4xf32>
    %c8_145 = arith.constant 8 : index
    %c0_146 = arith.constant 0 : index
    %c0_147 = arith.constant 0 : index
    %127 = vector.load %arg5[%c8_145, %c0_146, %c0_147] : memref<9x4x4xf32, #tpu.memory_space<vmem>>, vector<1x4x4xf32>
    %128 = vector.shape_cast %127 : vector<1x4x4xf32> to vector<4x4xf32>
    %cst_148 = arith.constant dense<0.000000e+00> : vector<256x4xf32>
    %129 = tpu.matmul %126, %128, %cst_148 {dimension_numbers = #tpu.dot_dimension_numbers<[1], [0], [0], [1], [0, 0, 1, 1], [], []>} : vector<256x4xf32>, vector<4x4xf32>, vector<256x4xf32> -> vector<256x4xf32>
    %130 = arith.addf %124, %129 : vector<256x4xf32>
    %c0_149 = arith.constant 0 : index
    %c0_150 = arith.constant 0 : index
    %131 = vector.load %arg6[%c0_149, %c0_150] : memref<1x4xf32, #tpu.memory_space<vmem>>, vector<1x4xf32>
    %132 = vector.broadcast %131 : vector<1x4xf32> to vector<256x4xf32>
    %133 = arith.addf %130, %132 : vector<256x4xf32>
    %134 = arith.addf %133, %13 : vector<256x4xf32>
    %135 = arith.addf %134, %10 : vector<256x4xf32>
    %c0_151 = arith.constant 0 : index
    %c0_152 = arith.constant 0 : index
    %136 = vector.load %arg15[%c0_151, %c0_152] : memref<256x4xf32, #tpu.memory_space<vmem>>, vector<256x4xf32>
    tpu.vector_store %arg15[%c0_151, %c0_152], %135 {strides = array<i32>} : memref<256x4xf32, #tpu.memory_space<vmem>>, vector<256x4xf32>,
    %c0_153 = arith.constant 0 : index
    %c0_154 = arith.constant 0 : index
    %137 = vector.load %arg15[%c0_153, %c0_154] : memref<256x4xf32, #tpu.memory_space<vmem>>, vector<256x4xf32>
    %cst_155 = arith.constant 0.000000e+00 : f32
    %138 = vector.broadcast %cst_155 : f32 to vector<256x4xf32>
    %139 = arith.maximumf %137, %138 : vector<256x4xf32>
    %140 = vector.shape_cast %139 : vector<256x4xf32> to vector<16x16x4xf32>
    %c1_156 = arith.constant 1 : index
    %c1_157 = arith.constant 1 : index
    %c0_158 = arith.constant 0 : index
    %141 = vector.load %arg14[%c1_156, %c1_157, %c0_158] : memref<18x18x4xf32, #tpu.memory_space<vmem>>, vector<16x16x4xf32>
    tpu.vector_store %arg14[%c1_156, %c1_157, %c0_158], %140 {strides = array<i32>} : memref<18x18x4xf32, #tpu.memory_space<vmem>>, vector<16x16x4xf32>,
    %c0_159 = arith.constant 0 : index
    %c0_160 = arith.constant 0 : index
    %c0_161 = arith.constant 0 : index
    %142 = vector.load %arg14[%c0_159, %c0_160, %c0_161] : memref<18x18x4xf32, #tpu.memory_space<vmem>>, vector<16x16x4xf32>
    %143 = vector.shape_cast %142 : vector<16x16x4xf32> to vector<256x4xf32>
    %c0_162 = arith.constant 0 : index
    %c0_163 = arith.constant 0 : index
    %c0_164 = arith.constant 0 : index
    %144 = vector.load %arg7[%c0_162, %c0_163, %c0_164] : memref<9x4x4xf32, #tpu.memory_space<vmem>>, vector<1x4x4xf32>
    %145 = vector.shape_cast %144 : vector<1x4x4xf32> to vector<4x4xf32>
    %cst_165 = arith.constant dense<0.000000e+00> : vector<256x4xf32>
    %146 = tpu.matmul %143, %145, %cst_165 {dimension_numbers = #tpu.dot_dimension_numbers<[1], [0], [0], [1], [0, 0, 1, 1], [], []>} : vector<256x4xf32>, vector<4x4xf32>, vector<256x4xf32> -> vector<256x4xf32>
    %c0_166 = arith.constant 0 : index
    %c1_167 = arith.constant 1 : index
    %c0_168 = arith.constant 0 : index
    %147 = vector.load %arg14[%c0_166, %c1_167, %c0_168] : memref<18x18x4xf32, #tpu.memory_space<vmem>>, vector<16x16x4xf32>
    %148 = vector.shape_cast %147 : vector<16x16x4xf32> to vector<256x4xf32>
    %c1_169 = arith.constant 1 : index
    %c0_170 = arith.constant 0 : index
    %c0_171 = arith.constant 0 : index
    %149 = vector.load %arg7[%c1_169, %c0_170, %c0_171] : memref<9x4x4xf32, #tpu.memory_space<vmem>>, vector<1x4x4xf32>
    %150 = vector.shape_cast %149 : vector<1x4x4xf32> to vector<4x4xf32>
    %cst_172 = arith.constant dense<0.000000e+00> : vector<256x4xf32>
    %151 = tpu.matmul %148, %150, %cst_172 {dimension_numbers = #tpu.dot_dimension_numbers<[1], [0], [0], [1], [0, 0, 1, 1], [], []>} : vector<256x4xf32>, vector<4x4xf32>, vector<256x4xf32> -> vector<256x4xf32>
    %152 = arith.addf %146, %151 : vector<256x4xf32>
    %c0_173 = arith.constant 0 : index
    %c2_174 = arith.constant 2 : index
    %c0_175 = arith.constant 0 : index
    %153 = vector.load %arg14[%c0_173, %c2_174, %c0_175] : memref<18x18x4xf32, #tpu.memory_space<vmem>>, vector<16x16x4xf32>
    %154 = vector.shape_cast %153 : vector<16x16x4xf32> to vector<256x4xf32>
    %c2_176 = arith.constant 2 : index
    %c0_177 = arith.constant 0 : index
    %c0_178 = arith.constant 0 : index
    %155 = vector.load %arg7[%c2_176, %c0_177, %c0_178] : memref<9x4x4xf32, #tpu.memory_space<vmem>>, vector<1x4x4xf32>
    %156 = vector.shape_cast %155 : vector<1x4x4xf32> to vector<4x4xf32>
    %cst_179 = arith.constant dense<0.000000e+00> : vector<256x4xf32>
    %157 = tpu.matmul %154, %156, %cst_179 {dimension_numbers = #tpu.dot_dimension_numbers<[1], [0], [0], [1], [0, 0, 1, 1], [], []>} : vector<256x4xf32>, vector<4x4xf32>, vector<256x4xf32> -> vector<256x4xf32>
    %158 = arith.addf %152, %157 : vector<256x4xf32>
    %c1_180 = arith.constant 1 : index
    %c0_181 = arith.constant 0 : index
    %c0_182 = arith.constant 0 : index
    %159 = vector.load %arg14[%c1_180, %c0_181, %c0_182] : memref<18x18x4xf32, #tpu.memory_space<vmem>>, vector<16x16x4xf32>
    %160 = vector.shape_cast %159 : vector<16x16x4xf32> to vector<256x4xf32>
    %c3_183 = arith.constant 3 : index
    %c0_184 = arith.constant 0 : index
    %c0_185 = arith.constant 0 : index
    %161 = vector.load %arg7[%c3_183, %c0_184, %c0_185] : memref<9x4x4xf32, #tpu.memory_space<vmem>>, vector<1x4x4xf32>
    %162 = vector.shape_cast %161 : vector<1x4x4xf32> to vector<4x4xf32>
    %cst_186 = arith.constant dense<0.000000e+00> : vector<256x4xf32>
    %163 = tpu.matmul %160, %162, %cst_186 {dimension_numbers = #tpu.dot_dimension_numbers<[1], [0], [0], [1], [0, 0, 1, 1], [], []>} : vector<256x4xf32>, vector<4x4xf32>, vector<256x4xf32> -> vector<256x4xf32>
    %164 = arith.addf %158, %163 : vector<256x4xf32>
    %c1_187 = arith.constant 1 : index
    %c1_188 = arith.constant 1 : index
    %c0_189 = arith.constant 0 : index
    %165 = vector.load %arg14[%c1_187, %c1_188, %c0_189] : memref<18x18x4xf32, #tpu.memory_space<vmem>>, vector<16x16x4xf32>
    %166 = vector.shape_cast %165 : vector<16x16x4xf32> to vector<256x4xf32>
    %c4_190 = arith.constant 4 : index
    %c0_191 = arith.constant 0 : index
    %c0_192 = arith.constant 0 : index
    %167 = vector.load %arg7[%c4_190, %c0_191, %c0_192] : memref<9x4x4xf32, #tpu.memory_space<vmem>>, vector<1x4x4xf32>
    %168 = vector.shape_cast %167 : vector<1x4x4xf32> to vector<4x4xf32>
    %cst_193 = arith.constant dense<0.000000e+00> : vector<256x4xf32>
    %169 = tpu.matmul %166, %168, %cst_193 {dimension_numbers = #tpu.dot_dimension_numbers<[1], [0], [0], [1], [0, 0, 1, 1], [], []>} : vector<256x4xf32>, vector<4x4xf32>, vector<256x4xf32> -> vector<256x4xf32>
    %170 = arith.addf %164, %169 : vector<256x4xf32>
    %c1_194 = arith.constant 1 : index
    %c2_195 = arith.constant 2 : index
    %c0_196 = arith.constant 0 : index
    %171 = vector.load %arg14[%c1_194, %c2_195, %c0_196] : memref<18x18x4xf32, #tpu.memory_space<vmem>>, vector<16x16x4xf32>
    %172 = vector.shape_cast %171 : vector<16x16x4xf32> to vector<256x4xf32>
    %c5_197 = arith.constant 5 : index
    %c0_198 = arith.constant 0 : index
    %c0_199 = arith.constant 0 : index
    %173 = vector.load %arg7[%c5_197, %c0_198, %c0_199] : memref<9x4x4xf32, #tpu.memory_space<vmem>>, vector<1x4x4xf32>
    %174 = vector.shape_cast %173 : vector<1x4x4xf32> to vector<4x4xf32>
    %cst_200 = arith.constant dense<0.000000e+00> : vector<256x4xf32>
    %175 = tpu.matmul %172, %174, %cst_200 {dimension_numbers = #tpu.dot_dimension_numbers<[1], [0], [0], [1], [0, 0, 1, 1], [], []>} : vector<256x4xf32>, vector<4x4xf32>, vector<256x4xf32> -> vector<256x4xf32>
    %176 = arith.addf %170, %175 : vector<256x4xf32>
    %c2_201 = arith.constant 2 : index
    %c0_202 = arith.constant 0 : index
    %c0_203 = arith.constant 0 : index
    %177 = vector.load %arg14[%c2_201, %c0_202, %c0_203] : memref<18x18x4xf32, #tpu.memory_space<vmem>>, vector<16x16x4xf32>
    %178 = vector.shape_cast %177 : vector<16x16x4xf32> to vector<256x4xf32>
    %c6_204 = arith.constant 6 : index
    %c0_205 = arith.constant 0 : index
    %c0_206 = arith.constant 0 : index
    %179 = vector.load %arg7[%c6_204, %c0_205, %c0_206] : memref<9x4x4xf32, #tpu.memory_space<vmem>>, vector<1x4x4xf32>
    %180 = vector.shape_cast %179 : vector<1x4x4xf32> to vector<4x4xf32>
    %cst_207 = arith.constant dense<0.000000e+00> : vector<256x4xf32>
    %181 = tpu.matmul %178, %180, %cst_207 {dimension_numbers = #tpu.dot_dimension_numbers<[1], [0], [0], [1], [0, 0, 1, 1], [], []>} : vector<256x4xf32>, vector<4x4xf32>, vector<256x4xf32> -> vector<256x4xf32>
    %182 = arith.addf %176, %181 : vector<256x4xf32>
    %c2_208 = arith.constant 2 : index
    %c1_209 = arith.constant 1 : index
    %c0_210 = arith.constant 0 : index
    %183 = vector.load %arg14[%c2_208, %c1_209, %c0_210] : memref<18x18x4xf32, #tpu.memory_space<vmem>>, vector<16x16x4xf32>
    %184 = vector.shape_cast %183 : vector<16x16x4xf32> to vector<256x4xf32>
    %c7_211 = arith.constant 7 : index
    %c0_212 = arith.constant 0 : index
    %c0_213 = arith.constant 0 : index
    %185 = vector.load %arg7[%c7_211, %c0_212, %c0_213] : memref<9x4x4xf32, #tpu.memory_space<vmem>>, vector<1x4x4xf32>
    %186 = vector.shape_cast %185 : vector<1x4x4xf32> to vector<4x4xf32>
    %cst_214 = arith.constant dense<0.000000e+00> : vector<256x4xf32>
    %187 = tpu.matmul %184, %186, %cst_214 {dimension_numbers = #tpu.dot_dimension_numbers<[1], [0], [0], [1], [0, 0, 1, 1], [], []>} : vector<256x4xf32>, vector<4x4xf32>, vector<256x4xf32> -> vector<256x4xf32>
    %188 = arith.addf %182, %187 : vector<256x4xf32>
    %c2_215 = arith.constant 2 : index
    %c2_216 = arith.constant 2 : index
    %c0_217 = arith.constant 0 : index
    %189 = vector.load %arg14[%c2_215, %c2_216, %c0_217] : memref<18x18x4xf32, #tpu.memory_space<vmem>>, vector<16x16x4xf32>
    %190 = vector.shape_cast %189 : vector<16x16x4xf32> to vector<256x4xf32>
    %c8_218 = arith.constant 8 : index
    %c0_219 = arith.constant 0 : index
    %c0_220 = arith.constant 0 : index
    %191 = vector.load %arg7[%c8_218, %c0_219, %c0_220] : memref<9x4x4xf32, #tpu.memory_space<vmem>>, vector<1x4x4xf32>
    %192 = vector.shape_cast %191 : vector<1x4x4xf32> to vector<4x4xf32>
    %cst_221 = arith.constant dense<0.000000e+00> : vector<256x4xf32>
    %193 = tpu.matmul %190, %192, %cst_221 {dimension_numbers = #tpu.dot_dimension_numbers<[1], [0], [0], [1], [0, 0, 1, 1], [], []>} : vector<256x4xf32>, vector<4x4xf32>, vector<256x4xf32> -> vector<256x4xf32>
    %194 = arith.addf %188, %193 : vector<256x4xf32>
    %c0_222 = arith.constant 0 : index
    %c0_223 = arith.constant 0 : index
    %195 = vector.load %arg8[%c0_222, %c0_223] : memref<1x4xf32, #tpu.memory_space<vmem>>, vector<1x4xf32>
    %196 = vector.broadcast %195 : vector<1x4xf32> to vector<256x4xf32>
    %197 = arith.addf %194, %196 : vector<256x4xf32>
    %cst_224 = arith.constant 0.000000e+00 : f32
    %198 = vector.broadcast %cst_224 : f32 to vector<256x4xf32>
    %199 = arith.maximumf %197, %198 : vector<256x4xf32>
    %200 = vector.shape_cast %199 : vector<256x4xf32> to vector<16x16x4xf32>
    %c1_225 = arith.constant 1 : index
    %c1_226 = arith.constant 1 : index
    %c0_227 = arith.constant 0 : index
    %201 = vector.load %arg14[%c1_225, %c1_226, %c0_227] : memref<18x18x4xf32, #tpu.memory_space<vmem>>, vector<16x16x4xf32>
    tpu.vector_store %arg14[%c1_225, %c1_226, %c0_227], %200 {strides = array<i32>} : memref<18x18x4xf32, #tpu.memory_space<vmem>>, vector<16x16x4xf32>,
    %c0_228 = arith.constant 0 : index
    %c0_229 = arith.constant 0 : index
    %c0_230 = arith.constant 0 : index
    %202 = vector.load %arg14[%c0_228, %c0_229, %c0_230] : memref<18x18x4xf32, #tpu.memory_space<vmem>>, vector<16x16x4xf32>
    %203 = vector.shape_cast %202 : vector<16x16x4xf32> to vector<256x4xf32>
    %c0_231 = arith.constant 0 : index
    %c0_232 = arith.constant 0 : index
    %c0_233 = arith.constant 0 : index
    %204 = vector.load %arg9[%c0_231, %c0_232, %c0_233] : memref<9x4x4xf32, #tpu.memory_space<vmem>>, vector<1x4x4xf32>
    %205 = vector.shape_cast %204 : vector<1x4x4xf32> to vector<4x4xf32>
    %cst_234 = arith.constant dense<0.000000e+00> : vector<256x4xf32>
    %206 = tpu.matmul %203, %205, %cst_234 {dimension_numbers = #tpu.dot_dimension_numbers<[1], [0], [0], [1], [0, 0, 1, 1], [], []>} : vector<256x4xf32>, vector<4x4xf32>, vector<256x4xf32> -> vector<256x4xf32>
    %c0_235 = arith.constant 0 : index
    %c1_236 = arith.constant 1 : index
    %c0_237 = arith.constant 0 : index
    %207 = vector.load %arg14[%c0_235, %c1_236, %c0_237] : memref<18x18x4xf32, #tpu.memory_space<vmem>>, vector<16x16x4xf32>
    %208 = vector.shape_cast %207 : vector<16x16x4xf32> to vector<256x4xf32>
    %c1_238 = arith.constant 1 : index
    %c0_239 = arith.constant 0 : index
    %c0_240 = arith.constant 0 : index
    %209 = vector.load %arg9[%c1_238, %c0_239, %c0_240] : memref<9x4x4xf32, #tpu.memory_space<vmem>>, vector<1x4x4xf32>
    %210 = vector.shape_cast %209 : vector<1x4x4xf32> to vector<4x4xf32>
    %cst_241 = arith.constant dense<0.000000e+00> : vector<256x4xf32>
    %211 = tpu.matmul %208, %210, %cst_241 {dimension_numbers = #tpu.dot_dimension_numbers<[1], [0], [0], [1], [0, 0, 1, 1], [], []>} : vector<256x4xf32>, vector<4x4xf32>, vector<256x4xf32> -> vector<256x4xf32>
    %212 = arith.addf %206, %211 : vector<256x4xf32>
    %c0_242 = arith.constant 0 : index
    %c2_243 = arith.constant 2 : index
    %c0_244 = arith.constant 0 : index
    %213 = vector.load %arg14[%c0_242, %c2_243, %c0_244] : memref<18x18x4xf32, #tpu.memory_space<vmem>>, vector<16x16x4xf32>
    %214 = vector.shape_cast %213 : vector<16x16x4xf32> to vector<256x4xf32>
    %c2_245 = arith.constant 2 : index
    %c0_246 = arith.constant 0 : index
    %c0_247 = arith.constant 0 : index
    %215 = vector.load %arg9[%c2_245, %c0_246, %c0_247] : memref<9x4x4xf32, #tpu.memory_space<vmem>>, vector<1x4x4xf32>
    %216 = vector.shape_cast %215 : vector<1x4x4xf32> to vector<4x4xf32>
    %cst_248 = arith.constant dense<0.000000e+00> : vector<256x4xf32>
    %217 = tpu.matmul %214, %216, %cst_248 {dimension_numbers = #tpu.dot_dimension_numbers<[1], [0], [0], [1], [0, 0, 1, 1], [], []>} : vector<256x4xf32>, vector<4x4xf32>, vector<256x4xf32> -> vector<256x4xf32>
    %218 = arith.addf %212, %217 : vector<256x4xf32>
    %c1_249 = arith.constant 1 : index
    %c0_250 = arith.constant 0 : index
    %c0_251 = arith.constant 0 : index
    %219 = vector.load %arg14[%c1_249, %c0_250, %c0_251] : memref<18x18x4xf32, #tpu.memory_space<vmem>>, vector<16x16x4xf32>
    %220 = vector.shape_cast %219 : vector<16x16x4xf32> to vector<256x4xf32>
    %c3_252 = arith.constant 3 : index
    %c0_253 = arith.constant 0 : index
    %c0_254 = arith.constant 0 : index
    %221 = vector.load %arg9[%c3_252, %c0_253, %c0_254] : memref<9x4x4xf32, #tpu.memory_space<vmem>>, vector<1x4x4xf32>
    %222 = vector.shape_cast %221 : vector<1x4x4xf32> to vector<4x4xf32>
    %cst_255 = arith.constant dense<0.000000e+00> : vector<256x4xf32>
    %223 = tpu.matmul %220, %222, %cst_255 {dimension_numbers = #tpu.dot_dimension_numbers<[1], [0], [0], [1], [0, 0, 1, 1], [], []>} : vector<256x4xf32>, vector<4x4xf32>, vector<256x4xf32> -> vector<256x4xf32>
    %224 = arith.addf %218, %223 : vector<256x4xf32>
    %c1_256 = arith.constant 1 : index
    %c1_257 = arith.constant 1 : index
    %c0_258 = arith.constant 0 : index
    %225 = vector.load %arg14[%c1_256, %c1_257, %c0_258] : memref<18x18x4xf32, #tpu.memory_space<vmem>>, vector<16x16x4xf32>
    %226 = vector.shape_cast %225 : vector<16x16x4xf32> to vector<256x4xf32>
    %c4_259 = arith.constant 4 : index
    %c0_260 = arith.constant 0 : index
    %c0_261 = arith.constant 0 : index
    %227 = vector.load %arg9[%c4_259, %c0_260, %c0_261] : memref<9x4x4xf32, #tpu.memory_space<vmem>>, vector<1x4x4xf32>
    %228 = vector.shape_cast %227 : vector<1x4x4xf32> to vector<4x4xf32>
    %cst_262 = arith.constant dense<0.000000e+00> : vector<256x4xf32>
    %229 = tpu.matmul %226, %228, %cst_262 {dimension_numbers = #tpu.dot_dimension_numbers<[1], [0], [0], [1], [0, 0, 1, 1], [], []>} : vector<256x4xf32>, vector<4x4xf32>, vector<256x4xf32> -> vector<256x4xf32>
    %230 = arith.addf %224, %229 : vector<256x4xf32>
    %c1_263 = arith.constant 1 : index
    %c2_264 = arith.constant 2 : index
    %c0_265 = arith.constant 0 : index
    %231 = vector.load %arg14[%c1_263, %c2_264, %c0_265] : memref<18x18x4xf32, #tpu.memory_space<vmem>>, vector<16x16x4xf32>
    %232 = vector.shape_cast %231 : vector<16x16x4xf32> to vector<256x4xf32>
    %c5_266 = arith.constant 5 : index
    %c0_267 = arith.constant 0 : index
    %c0_268 = arith.constant 0 : index
    %233 = vector.load %arg9[%c5_266, %c0_267, %c0_268] : memref<9x4x4xf32, #tpu.memory_space<vmem>>, vector<1x4x4xf32>
    %234 = vector.shape_cast %233 : vector<1x4x4xf32> to vector<4x4xf32>
    %cst_269 = arith.constant dense<0.000000e+00> : vector<256x4xf32>
    %235 = tpu.matmul %232, %234, %cst_269 {dimension_numbers = #tpu.dot_dimension_numbers<[1], [0], [0], [1], [0, 0, 1, 1], [], []>} : vector<256x4xf32>, vector<4x4xf32>, vector<256x4xf32> -> vector<256x4xf32>
    %236 = arith.addf %230, %235 : vector<256x4xf32>
    %c2_270 = arith.constant 2 : index
    %c0_271 = arith.constant 0 : index
    %c0_272 = arith.constant 0 : index
    %237 = vector.load %arg14[%c2_270, %c0_271, %c0_272] : memref<18x18x4xf32, #tpu.memory_space<vmem>>, vector<16x16x4xf32>
    %238 = vector.shape_cast %237 : vector<16x16x4xf32> to vector<256x4xf32>
    %c6_273 = arith.constant 6 : index
    %c0_274 = arith.constant 0 : index
    %c0_275 = arith.constant 0 : index
    %239 = vector.load %arg9[%c6_273, %c0_274, %c0_275] : memref<9x4x4xf32, #tpu.memory_space<vmem>>, vector<1x4x4xf32>
    %240 = vector.shape_cast %239 : vector<1x4x4xf32> to vector<4x4xf32>
    %cst_276 = arith.constant dense<0.000000e+00> : vector<256x4xf32>
    %241 = tpu.matmul %238, %240, %cst_276 {dimension_numbers = #tpu.dot_dimension_numbers<[1], [0], [0], [1], [0, 0, 1, 1], [], []>} : vector<256x4xf32>, vector<4x4xf32>, vector<256x4xf32> -> vector<256x4xf32>
    %242 = arith.addf %236, %241 : vector<256x4xf32>
    %c2_277 = arith.constant 2 : index
    %c1_278 = arith.constant 1 : index
    %c0_279 = arith.constant 0 : index
    %243 = vector.load %arg14[%c2_277, %c1_278, %c0_279] : memref<18x18x4xf32, #tpu.memory_space<vmem>>, vector<16x16x4xf32>
    %244 = vector.shape_cast %243 : vector<16x16x4xf32> to vector<256x4xf32>
    %c7_280 = arith.constant 7 : index
    %c0_281 = arith.constant 0 : index
    %c0_282 = arith.constant 0 : index
    %245 = vector.load %arg9[%c7_280, %c0_281, %c0_282] : memref<9x4x4xf32, #tpu.memory_space<vmem>>, vector<1x4x4xf32>
    %246 = vector.shape_cast %245 : vector<1x4x4xf32> to vector<4x4xf32>
    %cst_283 = arith.constant dense<0.000000e+00> : vector<256x4xf32>
    %247 = tpu.matmul %244, %246, %cst_283 {dimension_numbers = #tpu.dot_dimension_numbers<[1], [0], [0], [1], [0, 0, 1, 1], [], []>} : vector<256x4xf32>, vector<4x4xf32>, vector<256x4xf32> -> vector<256x4xf32>
    %248 = arith.addf %242, %247 : vector<256x4xf32>
    %c2_284 = arith.constant 2 : index
    %c2_285 = arith.constant 2 : index
    %c0_286 = arith.constant 0 : index
    %249 = vector.load %arg14[%c2_284, %c2_285, %c0_286] : memref<18x18x4xf32, #tpu.memory_space<vmem>>, vector<16x16x4xf32>
    %250 = vector.shape_cast %249 : vector<16x16x4xf32> to vector<256x4xf32>
    %c8_287 = arith.constant 8 : index
    %c0_288 = arith.constant 0 : index
    %c0_289 = arith.constant 0 : index
    %251 = vector.load %arg9[%c8_287, %c0_288, %c0_289] : memref<9x4x4xf32, #tpu.memory_space<vmem>>, vector<1x4x4xf32>
    %252 = vector.shape_cast %251 : vector<1x4x4xf32> to vector<4x4xf32>
    %cst_290 = arith.constant dense<0.000000e+00> : vector<256x4xf32>
    %253 = tpu.matmul %250, %252, %cst_290 {dimension_numbers = #tpu.dot_dimension_numbers<[1], [0], [0], [1], [0, 0, 1, 1], [], []>} : vector<256x4xf32>, vector<4x4xf32>, vector<256x4xf32> -> vector<256x4xf32>
    %254 = arith.addf %248, %253 : vector<256x4xf32>
    %c0_291 = arith.constant 0 : index
    %c0_292 = arith.constant 0 : index
    %255 = vector.load %arg10[%c0_291, %c0_292] : memref<1x4xf32, #tpu.memory_space<vmem>>, vector<1x4xf32>
    %256 = vector.broadcast %255 : vector<1x4xf32> to vector<256x4xf32>
    %257 = arith.addf %254, %256 : vector<256x4xf32>
    %c0_293 = arith.constant 0 : index
    %c0_294 = arith.constant 0 : index
    %258 = vector.load %arg15[%c0_293, %c0_294] : memref<256x4xf32, #tpu.memory_space<vmem>>, vector<256x4xf32>
    %259 = arith.addf %257, %258 : vector<256x4xf32>
    %c0_295 = arith.constant 0 : index
    %c0_296 = arith.constant 0 : index
    %260 = vector.load %arg11[%c0_295, %c0_296] : memref<4x4xf32, #tpu.memory_space<vmem>>, vector<4x4xf32>
    %cst_297 = arith.constant dense<0.000000e+00> : vector<256x4xf32>
    %261 = tpu.matmul %259, %260, %cst_297 {dimension_numbers = #tpu.dot_dimension_numbers<[1], [0], [0], [1], [0, 0, 1, 1], [], []>} : vector<256x4xf32>, vector<4x4xf32>, vector<256x4xf32> -> vector<256x4xf32>
    %c0_298 = arith.constant 0 : index
    %c0_299 = arith.constant 0 : index
    %262 = vector.load %arg12[%c0_298, %c0_299] : memref<1x4xf32, #tpu.memory_space<vmem>>, vector<1x4xf32>
    %263 = vector.broadcast %262 : vector<1x4xf32> to vector<256x4xf32>
    %264 = arith.addf %261, %263 : vector<256x4xf32>
    %265 = tpu.iota {dimensions = array<i32: 0>} : vector<256x1xi32>
    %266 = tpu.iota {dimensions = array<i32: 0>} : vector<16x1xi32>
    %267 = tpu.concatenate %266, %266, %266, %266, %266, %266, %266, %266, %266, %266, %266, %266, %266, %266, %266, %266 in 0 : vector<16x1xi32>, vector<16x1xi32>, vector<16x1xi32>, vector<16x1xi32>, vector<16x1xi32>, vector<16x1xi32>, vector<16x1xi32>, vector<16x1xi32>, vector<16x1xi32>, vector<16x1xi32>, vector<16x1xi32>, vector<16x1xi32>, vector<16x1xi32>, vector<16x1xi32>, vector<16x1xi32>, vector<16x1xi32> -> vector<256x1xi32>
    %268 = arith.sitofp %267 : vector<256x1xi32> to vector<256x1xf32>
    %269 = arith.subi %265, %267 : vector<256x1xi32>
    %270 = arith.sitofp %269 : vector<256x1xi32> to vector<256x1xf32>
    %cst_300 = arith.constant 6.250000e-02 : f32
    %271 = vector.broadcast %cst_300 : f32 to vector<256x1xf32>
    %272 = arith.mulf %270, %271 : vector<256x1xf32>
    %cst_301 = arith.constant 0.0322580636 : f32
    %273 = vector.broadcast %cst_301 : f32 to vector<256x1xf32>
    %274 = arith.mulf %268, %273 : vector<256x1xf32>
    %cst_302 = arith.constant 1.500000e+01 : f32
    %275 = vector.broadcast %cst_302 : f32 to vector<256x1xf32>
    %276 = arith.subf %275, %268 : vector<256x1xf32>
    %cst_303 = arith.constant 0.0322580636 : f32
    %277 = vector.broadcast %cst_303 : f32 to vector<256x1xf32>
    %278 = arith.mulf %276, %277 : vector<256x1xf32>
    %cst_304 = arith.constant 0.0322580636 : f32
    %279 = vector.broadcast %cst_304 : f32 to vector<256x1xf32>
    %280 = arith.mulf %272, %279 : vector<256x1xf32>
    %cst_305 = arith.constant 1.500000e+01 : f32
    %281 = vector.broadcast %cst_305 : f32 to vector<256x1xf32>
    %282 = arith.subf %281, %272 : vector<256x1xf32>
    %cst_306 = arith.constant 0.0322580636 : f32
    %283 = vector.broadcast %cst_306 : f32 to vector<256x1xf32>
    %284 = arith.mulf %282, %283 : vector<256x1xf32>
    %285 = vector.extract_strided_slice %264 {offsets = [0, 0], sizes = [1, 4], strides = [1, 1]} : vector<256x4xf32> to vector<1x4xf32>
    %286 = vector.extract_strided_slice %264 {offsets = [0, 0], sizes = [255, 4], strides = [1, 1]} : vector<256x4xf32> to vector<255x4xf32>
    %287 = tpu.concatenate %285, %286 in 0 : vector<1x4xf32>, vector<255x4xf32> -> vector<256x4xf32>
    %288 = vector.broadcast %274 : vector<256x1xf32> to vector<256x4xf32>
    %289 = arith.mulf %288, %287 : vector<256x4xf32>
    %cst_307 = arith.constant 1.000000e+00 : f32
    %290 = vector.broadcast %cst_307 : f32 to vector<256x1xf32>
    %291 = arith.subf %290, %274 : vector<256x1xf32>
    %292 = vector.broadcast %291 : vector<256x1xf32> to vector<256x4xf32>
    %293 = arith.mulf %292, %264 : vector<256x4xf32>
    %294 = arith.addf %289, %293 : vector<256x4xf32>
    %cst_308 = arith.constant 1.000000e+00 : f32
    %295 = vector.broadcast %cst_308 : f32 to vector<256x1xf32>
    %296 = arith.subf %295, %278 : vector<256x1xf32>
    %297 = vector.broadcast %296 : vector<256x1xf32> to vector<256x4xf32>
    %298 = arith.mulf %297, %264 : vector<256x4xf32>
    %299 = vector.extract_strided_slice %264 {offsets = [1, 0], sizes = [255, 4], strides = [1, 1]} : vector<256x4xf32> to vector<255x4xf32>
    %300 = vector.extract_strided_slice %264 {offsets = [255, 0], sizes = [1, 4], strides = [1, 1]} : vector<256x4xf32> to vector<1x4xf32>
    %301 = tpu.concatenate %299, %300 in 0 : vector<255x4xf32>, vector<1x4xf32> -> vector<256x4xf32>
    %302 = vector.broadcast %278 : vector<256x1xf32> to vector<256x4xf32>
    %303 = arith.mulf %302, %301 : vector<256x4xf32>
    %304 = arith.addf %298, %303 : vector<256x4xf32>
    %305 = vector.extract_strided_slice %294 {offsets = [0, 0], sizes = [16, 4], strides = [1, 1]} : vector<256x4xf32> to vector<16x4xf32>
    %306 = vector.extract_strided_slice %294 {offsets = [0, 0], sizes = [240, 4], strides = [1, 1]} : vector<256x4xf32> to vector<240x4xf32>
    %307 = tpu.concatenate %305, %306 in 0 : vector<16x4xf32>, vector<240x4xf32> -> vector<256x4xf32>
    %308 = vector.broadcast %280 : vector<256x1xf32> to vector<256x4xf32>
    %309 = arith.mulf %308, %307 : vector<256x4xf32>
    %cst_309 = arith.constant 1.000000e+00 : f32
    %310 = vector.broadcast %cst_309 : f32 to vector<256x1xf32>
    %311 = arith.subf %310, %280 : vector<256x1xf32>
    %312 = vector.broadcast %311 : vector<256x1xf32> to vector<256x4xf32>
    %313 = arith.mulf %312, %294 : vector<256x4xf32>
    %314 = arith.addf %309, %313 : vector<256x4xf32>
    %cst_310 = arith.constant 1.000000e+00 : f32
    %315 = vector.broadcast %cst_310 : f32 to vector<256x1xf32>
    %316 = arith.subf %315, %284 : vector<256x1xf32>
    %317 = vector.broadcast %316 : vector<256x1xf32> to vector<256x4xf32>
    %318 = arith.mulf %317, %294 : vector<256x4xf32>
    %319 = vector.extract_strided_slice %294 {offsets = [16, 0], sizes = [240, 4], strides = [1, 1]} : vector<256x4xf32> to vector<240x4xf32>
    %320 = vector.extract_strided_slice %294 {offsets = [240, 0], sizes = [16, 4], strides = [1, 1]} : vector<256x4xf32> to vector<16x4xf32>
    %321 = tpu.concatenate %319, %320 in 0 : vector<240x4xf32>, vector<16x4xf32> -> vector<256x4xf32>
    %322 = vector.broadcast %284 : vector<256x1xf32> to vector<256x4xf32>
    %323 = arith.mulf %322, %321 : vector<256x4xf32>
    %324 = arith.addf %318, %323 : vector<256x4xf32>
    %325 = vector.extract_strided_slice %304 {offsets = [0, 0], sizes = [16, 4], strides = [1, 1]} : vector<256x4xf32> to vector<16x4xf32>
    %326 = vector.extract_strided_slice %304 {offsets = [0, 0], sizes = [240, 4], strides = [1, 1]} : vector<256x4xf32> to vector<240x4xf32>
    %327 = tpu.concatenate %325, %326 in 0 : vector<16x4xf32>, vector<240x4xf32> -> vector<256x4xf32>
    %328 = vector.broadcast %280 : vector<256x1xf32> to vector<256x4xf32>
    %329 = arith.mulf %328, %327 : vector<256x4xf32>
    %cst_311 = arith.constant 1.000000e+00 : f32
    %330 = vector.broadcast %cst_311 : f32 to vector<256x1xf32>
    %331 = arith.subf %330, %280 : vector<256x1xf32>
    %332 = vector.broadcast %331 : vector<256x1xf32> to vector<256x4xf32>
    %333 = arith.mulf %332, %304 : vector<256x4xf32>
    %334 = arith.addf %329, %333 : vector<256x4xf32>
    %cst_312 = arith.constant 1.000000e+00 : f32
    %335 = vector.broadcast %cst_312 : f32 to vector<256x1xf32>
    %336 = arith.subf %335, %284 : vector<256x1xf32>
    %337 = vector.broadcast %336 : vector<256x1xf32> to vector<256x4xf32>
    %338 = arith.mulf %337, %304 : vector<256x4xf32>
    %339 = vector.extract_strided_slice %304 {offsets = [16, 0], sizes = [240, 4], strides = [1, 1]} : vector<256x4xf32> to vector<240x4xf32>
    %340 = vector.extract_strided_slice %304 {offsets = [240, 0], sizes = [16, 4], strides = [1, 1]} : vector<256x4xf32> to vector<16x4xf32>
    %341 = tpu.concatenate %339, %340 in 0 : vector<240x4xf32>, vector<16x4xf32> -> vector<256x4xf32>
    %342 = vector.broadcast %284 : vector<256x1xf32> to vector<256x4xf32>
    %343 = arith.mulf %342, %341 : vector<256x4xf32>
    %344 = arith.addf %338, %343 : vector<256x4xf32>
    %345 = vector.shape_cast %314 : vector<256x4xf32> to vector<16x16x4xf32>
    %c0_313 = arith.constant 0 : index
    %c0_314 = arith.constant 0 : index
    %c0_315 = arith.constant 0 : index
    %c0_316 = arith.constant 0 : index
    %c0_317 = arith.constant 0 : index
    %c0_318 = arith.constant 0 : index
    %346 = vector.load %arg13[%c0_313, %c0_314, %c0_315, %c0_316, %c0_317, %c0_318] : memref<1x2x16x2x16x4xf32, #tpu.memory_space<vmem>>, vector<1x1x16x1x16x4xf32>
    %347 = vector.shape_cast %346 : vector<1x1x16x1x16x4xf32> to vector<16x16x4xf32>
    %348 = vector.shape_cast %345 : vector<16x16x4xf32> to vector<1x1x16x1x16x4xf32>
    tpu.vector_store %arg13[%c0_313, %c0_314, %c0_315, %c0_316, %c0_317, %c0_318], %348 {strides = array<i32>} : memref<1x2x16x2x16x4xf32, #tpu.memory_space<vmem>>, vector<1x1x16x1x16x4xf32>,
    %349 = vector.shape_cast %334 : vector<256x4xf32> to vector<16x16x4xf32>
    %c0_319 = arith.constant 0 : index
    %c0_320 = arith.constant 0 : index
    %c0_321 = arith.constant 0 : index
    %c1_322 = arith.constant 1 : index
    %c0_323 = arith.constant 0 : index
    %c0_324 = arith.constant 0 : index
    %350 = vector.load %arg13[%c0_319, %c0_320, %c0_321, %c1_322, %c0_323, %c0_324] : memref<1x2x16x2x16x4xf32, #tpu.memory_space<vmem>>, vector<1x1x16x1x16x4xf32>
    %351 = vector.shape_cast %350 : vector<1x1x16x1x16x4xf32> to vector<16x16x4xf32>
    %352 = vector.shape_cast %349 : vector<16x16x4xf32> to vector<1x1x16x1x16x4xf32>
    tpu.vector_store %arg13[%c0_319, %c0_320, %c0_321, %c1_322, %c0_323, %c0_324], %352 {strides = array<i32>} : memref<1x2x16x2x16x4xf32, #tpu.memory_space<vmem>>, vector<1x1x16x1x16x4xf32>,
    %353 = vector.shape_cast %324 : vector<256x4xf32> to vector<16x16x4xf32>
    %c0_325 = arith.constant 0 : index
    %c1_326 = arith.constant 1 : index
    %c0_327 = arith.constant 0 : index
    %c0_328 = arith.constant 0 : index
    %c0_329 = arith.constant 0 : index
    %c0_330 = arith.constant 0 : index
    %354 = vector.load %arg13[%c0_325, %c1_326, %c0_327, %c0_328, %c0_329, %c0_330] : memref<1x2x16x2x16x4xf32, #tpu.memory_space<vmem>>, vector<1x1x16x1x16x4xf32>
    %355 = vector.shape_cast %354 : vector<1x1x16x1x16x4xf32> to vector<16x16x4xf32>
    %356 = vector.shape_cast %353 : vector<16x16x4xf32> to vector<1x1x16x1x16x4xf32>
    tpu.vector_store %arg13[%c0_325, %c1_326, %c0_327, %c0_328, %c0_329, %c0_330], %356 {strides = array<i32>} : memref<1x2x16x2x16x4xf32, #tpu.memory_space<vmem>>, vector<1x1x16x1x16x4xf32>,
    %357 = vector.shape_cast %344 : vector<256x4xf32> to vector<16x16x4xf32>
    %c0_331 = arith.constant 0 : index
    %c1_332 = arith.constant 1 : index
    %c0_333 = arith.constant 0 : index
    %c1_334 = arith.constant 1 : index
    %c0_335 = arith.constant 0 : index
    %c0_336 = arith.constant 0 : index
    %358 = vector.load %arg13[%c0_331, %c1_332, %c0_333, %c1_334, %c0_335, %c0_336] : memref<1x2x16x2x16x4xf32, #tpu.memory_space<vmem>>, vector<1x1x16x1x16x4xf32>
    %359 = vector.shape_cast %358 : vector<1x1x16x1x16x4xf32> to vector<16x16x4xf32>
    %360 = vector.shape_cast %357 : vector<16x16x4xf32> to vector<1x1x16x1x16x4xf32>
    tpu.vector_store %arg13[%c0_331, %c1_332, %c0_333, %c1_334, %c0_335, %c0_336], %360 {strides = array<i32>} : memref<1x2x16x2x16x4xf32, #tpu.memory_space<vmem>>, vector<1x1x16x1x16x4xf32>,
    return
  }
  func.func @transform_0(%arg0: i32) -> (i32, i32, i32, i32) {
    %c0_i32 = arith.constant 0 : i32
    %c0_i32_0 = arith.constant 0 : i32
    %c0_i32_1 = arith.constant 0 : i32
    %c0_i32_2 = arith.constant 0 : i32
    return %arg0, %c0_i32, %c0_i32_0, %c0_i32_1 : i32, i32, i32, i32
  }
  func.func @transform_1(%arg0: i32) -> (i32, i32, i32, i32) {
    %c0_i32 = arith.constant 0 : i32
    %c0_i32_0 = arith.constant 0 : i32
    %c0_i32_1 = arith.constant 0 : i32
    %c0_i32_2 = arith.constant 0 : i32
    return %arg0, %c0_i32, %c0_i32_0, %c0_i32_1 : i32, i32, i32, i32
  }
  func.func @transform_2(%arg0: i32) -> (i32, i32, i32) {
    %c0_i32 = arith.constant 0 : i32
    %c0_i32_0 = arith.constant 0 : i32
    %c0_i32_1 = arith.constant 0 : i32
    %c0_i32_2 = arith.constant 0 : i32
    return %c0_i32, %c0_i32_0, %c0_i32_1 : i32, i32, i32
  }
  func.func @transform_3(%arg0: i32) -> (i32, i32) {
    %c0_i32 = arith.constant 0 : i32
    %c0_i32_0 = arith.constant 0 : i32
    %c0_i32_1 = arith.constant 0 : i32
    return %c0_i32, %c0_i32_0 : i32, i32
  }
  func.func @transform_4(%arg0: i32) -> (i32, i32, i32) {
    %c0_i32 = arith.constant 0 : i32
    %c0_i32_0 = arith.constant 0 : i32
    %c0_i32_1 = arith.constant 0 : i32
    %c0_i32_2 = arith.constant 0 : i32
    return %c0_i32, %c0_i32_0, %c0_i32_1 : i32, i32, i32
  }
  func.func @transform_5(%arg0: i32) -> (i32, i32) {
    %c0_i32 = arith.constant 0 : i32
    %c0_i32_0 = arith.constant 0 : i32
    %c0_i32_1 = arith.constant 0 : i32
    return %c0_i32, %c0_i32_0 : i32, i32
  }
  func.func @transform_6(%arg0: i32) -> (i32, i32, i32) {
    %c0_i32 = arith.constant 0 : i32
    %c0_i32_0 = arith.constant 0 : i32
    %c0_i32_1 = arith.constant 0 : i32
    %c0_i32_2 = arith.constant 0 : i32
    return %c0_i32, %c0_i32_0, %c0_i32_1 : i32, i32, i32
  }
  func.func @transform_7(%arg0: i32) -> (i32, i32) {
    %c0_i32 = arith.constant 0 : i32
    %c0_i32_0 = arith.constant 0 : i32
    %c0_i32_1 = arith.constant 0 : i32
    return %c0_i32, %c0_i32_0 : i32, i32
  }
  func.func @transform_8(%arg0: i32) -> (i32, i32, i32) {
    %c0_i32 = arith.constant 0 : i32
    %c0_i32_0 = arith.constant 0 : i32
    %c0_i32_1 = arith.constant 0 : i32
    %c0_i32_2 = arith.constant 0 : i32
    return %c0_i32, %c0_i32_0, %c0_i32_1 : i32, i32, i32
  }
  func.func @transform_9(%arg0: i32) -> (i32, i32) {
    %c0_i32 = arith.constant 0 : i32
    %c0_i32_0 = arith.constant 0 : i32
    %c0_i32_1 = arith.constant 0 : i32
    return %c0_i32, %c0_i32_0 : i32, i32
  }
  func.func @transform_10(%arg0: i32) -> (i32, i32) {
    %c0_i32 = arith.constant 0 : i32
    %c0_i32_0 = arith.constant 0 : i32
    %c0_i32_1 = arith.constant 0 : i32
    return %c0_i32, %c0_i32_0 : i32, i32
  }
  func.func @transform_11(%arg0: i32) -> (i32, i32) {
    %c0_i32 = arith.constant 0 : i32
    %c0_i32_0 = arith.constant 0 : i32
    %c0_i32_1 = arith.constant 0 : i32
    return %c0_i32, %c0_i32_0 : i32, i32
  }
  func.func @transform_12(%arg0: i32) -> (i32, i32, i32, i32, i32, i32) {
    %c0_i32 = arith.constant 0 : i32
    %c0_i32_0 = arith.constant 0 : i32
    %c0_i32_1 = arith.constant 0 : i32
    %c0_i32_2 = arith.constant 0 : i32
    %c0_i32_3 = arith.constant 0 : i32
    %c0_i32_4 = arith.constant 0 : i32
    return %arg0, %c0_i32, %c0_i32_0, %c0_i32_1, %c0_i32_2, %c0_i32_3 : i32, i32, i32, i32, i32, i32
  }
}

</mosaic_0001>

<bundles_post_ra>
// kernel: tpu_custom_call.1
= control target key start
LH: loop header
LB: loop body
LE: loop exit
PB: predicated region body
PF: predicated region fallthrough
CT: control target
= control target key end

     0   :  { %s22788_s21 = smov 0   ;;  %s27821_s0 = inlined_call_operand.vmem [shape: f32[2,16,16,4], index: 0, kind: input, shape index: {}]   ;;  %s27822_s1 = inlined_call_operand.vmem [shape: f32[2,16,16,4], index: 1, kind: input, shape index: {}]   ;;  %s27823_s2 = inlined_call_operand.vmem [shape: f32[9,4,4], index: 2, kind: input, shape index: {}]   ;;  %s27824_s3 = inlined_call_operand.vmem [shape: f32[1,4], index: 3, kind: input, shape index: {}]   ;;  %s27825_s4 = inlined_call_operand.vmem [shape: f32[9,4,4], index: 4, kind: input, shape index: {}]   ;;  %s27826_s5 = inlined_call_operand.vmem [shape: f32[1,4], index: 5, kind: input, shape index: {}]   ;;  %s27827_s6 = inlined_call_operand.vmem [shape: f32[9,4,4], index: 6, kind: input, shape index: {}]   ;;  %s27828_s7 = inlined_call_operand.vmem [shape: f32[1,4], index: 7, kind: input, shape index: {}]   ;;  %s27829_s8 = inlined_call_operand.vmem [shape: f32[9,4,4], index: 8, kind: input, shape index: {}]   ;;  %s27830_s9 = inlined_call_operand.vmem [shape: f32[1,4], index: 9, kind: input, shape index: {}]   ;;  %s27831_s10 = inlined_call_operand.vmem [shape: f32[4,4], index: 10, kind: input, shape index: {}]   ;;  %s27832_s11 = inlined_call_operand.vmem [shape: f32[1,4], index: 11, kind: input, shape index: {}]   ;;  %s27833_s12 = inlined_call_operand.vmem [shape: f32[2,2,16,2,16,4], index: 12, kind: output, shape index: {}]  }
   0x1 LB: > { %s17201_s22 = sadd.s32 4294967295, %s22719_s21   ;;  %p17205_p0 = scmp.ge.s32.totalorder %s22719_s21, 1  ;;  %s22719_s21 = sphi %s22788_s21, %s22_s21  }
   0x2   : > { %p372_p1 = scmp.lt.s32.totalorder %s22719_s21, 3 }
   0x4   : > { %p373_p2 = pnand %p17205_p0, %p372_p1 }
   0x6   : > { %376 = sbr.rel (%p373_p2) target bundleno = 3358 (0xd1e), region = 68 }
   0xd   : > { %v17212_v0 = vld [vmem:[%s27823_s2 + $0x4] sm:$0xf]  ;;  %vm772_vm0 = vcmask 1043456   ;;  %vm434_vm1 = vcmask 31744   ;;  %vm437_vm2 = vcmask 25600   ;;  %v22721_v1 = vmov 0.0  }
   0xe   : > { %19792 = vmatprep.subr.msk.mxu0 %vm772_vm0, %v17212_v0  ;;  %435 = vst.msk [vmem:[#allocation2] sm:$0xff] %vm434_vm1, %v22721_v1  ;;  %436 = vst.msk [vmem:[#allocation2 + $0x8] sm:$0xff] %vm434_vm1, %v22721_v1  ;;  %v22807_v2 = vld [vmem:[%s27823_s2] sm:$0xf]  ;;  %p22811_p3 = scmp.lt.s32.totalorder %s17201_s22, 1  ;;  %vm443_vm3 = vcmask 24576   ;;  %21642 = vmatprep.subr.msk.mxu1 %vm772_vm0, %v17212_v0 }
   0xf   : > { %440 = vst.msk [vmem:[#allocation2 + $0x198] sm:$0xff] %vm434_vm1, %v22721_v1  ;;  %441 = vst.msk [vmem:[#allocation2 + $0x1a0] sm:$0xff] %vm434_vm1, %v22721_v1  ;;  %19793 = vmatpush3.msk.msra.mxu0 %vm772_vm0, %v17212_v0  ;;  %21643 = vmatpush3.msk.msra.mxu1 %vm772_vm0, %v17212_v0  ;;  %v22876_v6 = vld [vmem:[%s27823_s2 + $0x8] sm:$0xf]  ;;  %vm15491_vm4 = vcmask 1040384   ;;  %vm15750_vm5 = vcmask 1046528  }
  0x10   : > { %438 = vst.msk [vmem:[#allocation2 + $0x10] sm:$0x3] %vm437_vm2, %v22721_v1  ;;  %442 = vst.msk [vmem:[#allocation2 + $0x1a8] sm:$0x3] %vm437_vm2, %v22721_v1  ;;  %19842 = vmatprep.subr.msk.mxu0 %vm772_vm0, %v22807_v2  ;;  %s28488_s22 = smov (!%p22811_p3, %s17201_s22), 1 }
  0x11   : > { %444 = vst.msk [vmem:[#allocation2] sm:$0x1] %vm443_vm3, %v22721_v1  ;;  %445 = vst.msk [vmem:[#allocation2 + $0x18] sm:$0x1] %vm443_vm3, %v22721_v1  ;;  %s18568_s28 = sshll.u32 %s28488_s22, 8  ;;  %s18570_s23 = sshll.u32 %s28488_s22, 10 }
  0x12   : > { %446 = vst.msk [vmem:[#allocation2 + $0x30] sm:$0x1] %vm443_vm3, %v22721_v1  ;;  %447 = vst.msk [vmem:[#allocation2 + $0x48] sm:$0x1] %vm443_vm3, %v22721_v1  ;;  %s22868_s13 = scalar_lea.vmem %s27822_s1, %s18568_s28  ;;  %s24672_s16 = scalar_lea.vmem %s27821_s0, %s18568_s28 }
  0x13   : > { %448 = vst.msk [vmem:[#allocation2 + $0x60] sm:$0x1] %vm443_vm3, %v22721_v1  ;;  %449 = vst.msk [vmem:[#allocation2 + $0x78] sm:$0x1] %vm443_vm3, %v22721_v1  ;;  %v512_v3 = vld [vmem:[%s22868_s13] sm:$0xff]  ;;  %v513_v4 = vld [vmem:[%s22868_s13 + $0x8] sm:$0xff]  ;;  %s26846_s25 = scalar_lea.vmem %s27833_s12, %s18570_s23 }
  0x14   : > { %450 = vst.msk [vmem:[#allocation2 + $0x90] sm:$0x1] %vm443_vm3, %v22721_v1  ;;  %451 = vst.msk [vmem:[#allocation2 + $0xa8] sm:$0x1] %vm443_vm3, %v22721_v1  ;;  %v514_v5 = vld [vmem:[%s22868_s13 + $0x10] sm:$0xff]  ;;  %v544_v9 = vmax.f32 %v512_v3, 0.0 }
  0x15   : > { %452 = vst.msk [vmem:[#allocation2 + $0xc0] sm:$0x1] %vm443_vm3, %v22721_v1  ;;  %453 = vst.msk [vmem:[#allocation2 + $0xd8] sm:$0x1] %vm443_vm3, %v22721_v1  ;;  %v642_v7 = vld [vmem:[#allocation2 + $0x1] sm:$0xff]  ;;  %v545_v10 = vmax.f32 %v513_v4, 0.0 }
  0x16   : > { %454 = vst.msk [vmem:[#allocation2 + $0xf0] sm:$0x1] %vm443_vm3, %v22721_v1  ;;  %455 = vst.msk [vmem:[#allocation2 + $0x108] sm:$0x1] %vm443_vm3, %v22721_v1  ;;  %v546_v11 = vmax.f32 %v514_v5, 0.0  ;;  %v515_v12 = vld [vmem:[%s22868_s13 + $0x18] sm:$0xff]  ;;  %19794 = vmatprep.mubr.msk.f32.mxu0 %vm434_vm1, %v642_v7 }
  0x17   : > { %456 = vst.msk [vmem:[#allocation2 + $0x120] sm:$0x1] %vm443_vm3, %v22721_v1  ;;  %457 = vst.msk [vmem:[#allocation2 + $0x138] sm:$0x1] %vm443_vm3, %v22721_v1  ;;  %v643_v8 = vld [vmem:[#allocation2 + $0x9] sm:$0xff]  ;;  %v547_v13 = vmax.f32 %v515_v12, 0.0 }
  0x18   : > { %458 = vst.msk [vmem:[#allocation2 + $0x150] sm:$0x1] %vm443_vm3, %v22721_v1  ;;  %459 = vst.msk [vmem:[#allocation2 + $0x168] sm:$0x1] %vm443_vm3, %v22721_v1  ;;  %v516_v14 = vld [vmem:[%s22868_s13 + $0x20] sm:$0xff]  ;;  %v517_v15 = vld [vmem:[%s22868_s13 + $0x28] sm:$0xff]  ;;  %19795 = vmatmul.mubr.msk.f32.vlgmr.msra.gmra.mrb[0].mxu0 %vm434_vm1, %v643_v8 }
  0x19   : > { %460 = vst.msk [vmem:[#allocation2 + $0x180] sm:$0x1] %vm443_vm3, %v22721_v1  ;;  %461 = vst.msk [vmem:[#allocation2 + $0x198] sm:$0x1] %vm443_vm3, %v22721_v1  ;;  %v518_v16 = vld [vmem:[%s22868_s13 + $0x30] sm:$0xff]  ;;  %v548_v17 = vmax.f32 %v516_v14, 0.0  ;;  %19843 = vmatpush3.msk.msra.mxu0 %vm772_vm0, %v22807_v2 }
  0x1a   : > { %462 = vst.msk [vmem:[#allocation2 + $0x11] sm:$0x1] %vm443_vm3, %v22721_v1  ;;  %463 = vst.msk [vmem:[#allocation2 + $0x29] sm:$0x1] %vm443_vm3, %v22721_v1  ;;  %v549_v18 = vmax.f32 %v517_v15, 0.0  ;;  %v550_v19 = vmax.f32 %v518_v16, 0.0  ;;  %19892 = vmatprep.subr.msk.mxu0 %vm772_vm0, %v22876_v6 }
  0x1b   : > { %464 = vst.msk [vmem:[#allocation2 + $0x41] sm:$0x1] %vm443_vm3, %v22721_v1  ;;  %465 = vst.msk [vmem:[#allocation2 + $0x59] sm:$0x1] %vm443_vm3, %v22721_v1  ;;  %v519_v20 = vld [vmem:[%s22868_s13 + $0x38] sm:$0xff]  ;;  %v520_v21 = vld [vmem:[%s22868_s13 + $0x40] sm:$0xff] }
  0x1c   : > { %466 = vst.msk [vmem:[#allocation2 + $0x71] sm:$0x1] %vm443_vm3, %v22721_v1  ;;  %467 = vst.msk [vmem:[#allocation2 + $0x89] sm:$0x1] %vm443_vm3, %v22721_v1  ;;  %v521_v22 = vld [vmem:[%s22868_s13 + $0x48] sm:$0xff]  ;;  %v551_v23 = vmax.f32 %v519_v20, 0.0 }
  0x1d   : > { %468 = vst.msk [vmem:[#allocation2 + $0xa1] sm:$0x1] %vm443_vm3, %v22721_v1  ;;  %469 = vst.msk [vmem:[#allocation2 + $0xb9] sm:$0x1] %vm443_vm3, %v22721_v1  ;;  %v552_v24 = vmax.f32 %v520_v21, 0.0  ;;  %v553_v25 = vmax.f32 %v521_v22, 0.0 }
  0x1e   : > { %470 = vst.msk [vmem:[#allocation2 + $0xd1] sm:$0x1] %vm443_vm3, %v22721_v1  ;;  %471 = vst.msk [vmem:[#allocation2 + $0xe9] sm:$0x1] %vm443_vm3, %v22721_v1  ;;  %v522_v26 = vld [vmem:[%s22868_s13 + $0x50] sm:$0xff]  ;;  %v523_v27 = vld [vmem:[%s22868_s13 + $0x58] sm:$0xff] }
  0x1f   : > { %472 = vst.msk [vmem:[#allocation2 + $0x101] sm:$0x1] %vm443_vm3, %v22721_v1  ;;  %473 = vst.msk [vmem:[#allocation2 + $0x119] sm:$0x1] %vm443_vm3, %v22721_v1  ;;  %v524_v28 = vld [vmem:[%s22868_s13 + $0x60] sm:$0xff]  ;;  %v554_v29 = vmax.f32 %v522_v26, 0.0 }
  0x20   : > { %474 = vst.msk [vmem:[#allocation2 + $0x131] sm:$0x1] %vm443_vm3, %v22721_v1  ;;  %475 = vst.msk [vmem:[#allocation2 + $0x149] sm:$0x1] %vm443_vm3, %v22721_v1  ;;  %v555_v30 = vmax.f32 %v523_v27, 0.0  ;;  %v556_v31 = vmax.f32 %v524_v28, 0.0 }
  0x21   : > { %476 = vst.msk [vmem:[#allocation2 + $0x161] sm:$0x1] %vm443_vm3, %v22721_v1  ;;  %477 = vst.msk [vmem:[#allocation2 + $0x179] sm:$0x1] %vm443_vm3, %v22721_v1  ;;  %v525_v32 = vld [vmem:[%s22868_s13 + $0x68] sm:$0xff]  ;;  %v526_v34 = vld [vmem:[%s22868_s13 + $0x70] sm:$0xff] }
  0x22   : > { %478 = vst.msk [vmem:[#allocation2 + $0x191] sm:$0x1] %vm443_vm3, %v22721_v1  ;;  %479 = vst.msk [vmem:[#allocation2 + $0x1a9] sm:$0x1] %vm443_vm3, %v22721_v1  ;;  %v557_v33 = vmax.f32 %v525_v32, 0.0  ;;  %v527_v35 = vld [vmem:[%s22868_s13 + $0x78] sm:$0xff] }
  0x23   : > { %577 = vst.msk [vmem:[#allocation2 + $0x19] sm:$0xff] %vm434_vm1, %v544_v9  ;;  %578 = vst.msk [vmem:[#allocation2 + $0x21] sm:$0xff] %vm434_vm1, %v545_v10  ;;  %v528_v36 = vld [vmem:[%s22868_s13 + $0x80] sm:$0xff]  ;;  %v558_v37 = vmax.f32 %v526_v34, 0.0  ;;  %v559_v38 = vmax.f32 %v527_v35, 0.0  ;;  %v529_v40 = vld [vmem:[%s22868_s13 + $0x88] sm:$0xff] }
  0x24   : > { %579 = vst.msk [vmem:[#allocation2 + $0x31] sm:$0xff] %vm434_vm1, %v546_v11  ;;  %580 = vst.msk [vmem:[#allocation2 + $0x39] sm:$0xff] %vm434_vm1, %v547_v13  ;;  %v560_v39 = vmax.f32 %v528_v36, 0.0  ;;  %v530_v41 = vld [vmem:[%s22868_s13 + $0x90] sm:$0xff]  ;;  %v531_v42 = vld [vmem:[%s22868_s13 + $0x98] sm:$0xff]  ;;  %v561_v43 = vmax.f32 %v529_v40, 0.0 }
  0x25   : > { %581 = vst.msk [vmem:[#allocation2 + $0x49] sm:$0xff] %vm434_vm1, %v548_v17  ;;  %582 = vst.msk [vmem:[#allocation2 + $0x51] sm:$0xff] %vm434_vm1, %v549_v18  ;;  %v562_v44 = vmax.f32 %v530_v41, 0.0  ;;  %v563_v45 = vmax.f32 %v531_v42, 0.0  ;;  %v532_v46 = vld [vmem:[%s22868_s13 + $0xa0] sm:$0xff]  ;;  %v533_v47 = vld [vmem:[%s22868_s13 + $0xa8] sm:$0xff] }
  0x26   : > { %583 = vst.msk [vmem:[#allocation2 + $0x61] sm:$0xff] %vm434_vm1, %v550_v19  ;;  %584 = vst.msk [vmem:[#allocation2 + $0x69] sm:$0xff] %vm434_vm1, %v551_v23  ;;  %v534_v48 = vld [vmem:[%s22868_s13 + $0xb0] sm:$0xff]  ;;  %v564_v49 = vmax.f32 %v532_v46, 0.0  ;;  %v565_v50 = vmax.f32 %v533_v47, 0.0  ;;  %v535_v52 = vld [vmem:[%s22868_s13 + $0xb8] sm:$0xff] }
  0x27   : > { %585 = vst.msk [vmem:[#allocation2 + $0x79] sm:$0xff] %vm434_vm1, %v552_v24  ;;  %586 = vst.msk [vmem:[#allocation2 + $0x81] sm:$0xff] %vm434_vm1, %v553_v25  ;;  %v566_v51 = vmax.f32 %v534_v48, 0.0  ;;  %v536_v53 = vld [vmem:[%s22868_s13 + $0xc0] sm:$0xff]  ;;  %v537_v54 = vld [vmem:[%s22868_s13 + $0xc8] sm:$0xff]  ;;  %v567_v58 = vmax.f32 %v535_v52, 0.0 }
  0x28   : > { %587 = vst.msk [vmem:[#allocation2 + $0x91] sm:$0xff] %vm434_vm1, %v554_v29  ;;  %588 = vst.msk [vmem:[#allocation2 + $0x99] sm:$0xff] %vm434_vm1, %v555_v30  ;;  %v568_v59 = vmax.f32 %v536_v53, 0.0  ;;  %v569_v60 = vmax.f32 %v537_v54, 0.0  ;;  %v538_v3 = vld [vmem:[%s22868_s13 + $0xd0] sm:$0xff]  ;;  %v539_v4 = vld [vmem:[%s22868_s13 + $0xd8] sm:$0xff] }
  0x29   : > { %589 = vst.msk [vmem:[#allocation2 + $0xa9] sm:$0xff] %vm434_vm1, %v556_v31  ;;  %590 = vst.msk [vmem:[#allocation2 + $0xb1] sm:$0xff] %vm434_vm1, %v557_v33  ;;  %v570_v5 = vmax.f32 %v538_v3, 0.0  ;;  %v571_v7 = vmax.f32 %v539_v4, 0.0  ;;  %v540_v8 = vld [vmem:[%s22868_s13 + $0xe0] sm:$0xff]  ;;  %v541_v9 = vld [vmem:[%s22868_s13 + $0xe8] sm:$0xff] }
  0x2a   : > { %591 = vst.msk [vmem:[#allocation2 + $0xc1] sm:$0xff] %vm434_vm1, %v558_v37  ;;  %592 = vst.msk [vmem:[#allocation2 + $0xc9] sm:$0xff] %vm434_vm1, %v559_v38  ;;  %v22924_v55 = vld [vmem:[#allocation2 + $0x19] sm:$0xff]  ;;  %v22926_v56 = vld [vmem:[#allocation2 + $0x21] sm:$0xff]  ;;  %v572_v11 = vmax.f32 %v540_v8, 0.0  ;;  %v573_v12 = vmax.f32 %v541_v9, 0.0 }
  0x2b   : > { %593 = vst.msk [vmem:[#allocation2 + $0xd9] sm:$0xff] %vm434_vm1, %v560_v39  ;;  %v22928_v57 = vld [vmem:[#allocation2 + $0x31] sm:$0xff]  ;;  %594 = vst.msk [vmem:[#allocation2 + $0xe1] sm:$0xff] %vm434_vm1, %v561_v43  ;;  %19797 = vmatprep.mubr.msk.f32.mxu0 %vm434_vm1, %v22924_v55  ;;  %v22945_v61 = vld [vmem:[#allocation2 + $0x39] sm:$0xff] }
  0x2c   : > { %595 = vst.msk [vmem:[#allocation2 + $0xf1] sm:$0xff] %vm434_vm1, %v562_v44  ;;  %596 = vst.msk [vmem:[#allocation2 + $0xf9] sm:$0xff] %vm434_vm1, %v563_v45  ;;  %19798 = vmatmul.mubr.msk.f32.gmra.mrb[2].mxu0 %vm434_vm1, %v22926_v56  ;;  %v22947_v62 = vld [vmem:[#allocation2 + $0x49] sm:$0xff]  ;;  %v22953_v63 = vld [vmem:[#allocation2 + $0x51] sm:$0xff] }
  0x2d   : > { %597 = vst.msk [vmem:[#allocation2 + $0x109] sm:$0xff] %vm434_vm1, %v564_v49  ;;  %598 = vst.msk [vmem:[#allocation2 + $0x111] sm:$0xff] %vm434_vm1, %v565_v50  ;;  %19800 = vmatprep.mubr.msk.f32.mxu0 %vm434_vm1, %v22928_v57  ;;  %v22955_v0 = vld [vmem:[#allocation2 + $0x61] sm:$0xff]  ;;  %v22961_v1 = vld [vmem:[#allocation2 + $0x69] sm:$0xff] }
  0x2e   : > { %599 = vst.msk [vmem:[#allocation2 + $0x121] sm:$0xff] %vm434_vm1, %v566_v51  ;;  %600 = vst.msk [vmem:[#allocation2 + $0x129] sm:$0xff] %vm434_vm1, %v567_v58  ;;  %v22963_v2 = vld [vmem:[#allocation2 + $0x79] sm:$0xff]  ;;  %v22973_v10 = vld [vmem:[#allocation2 + $0x81] sm:$0xff] }
  0x2f   : > { %601 = vst.msk [vmem:[#allocation2 + $0x139] sm:$0xff] %vm434_vm1, %v568_v59  ;;  %602 = vst.msk [vmem:[#allocation2 + $0x141] sm:$0xff] %vm434_vm1, %v569_v60  ;;  %v22975_v13 = vld [vmem:[#allocation2 + $0x91] sm:$0xff]  ;;  %v22985_v14 = vld [vmem:[#allocation2 + $0x99] sm:$0xff] }
  0x30   : > { %19801 = vmatmul.mubr.msk.f32.gmra.mrb[4].mxu0 %vm434_vm1, %v22945_v61  ;;  %603 = vst.msk [vmem:[#allocation2 + $0x151] sm:$0xff] %vm434_vm1, %v570_v5  ;;  %604 = vst.msk [vmem:[#allocation2 + $0x159] sm:$0xff] %vm434_vm1, %v571_v7  ;;  %v22987_v15 = vld [vmem:[#allocation2 + $0xa9] sm:$0xff]  ;;  %v22993_v16 = vld [vmem:[#allocation2 + $0xb1] sm:$0xff] }
  0x31   : > { %19803 = vmatprep.mubr.msk.f32.mxu0 %vm434_vm1, %v22947_v62  ;;  %605 = vst.msk [vmem:[#allocation2 + $0x169] sm:$0xff] %vm434_vm1, %v572_v11  ;;  %606 = vst.msk [vmem:[#allocation2 + $0x171] sm:$0xff] %vm434_vm1, %v573_v12  ;;  %v609_v17 = vld [vmem:[#allocation2] sm:$0xff]  ;;  %v610_v18 = vld [vmem:[#allocation2 + $0x8] sm:$0xff] }
  0x32   : > { %v22998_v19 = vld [vmem:[#allocation2 + $0x18] sm:$0xff]  ;;  %v23003_v20 = vld [vmem:[%s27823_s2 + $0xc] sm:$0xf]  ;;  %v23010_v21 = vld [vmem:[#allocation2 + $0x20] sm:$0xff] }
  0x33   : > { %v23012_v22 = vld [vmem:[#allocation2 + $0x30] sm:$0xff]  ;;  %v23020_v23 = vld [vmem:[#allocation2 + $0x38] sm:$0xff]  ;;  %v23022_v24 = vld [vmem:[#allocation2 + $0x48] sm:$0xff] }
  0x34   : > { %19804 = vmatmul.mubr.msk.f32.gmra.mrb[6].mxu0 %vm434_vm1, %v22953_v63  ;;  %v23030_v25 = vld [vmem:[#allocation2 + $0x60] sm:$0xff]  ;;  %v23036_v26 = vld [vmem:[#allocation2 + $0x68] sm:$0xff]  ;;  %v23038_v27 = vld [vmem:[#allocation2 + $0x78] sm:$0xff] }
  0x35   : > { %19806 = vmatprep.mubr.msk.f32.mxu0 %vm434_vm1, %v22955_v0  ;;  %v23044_v28 = vld [vmem:[#allocation2 + $0x80] sm:$0xff]  ;;  %v23046_v29 = vld [vmem:[#allocation2 + $0x90] sm:$0xff]  ;;  %v23052_v30 = vld [vmem:[#allocation2 + $0x98] sm:$0xff] }
  0x36   : > { %v23054_v31 = vld [vmem:[#allocation2 + $0xa8] sm:$0xff]  ;;  %v23060_v32 = vld [vmem:[#allocation2 + $0xb0] sm:$0xff]  ;;  %v23062_v33 = vld [vmem:[#allocation2 + $0xc0] sm:$0xff] }
  0x37   : > { %v23068_v34 = vld [vmem:[#allocation2 + $0xc8] sm:$0xff]  ;;  %v23070_v35 = vld [vmem:[#allocation2 + $0xd8] sm:$0xff]  ;;  %v23076_v36 = vld [vmem:[#allocation2 + $0xe0] sm:$0xff] }
  0x38   : > { %19807 = vmatmul.mubr.msk.f32.gmra.mrb[8].mxu0 %vm434_vm1, %v22961_v1  ;;  %v23078_v37 = vld [vmem:[#allocation2 + $0xf0] sm:$0xff]  ;;  %v23084_v38 = vld [vmem:[#allocation2 + $0xf8] sm:$0xff]  ;;  %v23086_v39 = vld [vmem:[#allocation2 + $0x108] sm:$0xff] }
  0x39   : > { %19809 = vmatprep.mubr.msk.f32.mxu0 %vm434_vm1, %v22963_v2  ;;  %v23092_v40 = vld [vmem:[#allocation2 + $0x110] sm:$0xff]  ;;  %v23094_v41 = vld [vmem:[#allocation2 + $0x120] sm:$0xff]  ;;  %v23100_v42 = vld [vmem:[#allocation2 + $0x128] sm:$0xff] }
  0x3a   : > { %v23102_v43 = vld [vmem:[#allocation2 + $0x138] sm:$0xff]  ;;  %v542_v44 = vld [vmem:[%s22868_s13 + $0xf0] sm:$0xff]  ;;  %v23109_v45 = vld [vmem:[#allocation2 + $0x140] sm:$0xff] }
  0x3b   : > { %v574_v46 = vmax.f32 %v542_v44, 0.0  ;;  %v543_v47 = vld [vmem:[%s22868_s13 + $0xf8] sm:$0xff]  ;;  %v23112_v48 = vld [vmem:[#allocation2 + $0x150] sm:$0xff]  ;;  %v23122_v51 = vld [vmem:[#allocation2 + $0x168] sm:$0xff] }
  0x3c   : > { %19810 = vmatmul.mubr.msk.f32.gmra.mrb[10].mxu0 %vm434_vm1, %v22973_v10  ;;  %v575_v49 = vmax.f32 %v543_v47, 0.0  ;;  %v23120_v50 = vld [vmem:[#allocation2 + $0x158] sm:$0xff]  ;;  %v23128_v52 = vld [vmem:[#allocation2 + $0x170] sm:$0xff]  ;;  %v1325_v53 = vld [vmem:[#allocation2 + $0x2] sm:$0xff] }
  0x3d   : > { %19812 = vmatprep.mubr.msk.f32.mxu0 %vm434_vm1, %v22975_v13  ;;  %607 = vst.msk [vmem:[#allocation2 + $0x181] sm:$0xff] %vm434_vm1, %v574_v46  ;;  %v1326_v54 = vld [vmem:[#allocation2 + $0xa] sm:$0xff]  ;;  %v23133_v58 = vld [vmem:[#allocation2 + $0x1a] sm:$0xff]  ;;  %v23145_v60 = vld [vmem:[#allocation2 + $0x22] sm:$0xff] }
  0x3e   : > { %608 = vst.msk [vmem:[#allocation2 + $0x189] sm:$0xff] %vm434_vm1, %v575_v49  ;;  %28091 = vst [vmem:[#allocation4_spill] sm:$0xff] %v23133_v58  ;;  %v23138_v59 = vld [vmem:[%s27823_s2 + $0x10] sm:$0xf]  ;;  %v23155_v4 = vld [vmem:[#allocation2 + $0x3a] sm:$0xff] }
  0x3f   : > { %28092 = vst [vmem:[#allocation5_spill] sm:$0xff] %v23145_v60  ;;  %v23147_v3 = vld [vmem:[#allocation2 + $0x32] sm:$0xff]  ;;  %28094 = vst [vmem:[#allocation7_spill] sm:$0xff] %v23155_v4  ;;  %v23157_v5 = vld [vmem:[#allocation2 + $0x4a] sm:$0xff] }
  0x40   : > { %19813 = vmatmul.mubr.msk.f32.gmra.mrb[12].mxu0 %vm434_vm1, %v22985_v14  ;;  %28093 = vst [vmem:[#allocation6_spill] sm:$0xff] %v23147_v3  ;;  %28095 = vst [vmem:[#allocation8_spill] sm:$0xff] %v23157_v5  ;;  %v23163_v7 = vld [vmem:[#allocation2 + $0x52] sm:$0xff]  ;;  %v23165_v8 = vld [vmem:[#allocation2 + $0x62] sm:$0xff] }
  0x41   : > { %19815 = vmatprep.mubr.msk.f32.mxu0 %vm434_vm1, %v22987_v15  ;;  %28096 = vst [vmem:[#allocation9_spill] sm:$0xff] %v23163_v7  ;;  %28097 = vst [vmem:[#allocation10_spill] sm:$0xff] %v23165_v8  ;;  %v23171_v9 = vld [vmem:[#allocation2 + $0x6a] sm:$0xff]  ;;  %v23173_v11 = vld [vmem:[#allocation2 + $0x7a] sm:$0xff] }
  0x42   : > { %28098 = vst [vmem:[#allocation11_spill] sm:$0xff] %v23171_v9  ;;  %28099 = vst [vmem:[#allocation12_spill] sm:$0xff] %v23173_v11  ;;  %v23179_v12 = vld [vmem:[#allocation2 + $0x82] sm:$0xff]  ;;  %v23197_v46 = vld [vmem:[#allocation2 + $0xb2] sm:$0xff] }
  0x43   : > { %28100 = vst [vmem:[#allocation13_spill] sm:$0xff] %v23179_v12  ;;  %v23193_v44 = vld [vmem:[#allocation2 + $0xc1] sm:$0xff]  ;;  %28104 = vst [vmem:[#allocation17_spill] sm:$0xff] %v23197_v46  ;;  %v23199_v47 = vld [vmem:[#allocation2 + $0xc9] sm:$0xff] }
  0x44   : > { %19816 = vmatmul.mubr.msk.f32.gmra.mrb[14].mxu0 %vm434_vm1, %v22993_v16  ;;  %19818 = vmatprep.mubr.msk.f32.mxu1 %vm434_vm1, %v23193_v44  ;;  %v23203_v49 = vld [vmem:[#allocation2 + $0xc2] sm:$0xff] }
  0x45   : > { %19844 = vmatprep.mubr.msk.f32.mxu0 %vm434_vm1, %v609_v17  ;;  %v23181_v17 = vld [vmem:[#allocation2 + $0x92] sm:$0xff]  ;;  %28105 = vst [vmem:[#allocation18_spill] sm:$0xff] %v23203_v49  ;;  %19819 = vmatmul.mubr.msk.f32.vlgmr.msra.gmra.mrb[0].mxu1 %vm434_vm1, %v23199_v47 }
  0x46   : > { %28101 = vst [vmem:[#allocation14_spill] sm:$0xff] %v23181_v17 }
  0x48   : > { %19845 = vmatmul.mubr.msk.f32.vlgmr.msra.gmra.mrb[0].mxu0 %vm434_vm1, %v610_v18  ;;  %v23187_v18 = vld [vmem:[#allocation2 + $0x9a] sm:$0xff] }
  0x49   : > { %19893 = vmatpush3.msk.msra.mxu0 %vm772_vm0, %v22876_v6  ;;  %19847 = vmatprep.mubr.msk.f32.mxu0 %vm434_vm1, %v22998_v19  ;;  %v23028_v6 = vld [vmem:[#allocation2 + $0x50] sm:$0xff]  ;;  %28102 = vst [vmem:[#allocation15_spill] sm:$0xff] %v23187_v18 }
  0x4a   : > { %19942 = vmatprep.subr.msk.mxu0 %vm772_vm0, %v23003_v20 }
  0x4c   : > { %19848 = vmatmul.mubr.msk.f32.gmra.mrb[2].mxu0 %vm434_vm1, %v23010_v21 }
  0x4d   : > { %19850 = vmatprep.mubr.msk.f32.mxu0 %vm434_vm1, %v23012_v22 }
  0x50   : > { %19851 = vmatmul.mubr.msk.f32.gmra.mrb[4].mxu0 %vm434_vm1, %v23020_v23 }
  0x51   : > { %19853 = vmatprep.mubr.msk.f32.mxu0 %vm434_vm1, %v23022_v24 }
  0x54   : > { %19854 = vmatmul.mubr.msk.f32.gmra.mrb[6].mxu0 %vm434_vm1, %v23028_v6 }
  0x55   : > { %19856 = vmatprep.mubr.msk.f32.mxu0 %vm434_vm1, %v23030_v25 }
  0x58   : > { %19857 = vmatmul.mubr.msk.f32.gmra.mrb[8].mxu0 %vm434_vm1, %v23036_v26 }
  0x59   : > { %19859 = vmatprep.mubr.msk.f32.mxu0 %vm434_vm1, %v23038_v27 }
  0x5c   : > { %19860 = vmatmul.mubr.msk.f32.gmra.mrb[10].mxu0 %vm434_vm1, %v23044_v28 }
  0x5d   : > { %19862 = vmatprep.mubr.msk.f32.mxu0 %vm434_vm1, %v23046_v29 }
  0x60   : > { %19863 = vmatmul.mubr.msk.f32.gmra.mrb[12].mxu0 %vm434_vm1, %v23052_v30 }
  0x61   : > { %19865 = vmatprep.mubr.msk.f32.mxu0 %vm434_vm1, %v23054_v31 }
  0x64   : > { %19866 = vmatmul.mubr.msk.f32.gmra.mrb[14].mxu0 %vm434_vm1, %v23060_v32 }
  0x65   : > { %19868 = vmatprep.mubr.msk.f32.mxu0 %vm434_vm1, %v23062_v33 }
  0x68   : > { %19869 = vmatmul.mubr.msk.f32.gmra.mrb[16].mxu0 %vm434_vm1, %v23068_v34 }
  0x69   : > { %19871 = vmatprep.mubr.msk.f32.mxu0 %vm434_vm1, %v23070_v35 }
  0x6c   : > { %19872 = vmatmul.mubr.msk.f32.gmra.mrb[18].mxu0 %vm434_vm1, %v23076_v36 }
  0x6d   : > { %19874 = vmatprep.mubr.msk.f32.mxu0 %vm434_vm1, %v23078_v37 }
  0x70   : > { %19875 = vmatmul.mubr.msk.f32.gmra.mrb[20].mxu0 %vm434_vm1, %v23084_v38 }
  0x71   : > { %19877 = vmatprep.mubr.msk.f32.mxu0 %vm434_vm1, %v23086_v39 }
  0x74   : > { %19878 = vmatmul.mubr.msk.f32.gmra.mrb[22].mxu0 %vm434_vm1, %v23092_v40 }
  0x75   : > { %19880 = vmatprep.mubr.msk.f32.mxu0 %vm434_vm1, %v23094_v41 }
  0x78   : > { %19881 = vmatmul.mubr.msk.f32.gmra.mrb[24].mxu0 %vm434_vm1, %v23100_v42 }
  0x79   : > { %19883 = vmatprep.mubr.msk.f32.mxu0 %vm434_vm1, %v23102_v43 }
  0x7c   : > { %19884 = vmatmul.mubr.msk.f32.gmra.mrb[26].mxu0 %vm434_vm1, %v23109_v45 }
  0x7d   : > { %19886 = vmatprep.mubr.msk.f32.mxu0 %vm434_vm1, %v23112_v48 }
  0x80   : > { %19887 = vmatmul.mubr.msk.f32.gmra.mrb[28].mxu0 %vm434_vm1, %v23120_v50 }
  0x81   : > { %19889 = vmatprep.mubr.msk.f32.mxu0 %vm434_vm1, %v23122_v51 }
  0x84   : > { %19890 = vmatmul.mubr.msk.f32.gmra.mrb[30].mxu0 %vm434_vm1, %v23128_v52 }
  0x85   : > { %19894 = vmatprep.mubr.msk.f32.mxu0 %vm434_vm1, %v1325_v53  ;;  %v23209_v53 = vld [vmem:[#allocation2 + $0xd9] sm:$0xff] }
  0x86   : > { %19821 = vmatprep.mubr.msk.f32.mxu1 %vm434_vm1, %v23209_v53 }
  0x88   : > { %19895 = vmatmul.mubr.msk.f32.vlgmr.msra.gmra.mrb[0].mxu0 %vm434_vm1, %v1326_v54  ;;  %v23213_v54 = vld [vmem:[#allocation2 + $0xca] sm:$0xff] }
  0x89   : > { %19943 = vmatpush3.msk.msra.mxu0 %vm772_vm0, %v23003_v20  ;;  %19897 = vmatprep.mubr.msk.f32.mxu0 %vm434_vm1, %v23133_v58  ;;  %v23189_v20 = vld [vmem:[#allocation2 + $0xaa] sm:$0xff]  ;;  %28106 = vst [vmem:[#allocation19_spill] sm:$0xff] %v23213_v54 }
  0x8a   : > { %19992 = vmatprep.subr.msk.mxu0 %vm772_vm0, %v23138_v59  ;;  %28103 = vst [vmem:[#allocation16_spill] sm:$0xff] %v23189_v20  ;;  %v23311_v58 = vld [vmem:[#allocation2 + $0x171] sm:$0xff] }
  0x8c   : > { %19898 = vmatmul.mubr.msk.f32.gmra.mrb[2].mxu0 %vm434_vm1, %v23145_v60  ;;  %v23299_v60 = vld [vmem:[#allocation2 + $0x152] sm:$0xff] }
  0x8d   : > { %19900 = vmatprep.mubr.msk.f32.mxu0 %vm434_vm1, %v23147_v3  ;;  %v23295_v3 = vld [vmem:[#allocation2 + $0x159] sm:$0xff]  ;;  %28118 = vst [vmem:[#allocation31_spill] sm:$0xff] %v23299_v60 }
  0x90   : > { %19901 = vmatmul.mubr.msk.f32.gmra.mrb[4].mxu0 %vm434_vm1, %v23155_v4  ;;  %v23283_v4 = vld [vmem:[#allocation2 + $0x13a] sm:$0xff] }
  0x91   : > { %19903 = vmatprep.mubr.msk.f32.mxu0 %vm434_vm1, %v23157_v5  ;;  %v23279_v5 = vld [vmem:[#allocation2 + $0x141] sm:$0xff]  ;;  %28115 = vst [vmem:[#allocation28_spill] sm:$0xff] %v23283_v4 }
  0x94   : > { %19904 = vmatmul.mubr.msk.f32.gmra.mrb[6].mxu0 %vm434_vm1, %v23163_v7  ;;  %v23267_v7 = vld [vmem:[#allocation2 + $0x122] sm:$0xff] }
  0x95   : > { %19906 = vmatprep.mubr.msk.f32.mxu0 %vm434_vm1, %v23165_v8  ;;  %v23263_v8 = vld [vmem:[#allocation2 + $0x129] sm:$0xff]  ;;  %28113 = vst [vmem:[#allocation26_spill] sm:$0xff] %v23267_v7 }
  0x98   : > { %19907 = vmatmul.mubr.msk.f32.gmra.mrb[8].mxu0 %vm434_vm1, %v23171_v9  ;;  %v23251_v9 = vld [vmem:[#allocation2 + $0x10a] sm:$0xff] }
  0x99   : > { %19909 = vmatprep.mubr.msk.f32.mxu0 %vm434_vm1, %v23173_v11  ;;  %v23247_v11 = vld [vmem:[#allocation2 + $0x111] sm:$0xff]  ;;  %28111 = vst [vmem:[#allocation24_spill] sm:$0xff] %v23251_v9 }
  0x9c   : > { %19910 = vmatmul.mubr.msk.f32.gmra.mrb[10].mxu0 %vm434_vm1, %v23179_v12  ;;  %v23235_v12 = vld [vmem:[#allocation2 + $0xf2] sm:$0xff] }
  0x9d   : > { %19912 = vmatprep.mubr.msk.f32.mxu0 %vm434_vm1, %v23181_v17  ;;  %v23231_v17 = vld [vmem:[#allocation2 + $0xf9] sm:$0xff]  ;;  %28109 = vst [vmem:[#allocation22_spill] sm:$0xff] %v23235_v12 }
  0xa0   : > { %19913 = vmatmul.mubr.msk.f32.gmra.mrb[12].mxu0 %vm434_vm1, %v23187_v18  ;;  %v23219_v18 = vld [vmem:[#allocation2 + $0xda] sm:$0xff] }
  0xa1   : > { %19915 = vmatprep.mubr.msk.f32.mxu0 %vm434_vm1, %v23189_v20  ;;  %v23215_v20 = vld [vmem:[#allocation2 + $0xe1] sm:$0xff]  ;;  %28107 = vst [vmem:[#allocation20_spill] sm:$0xff] %v23219_v18 }
  0xa2   : > { %19822 = vmatmul.mubr.msk.f32.gmra.mrb[2].mxu1 %vm434_vm1, %v23215_v20 }
  0xa4   : > { %19916 = vmatmul.mubr.msk.f32.gmra.mrb[14].mxu0 %vm434_vm1, %v23197_v46  ;;  %v23225_v46 = vld [vmem:[#allocation2 + $0xf1] sm:$0xff] }
  0xa5   : > { %19918 = vmatprep.mubr.msk.f32.mxu0 %vm434_vm1, %v23203_v49  ;;  %v23229_v49 = vld [vmem:[#allocation2 + $0xe2] sm:$0xff]  ;;  %19824 = vmatprep.mubr.msk.f32.mxu1 %vm434_vm1, %v23225_v46 }
  0xa6   : > { %28108 = vst [vmem:[#allocation21_spill] sm:$0xff] %v23229_v49  ;;  %19825 = vmatmul.mubr.msk.f32.gmra.mrb[4].mxu1 %vm434_vm1, %v23231_v17 }
  0xa8   : > { %19919 = vmatmul.mubr.msk.f32.gmra.mrb[16].mxu0 %vm434_vm1, %v23213_v54  ;;  %v23241_v54 = vld [vmem:[#allocation2 + $0x109] sm:$0xff] }
  0xa9   : > { %19921 = vmatprep.mubr.msk.f32.mxu0 %vm434_vm1, %v23219_v18  ;;  %v23245_v18 = vld [vmem:[#allocation2 + $0xfa] sm:$0xff]  ;;  %19827 = vmatprep.mubr.msk.f32.mxu1 %vm434_vm1, %v23241_v54 }
  0xaa   : > { %28110 = vst [vmem:[#allocation23_spill] sm:$0xff] %v23245_v18  ;;  %19828 = vmatmul.mubr.msk.f32.gmra.mrb[6].mxu1 %vm434_vm1, %v23247_v11 }
  0xac   : > { %19922 = vmatmul.mubr.msk.f32.gmra.mrb[18].mxu0 %vm434_vm1, %v23229_v49  ;;  %v23257_v49 = vld [vmem:[#allocation2 + $0x121] sm:$0xff] }
  0xad   : > { %19924 = vmatprep.mubr.msk.f32.mxu0 %vm434_vm1, %v23235_v12  ;;  %v23261_v12 = vld [vmem:[#allocation2 + $0x112] sm:$0xff]  ;;  %19830 = vmatprep.mubr.msk.f32.mxu1 %vm434_vm1, %v23257_v49 }
  0xae   : > { %28112 = vst [vmem:[#allocation25_spill] sm:$0xff] %v23261_v12  ;;  %19831 = vmatmul.mubr.msk.f32.gmra.mrb[8].mxu1 %vm434_vm1, %v23263_v8 }
  0xb0   : > { %19925 = vmatmul.mubr.msk.f32.gmra.mrb[20].mxu0 %vm434_vm1, %v23245_v18  ;;  %v23273_v18 = vld [vmem:[#allocation2 + $0x139] sm:$0xff] }
  0xb1   : > { %19927 = vmatprep.mubr.msk.f32.mxu0 %vm434_vm1, %v23251_v9  ;;  %v23277_v9 = vld [vmem:[#allocation2 + $0x12a] sm:$0xff]  ;;  %19833 = vmatprep.mubr.msk.f32.mxu1 %vm434_vm1, %v23273_v18 }
  0xb2   : > { %28114 = vst [vmem:[#allocation27_spill] sm:$0xff] %v23277_v9  ;;  %19834 = vmatmul.mubr.msk.f32.gmra.mrb[10].mxu1 %vm434_vm1, %v23279_v5 }
  0xb4   : > { %19928 = vmatmul.mubr.msk.f32.gmra.mrb[22].mxu0 %vm434_vm1, %v23261_v12  ;;  %v23289_v12 = vld [vmem:[#allocation2 + $0x151] sm:$0xff] }
  0xb5   : > { %19930 = vmatprep.mubr.msk.f32.mxu0 %vm434_vm1, %v23267_v7  ;;  %28116 = vst [vmem:[#allocation29_spill] sm:$0xff] %v23289_v12  ;;  %v23293_v7 = vld [vmem:[#allocation2 + $0x142] sm:$0xff]  ;;  %19836 = vmatprep.mubr.msk.f32.mxu1 %vm434_vm1, %v23289_v12  ;;  %v23315_v12 = vld [vmem:[#allocation2 + $0x16a] sm:$0xff] }
  0xb6   : > { %28117 = vst [vmem:[#allocation30_spill] sm:$0xff] %v23293_v7  ;;  %19837 = vmatmul.mubr.msk.f32.gmra.mrb[12].mxu1 %vm434_vm1, %v23295_v3  ;;  %28119 = vst [vmem:[#allocation32_spill] sm:$0xff] %v23315_v12 }
  0xb8   : > { %19931 = vmatmul.mubr.msk.f32.gmra.mrb[24].mxu0 %vm434_vm1, %v23277_v9  ;;  %v23305_v9 = vld [vmem:[#allocation2 + $0x169] sm:$0xff] }
  0xb9   : > { %19933 = vmatprep.mubr.msk.f32.mxu0 %vm434_vm1, %v23283_v4  ;;  %v23309_v4 = vld [vmem:[#allocation2 + $0x15a] sm:$0xff]  ;;  %19839 = vmatprep.mubr.msk.f32.mxu1 %vm434_vm1, %v23305_v9 }
  0xba   : > { %19840 = vmatmul.mubr.msk.f32.gmra.mrb[14].mxu1 %vm434_vm1, %v23311_v58 }
  0xbc   : > { %19934 = vmatmul.mubr.msk.f32.gmra.mrb[26].mxu0 %vm434_vm1, %v23293_v7  ;;  %v23323_v7 = vld [vmem:[#allocation2 + $0x172] sm:$0xff] }
  0xbd   : > { %19936 = vmatprep.mubr.msk.f32.mxu0 %vm434_vm1, %v23299_v60  ;;  %v17381_v60 = vld [vmem:[%s27823_s2 + $0x14] sm:$0xf] }
  0xc0   : > { %19937 = vmatmul.mubr.msk.f32.gmra.mrb[28].mxu0 %vm434_vm1, %v23309_v4 }
  0xc1   : > { %19939 = vmatprep.mubr.msk.f32.mxu0 %vm434_vm1, %v23315_v12 }
  0xc4   : > { %19940 = vmatmul.mubr.msk.f32.gmra.mrb[30].mxu0 %vm434_vm1, %v23323_v7 }
  0xc5   : > { %19944 = vmatprep.mubr.msk.f32.mxu0 %vm434_vm1, %v22998_v19  ;;  %v23391_v19 = vld [vmem:[#allocation2 + $0x180] sm:$0xff] }
  0xc8   : > { %19945 = vmatmul.mubr.msk.f32.vlgmr.msra.gmra.mrb[0].mxu0 %vm434_vm1, %v23010_v21  ;;  %v23397_v21 = vld [vmem:[#allocation2 + $0x188] sm:$0xff] }
  0xc9   : > { %19993 = vmatpush3.msk.msra.mxu0 %vm772_vm0, %v23138_v59  ;;  %19947 = vmatprep.mubr.msk.f32.mxu0 %vm434_vm1, %v23012_v22  ;;  %v17415_v59 = vld [vmem:[%s27823_s2 + $0x18] sm:$0xf] }
  0xca   : > { %20042 = vmatprep.subr.msk.mxu0 %vm772_vm0, %v17381_v60 }
  0xcc   : > { %19948 = vmatmul.mubr.msk.f32.gmra.mrb[2].mxu0 %vm434_vm1, %v23020_v23 }
  0xcd   : > { %19950 = vmatprep.mubr.msk.f32.mxu0 %vm434_vm1, %v23022_v24 }
  0xd0   : > { %19951 = vmatmul.mubr.msk.f32.gmra.mrb[4].mxu0 %vm434_vm1, %v23028_v6 }
  0xd1   : > { %19953 = vmatprep.mubr.msk.f32.mxu0 %vm434_vm1, %v23030_v25 }
  0xd4   : > { %19954 = vmatmul.mubr.msk.f32.gmra.mrb[6].mxu0 %vm434_vm1, %v23036_v26 }
  0xd5   : > { %19956 = vmatprep.mubr.msk.f32.mxu0 %vm434_vm1, %v23038_v27 }
  0xd8   : > { %19957 = vmatmul.mubr.msk.f32.gmra.mrb[8].mxu0 %vm434_vm1, %v23044_v28 }
  0xd9   : > { %19959 = vmatprep.mubr.msk.f32.mxu0 %vm434_vm1, %v23046_v29 }
  0xdc   : > { %19960 = vmatmul.mubr.msk.f32.gmra.mrb[10].mxu0 %vm434_vm1, %v23052_v30 }
  0xdd   : > { %19962 = vmatprep.mubr.msk.f32.mxu0 %vm434_vm1, %v23054_v31 }
  0xe0   : > { %19963 = vmatmul.mubr.msk.f32.gmra.mrb[12].mxu0 %vm434_vm1, %v23060_v32 }
  0xe1   : > { %19965 = vmatprep.mubr.msk.f32.mxu0 %vm434_vm1, %v23062_v33 }
  0xe4   : > { %19966 = vmatmul.mubr.msk.f32.gmra.mrb[14].mxu0 %vm434_vm1, %v23068_v34 }
  0xe5   : > { %19968 = vmatprep.mubr.msk.f32.mxu0 %vm434_vm1, %v23070_v35 }
  0xe8   : > { %19969 = vmatmul.mubr.msk.f32.gmra.mrb[16].mxu0 %vm434_vm1, %v23076_v36 }
  0xe9   : > { %19971 = vmatprep.mubr.msk.f32.mxu0 %vm434_vm1, %v23078_v37 }
  0xec   : > { %19972 = vmatmul.mubr.msk.f32.gmra.mrb[18].mxu0 %vm434_vm1, %v23084_v38 }
  0xed   : > { %19974 = vmatprep.mubr.msk.f32.mxu0 %vm434_vm1, %v23086_v39 }
  0xf0   : > { %19975 = vmatmul.mubr.msk.f32.gmra.mrb[20].mxu0 %vm434_vm1, %v23092_v40 }
  0xf1   : > { %19977 = vmatprep.mubr.msk.f32.mxu0 %vm434_vm1, %v23094_v41 }
  0xf4   : > { %19978 = vmatmul.mubr.msk.f32.gmra.mrb[22].mxu0 %vm434_vm1, %v23100_v42 }
  0xf5   : > { %19980 = vmatprep.mubr.msk.f32.mxu0 %vm434_vm1, %v23102_v43 }
  0xf8   : > { %19981 = vmatmul.mubr.msk.f32.gmra.mrb[24].mxu0 %vm434_vm1, %v23109_v45 }
  0xf9   : > { %19983 = vmatprep.mubr.msk.f32.mxu0 %vm434_vm1, %v23112_v48 }
  0xfc   : > { %19984 = vmatmul.mubr.msk.f32.gmra.mrb[26].mxu0 %vm434_vm1, %v23120_v50 }
  0xfd   : > { %19986 = vmatprep.mubr.msk.f32.mxu0 %vm434_vm1, %v23122_v51 }
 0x100   : > { %19987 = vmatmul.mubr.msk.f32.gmra.mrb[28].mxu0 %vm434_vm1, %v23128_v52 }
 0x101   : > { %19989 = vmatprep.mubr.msk.f32.mxu0 %vm434_vm1, %v23391_v19 }
 0x104   : > { %19990 = vmatmul.mubr.msk.f32.gmra.mrb[30].mxu0 %vm434_vm1, %v23397_v21 }
 0x105   : > { %19994 = vmatprep.mubr.msk.f32.mxu0 %vm434_vm1, %v22924_v55  ;;  %v28120_v55 = vld [vmem:[#allocation29_spill] sm:$0xff] }
 0x108   : > { %19995 = vmatmul.mubr.msk.f32.vlgmr.msra.gmra.mrb[0].mxu0 %vm434_vm1, %v22926_v56  ;;  %v23464_v56 = vld [vmem:[#allocation2 + $0x181] sm:$0xff] }
 0x109   : > { %20043 = vmatpush3.msk.msra.mxu0 %vm772_vm0, %v17381_v60  ;;  %19997 = vmatprep.mubr.msk.f32.mxu0 %vm434_vm1, %v22928_v57  ;;  %v23470_v57 = vld [vmem:[#allocation2 + $0x189] sm:$0xff]  ;;  %v28131_v60 = vld [vmem:[#allocation14_spill] sm:$0xff] }
 0x10a   : > { %20092 = vmatprep.subr.msk.mxu0 %vm772_vm0, %v17415_v59 }
 0x10c   : > { %19998 = vmatmul.mubr.msk.f32.gmra.mrb[2].mxu0 %vm434_vm1, %v22945_v61  ;;  %v28121_v61 = vld [vmem:[#allocation4_spill] sm:$0xff] }
 0x10d   : > { %20000 = vmatprep.mubr.msk.f32.mxu0 %vm434_vm1, %v22947_v62  ;;  %v17449_v62 = vld [vmem:[%s27823_s2 + $0x1c] sm:$0xf] }
 0x110   : > { %20001 = vmatmul.mubr.msk.f32.gmra.mrb[4].mxu0 %vm434_vm1, %v22953_v63  ;;  %v28122_v63 = vld [vmem:[#allocation5_spill] sm:$0xff] }
 0x111   : > { %20003 = vmatprep.mubr.msk.f32.mxu0 %vm434_vm1, %v22955_v0  ;;  %v28123_v0 = vld [vmem:[#allocation6_spill] sm:$0xff] }
 0x114   : > { %20004 = vmatmul.mubr.msk.f32.gmra.mrb[6].mxu0 %vm434_vm1, %v22961_v1  ;;  %v28124_v1 = vld [vmem:[#allocation7_spill] sm:$0xff] }
 0x115   : > { %20006 = vmatprep.mubr.msk.f32.mxu0 %vm434_vm1, %v22963_v2  ;;  %v28125_v2 = vld [vmem:[#allocation8_spill] sm:$0xff] }
 0x118   : > { %20007 = vmatmul.mubr.msk.f32.gmra.mrb[8].mxu0 %vm434_vm1, %v22973_v10  ;;  %v28126_v10 = vld [vmem:[#allocation9_spill] sm:$0xff] }
 0x119   : > { %20009 = vmatprep.mubr.msk.f32.mxu0 %vm434_vm1, %v22975_v13  ;;  %v28127_v13 = vld [vmem:[#allocation10_spill] sm:$0xff] }
 0x11c   : > { %20010 = vmatmul.mubr.msk.f32.gmra.mrb[10].mxu0 %vm434_vm1, %v22985_v14  ;;  %v28128_v14 = vld [vmem:[#allocation11_spill] sm:$0xff] }
 0x11d   : > { %20012 = vmatprep.mubr.msk.f32.mxu0 %vm434_vm1, %v22987_v15  ;;  %v28129_v15 = vld [vmem:[#allocation12_spill] sm:$0xff] }
 0x120   : > { %20013 = vmatmul.mubr.msk.f32.gmra.mrb[12].mxu0 %vm434_vm1, %v22993_v16  ;;  %v28130_v16 = vld [vmem:[#allocation13_spill] sm:$0xff] }
 0x121   : > { %20015 = vmatprep.mubr.msk.f32.mxu0 %vm434_vm1, %v23193_v44 }
 0x124   : > { %20016 = vmatmul.mubr.msk.f32.gmra.mrb[14].mxu0 %vm434_vm1, %v23199_v47 }
 0x125   : > { %20018 = vmatprep.mubr.msk.f32.mxu0 %vm434_vm1, %v23209_v53 }
 0x128   : > { %20019 = vmatmul.mubr.msk.f32.gmra.mrb[16].mxu0 %vm434_vm1, %v23215_v20 }
 0x129   : > { %20021 = vmatprep.mubr.msk.f32.mxu0 %vm434_vm1, %v23225_v46 }
 0x12c   : > { %20022 = vmatmul.mubr.msk.f32.gmra.mrb[18].mxu0 %vm434_vm1, %v23231_v17 }
 0x12d   : > { %20024 = vmatprep.mubr.msk.f32.mxu0 %vm434_vm1, %v23241_v54 }
 0x130   : > { %20025 = vmatmul.mubr.msk.f32.gmra.mrb[20].mxu0 %vm434_vm1, %v23247_v11 }
 0x131   : > { %20027 = vmatprep.mubr.msk.f32.mxu0 %vm434_vm1, %v23257_v49 }
 0x134   : > { %20028 = vmatmul.mubr.msk.f32.gmra.mrb[22].mxu0 %vm434_vm1, %v23263_v8 }
 0x135   : > { %20030 = vmatprep.mubr.msk.f32.mxu0 %vm434_vm1, %v23273_v18 }
 0x138   : > { %20031 = vmatmul.mubr.msk.f32.gmra.mrb[24].mxu0 %vm434_vm1, %v23279_v5 }
 0x139   : > { %20033 = vmatprep.mubr.msk.f32.mxu0 %vm434_vm1, %v28120_v55 }
 0x13c   : > { %20034 = vmatmul.mubr.msk.f32.gmra.mrb[26].mxu0 %vm434_vm1, %v23295_v3 }
 0x13d   : > { %20036 = vmatprep.mubr.msk.f32.mxu0 %vm434_vm1, %v23305_v9 }
 0x140   : > { %20037 = vmatmul.mubr.msk.f32.gmra.mrb[28].mxu0 %vm434_vm1, %v23311_v58 }
 0x141   : > { %20039 = vmatprep.mubr.msk.f32.mxu0 %vm434_vm1, %v23464_v56 }
 0x144   : > { %20040 = vmatmul.mubr.msk.f32.gmra.mrb[30].mxu0 %vm434_vm1, %v23470_v57 }
 0x145   : > { %20044 = vmatprep.mubr.msk.f32.mxu0 %vm434_vm1, %v28121_v61  ;;  %v28133_v61 = vld [vmem:[#allocation16_spill] sm:$0xff] }
 0x148   : > { %20045 = vmatmul.mubr.msk.f32.vlgmr.msra.gmra.mrb[0].mxu0 %vm434_vm1, %v28122_v63  ;;  %v28134_v63 = vld [vmem:[#allocation17_spill] sm:$0xff] }
 0x149   : > { %20093 = vmatpush3.msk.msra.mxu0 %vm772_vm0, %v17415_v59  ;;  %20047 = vmatprep.mubr.msk.f32.mxu0 %vm434_vm1, %v28123_v0  ;;  %v28132_v59 = vld [vmem:[#allocation15_spill] sm:$0xff] }
 0x14a   : > { %20142 = vmatprep.subr.msk.mxu0 %vm772_vm0, %v17449_v62 }
 0x14c   : > { %20048 = vmatmul.mubr.msk.f32.gmra.mrb[2].mxu0 %vm434_vm1, %v28124_v1 }
 0x14d   : > { %20050 = vmatprep.mubr.msk.f32.mxu0 %vm434_vm1, %v28125_v2 }
 0x150   : > { %20051 = vmatmul.mubr.msk.f32.gmra.mrb[4].mxu0 %vm434_vm1, %v28126_v10 }
 0x151   : > { %20053 = vmatprep.mubr.msk.f32.mxu0 %vm434_vm1, %v28127_v13  ;;  %v28135_v13 = vld [vmem:[#allocation18_spill] sm:$0xff] }
 0x154   : > { %20054 = vmatmul.mubr.msk.f32.gmra.mrb[6].mxu0 %vm434_vm1, %v28128_v14  ;;  %v28136_v14 = vld [vmem:[#allocation19_spill] sm:$0xff] }
 0x155   : > { %20056 = vmatprep.mubr.msk.f32.mxu0 %vm434_vm1, %v28129_v15  ;;  %v28137_v15 = vld [vmem:[#allocation20_spill] sm:$0xff] }
 0x158   : > { %20057 = vmatmul.mubr.msk.f32.gmra.mrb[8].mxu0 %vm434_vm1, %v28130_v16  ;;  %v28138_v16 = vld [vmem:[#allocation21_spill] sm:$0xff] }
 0x159   : > { %20059 = vmatprep.mubr.msk.f32.mxu0 %vm434_vm1, %v28131_v60  ;;  %v28139_v60 = vld [vmem:[#allocation22_spill] sm:$0xff] }
 0x15c   : > { %20060 = vmatmul.mubr.msk.f32.gmra.mrb[10].mxu0 %vm434_vm1, %v28132_v59  ;;  %v28140_v59 = vld [vmem:[#allocation23_spill] sm:$0xff] }
 0x15d   : > { %20062 = vmatprep.mubr.msk.f32.mxu0 %vm434_vm1, %v28133_v61  ;;  %v28141_v61 = vld [vmem:[#allocation24_spill] sm:$0xff] }
 0x160   : > { %20063 = vmatmul.mubr.msk.f32.gmra.mrb[12].mxu0 %vm434_vm1, %v28134_v63  ;;  %v28142_v63 = vld [vmem:[#allocation25_spill] sm:$0xff] }
 0x161   : > { %20065 = vmatprep.mubr.msk.f32.mxu0 %vm434_vm1, %v28135_v13  ;;  %v28143_v13 = vld [vmem:[#allocation26_spill] sm:$0xff] }
 0x164   : > { %20066 = vmatmul.mubr.msk.f32.gmra.mrb[14].mxu0 %vm434_vm1, %v28136_v14  ;;  %v28144_v14 = vld [vmem:[#allocation27_spill] sm:$0xff] }
 0x165   : > { %20068 = vmatprep.mubr.msk.f32.mxu0 %vm434_vm1, %v28137_v15  ;;  %v28145_v15 = vld [vmem:[#allocation28_spill] sm:$0xff] }
 0x168   : > { %20069 = vmatmul.mubr.msk.f32.gmra.mrb[16].mxu0 %vm434_vm1, %v28138_v16  ;;  %v28146_v16 = vld [vmem:[#allocation30_spill] sm:$0xff] }
 0x169   : > { %20071 = vmatprep.mubr.msk.f32.mxu0 %vm434_vm1, %v28139_v60  ;;  %v28147_v60 = vld [vmem:[#allocation31_spill] sm:$0xff] }
 0x16c   : > { %20072 = vmatmul.mubr.msk.f32.gmra.mrb[18].mxu0 %vm434_vm1, %v28140_v59 }
 0x16d   : > { %20074 = vmatprep.mubr.msk.f32.mxu0 %vm434_vm1, %v28141_v61 }
 0x170   : > { %20075 = vmatmul.mubr.msk.f32.gmra.mrb[20].mxu0 %vm434_vm1, %v28142_v63  ;;  %v23537_v63 = vld [vmem:[#allocation2 + $0x182] sm:$0xff] }
 0x171   : > { %20077 = vmatprep.mubr.msk.f32.mxu0 %vm434_vm1, %v28143_v13 }
 0x174   : > { %20078 = vmatmul.mubr.msk.f32.gmra.mrb[22].mxu0 %vm434_vm1, %v28144_v14 }
 0x175   : > { %20080 = vmatprep.mubr.msk.f32.mxu0 %vm434_vm1, %v28145_v15  ;;  %v23543_v15 = vld [vmem:[#allocation2 + $0x18a] sm:$0xff] }
 0x178   : > { %20081 = vmatmul.mubr.msk.f32.gmra.mrb[24].mxu0 %vm434_vm1, %v28146_v16 }
 0x179   : > { %20083 = vmatprep.mubr.msk.f32.mxu0 %vm434_vm1, %v28147_v60 }
 0x17c   : > { %20084 = vmatmul.mubr.msk.f32.gmra.mrb[26].mxu0 %vm434_vm1, %v23309_v4 }
 0x17d   : > { %20086 = vmatprep.mubr.msk.f32.mxu0 %vm434_vm1, %v23315_v12  ;;  %v17483_v12 = vld [vmem:[%s27823_s2 + $0x20] sm:$0xf] }
 0x180   : > { %20087 = vmatmul.mubr.msk.f32.gmra.mrb[28].mxu0 %vm434_vm1, %v23323_v7 }
 0x181   : > { %20089 = vmatprep.mubr.msk.f32.mxu0 %vm434_vm1, %v23537_v63 }
 0x184   : > { %20090 = vmatmul.mubr.msk.f32.gmra.mrb[30].mxu0 %vm434_vm1, %v23543_v15 }
 0x185   : > { %20094 = vmatprep.mubr.msk.f32.mxu0 %vm434_vm1, %v23012_v22  ;;  %v2916_v22 = vld [vmem:[#allocation2 + $0x198] sm:$0xff] }
 0x188   : > { %20095 = vmatmul.mubr.msk.f32.vlgmr.msra.gmra.mrb[0].mxu0 %vm434_vm1, %v23020_v23  ;;  %v2917_v23 = vld [vmem:[#allocation2 + $0x1a0] sm:$0xff] }
 0x189   : > { %20143 = vmatpush3.msk.msra.mxu0 %vm772_vm0, %v17449_v62  ;;  %20097 = vmatprep.mubr.msk.f32.mxu0 %vm434_vm1, %v23022_v24  ;;  %v3276_v24 = vld [vmem:[#allocation2 + $0x31] sm:$0xff] }
 0x18a   : > { %20192 = vmatprep.subr.msk.mxu0 %vm772_vm0, %v17483_v12 }
 0x18c   : > { %20098 = vmatmul.mubr.msk.f32.gmra.mrb[2].mxu0 %vm434_vm1, %v23028_v6  ;;  %v17518_v6 = vld [vmem:[%s27825_s4 + $0x4] sm:$0xf] }
 0x18d   : > { %20100 = vmatprep.mubr.msk.f32.mxu0 %vm434_vm1, %v23030_v25  ;;  %v3277_v25 = vld [vmem:[#allocation2 + $0x39] sm:$0xff]  ;;  %20242 = vmatprep.subr.msk.mxu1 %vm772_vm0, %v17518_v6 }
 0x18e   : > { %20243 = vmatpush3.msk.msra.mxu1 %vm772_vm0, %v17518_v6 }
 0x190   : > { %20101 = vmatmul.mubr.msk.f32.gmra.mrb[4].mxu0 %vm434_vm1, %v23036_v26  ;;  %v3278_v26 = vld [vmem:[#allocation2 + $0x49] sm:$0xff] }
 0x191   : > { %20103 = vmatprep.mubr.msk.f32.mxu0 %vm434_vm1, %v23038_v27  ;;  %v3279_v27 = vld [vmem:[#allocation2 + $0x51] sm:$0xff] }
 0x194   : > { %20104 = vmatmul.mubr.msk.f32.gmra.mrb[6].mxu0 %vm434_vm1, %v23044_v28  ;;  %v3280_v28 = vld [vmem:[#allocation2 + $0x61] sm:$0xff] }
 0x195   : > { %20106 = vmatprep.mubr.msk.f32.mxu0 %vm434_vm1, %v23046_v29  ;;  %v3281_v29 = vld [vmem:[#allocation2 + $0x69] sm:$0xff] }
 0x198   : > { %20107 = vmatmul.mubr.msk.f32.gmra.mrb[8].mxu0 %vm434_vm1, %v23052_v30  ;;  %v3282_v30 = vld [vmem:[#allocation2 + $0x79] sm:$0xff] }
 0x199   : > { %20109 = vmatprep.mubr.msk.f32.mxu0 %vm434_vm1, %v23054_v31  ;;  %v3283_v31 = vld [vmem:[#allocation2 + $0x81] sm:$0xff] }
 0x19c   : > { %20110 = vmatmul.mubr.msk.f32.gmra.mrb[10].mxu0 %vm434_vm1, %v23060_v32  ;;  %v3284_v32 = vld [vmem:[#allocation2 + $0x91] sm:$0xff] }
 0x19d   : > { %20112 = vmatprep.mubr.msk.f32.mxu0 %vm434_vm1, %v23062_v33  ;;  %v3285_v33 = vld [vmem:[#allocation2 + $0x99] sm:$0xff] }
 0x1a0   : > { %20113 = vmatmul.mubr.msk.f32.gmra.mrb[12].mxu0 %vm434_vm1, %v23068_v34  ;;  %v3286_v34 = vld [vmem:[#allocation2 + $0xa9] sm:$0xff] }
 0x1a1   : > { %20115 = vmatprep.mubr.msk.f32.mxu0 %vm434_vm1, %v23070_v35  ;;  %v3287_v35 = vld [vmem:[#allocation2 + $0xb1] sm:$0xff] }
 0x1a4   : > { %20116 = vmatmul.mubr.msk.f32.gmra.mrb[14].mxu0 %vm434_vm1, %v23076_v36  ;;  %v3306_v36 = vld [vmem:[#allocation2 + $0x199] sm:$0xff] }
 0x1a5   : > { %20118 = vmatprep.mubr.msk.f32.mxu0 %vm434_vm1, %v23078_v37  ;;  %v3307_v37 = vld [vmem:[#allocation2 + $0x1a1] sm:$0xff] }
 0x1a8   : > { %20119 = vmatmul.mubr.msk.f32.gmra.mrb[16].mxu0 %vm434_vm1, %v23084_v38  ;;  %v28148_v38 = vld [vmem:[#allocation10_spill] sm:$0xff] }
 0x1a9   : > { %20121 = vmatprep.mubr.msk.f32.mxu0 %vm434_vm1, %v23086_v39  ;;  %v28149_v39 = vld [vmem:[#allocation11_spill] sm:$0xff] }
 0x1ac   : > { %20122 = vmatmul.mubr.msk.f32.gmra.mrb[18].mxu0 %vm434_vm1, %v23092_v40  ;;  %v28150_v40 = vld [vmem:[#allocation12_spill] sm:$0xff] }
 0x1ad   : > { %20124 = vmatprep.mubr.msk.f32.mxu0 %vm434_vm1, %v23094_v41  ;;  %v28151_v41 = vld [vmem:[#allocation13_spill] sm:$0xff] }
 0x1b0   : > { %20125 = vmatmul.mubr.msk.f32.gmra.mrb[20].mxu0 %vm434_vm1, %v23100_v42  ;;  %v28152_v42 = vld [vmem:[#allocation14_spill] sm:$0xff] }
 0x1b1   : > { %20127 = vmatprep.mubr.msk.f32.mxu0 %vm434_vm1, %v23102_v43  ;;  %v28153_v43 = vld [vmem:[#allocation15_spill] sm:$0xff] }
 0x1b4   : > { %20128 = vmatmul.mubr.msk.f32.gmra.mrb[22].mxu0 %vm434_vm1, %v23109_v45  ;;  %v28154_v45 = vld [vmem:[#allocation16_spill] sm:$0xff] }
 0x1b5   : > { %20130 = vmatprep.mubr.msk.f32.mxu0 %vm434_vm1, %v23112_v48  ;;  %v28155_v48 = vld [vmem:[#allocation17_spill] sm:$0xff] }
 0x1b8   : > { %20131 = vmatmul.mubr.msk.f32.gmra.mrb[24].mxu0 %vm434_vm1, %v23120_v50  ;;  %v28156_v50 = vld [vmem:[#allocation18_spill] sm:$0xff] }
 0x1b9   : > { %20133 = vmatprep.mubr.msk.f32.mxu0 %vm434_vm1, %v23122_v51  ;;  %v28157_v51 = vld [vmem:[#allocation19_spill] sm:$0xff] }
 0x1bc   : > { %20134 = vmatmul.mubr.msk.f32.gmra.mrb[26].mxu0 %vm434_vm1, %v23128_v52  ;;  %v28158_v52 = vld [vmem:[#allocation20_spill] sm:$0xff] }
 0x1bd   : > { %20136 = vmatprep.mubr.msk.f32.mxu0 %vm434_vm1, %v23391_v19 }
 0x1c0   : > { %20137 = vmatmul.mubr.msk.f32.gmra.mrb[28].mxu0 %vm434_vm1, %v23397_v21 }
 0x1c1   : > { %20139 = vmatprep.mubr.msk.f32.mxu0 %vm434_vm1, %v2916_v22 }
 0x1c4   : > { %20140 = vmatmul.mubr.msk.f32.gmra.mrb[30].mxu0 %vm434_vm1, %v2917_v23 }
 0x1c5   : > { %20144 = vmatprep.mubr.msk.f32.mxu0 %vm434_vm1, %v3276_v24 }
 0x1c8   : > { %20145 = vmatmul.mubr.msk.f32.vlgmr.msra.gmra.mrb[0].mxu0 %vm434_vm1, %v3277_v25 }
 0x1c9   : > { %20193 = vmatpush3.msk.msra.mxu0 %vm772_vm0, %v17483_v12  ;;  %20147 = vmatprep.mubr.msk.f32.mxu0 %vm434_vm1, %v3278_v26  ;;  %v3697_v12 = vld [vmem:[#allocation2 + $0x1a2] sm:$0xff] }
 0x1cc   : > { %20148 = vmatmul.mubr.msk.f32.gmra.mrb[2].mxu0 %vm434_vm1, %v3279_v27 }
 0x1cd   : > { %20150 = vmatprep.mubr.msk.f32.mxu0 %vm434_vm1, %v3280_v28 }
 0x1d0   : > { %20151 = vmatmul.mubr.msk.f32.gmra.mrb[4].mxu0 %vm434_vm1, %v3281_v29 }
 0x1d1   : > { %20153 = vmatprep.mubr.msk.f32.mxu0 %vm434_vm1, %v3282_v30 }
 0x1d4   : > { %20154 = vmatmul.mubr.msk.f32.gmra.mrb[6].mxu0 %vm434_vm1, %v3283_v31 }
 0x1d5   : > { %20156 = vmatprep.mubr.msk.f32.mxu0 %vm434_vm1, %v3284_v32 }
 0x1d8   : > { %20157 = vmatmul.mubr.msk.f32.gmra.mrb[8].mxu0 %vm434_vm1, %v3285_v33 }
 0x1d9   : > { %20159 = vmatprep.mubr.msk.f32.mxu0 %vm434_vm1, %v3286_v34 }
 0x1dc   : > { %20160 = vmatmul.mubr.msk.f32.gmra.mrb[10].mxu0 %vm434_vm1, %v3287_v35 }
 0x1dd   : > { %20162 = vmatprep.mubr.msk.f32.mxu0 %vm434_vm1, %v23193_v44 }
 0x1e0   : > { %20163 = vmatmul.mubr.msk.f32.gmra.mrb[12].mxu0 %vm434_vm1, %v23199_v47 }
 0x1e1   : > { %20165 = vmatprep.mubr.msk.f32.mxu0 %vm434_vm1, %v23209_v53 }
 0x1e4   : > { %20166 = vmatmul.mubr.msk.f32.gmra.mrb[14].mxu0 %vm434_vm1, %v23215_v20 }
 0x1e5   : > { %20168 = vmatprep.mubr.msk.f32.mxu0 %vm434_vm1, %v23225_v46 }
 0x1e8   : > { %20169 = vmatmul.mubr.msk.f32.gmra.mrb[16].mxu0 %vm434_vm1, %v23231_v17  ;;  %v4192_v17 = vld [vmem:[#allocation2 + $0x1] sm:$0xff] }
 0x1e9   : > { %20171 = vmatprep.mubr.msk.f32.mxu0 %vm434_vm1, %v23241_v54  ;;  %20244 = vmatprep.mubr.msk.f32.mxu1 %vm434_vm1, %v4192_v17 }
 0x1ec   : > { %20172 = vmatmul.mubr.msk.f32.gmra.mrb[18].mxu0 %vm434_vm1, %v23247_v11  ;;  %v3696_v11 = vld [vmem:[#allocation2 + $0x19a] sm:$0xff] }
 0x1ed   : > { %20174 = vmatprep.mubr.msk.f32.mxu0 %vm434_vm1, %v23257_v49 }
 0x1f0   : > { %20175 = vmatmul.mubr.msk.f32.gmra.mrb[20].mxu0 %vm434_vm1, %v23263_v8  ;;  %v28162_v8 = vld [vmem:[#allocation28_spill] sm:$0xff] }
 0x1f1   : > { %20177 = vmatprep.mubr.msk.f32.mxu0 %vm434_vm1, %v23273_v18  ;;  %v23739_v18 = vpop.f32.mrb[0].mxu1 }
 0x1f2   : > { %v23741_v20 = vpop.f32.mrb[1].mxu1 }
 0x1f3   : > { %v23743_v44 = vpop.f32.mrb[2].mxu1 }
 0x1f4   : > { %20178 = vmatmul.mubr.msk.f32.gmra.mrb[22].mxu0 %vm434_vm1, %v23279_v5  ;;  %v28161_v5 = vld [vmem:[#allocation25_spill] sm:$0xff]  ;;  %v23745_v46 = vpop.f32.mrb[3].mxu1 }
 0x1f5   : > { %20180 = vmatprep.mubr.msk.f32.mxu0 %vm434_vm1, %v28120_v55  ;;  %v23747_v47 = vpop.f32.mrb[4].mxu1 }
 0x1f6   : > { %v23749_v49 = vpop.f32.mrb[5].mxu1 }
 0x1f7   : > { %v23751_v53 = vpop.f32.mrb[6].mxu1 }
 0x1f8   : > { %20181 = vmatmul.mubr.msk.f32.gmra.mrb[24].mxu0 %vm434_vm1, %v23295_v3  ;;  %v28160_v3 = vld [vmem:[#allocation22_spill] sm:$0xff]  ;;  %v23753_v54 = vpop.f32.mrb[7].mxu1 }
 0x1f9   : > { %20183 = vmatprep.mubr.msk.f32.mxu0 %vm434_vm1, %v23305_v9  ;;  %v28163_v9 = vld [vmem:[#allocation32_spill] sm:$0xff]  ;;  %v23755_v19 = vpop.f32.mrb[8].mxu1 }
 0x1fa   : > { %v23757_v21 = vpop.f32.mrb[9].mxu1 }
 0x1fb   : > { %v23759_v55 = vpop.f32.mrb[10].mxu1 }
 0x1fc   : > { %20184 = vmatmul.mubr.msk.f32.gmra.mrb[26].mxu0 %vm434_vm1, %v23311_v58  ;;  %v28159_v58 = vld [vmem:[#allocation21_spill] sm:$0xff] }
 0x1fd   : > { %20186 = vmatprep.mubr.msk.f32.mxu0 %vm434_vm1, %v23464_v56  ;;  %v23761_v56 = vpop.f32.mrb[11].mxu1 }
 0x200   : > { %20187 = vmatmul.mubr.msk.f32.gmra.mrb[28].mxu0 %vm434_vm1, %v23470_v57  ;;  %v23763_v57 = vpop.f32.mrb[12].mxu1 }
 0x201   : > { %20189 = vmatprep.mubr.msk.f32.mxu0 %vm434_vm1, %v3306_v36  ;;  %v23765_v62 = vpop.f32.mrb[13].mxu1 }
 0x204   : > { %20190 = vmatmul.mubr.msk.f32.gmra.mrb[30].mxu0 %vm434_vm1, %v3307_v37 }
 0x205   : > { %20194 = vmatprep.mubr.msk.f32.mxu0 %vm434_vm1, %v28123_v0  ;;  %v23767_v0 = vpop.f32.mrb[14].mxu1 }
 0x208   : > { %20195 = vmatmul.mubr.msk.f32.vlgmr.msra.gmra.mrb[0].mxu0 %vm434_vm1, %v28124_v1  ;;  %v23769_v1 = vpop.f32.mrb[15].mxu1 }
 0x209   : > { %20197 = vmatprep.mubr.msk.f32.mxu0 %vm434_vm1, %v28125_v2  ;;  %v23774_v2 = vld [vmem:[%s27825_s4 + $0x8] sm:$0xf] }
 0x20c   : > { %20198 = vmatmul.mubr.msk.f32.gmra.mrb[2].mxu0 %vm434_vm1, %v28126_v10  ;;  %v23781_v10 = vld [vmem:[%s27824_s3] ss:$0 sm:$0xff] }
 0x20d   : > { %20200 = vmatprep.mubr.msk.f32.mxu0 %vm434_vm1, %v28148_v38 }
 0x210   : > { %20201 = vmatmul.mubr.msk.f32.gmra.mrb[4].mxu0 %vm434_vm1, %v28149_v39 }
 0x211   : > { %20203 = vmatprep.mubr.msk.f32.mxu0 %vm434_vm1, %v28150_v40 }
 0x214   : > { %20204 = vmatmul.mubr.msk.f32.gmra.mrb[6].mxu0 %vm434_vm1, %v28151_v41 }
 0x215   : > { %20206 = vmatprep.mubr.msk.f32.mxu0 %vm434_vm1, %v28152_v42 }
 0x218   : > { %20207 = vmatmul.mubr.msk.f32.gmra.mrb[8].mxu0 %vm434_vm1, %v28153_v43 }
 0x219   : > { %20209 = vmatprep.mubr.msk.f32.mxu0 %vm434_vm1, %v28154_v45 }
 0x21c   : > { %20210 = vmatmul.mubr.msk.f32.gmra.mrb[10].mxu0 %vm434_vm1, %v28155_v48 }
 0x21d   : > { %20212 = vmatprep.mubr.msk.f32.mxu0 %vm434_vm1, %v28156_v50 }
 0x220   : > { %20213 = vmatmul.mubr.msk.f32.gmra.mrb[12].mxu0 %vm434_vm1, %v28157_v51 }
 0x221   : > { %20215 = vmatprep.mubr.msk.f32.mxu0 %vm434_vm1, %v28158_v52 }
 0x224   : > { %20216 = vmatmul.mubr.msk.f32.gmra.mrb[14].mxu0 %vm434_vm1, %v28159_v58 }
 0x225   : > { %20218 = vmatprep.mubr.msk.f32.mxu0 %vm434_vm1, %v28160_v3 }
 0x228   : > { %20219 = vmatmul.mubr.msk.f32.gmra.mrb[16].mxu0 %vm434_vm1, %v28140_v59 }
 0x229   : > { %20221 = vmatprep.mubr.msk.f32.mxu0 %vm434_vm1, %v28141_v61 }
 0x22c   : > { %20222 = vmatmul.mubr.msk.f32.gmra.mrb[18].mxu0 %vm434_vm1, %v28161_v5 }
 0x22d   : > { %20224 = vmatprep.mubr.msk.f32.mxu0 %vm434_vm1, %v28143_v13 }
 0x230   : > { %20225 = vmatmul.mubr.msk.f32.gmra.mrb[20].mxu0 %vm434_vm1, %v28144_v14 }
 0x231   : > { %20227 = vmatprep.mubr.msk.f32.mxu0 %vm434_vm1, %v28162_v8 }
 0x234   : > { %20228 = vmatmul.mubr.msk.f32.gmra.mrb[22].mxu0 %vm434_vm1, %v28146_v16 }
 0x235   : > { %20230 = vmatprep.mubr.msk.f32.mxu0 %vm434_vm1, %v28147_v60 }
 0x238   : > { %20231 = vmatmul.mubr.msk.f32.gmra.mrb[24].mxu0 %vm434_vm1, %v23309_v4  ;;  %v4193_v4 = vld [vmem:[#allocation2 + $0x9] sm:$0xff] }
 0x239   : > { %20233 = vmatprep.mubr.msk.f32.mxu0 %vm434_vm1, %v28163_v9  ;;  %20245 = vmatmul.mubr.msk.f32.vlgmr.msra.gmra.mrb[16].mxu1 %vm434_vm1, %v4193_v4 }
 0x23c   : > { %20234 = vmatmul.mubr.msk.f32.gmra.mrb[26].mxu0 %vm434_vm1, %v23323_v7  ;;  %v4191_v7 = vld [vmem:[%s27825_s4] sm:$0xf] }
 0x23d   : > { %20236 = vmatprep.mubr.msk.f32.mxu0 %vm434_vm1, %v23537_v63  ;;  %20292 = vmatprep.subr.msk.mxu1 %vm772_vm0, %v4191_v7 }
 0x23e   : > { %20293 = vmatpush3.msk.msra.mxu1 %vm772_vm0, %v4191_v7 }
 0x23f   : > { %20342 = vmatprep.subr.msk.mxu1 %vm772_vm0, %v23774_v2 }
 0x240   : > { %20237 = vmatmul.mubr.msk.f32.gmra.mrb[28].mxu0 %vm434_vm1, %v23543_v15 }
 0x241   : > { %20239 = vmatprep.mubr.msk.f32.mxu0 %vm434_vm1, %v3696_v11 }
 0x244   : > { %20240 = vmatmul.mubr.msk.f32.gmra.mrb[30].mxu0 %vm434_vm1, %v3697_v12 }
 0x2db   : > { %v20196_v13 = vpop.f32.mrb[0].mxu0 }
 0x2dc   : > { %v4064_v14 = vadd.f32 %v20196_v13, %v23781_v10  ;;  %v3865_v15 = vpop.f32.mrb[1].mxu0 }
 0x2dd   : > { %v4063_v16 = vadd.f32 %v23781_v10, %v3865_v15 }
 0x2de   : > { %v4096_v60 = vmax.f32 %v4064_v14, 0.0 }
 0x2df   : > { %v4095_v59 = vmax.f32 %v4063_v16, 0.0  ;;  %v20199_v61 = vpop.f32.mrb[2].mxu0 }
 0x2e0   : > { %4128 = vst.msk [vmem:[#allocation2 + $0x21] sm:$0xff] %vm434_vm1, %v4096_v60  ;;  %v4066_v63 = vadd.f32 %v20199_v61, %v23781_v10  ;;  %v3875_v22 = vpop.f32.mrb[3].mxu0 }
 0x2e1   : > { %4127 = vst.msk [vmem:[#allocation2 + $0x19] sm:$0xff] %vm434_vm1, %v4095_v59  ;;  %v4065_v23 = vadd.f32 %v23781_v10, %v3875_v22 }
 0x2e2   : > { %v4098_v24 = vmax.f32 %v4066_v63, 0.0 }
 0x2e3   : > { %v4097_v6 = vmax.f32 %v4065_v23, 0.0  ;;  %v20202_v25 = vpop.f32.mrb[4].mxu0 }
 0x2e4   : > { %4130 = vst.msk [vmem:[#allocation2 + $0x39] sm:$0xff] %vm434_vm1, %v4098_v24  ;;  %v4068_v26 = vadd.f32 %v20202_v25, %v23781_v10  ;;  %v3885_v27 = vpop.f32.mrb[5].mxu0 }
 0x2e5   : > { %4129 = vst.msk [vmem:[#allocation2 + $0x31] sm:$0xff] %vm434_vm1, %v4097_v6  ;;  %v4067_v28 = vadd.f32 %v23781_v10, %v3885_v27 }
 0x2e6   : > { %v4100_v29 = vmax.f32 %v4068_v26, 0.0 }
 0x2e7   : > { %v4099_v30 = vmax.f32 %v4067_v28, 0.0  ;;  %v20205_v31 = vpop.f32.mrb[6].mxu0  ;;  %v23801_v36 = vld [vmem:[#allocation2 + $0x21] sm:$0xff] }
 0x2e8   : > { %4132 = vst.msk [vmem:[#allocation2 + $0x51] sm:$0xff] %vm434_vm1, %v4100_v29  ;;  %v4070_v32 = vadd.f32 %v20205_v31, %v23781_v10  ;;  %v3895_v33 = vpop.f32.mrb[7].mxu0  ;;  %v23795_v34 = vld [vmem:[#allocation2 + $0x19] sm:$0xff] }
 0x2e9   : > { %4131 = vst.msk [vmem:[#allocation2 + $0x49] sm:$0xff] %vm434_vm1, %v4099_v30  ;;  %v4069_v35 = vadd.f32 %v23781_v10, %v3895_v33  ;;  %20247 = vmatprep.mubr.msk.f32.mxu1 %vm434_vm1, %v23795_v34 }
 0x2ea   : > { %v4102_v37 = vmax.f32 %v4070_v32, 0.0  ;;  %20248 = vmatmul.mubr.msk.f32.gmra.mrb[18].mxu1 %vm434_vm1, %v23801_v36 }
 0x2eb   : > { %v4101_v38 = vmax.f32 %v4069_v35, 0.0  ;;  %v20208_v39 = vpop.f32.mrb[8].mxu0  ;;  %v23813_v45 = vld [vmem:[#allocation2 + $0x39] sm:$0xff] }
 0x2ec   : > { %4134 = vst.msk [vmem:[#allocation2 + $0x69] sm:$0xff] %vm434_vm1, %v4102_v37  ;;  %v4072_v40 = vadd.f32 %v20208_v39, %v23781_v10  ;;  %v3905_v41 = vpop.f32.mrb[9].mxu0  ;;  %v23807_v42 = vld [vmem:[#allocation2 + $0x31] sm:$0xff] }
 0x2ed   : > { %4133 = vst.msk [vmem:[#allocation2 + $0x61] sm:$0xff] %vm434_vm1, %v4101_v38  ;;  %v4071_v43 = vadd.f32 %v23781_v10, %v3905_v41  ;;  %20250 = vmatprep.mubr.msk.f32.mxu1 %vm434_vm1, %v23807_v42 }
 0x2ee   : > { %v4104_v48 = vmax.f32 %v4072_v40, 0.0  ;;  %20251 = vmatmul.mubr.msk.f32.gmra.mrb[20].mxu1 %vm434_vm1, %v23813_v45 }
 0x2ef   : > { %v4103_v50 = vmax.f32 %v4071_v43, 0.0  ;;  %v20211_v51 = vpop.f32.mrb[10].mxu0  ;;  %v23825_v8 = vld [vmem:[#allocation2 + $0x51] sm:$0xff] }
 0x2f0   : > { %4136 = vst.msk [vmem:[#allocation2 + $0x81] sm:$0xff] %vm434_vm1, %v4104_v48  ;;  %v4074_v52 = vadd.f32 %v20211_v51, %v23781_v10  ;;  %v3915_v58 = vpop.f32.mrb[11].mxu0  ;;  %v23819_v3 = vld [vmem:[#allocation2 + $0x49] sm:$0xff] }
 0x2f1   : > { %4135 = vst.msk [vmem:[#allocation2 + $0x79] sm:$0xff] %vm434_vm1, %v4103_v50  ;;  %v4073_v5 = vadd.f32 %v23781_v10, %v3915_v58  ;;  %20253 = vmatprep.mubr.msk.f32.mxu1 %vm434_vm1, %v23819_v3 }
 0x2f2   : > { %v4106_v9 = vmax.f32 %v4074_v52, 0.0  ;;  %20254 = vmatmul.mubr.msk.f32.gmra.mrb[22].mxu1 %vm434_vm1, %v23825_v8 }
 0x2f3   : > { %v4105_v11 = vmax.f32 %v4073_v5, 0.0  ;;  %v20214_v12 = vpop.f32.mrb[12].mxu0  ;;  %v23837_v14 = vld [vmem:[#allocation2 + $0x69] sm:$0xff] }
 0x2f4   : > { %4138 = vst.msk [vmem:[#allocation2 + $0x99] sm:$0xff] %vm434_vm1, %v4106_v9  ;;  %v4076_v17 = vadd.f32 %v20214_v12, %v23781_v10  ;;  %v3925_v4 = vpop.f32.mrb[13].mxu0  ;;  %v23831_v7 = vld [vmem:[#allocation2 + $0x61] sm:$0xff] }
 0x2f5   : > { %4137 = vst.msk [vmem:[#allocation2 + $0x91] sm:$0xff] %vm434_vm1, %v4105_v11  ;;  %v4075_v13 = vadd.f32 %v23781_v10, %v3925_v4  ;;  %20256 = vmatprep.mubr.msk.f32.mxu1 %vm434_vm1, %v23831_v7 }
 0x2f6   : > { %v4108_v15 = vmax.f32 %v4076_v17, 0.0  ;;  %20257 = vmatmul.mubr.msk.f32.gmra.mrb[24].mxu1 %vm434_vm1, %v23837_v14 }
 0x2f7   : > { %v4107_v16 = vmax.f32 %v4075_v13, 0.0  ;;  %v20217_v60 = vpop.f32.mrb[14].mxu0  ;;  %v23849_v23 = vld [vmem:[#allocation2 + $0x81] sm:$0xff] }
 0x2f8   : > { %4140 = vst.msk [vmem:[#allocation2 + $0xb1] sm:$0xff] %vm434_vm1, %v4108_v15  ;;  %v4078_v59 = vadd.f32 %v20217_v60, %v23781_v10  ;;  %v3935_v61 = vpop.f32.mrb[15].mxu0  ;;  %v23843_v63 = vld [vmem:[#allocation2 + $0x79] sm:$0xff] }
 0x2f9   : > { %4139 = vst.msk [vmem:[#allocation2 + $0xa9] sm:$0xff] %vm434_vm1, %v4107_v16  ;;  %v4077_v22 = vadd.f32 %v23781_v10, %v3935_v61  ;;  %20259 = vmatprep.mubr.msk.f32.mxu1 %vm434_vm1, %v23843_v63 }
 0x2fa   : > { %v4110_v24 = vmax.f32 %v4078_v59, 0.0  ;;  %20260 = vmatmul.mubr.msk.f32.gmra.mrb[26].mxu1 %vm434_vm1, %v23849_v23 }
 0x2fb   : > { %v4109_v6 = vmax.f32 %v4077_v22, 0.0  ;;  %v20220_v25 = vpop.f32.mrb[16].mxu0  ;;  %v23861_v30 = vld [vmem:[#allocation2 + $0x99] sm:$0xff] }
 0x2fc   : > { %4142 = vst.msk [vmem:[#allocation2 + $0xc9] sm:$0xff] %vm434_vm1, %v4110_v24  ;;  %v21644_v26 = vadd.f32 %v20220_v25, %v23739_v18  ;;  %v3945_v27 = vpop.f32.mrb[17].mxu0  ;;  %v23855_v28 = vld [vmem:[#allocation2 + $0x91] sm:$0xff] }
 0x2fd   : > { %4141 = vst.msk [vmem:[#allocation2 + $0xc1] sm:$0xff] %vm434_vm1, %v4109_v6  ;;  %v21645_v29 = vadd.f32 %v3945_v27, %v23741_v20  ;;  %20262 = vmatprep.mubr.msk.f32.mxu1 %vm434_vm1, %v23855_v28 }
 0x2fe   : > { %v4080_v31 = vadd.f32 %v21644_v26, %v23781_v10  ;;  %20263 = vmatmul.mubr.msk.f32.gmra.mrb[28].mxu1 %vm434_vm1, %v23861_v30 }
 0x2ff   : > { %v4079_v32 = vadd.f32 %v21645_v29, %v23781_v10  ;;  %v20223_v18 = vpop.f32.mrb[18].mxu0  ;;  %v23873_v40 = vld [vmem:[#allocation2 + $0xb1] sm:$0xff] }
 0x300   : > { %v4112_v33 = vmax.f32 %v4080_v31, 0.0  ;;  %v21646_v35 = vadd.f32 %v20223_v18, %v23743_v44  ;;  %v3955_v37 = vpop.f32.mrb[19].mxu0  ;;  %v23868_v38 = vld [vmem:[#allocation2 + $0xa9] sm:$0xff] }
 0x301   : > { %v4111_v20 = vmax.f32 %v4079_v32, 0.0  ;;  %v21647_v39 = vadd.f32 %v3955_v37, %v23745_v46  ;;  %20265 = vmatprep.mubr.msk.f32.mxu1 %vm434_vm1, %v23868_v38 }
 0x302   : > { %4144 = vst.msk [vmem:[#allocation2 + $0xe1] sm:$0xff] %vm434_vm1, %v4112_v33  ;;  %v4082_v41 = vadd.f32 %v21646_v35, %v23781_v10  ;;  %20266 = vmatmul.mubr.msk.f32.gmra.mrb[30].mxu1 %vm434_vm1, %v23873_v40 }
 0x303   : > { %4143 = vst.msk [vmem:[#allocation2 + $0xd9] sm:$0xff] %vm434_vm1, %v4111_v20  ;;  %v4081_v44 = vadd.f32 %v21647_v39, %v23781_v10  ;;  %v20226_v43 = vpop.f32.mrb[20].mxu0  ;;  %v23887_v5 = vld [vmem:[#allocation2 + $0xc9] sm:$0xff] }
 0x304   : > { %v4114_v48 = vmax.f32 %v4082_v41, 0.0  ;;  %v21648_v46 = vadd.f32 %v20226_v43, %v23747_v47  ;;  %v3965_v50 = vpop.f32.mrb[21].mxu0  ;;  %v23882_v51 = vld [vmem:[#allocation2 + $0xc1] sm:$0xff] }
 0x305   : > { %v4113_v52 = vmax.f32 %v4081_v44, 0.0  ;;  %v21649_v58 = vadd.f32 %v3965_v50, %v23749_v49  ;;  %20268 = vmatprep.mubr.msk.f32.mxu1 %vm434_vm1, %v23882_v51 }
 0x306   : > { %4146 = vst.msk [vmem:[#allocation2 + $0xf9] sm:$0xff] %vm434_vm1, %v4114_v48  ;;  %v4084_v9 = vadd.f32 %v21648_v46, %v23781_v10  ;;  %20269 = vmatmul.mubr.msk.f32.gmra.mrb[32].mxu1 %vm434_vm1, %v23887_v5 }
 0x307   : > { %4145 = vst.msk [vmem:[#allocation2 + $0xf1] sm:$0xff] %vm434_vm1, %v4113_v52  ;;  %v4083_v47 = vadd.f32 %v21649_v58, %v23781_v10  ;;  %v20229_v11 = vpop.f32.mrb[22].mxu0 }
 0x308   : > { %v4116_v12 = vmax.f32 %v4084_v9, 0.0  ;;  %v21650_v49 = vadd.f32 %v20229_v11, %v23751_v53  ;;  %v3975_v17 = vpop.f32.mrb[23].mxu0 }
 0x309   : > { %v4115_v4 = vmax.f32 %v4083_v47, 0.0  ;;  %v21651_v13 = vadd.f32 %v3975_v17, %v23753_v54  ;;  %v23905_v61 = vld [vmem:[#allocation2 + $0xe1] sm:$0xff] }
 0x30a   : > { %4148 = vst.msk [vmem:[#allocation2 + $0x111] sm:$0xff] %vm434_vm1, %v4116_v12  ;;  %v4086_v15 = vadd.f32 %v21650_v49, %v23781_v10  ;;  %v23899_v16 = vld [vmem:[#allocation2 + $0xd9] sm:$0xff] }
 0x30b   : > { %4147 = vst.msk [vmem:[#allocation2 + $0x109] sm:$0xff] %vm434_vm1, %v4115_v4  ;;  %v4085_v60 = vadd.f32 %v21651_v13, %v23781_v10  ;;  %v20232_v59 = vpop.f32.mrb[24].mxu0  ;;  %20271 = vmatprep.mubr.msk.f32.mxu1 %vm434_vm1, %v23899_v16 }
 0x30c   : > { %v4118_v53 = vmax.f32 %v4086_v15, 0.0  ;;  %v21652_v22 = vadd.f32 %v20232_v59, %v23755_v19  ;;  %v3985_v54 = vpop.f32.mrb[25].mxu0  ;;  %20272 = vmatmul.mubr.msk.f32.gmra.mrb[34].mxu1 %vm434_vm1, %v23905_v61  ;;  %v4159_v59 = vld [vmem:[#allocation2] sm:$0xff] }
 0x30d   : > { %v4117_v24 = vmax.f32 %v4085_v60, 0.0  ;;  %v21653_v6 = vadd.f32 %v3985_v54, %v23757_v21  ;;  %v23919_v19 = vld [vmem:[#allocation2 + $0xf9] sm:$0xff]  ;;  %v23987_v54 = vld [vmem:[%s27825_s4 + $0xc] sm:$0xf] }
 0x30e   : > { %4150 = vst.msk [vmem:[#allocation2 + $0x129] sm:$0xff] %vm434_vm1, %v4118_v53  ;;  %v4088_v25 = vadd.f32 %v21652_v22, %v23781_v10  ;;  %v23913_v26 = vld [vmem:[#allocation2 + $0xf1] sm:$0xff]  ;;  %v4160_v22 = vld [vmem:[#allocation2 + $0x8] sm:$0xff] }
 0x30f   : > { %4149 = vst.msk [vmem:[#allocation2 + $0x121] sm:$0xff] %vm434_vm1, %v4117_v24  ;;  %v4087_v27 = vadd.f32 %v21653_v6, %v23781_v10  ;;  %v20235_v29 = vpop.f32.mrb[26].mxu0  ;;  %20274 = vmatprep.mubr.msk.f32.mxu1 %vm434_vm1, %v23913_v26  ;;  %v23990_v24 = vld [vmem:[#allocation2 + $0x18] sm:$0xff]  ;;  %v23998_v6 = vld [vmem:[#allocation2 + $0x20] sm:$0xff] }
 0x310   : > { %v4120_v31 = vmax.f32 %v4088_v25, 0.0  ;;  %v21654_v32 = vadd.f32 %v20235_v29, %v23759_v55  ;;  %v3995_v21 = vpop.f32.mrb[27].mxu0  ;;  %20275 = vmatmul.mubr.msk.f32.gmra.mrb[36].mxu1 %vm434_vm1, %v23919_v19  ;;  %v24002_v25 = vld [vmem:[#allocation2 + $0x30] sm:$0xff] }
 0x311   : > { %v4119_v18 = vmax.f32 %v4087_v27, 0.0  ;;  %v21655_v33 = vadd.f32 %v3995_v21, %v23761_v56  ;;  %v23933_v55 = vld [vmem:[#allocation2 + $0x111] sm:$0xff] }
 0x312   : > { %4152 = vst.msk [vmem:[#allocation2 + $0x141] sm:$0xff] %vm434_vm1, %v4120_v31  ;;  %v4090_v35 = vadd.f32 %v21654_v32, %v23781_v10  ;;  %v23927_v37 = vld [vmem:[#allocation2 + $0x109] sm:$0xff]  ;;  %v24006_v27 = vld [vmem:[#allocation2 + $0x38] sm:$0xff]  ;;  %v24018_v31 = vld [vmem:[#allocation2 + $0x60] sm:$0xff] }
 0x313   : > { %4151 = vst.msk [vmem:[#allocation2 + $0x139] sm:$0xff] %vm434_vm1, %v4119_v18  ;;  %v4089_v20 = vadd.f32 %v21655_v33, %v23781_v10  ;;  %v20238_v39 = vpop.f32.mrb[28].mxu0  ;;  %20277 = vmatprep.mubr.msk.f32.mxu1 %vm434_vm1, %v23927_v37  ;;  %v24014_v29 = vld [vmem:[#allocation2 + $0x50] sm:$0xff]  ;;  %v24022_v32 = vld [vmem:[#allocation2 + $0x68] sm:$0xff]  ;;  %v24026_v21 = vld [vmem:[#allocation2 + $0x78] sm:$0xff] }
 0x314   : > { %v4122_v41 = vmax.f32 %v4090_v35, 0.0  ;;  %v21656_v44 = vadd.f32 %v20238_v39, %v23763_v57  ;;  %v4005_v56 = vpop.f32.mrb[29].mxu0  ;;  %20278 = vmatmul.mubr.msk.f32.gmra.mrb[38].mxu1 %vm434_vm1, %v23933_v55  ;;  %v24030_v18 = vld [vmem:[#allocation2 + $0x80] sm:$0xff]  ;;  %v24034_v33 = vld [vmem:[#allocation2 + $0x90] sm:$0xff]  ;;  %v24038_v35 = vld [vmem:[#allocation2 + $0x98] sm:$0xff] }
 0x315   : > { %v4121_v43 = vmax.f32 %v4089_v20, 0.0  ;;  %v21657_v48 = vadd.f32 %v4005_v56, %v23765_v62  ;;  %v23947_v57 = vld [vmem:[#allocation2 + $0x129] sm:$0xff]  ;;  %v24058_v56 = vld [vmem:[#allocation2 + $0xd8] sm:$0xff] }
 0x316   : > { %4154 = vst.msk [vmem:[#allocation2 + $0x159] sm:$0xff] %vm434_vm1, %v4122_v41  ;;  %v4092_v46 = vadd.f32 %v21656_v44, %v23781_v10  ;;  %v23941_v50 = vld [vmem:[#allocation2 + $0x121] sm:$0xff]  ;;  %v24046_v39 = vld [vmem:[#allocation2 + $0xb0] sm:$0xff] }
 0x317   : > { %4153 = vst.msk [vmem:[#allocation2 + $0x151] sm:$0xff] %vm434_vm1, %v4121_v43  ;;  %v4091_v52 = vadd.f32 %v21657_v48, %v23781_v10  ;;  %v20241_v58 = vpop.f32.mrb[30].mxu0  ;;  %20280 = vmatprep.mubr.msk.f32.mxu1 %vm434_vm1, %v23941_v50  ;;  %v24042_v20 = vld [vmem:[#allocation2 + $0xa8] sm:$0xff]  ;;  %v24050_v41 = vld [vmem:[#allocation2 + $0xc0] sm:$0xff]  ;;  %v24066_v48 = vld [vmem:[#allocation2 + $0xf0] sm:$0xff] }
 0x318   : > { %v4124_v9 = vmax.f32 %v4092_v46, 0.0  ;;  %v21658_v47 = vadd.f32 %v20241_v58, %v23767_v0  ;;  %v4015_v62 = vpop.f32.mrb[31].mxu0  ;;  %20281 = vmatmul.mubr.msk.f32.gmra.mrb[40].mxu1 %vm434_vm1, %v23947_v57  ;;  %v24054_v44 = vld [vmem:[#allocation2 + $0xc8] sm:$0xff]  ;;  %v24062_v43 = vld [vmem:[#allocation2 + $0xe0] sm:$0xff]  ;;  %v24070_v46 = vld [vmem:[#allocation2 + $0xf8] sm:$0xff] }
 0x319   : > { %v4123_v11 = vmax.f32 %v4091_v52, 0.0  ;;  %v21659_v12 = vadd.f32 %v4015_v62, %v23769_v1  ;;  %v23961_v0 = vld [vmem:[#allocation2 + $0x141] sm:$0xff]  ;;  %v24078_v58 = vld [vmem:[#allocation2 + $0x110] sm:$0xff] }
 0x31a   : > { %4156 = vst.msk [vmem:[#allocation2 + $0x171] sm:$0xff] %vm434_vm1, %v4124_v9  ;;  %v4094_v49 = vadd.f32 %v21658_v47, %v23781_v10  ;;  %v23955_v17 = vld [vmem:[#allocation2 + $0x139] sm:$0xff]  ;;  %v24074_v52 = vld [vmem:[#allocation2 + $0x108] sm:$0xff] }
 0x31b   : > { %4155 = vst.msk [vmem:[#allocation2 + $0x169] sm:$0xff] %vm434_vm1, %v4123_v11  ;;  %v4093_v4 = vadd.f32 %v21659_v12, %v23781_v10  ;;  %20283 = vmatprep.mubr.msk.f32.mxu1 %vm434_vm1, %v23955_v17  ;;  %v24082_v9 = vld [vmem:[#allocation2 + $0x120] sm:$0xff]  ;;  %v24086_v47 = vld [vmem:[#allocation2 + $0x128] sm:$0xff]  ;;  %v24090_v62 = vld [vmem:[#allocation2 + $0x138] sm:$0xff] }
 0x31c   : > { %v4126_v13 = vmax.f32 %v4094_v49, 0.0  ;;  %20284 = vmatmul.mubr.msk.f32.gmra.mrb[42].mxu1 %vm434_vm1, %v23961_v0  ;;  %v24094_v11 = vld [vmem:[#allocation2 + $0x140] sm:$0xff] }
 0x31d   : > { %v4125_v1 = vmax.f32 %v4093_v4, 0.0  ;;  %v23971_v10 = vld [vmem:[#allocation2 + $0x159] sm:$0xff] }
 0x31e   : > { %4158 = vst.msk [vmem:[#allocation2 + $0x189] sm:$0xff] %vm434_vm1, %v4126_v13  ;;  %v23966_v15 = vld [vmem:[#allocation2 + $0x151] sm:$0xff]  ;;  %v4874_v13 = vld [vmem:[#allocation2 + $0x2] sm:$0xff] }
 0x31f   : > { %4157 = vst.msk [vmem:[#allocation2 + $0x181] sm:$0xff] %vm434_vm1, %v4125_v1  ;;  %20286 = vmatprep.mubr.msk.f32.mxu1 %vm434_vm1, %v23966_v15  ;;  %v24098_v12 = vld [vmem:[#allocation2 + $0x150] sm:$0xff]  ;;  %v24102_v49 = vld [vmem:[#allocation2 + $0x158] sm:$0xff] }
 0x320   : > { %20287 = vmatmul.mubr.msk.f32.gmra.mrb[44].mxu1 %vm434_vm1, %v23971_v10 }
 0x321   : > { %v23979_v53 = vld [vmem:[#allocation2 + $0x171] sm:$0xff] }
 0x322   : > { %v23975_v60 = vld [vmem:[#allocation2 + $0x169] sm:$0xff]  ;;  %28165 = vst [vmem:[#allocation4_spill] sm:$0xff] %v23979_v53 }
 0x323   : > { %28164 = vst [vmem:[#allocation29_spill] sm:$0xff] %v23975_v60  ;;  %20289 = vmatprep.mubr.msk.f32.mxu1 %vm434_vm1, %v23975_v60  ;;  %v24106_v4 = vld [vmem:[#allocation2 + $0x168] sm:$0xff]  ;;  %v24110_v1 = vld [vmem:[#allocation2 + $0x170] sm:$0xff] }
 0x324   : > { %20290 = vmatmul.mubr.msk.f32.gmra.mrb[46].mxu1 %vm434_vm1, %v23979_v53  ;;  %v24121_v53 = vld [vmem:[#allocation2 + $0x1a] sm:$0xff]  ;;  %v24133_v60 = vld [vmem:[#allocation2 + $0x32] sm:$0xff] }
 0x325   : > { %20294 = vmatprep.mubr.msk.f32.mxu1 %vm434_vm1, %v4159_v59  ;;  %v4875_v59 = vld [vmem:[#allocation2 + $0xa] sm:$0xff]  ;;  %28166 = vst [vmem:[#allocation5_spill] sm:$0xff] %v24121_v53  ;;  %28168 = vst [vmem:[#allocation7_spill] sm:$0xff] %v24133_v60 }
 0x328   : > { %20295 = vmatmul.mubr.msk.f32.vlgmr.msra.gmra.mrb[16].mxu1 %vm434_vm1, %v4160_v22  ;;  %v24118_v22 = vld [vmem:[%s27825_s4 + $0x10] sm:$0xf] }
 0x329   : > { %20343 = vmatpush3.msk.msra.mxu1 %vm772_vm0, %v23774_v2  ;;  %20297 = vmatprep.mubr.msk.f32.mxu1 %vm434_vm1, %v23990_v24  ;;  %v24010_v2 = vld [vmem:[#allocation2 + $0x48] sm:$0xff] }
 0x32a   : > { %20392 = vmatprep.subr.msk.mxu1 %vm772_vm0, %v23987_v54 }
 0x32c   : > { %20298 = vmatmul.mubr.msk.f32.gmra.mrb[18].mxu1 %vm434_vm1, %v23998_v6 }
 0x32d   : > { %20300 = vmatprep.mubr.msk.f32.mxu1 %vm434_vm1, %v24002_v25 }
 0x330   : > { %20301 = vmatmul.mubr.msk.f32.gmra.mrb[20].mxu1 %vm434_vm1, %v24006_v27 }
 0x331   : > { %20303 = vmatprep.mubr.msk.f32.mxu1 %vm434_vm1, %v24010_v2 }
 0x334   : > { %20304 = vmatmul.mubr.msk.f32.gmra.mrb[22].mxu1 %vm434_vm1, %v24014_v29 }
 0x335   : > { %20306 = vmatprep.mubr.msk.f32.mxu1 %vm434_vm1, %v24018_v31 }
 0x338   : > { %20307 = vmatmul.mubr.msk.f32.gmra.mrb[24].mxu1 %vm434_vm1, %v24022_v32 }
 0x339   : > { %20309 = vmatprep.mubr.msk.f32.mxu1 %vm434_vm1, %v24026_v21 }
 0x33c   : > { %20310 = vmatmul.mubr.msk.f32.gmra.mrb[26].mxu1 %vm434_vm1, %v24030_v18 }
 0x33d   : > { %20312 = vmatprep.mubr.msk.f32.mxu1 %vm434_vm1, %v24034_v33 }
 0x340   : > { %20313 = vmatmul.mubr.msk.f32.gmra.mrb[28].mxu1 %vm434_vm1, %v24038_v35 }
 0x341   : > { %20315 = vmatprep.mubr.msk.f32.mxu1 %vm434_vm1, %v24042_v20 }
 0x344   : > { %20316 = vmatmul.mubr.msk.f32.gmra.mrb[30].mxu1 %vm434_vm1, %v24046_v39 }
 0x345   : > { %20318 = vmatprep.mubr.msk.f32.mxu1 %vm434_vm1, %v24050_v41 }
 0x348   : > { %20319 = vmatmul.mubr.msk.f32.gmra.mrb[32].mxu1 %vm434_vm1, %v24054_v44 }
 0x349   : > { %20321 = vmatprep.mubr.msk.f32.mxu1 %vm434_vm1, %v24058_v56 }
 0x34c   : > { %20322 = vmatmul.mubr.msk.f32.gmra.mrb[34].mxu1 %vm434_vm1, %v24062_v43 }
 0x34d   : > { %20324 = vmatprep.mubr.msk.f32.mxu1 %vm434_vm1, %v24066_v48 }
 0x350   : > { %20325 = vmatmul.mubr.msk.f32.gmra.mrb[36].mxu1 %vm434_vm1, %v24070_v46 }
 0x351   : > { %20327 = vmatprep.mubr.msk.f32.mxu1 %vm434_vm1, %v24074_v52 }
 0x354   : > { %20328 = vmatmul.mubr.msk.f32.gmra.mrb[38].mxu1 %vm434_vm1, %v24078_v58 }
 0x355   : > { %20330 = vmatprep.mubr.msk.f32.mxu1 %vm434_vm1, %v24082_v9 }
 0x358   : > { %20331 = vmatmul.mubr.msk.f32.gmra.mrb[40].mxu1 %vm434_vm1, %v24086_v47 }
 0x359   : > { %20333 = vmatprep.mubr.msk.f32.mxu1 %vm434_vm1, %v24090_v62 }
 0x35c   : > { %20334 = vmatmul.mubr.msk.f32.gmra.mrb[42].mxu1 %vm434_vm1, %v24094_v11 }
 0x35d   : > { %20336 = vmatprep.mubr.msk.f32.mxu1 %vm434_vm1, %v24098_v12 }
 0x360   : > { %20337 = vmatmul.mubr.msk.f32.gmra.mrb[44].mxu1 %vm434_vm1, %v24102_v49 }
 0x361   : > { %20339 = vmatprep.mubr.msk.f32.mxu1 %vm434_vm1, %v24106_v4 }
 0x364   : > { %20340 = vmatmul.mubr.msk.f32.gmra.mrb[46].mxu1 %vm434_vm1, %v24110_v1 }
 0x365   : > { %20344 = vmatprep.mubr.msk.f32.mxu1 %vm434_vm1, %v4874_v13  ;;  %v24129_v13 = vld [vmem:[#allocation2 + $0x22] sm:$0xff] }
 0x366   : > { %28167 = vst [vmem:[#allocation6_spill] sm:$0xff] %v24129_v13 }
 0x368   : > { %20345 = vmatmul.mubr.msk.f32.vlgmr.msra.gmra.mrb[16].mxu1 %vm434_vm1, %v4875_v59  ;;  %v24137_v59 = vld [vmem:[#allocation2 + $0x3a] sm:$0xff] }
 0x369   : > { %20393 = vmatpush3.msk.msra.mxu1 %vm772_vm0, %v23987_v54  ;;  %20347 = vmatprep.mubr.msk.f32.mxu1 %vm434_vm1, %v24121_v53  ;;  %28169 = vst [vmem:[#allocation8_spill] sm:$0xff] %v24137_v59  ;;  %v24141_v54 = vld [vmem:[#allocation2 + $0x4a] sm:$0xff]  ;;  %v24145_v53 = vld [vmem:[#allocation2 + $0x52] sm:$0xff] }
 0x36a   : > { %20442 = vmatprep.subr.msk.mxu1 %vm772_vm0, %v24118_v22  ;;  %28170 = vst [vmem:[#allocation9_spill] sm:$0xff] %v24141_v54  ;;  %28171 = vst [vmem:[#allocation23_spill] sm:$0xff] %v24145_v53 }
 0x36c   : > { %20348 = vmatmul.mubr.msk.f32.gmra.mrb[18].mxu1 %vm434_vm1, %v24129_v13  ;;  %v24149_v13 = vld [vmem:[#allocation2 + $0x62] sm:$0xff] }
 0x36d   : > { %20350 = vmatprep.mubr.msk.f32.mxu1 %vm434_vm1, %v24133_v60  ;;  %28172 = vst [vmem:[#allocation24_spill] sm:$0xff] %v24149_v13  ;;  %v24153_v60 = vld [vmem:[#allocation2 + $0x6a] sm:$0xff] }
 0x36e   : > { %28173 = vst [vmem:[#allocation26_spill] sm:$0xff] %v24153_v60 }
 0x370   : > { %20351 = vmatmul.mubr.msk.f32.gmra.mrb[20].mxu1 %vm434_vm1, %v24137_v59  ;;  %v24157_v59 = vld [vmem:[#allocation2 + $0x7a] sm:$0xff] }
 0x371   : > { %20353 = vmatprep.mubr.msk.f32.mxu1 %vm434_vm1, %v24141_v54  ;;  %28174 = vst [vmem:[#allocation27_spill] sm:$0xff] %v24157_v59  ;;  %v24161_v54 = vld [vmem:[#allocation2 + $0x82] sm:$0xff] }
 0x372   : > { %28175 = vst [vmem:[#allocation30_spill] sm:$0xff] %v24161_v54 }
 0x374   : > { %20354 = vmatmul.mubr.msk.f32.gmra.mrb[22].mxu1 %vm434_vm1, %v24145_v53  ;;  %v24165_v53 = vld [vmem:[#allocation2 + $0x92] sm:$0xff] }
 0x375   : > { %20356 = vmatprep.mubr.msk.f32.mxu1 %vm434_vm1, %v24149_v13  ;;  %28176 = vst [vmem:[#allocation31_spill] sm:$0xff] %v24165_v53  ;;  %v24169_v13 = vld [vmem:[#allocation2 + $0x9a] sm:$0xff] }
 0x376   : > { %28177 = vst [vmem:[#allocation10_spill] sm:$0xff] %v24169_v13 }
 0x378   : > { %20357 = vmatmul.mubr.msk.f32.gmra.mrb[24].mxu1 %vm434_vm1, %v24153_v60  ;;  %v24173_v60 = vld [vmem:[#allocation2 + $0xaa] sm:$0xff] }
 0x379   : > { %20359 = vmatprep.mubr.msk.f32.mxu1 %vm434_vm1, %v24157_v59  ;;  %28178 = vst [vmem:[#allocation11_spill] sm:$0xff] %v24173_v60  ;;  %v24177_v59 = vld [vmem:[#allocation2 + $0xb2] sm:$0xff] }
 0x37a   : > { %28179 = vst [vmem:[#allocation12_spill] sm:$0xff] %v24177_v59 }
 0x37c   : > { %20360 = vmatmul.mubr.msk.f32.gmra.mrb[26].mxu1 %vm434_vm1, %v24161_v54  ;;  %v24181_v54 = vld [vmem:[#allocation2 + $0xc2] sm:$0xff] }
 0x37d   : > { %20362 = vmatprep.mubr.msk.f32.mxu1 %vm434_vm1, %v24165_v53  ;;  %28180 = vst [vmem:[#allocation13_spill] sm:$0xff] %v24181_v54  ;;  %v24185_v53 = vld [vmem:[#allocation2 + $0xca] sm:$0xff] }
 0x37e   : > { %28181 = vst [vmem:[#allocation14_spill] sm:$0xff] %v24185_v53 }
 0x380   : > { %20363 = vmatmul.mubr.msk.f32.gmra.mrb[28].mxu1 %vm434_vm1, %v24169_v13  ;;  %v24189_v13 = vld [vmem:[#allocation2 + $0xda] sm:$0xff] }
 0x381   : > { %20365 = vmatprep.mubr.msk.f32.mxu1 %vm434_vm1, %v24173_v60  ;;  %28182 = vst [vmem:[#allocation15_spill] sm:$0xff] %v24189_v13  ;;  %v24193_v60 = vld [vmem:[#allocation2 + $0xe2] sm:$0xff] }
 0x382   : > { %28183 = vst [vmem:[#allocation16_spill] sm:$0xff] %v24193_v60 }
 0x384   : > { %20366 = vmatmul.mubr.msk.f32.gmra.mrb[30].mxu1 %vm434_vm1, %v24177_v59  ;;  %v24197_v59 = vld [vmem:[#allocation2 + $0xf2] sm:$0xff] }
 0x385   : > { %20368 = vmatprep.mubr.msk.f32.mxu1 %vm434_vm1, %v24181_v54  ;;  %28184 = vst [vmem:[#allocation17_spill] sm:$0xff] %v24197_v59  ;;  %v24201_v54 = vld [vmem:[#allocation2 + $0xfa] sm:$0xff] }
 0x386   : > { %28185 = vst [vmem:[#allocation18_spill] sm:$0xff] %v24201_v54 }
 0x388   : > { %20369 = vmatmul.mubr.msk.f32.gmra.mrb[32].mxu1 %vm434_vm1, %v24185_v53  ;;  %v24205_v53 = vld [vmem:[#allocation2 + $0x10a] sm:$0xff] }
 0x389   : > { %20371 = vmatprep.mubr.msk.f32.mxu1 %vm434_vm1, %v24189_v13  ;;  %28186 = vst [vmem:[#allocation19_spill] sm:$0xff] %v24205_v53  ;;  %v24209_v13 = vld [vmem:[#allocation2 + $0x112] sm:$0xff] }
 0x38a   : > { %28187 = vst [vmem:[#allocation20_spill] sm:$0xff] %v24209_v13 }
 0x38c   : > { %20372 = vmatmul.mubr.msk.f32.gmra.mrb[34].mxu1 %vm434_vm1, %v24193_v60  ;;  %v24213_v60 = vld [vmem:[#allocation2 + $0x122] sm:$0xff] }
 0x38d   : > { %20374 = vmatprep.mubr.msk.f32.mxu1 %vm434_vm1, %v24197_v59  ;;  %28188 = vst [vmem:[#allocation21_spill] sm:$0xff] %v24213_v60  ;;  %v24217_v59 = vld [vmem:[#allocation2 + $0x12a] sm:$0xff] }
 0x38e   : > { %28189 = vst [vmem:[#allocation22_spill] sm:$0xff] %v24217_v59 }
 0x390   : > { %20375 = vmatmul.mubr.msk.f32.gmra.mrb[36].mxu1 %vm434_vm1, %v24201_v54  ;;  %v24221_v54 = vld [vmem:[#allocation2 + $0x13a] sm:$0xff] }
 0x391   : > { %20377 = vmatprep.mubr.msk.f32.mxu1 %vm434_vm1, %v24205_v53  ;;  %28190 = vst [vmem:[#allocation25_spill] sm:$0xff] %v24221_v54  ;;  %v24225_v53 = vld [vmem:[#allocation2 + $0x142] sm:$0xff] }
 0x394   : > { %20378 = vmatmul.mubr.msk.f32.gmra.mrb[38].mxu1 %vm434_vm1, %v24209_v13  ;;  %v24229_v13 = vld [vmem:[#allocation2 + $0x152] sm:$0xff] }
 0x395   : > { %20380 = vmatprep.mubr.msk.f32.mxu1 %vm434_vm1, %v24213_v60  ;;  %28191 = vst [vmem:[#allocation28_spill] sm:$0xff] %v24229_v13  ;;  %v24233_v60 = vld [vmem:[#allocation2 + $0x15a] sm:$0xff] }
 0x398   : > { %20381 = vmatmul.mubr.msk.f32.gmra.mrb[40].mxu1 %vm434_vm1, %v24217_v59  ;;  %v24237_v59 = vld [vmem:[#allocation2 + $0x16a] sm:$0xff] }
 0x399   : > { %20383 = vmatprep.mubr.msk.f32.mxu1 %vm434_vm1, %v24221_v54  ;;  %28192 = vst [vmem:[#allocation32_spill] sm:$0xff] %v24237_v59  ;;  %v24241_v54 = vld [vmem:[#allocation2 + $0x172] sm:$0xff] }
 0x39c   : > { %20384 = vmatmul.mubr.msk.f32.gmra.mrb[42].mxu1 %vm434_vm1, %v24225_v53 }
 0x39d   : > { %20386 = vmatprep.mubr.msk.f32.mxu1 %vm434_vm1, %v24229_v13  ;;  %v17687_v13 = vld [vmem:[%s27825_s4 + $0x14] sm:$0xf] }
 0x3a0   : > { %20387 = vmatmul.mubr.msk.f32.gmra.mrb[44].mxu1 %vm434_vm1, %v24233_v60 }
 0x3a1   : > { %20389 = vmatprep.mubr.msk.f32.mxu1 %vm434_vm1, %v24237_v59 }
 0x3a4   : > { %20390 = vmatmul.mubr.msk.f32.gmra.mrb[46].mxu1 %vm434_vm1, %v24241_v54 }
 0x3a5   : > { %20394 = vmatprep.mubr.msk.f32.mxu1 %vm434_vm1, %v23990_v24  ;;  %v24311_v24 = vld [vmem:[#allocation2 + $0x180] sm:$0xff] }
 0x3a8   : > { %20395 = vmatmul.mubr.msk.f32.vlgmr.msra.gmra.mrb[16].mxu1 %vm434_vm1, %v23998_v6  ;;  %v24315_v6 = vld [vmem:[#allocation2 + $0x188] sm:$0xff] }
 0x3a9   : > { %20443 = vmatpush3.msk.msra.mxu1 %vm772_vm0, %v24118_v22  ;;  %20397 = vmatprep.mubr.msk.f32.mxu1 %vm434_vm1, %v24002_v25  ;;  %v17721_v22 = vld [vmem:[%s27825_s4 + $0x18] sm:$0xf] }
 0x3aa   : > { %20492 = vmatprep.subr.msk.mxu1 %vm772_vm0, %v17687_v13 }
 0x3ac   : > { %20398 = vmatmul.mubr.msk.f32.gmra.mrb[18].mxu1 %vm434_vm1, %v24006_v27 }
 0x3ad   : > { %20400 = vmatprep.mubr.msk.f32.mxu1 %vm434_vm1, %v24010_v2 }
 0x3b0   : > { %20401 = vmatmul.mubr.msk.f32.gmra.mrb[20].mxu1 %vm434_vm1, %v24014_v29 }
 0x3b1   : > { %20403 = vmatprep.mubr.msk.f32.mxu1 %vm434_vm1, %v24018_v31 }
 0x3b4   : > { %20404 = vmatmul.mubr.msk.f32.gmra.mrb[22].mxu1 %vm434_vm1, %v24022_v32 }
 0x3b5   : > { %20406 = vmatprep.mubr.msk.f32.mxu1 %vm434_vm1, %v24026_v21 }
 0x3b8   : > { %20407 = vmatmul.mubr.msk.f32.gmra.mrb[24].mxu1 %vm434_vm1, %v24030_v18 }
 0x3b9   : > { %20409 = vmatprep.mubr.msk.f32.mxu1 %vm434_vm1, %v24034_v33 }
 0x3bc   : > { %20410 = vmatmul.mubr.msk.f32.gmra.mrb[26].mxu1 %vm434_vm1, %v24038_v35 }
 0x3bd   : > { %20412 = vmatprep.mubr.msk.f32.mxu1 %vm434_vm1, %v24042_v20 }
 0x3c0   : > { %20413 = vmatmul.mubr.msk.f32.gmra.mrb[28].mxu1 %vm434_vm1, %v24046_v39 }
 0x3c1   : > { %20415 = vmatprep.mubr.msk.f32.mxu1 %vm434_vm1, %v24050_v41 }
 0x3c4   : > { %20416 = vmatmul.mubr.msk.f32.gmra.mrb[30].mxu1 %vm434_vm1, %v24054_v44 }
 0x3c5   : > { %20418 = vmatprep.mubr.msk.f32.mxu1 %vm434_vm1, %v24058_v56 }
 0x3c8   : > { %20419 = vmatmul.mubr.msk.f32.gmra.mrb[32].mxu1 %vm434_vm1, %v24062_v43 }
 0x3c9   : > { %20421 = vmatprep.mubr.msk.f32.mxu1 %vm434_vm1, %v24066_v48 }
 0x3cc   : > { %20422 = vmatmul.mubr.msk.f32.gmra.mrb[34].mxu1 %vm434_vm1, %v24070_v46 }
 0x3cd   : > { %20424 = vmatprep.mubr.msk.f32.mxu1 %vm434_vm1, %v24074_v52 }
 0x3d0   : > { %20425 = vmatmul.mubr.msk.f32.gmra.mrb[36].mxu1 %vm434_vm1, %v24078_v58 }
 0x3d1   : > { %20427 = vmatprep.mubr.msk.f32.mxu1 %vm434_vm1, %v24082_v9 }
 0x3d4   : > { %20428 = vmatmul.mubr.msk.f32.gmra.mrb[38].mxu1 %vm434_vm1, %v24086_v47 }
 0x3d5   : > { %20430 = vmatprep.mubr.msk.f32.mxu1 %vm434_vm1, %v24090_v62 }
 0x3d8   : > { %20431 = vmatmul.mubr.msk.f32.gmra.mrb[40].mxu1 %vm434_vm1, %v24094_v11 }
 0x3d9   : > { %20433 = vmatprep.mubr.msk.f32.mxu1 %vm434_vm1, %v24098_v12 }
 0x3dc   : > { %20434 = vmatmul.mubr.msk.f32.gmra.mrb[42].mxu1 %vm434_vm1, %v24102_v49 }
 0x3dd   : > { %20436 = vmatprep.mubr.msk.f32.mxu1 %vm434_vm1, %v24106_v4 }
 0x3e0   : > { %20437 = vmatmul.mubr.msk.f32.gmra.mrb[44].mxu1 %vm434_vm1, %v24110_v1 }
 0x3e1   : > { %20439 = vmatprep.mubr.msk.f32.mxu1 %vm434_vm1, %v24311_v24 }
 0x3e4   : > { %20440 = vmatmul.mubr.msk.f32.gmra.mrb[46].mxu1 %vm434_vm1, %v24315_v6 }
 0x3e5   : > { %20444 = vmatprep.mubr.msk.f32.mxu1 %vm434_vm1, %v23795_v34  ;;  %v28193_v34 = vld [vmem:[#allocation29_spill] sm:$0xff] }
 0x3e8   : > { %20445 = vmatmul.mubr.msk.f32.vlgmr.msra.gmra.mrb[16].mxu1 %vm434_vm1, %v23801_v36  ;;  %v28194_v36 = vld [vmem:[#allocation4_spill] sm:$0xff] }
 0x3e9   : > { %20493 = vmatpush3.msk.msra.mxu1 %vm772_vm0, %v17687_v13  ;;  %20447 = vmatprep.mubr.msk.f32.mxu1 %vm434_vm1, %v23807_v42  ;;  %v24384_v42 = vld [vmem:[#allocation2 + $0x181] sm:$0xff] }
 0x3ea   : > { %20542 = vmatprep.subr.msk.mxu1 %vm772_vm0, %v17721_v22  ;;  %v28206_v13 = vld [vmem:[#allocation10_spill] sm:$0xff] }
 0x3ec   : > { %20448 = vmatmul.mubr.msk.f32.gmra.mrb[18].mxu1 %vm434_vm1, %v23813_v45  ;;  %v24388_v45 = vld [vmem:[#allocation2 + $0x189] sm:$0xff] }
 0x3ed   : > { %20450 = vmatprep.mubr.msk.f32.mxu1 %vm434_vm1, %v23819_v3  ;;  %v28195_v3 = vld [vmem:[#allocation5_spill] sm:$0xff] }
 0x3f0   : > { %20451 = vmatmul.mubr.msk.f32.gmra.mrb[20].mxu1 %vm434_vm1, %v23825_v8  ;;  %v17755_v8 = vld [vmem:[%s27825_s4 + $0x1c] sm:$0xf] }
 0x3f1   : > { %20453 = vmatprep.mubr.msk.f32.mxu1 %vm434_vm1, %v23831_v7  ;;  %v28196_v7 = vld [vmem:[#allocation6_spill] sm:$0xff] }
 0x3f4   : > { %20454 = vmatmul.mubr.msk.f32.gmra.mrb[22].mxu1 %vm434_vm1, %v23837_v14  ;;  %v28197_v14 = vld [vmem:[#allocation7_spill] sm:$0xff] }
 0x3f5   : > { %20456 = vmatprep.mubr.msk.f32.mxu1 %vm434_vm1, %v23843_v63  ;;  %v28198_v63 = vld [vmem:[#allocation8_spill] sm:$0xff] }
 0x3f8   : > { %20457 = vmatmul.mubr.msk.f32.gmra.mrb[24].mxu1 %vm434_vm1, %v23849_v23  ;;  %v28199_v23 = vld [vmem:[#allocation9_spill] sm:$0xff] }
 0x3f9   : > { %20459 = vmatprep.mubr.msk.f32.mxu1 %vm434_vm1, %v23855_v28  ;;  %v28200_v28 = vld [vmem:[#allocation23_spill] sm:$0xff] }
 0x3fc   : > { %20460 = vmatmul.mubr.msk.f32.gmra.mrb[26].mxu1 %vm434_vm1, %v23861_v30  ;;  %v28201_v30 = vld [vmem:[#allocation24_spill] sm:$0xff] }
 0x3fd   : > { %20462 = vmatprep.mubr.msk.f32.mxu1 %vm434_vm1, %v23868_v38  ;;  %v28202_v38 = vld [vmem:[#allocation26_spill] sm:$0xff] }
 0x400   : > { %20463 = vmatmul.mubr.msk.f32.gmra.mrb[28].mxu1 %vm434_vm1, %v23873_v40  ;;  %v28203_v40 = vld [vmem:[#allocation27_spill] sm:$0xff] }
 0x401   : > { %20465 = vmatprep.mubr.msk.f32.mxu1 %vm434_vm1, %v23882_v51  ;;  %v28204_v51 = vld [vmem:[#allocation30_spill] sm:$0xff] }
 0x404   : > { %20466 = vmatmul.mubr.msk.f32.gmra.mrb[30].mxu1 %vm434_vm1, %v23887_v5  ;;  %v28205_v5 = vld [vmem:[#allocation31_spill] sm:$0xff] }
 0x405   : > { %20468 = vmatprep.mubr.msk.f32.mxu1 %vm434_vm1, %v23899_v16 }
 0x408   : > { %20469 = vmatmul.mubr.msk.f32.gmra.mrb[32].mxu1 %vm434_vm1, %v23905_v61 }
 0x409   : > { %20471 = vmatprep.mubr.msk.f32.mxu1 %vm434_vm1, %v23913_v26 }
 0x40c   : > { %20472 = vmatmul.mubr.msk.f32.gmra.mrb[34].mxu1 %vm434_vm1, %v23919_v19 }
 0x40d   : > { %20474 = vmatprep.mubr.msk.f32.mxu1 %vm434_vm1, %v23927_v37 }
 0x410   : > { %20475 = vmatmul.mubr.msk.f32.gmra.mrb[36].mxu1 %vm434_vm1, %v23933_v55 }
 0x411   : > { %20477 = vmatprep.mubr.msk.f32.mxu1 %vm434_vm1, %v23941_v50 }
 0x414   : > { %20478 = vmatmul.mubr.msk.f32.gmra.mrb[38].mxu1 %vm434_vm1, %v23947_v57 }
 0x415   : > { %20480 = vmatprep.mubr.msk.f32.mxu1 %vm434_vm1, %v23955_v17 }
 0x418   : > { %20481 = vmatmul.mubr.msk.f32.gmra.mrb[40].mxu1 %vm434_vm1, %v23961_v0 }
 0x419   : > { %20483 = vmatprep.mubr.msk.f32.mxu1 %vm434_vm1, %v23966_v15 }
 0x41c   : > { %20484 = vmatmul.mubr.msk.f32.gmra.mrb[42].mxu1 %vm434_vm1, %v23971_v10 }
 0x41d   : > { %20486 = vmatprep.mubr.msk.f32.mxu1 %vm434_vm1, %v28193_v34 }
 0x420   : > { %20487 = vmatmul.mubr.msk.f32.gmra.mrb[44].mxu1 %vm434_vm1, %v28194_v36 }
 0x421   : > { %20489 = vmatprep.mubr.msk.f32.mxu1 %vm434_vm1, %v24384_v42 }
 0x424   : > { %20490 = vmatmul.mubr.msk.f32.gmra.mrb[46].mxu1 %vm434_vm1, %v24388_v45 }
 0x425   : > { %20494 = vmatprep.mubr.msk.f32.mxu1 %vm434_vm1, %v28195_v3  ;;  %v28208_v3 = vld [vmem:[#allocation12_spill] sm:$0xff] }
 0x428   : > { %20495 = vmatmul.mubr.msk.f32.vlgmr.msra.gmra.mrb[16].mxu1 %vm434_vm1, %v28196_v7  ;;  %v28209_v7 = vld [vmem:[#allocation13_spill] sm:$0xff] }
 0x429   : > { %20543 = vmatpush3.msk.msra.mxu1 %vm772_vm0, %v17721_v22  ;;  %20497 = vmatprep.mubr.msk.f32.mxu1 %vm434_vm1, %v28197_v14  ;;  %v28207_v22 = vld [vmem:[#allocation11_spill] sm:$0xff] }
 0x42a   : > { %20592 = vmatprep.subr.msk.mxu1 %vm772_vm0, %v17755_v8 }
 0x42c   : > { %20498 = vmatmul.mubr.msk.f32.gmra.mrb[18].mxu1 %vm434_vm1, %v28198_v63 }
 0x42d   : > { %20500 = vmatprep.mubr.msk.f32.mxu1 %vm434_vm1, %v28199_v23 }
 0x430   : > { %20501 = vmatmul.mubr.msk.f32.gmra.mrb[20].mxu1 %vm434_vm1, %v28200_v28 }
 0x431   : > { %20503 = vmatprep.mubr.msk.f32.mxu1 %vm434_vm1, %v28201_v30 }
 0x434   : > { %20504 = vmatmul.mubr.msk.f32.gmra.mrb[22].mxu1 %vm434_vm1, %v28202_v38  ;;  %v28210_v38 = vld [vmem:[#allocation14_spill] sm:$0xff] }
 0x435   : > { %20506 = vmatprep.mubr.msk.f32.mxu1 %vm434_vm1, %v28203_v40  ;;  %v28211_v40 = vld [vmem:[#allocation15_spill] sm:$0xff] }
 0x438   : > { %20507 = vmatmul.mubr.msk.f32.gmra.mrb[24].mxu1 %vm434_vm1, %v28204_v51  ;;  %v28212_v51 = vld [vmem:[#allocation16_spill] sm:$0xff] }
 0x439   : > { %20509 = vmatprep.mubr.msk.f32.mxu1 %vm434_vm1, %v28205_v5  ;;  %v28213_v5 = vld [vmem:[#allocation17_spill] sm:$0xff] }
 0x43c   : > { %20510 = vmatmul.mubr.msk.f32.gmra.mrb[26].mxu1 %vm434_vm1, %v28206_v13  ;;  %v28214_v13 = vld [vmem:[#allocation18_spill] sm:$0xff] }
 0x43d   : > { %20512 = vmatprep.mubr.msk.f32.mxu1 %vm434_vm1, %v28207_v22  ;;  %v28215_v22 = vld [vmem:[#allocation19_spill] sm:$0xff] }
 0x440   : > { %20513 = vmatmul.mubr.msk.f32.gmra.mrb[28].mxu1 %vm434_vm1, %v28208_v3  ;;  %v28216_v3 = vld [vmem:[#allocation20_spill] sm:$0xff] }
 0x441   : > { %20515 = vmatprep.mubr.msk.f32.mxu1 %vm434_vm1, %v28209_v7  ;;  %v28217_v7 = vld [vmem:[#allocation21_spill] sm:$0xff] }
 0x444   : > { %20516 = vmatmul.mubr.msk.f32.gmra.mrb[30].mxu1 %vm434_vm1, %v28210_v38  ;;  %v28218_v38 = vld [vmem:[#allocation22_spill] sm:$0xff] }
 0x445   : > { %20518 = vmatprep.mubr.msk.f32.mxu1 %vm434_vm1, %v28211_v40  ;;  %v28219_v40 = vld [vmem:[#allocation25_spill] sm:$0xff] }
 0x448   : > { %20519 = vmatmul.mubr.msk.f32.gmra.mrb[32].mxu1 %vm434_vm1, %v28212_v51 }
 0x449   : > { %20521 = vmatprep.mubr.msk.f32.mxu1 %vm434_vm1, %v28213_v5  ;;  %v28220_v5 = vld [vmem:[#allocation28_spill] sm:$0xff] }
 0x44c   : > { %20522 = vmatmul.mubr.msk.f32.gmra.mrb[34].mxu1 %vm434_vm1, %v28214_v13 }
 0x44d   : > { %20524 = vmatprep.mubr.msk.f32.mxu1 %vm434_vm1, %v28215_v22 }
 0x450   : > { %20525 = vmatmul.mubr.msk.f32.gmra.mrb[36].mxu1 %vm434_vm1, %v28216_v3 }
 0x451   : > { %20527 = vmatprep.mubr.msk.f32.mxu1 %vm434_vm1, %v28217_v7  ;;  %v24457_v7 = vld [vmem:[#allocation2 + $0x182] sm:$0xff] }
 0x454   : > { %20528 = vmatmul.mubr.msk.f32.gmra.mrb[38].mxu1 %vm434_vm1, %v28218_v38 }
 0x455   : > { %20530 = vmatprep.mubr.msk.f32.mxu1 %vm434_vm1, %v28219_v40  ;;  %v24461_v40 = vld [vmem:[#allocation2 + $0x18a] sm:$0xff] }
 0x458   : > { %20531 = vmatmul.mubr.msk.f32.gmra.mrb[40].mxu1 %vm434_vm1, %v24225_v53 }
 0x459   : > { %20533 = vmatprep.mubr.msk.f32.mxu1 %vm434_vm1, %v28220_v5 }
 0x45c   : > { %20534 = vmatmul.mubr.msk.f32.gmra.mrb[42].mxu1 %vm434_vm1, %v24233_v60 }
 0x45d   : > { %20536 = vmatprep.mubr.msk.f32.mxu1 %vm434_vm1, %v24237_v59  ;;  %v17789_v59 = vld [vmem:[%s27825_s4 + $0x20] sm:$0xf] }
 0x460   : > { %20537 = vmatmul.mubr.msk.f32.gmra.mrb[44].mxu1 %vm434_vm1, %v24241_v54 }
 0x461   : > { %20539 = vmatprep.mubr.msk.f32.mxu1 %vm434_vm1, %v24457_v7 }
 0x464   : > { %20540 = vmatmul.mubr.msk.f32.gmra.mrb[46].mxu1 %vm434_vm1, %v24461_v40 }
 0x465   : > { %20544 = vmatprep.mubr.msk.f32.mxu1 %vm434_vm1, %v24002_v25  ;;  %v6464_v25 = vld [vmem:[#allocation2 + $0x198] sm:$0xff] }
 0x468   : > { %20545 = vmatmul.mubr.msk.f32.vlgmr.msra.gmra.mrb[16].mxu1 %vm434_vm1, %v24006_v27  ;;  %v6465_v27 = vld [vmem:[#allocation2 + $0x1a0] sm:$0xff] }
 0x469   : > { %20593 = vmatpush3.msk.msra.mxu1 %vm772_vm0, %v17755_v8  ;;  %20547 = vmatprep.mubr.msk.f32.mxu1 %vm434_vm1, %v24010_v2  ;;  %v6824_v2 = vld [vmem:[#allocation2 + $0x31] sm:$0xff] }
 0x46a   : > { %20642 = vmatprep.subr.msk.mxu1 %vm772_vm0, %v17789_v59 }
 0x46c   : > { %20548 = vmatmul.mubr.msk.f32.gmra.mrb[18].mxu1 %vm434_vm1, %v24014_v29  ;;  %v17824_v29 = vld [vmem:[%s27827_s6 + $0x4] sm:$0xf] }
 0x46d   : > { %20550 = vmatprep.mubr.msk.f32.mxu1 %vm434_vm1, %v24018_v31  ;;  %20692 = vmatprep.subr.msk.mxu0 %vm772_vm0, %v17824_v29  ;;  %v6825_v31 = vld [vmem:[#allocation2 + $0x39] sm:$0xff] }
 0x46e   : > { %20693 = vmatpush3.msk.msra.mxu0 %vm772_vm0, %v17824_v29  ;;  %v485_v29 = vld [vmem:[%s24672_s16 + $0x28] sm:$0xff] }
 0x470   : > { %20551 = vmatmul.mubr.msk.f32.gmra.mrb[20].mxu1 %vm434_vm1, %v24022_v32  ;;  %v6826_v32 = vld [vmem:[#allocation2 + $0x49] sm:$0xff] }
 0x471   : > { %20553 = vmatprep.mubr.msk.f32.mxu1 %vm434_vm1, %v24026_v21  ;;  %v6827_v21 = vld [vmem:[#allocation2 + $0x51] sm:$0xff] }
 0x474   : > { %20554 = vmatmul.mubr.msk.f32.gmra.mrb[22].mxu1 %vm434_vm1, %v24030_v18  ;;  %v6828_v18 = vld [vmem:[#allocation2 + $0x61] sm:$0xff] }
 0x475   : > { %20556 = vmatprep.mubr.msk.f32.mxu1 %vm434_vm1, %v24034_v33  ;;  %v6829_v33 = vld [vmem:[#allocation2 + $0x69] sm:$0xff] }
 0x478   : > { %20557 = vmatmul.mubr.msk.f32.gmra.mrb[24].mxu1 %vm434_vm1, %v24038_v35  ;;  %v6830_v35 = vld [vmem:[#allocation2 + $0x79] sm:$0xff] }
 0x479   : > { %20559 = vmatprep.mubr.msk.f32.mxu1 %vm434_vm1, %v24042_v20  ;;  %v6831_v20 = vld [vmem:[#allocation2 + $0x81] sm:$0xff] }
 0x47c   : > { %20560 = vmatmul.mubr.msk.f32.gmra.mrb[26].mxu1 %vm434_vm1, %v24046_v39  ;;  %v6832_v39 = vld [vmem:[#allocation2 + $0x91] sm:$0xff] }
 0x47d   : > { %20562 = vmatprep.mubr.msk.f32.mxu1 %vm434_vm1, %v24050_v41  ;;  %v6833_v41 = vld [vmem:[#allocation2 + $0x99] sm:$0xff] }
 0x480   : > { %20563 = vmatmul.mubr.msk.f32.gmra.mrb[28].mxu1 %vm434_vm1, %v24054_v44  ;;  %v6834_v44 = vld [vmem:[#allocation2 + $0xa9] sm:$0xff] }
 0x481   : > { %20565 = vmatprep.mubr.msk.f32.mxu1 %vm434_vm1, %v24058_v56  ;;  %v6835_v56 = vld [vmem:[#allocation2 + $0xb1] sm:$0xff] }
 0x484   : > { %20566 = vmatmul.mubr.msk.f32.gmra.mrb[30].mxu1 %vm434_vm1, %v24062_v43  ;;  %v6836_v43 = vld [vmem:[#allocation2 + $0xc1] sm:$0xff] }
 0x485   : > { %20568 = vmatprep.mubr.msk.f32.mxu1 %vm434_vm1, %v24066_v48  ;;  %v6837_v48 = vld [vmem:[#allocation2 + $0xc9] sm:$0xff] }
 0x488   : > { %20569 = vmatmul.mubr.msk.f32.gmra.mrb[32].mxu1 %vm434_vm1, %v24070_v46  ;;  %v28231_v46 = vld [vmem:[#allocation17_spill] sm:$0xff] }
 0x489   : > { %20571 = vmatprep.mubr.msk.f32.mxu1 %vm434_vm1, %v24074_v52  ;;  %v28232_v52 = vld [vmem:[#allocation21_spill] sm:$0xff] }
 0x48c   : > { %20572 = vmatmul.mubr.msk.f32.gmra.mrb[34].mxu1 %vm434_vm1, %v24078_v58  ;;  %v28233_v58 = vld [vmem:[#allocation25_spill] sm:$0xff] }
 0x48d   : > { %20574 = vmatprep.mubr.msk.f32.mxu1 %vm434_vm1, %v24082_v9  ;;  %v28234_v9 = vld [vmem:[#allocation32_spill] sm:$0xff] }
 0x490   : > { %20575 = vmatmul.mubr.msk.f32.gmra.mrb[36].mxu1 %vm434_vm1, %v24086_v47  ;;  %v7244_v47 = vld [vmem:[#allocation2 + $0x19a] sm:$0xff] }
 0x491   : > { %20577 = vmatprep.mubr.msk.f32.mxu1 %vm434_vm1, %v24090_v62  ;;  %v7869_v62 = vld [vmem:[#allocation2 + $0x9] sm:$0xff] }
 0x494   : > { %20578 = vmatmul.mubr.msk.f32.gmra.mrb[38].mxu1 %vm434_vm1, %v24094_v11  ;;  %v7867_v11 = vld [vmem:[%s27827_s6] sm:$0xf] }
 0x495   : > { %20580 = vmatprep.mubr.msk.f32.mxu1 %vm434_vm1, %v24098_v12  ;;  %20742 = vmatprep.subr.msk.mxu0 %vm772_vm0, %v7867_v11  ;;  %v24658_v12 = vld [vmem:[%s27827_s6 + $0x8] sm:$0xf] }
 0x498   : > { %20581 = vmatmul.mubr.msk.f32.gmra.mrb[40].mxu1 %vm434_vm1, %v24102_v49  ;;  %v24665_v49 = vld [vmem:[%s27826_s5] ss:$0 sm:$0xff] }
 0x499   : > { %20583 = vmatprep.mubr.msk.f32.mxu1 %vm434_vm1, %v24106_v4 }
 0x49c   : > { %20584 = vmatmul.mubr.msk.f32.gmra.mrb[42].mxu1 %vm434_vm1, %v24110_v1 }
 0x49d   : > { %20586 = vmatprep.mubr.msk.f32.mxu1 %vm434_vm1, %v24311_v24 }
 0x4a0   : > { %20587 = vmatmul.mubr.msk.f32.gmra.mrb[44].mxu1 %vm434_vm1, %v24315_v6  ;;  %v22680_v6 = vld [vmem:[%s22868_s13 + $0x8] sm:$0xff] }
 0x4a1   : > { %20589 = vmatprep.mubr.msk.f32.mxu1 %vm434_vm1, %v6464_v25 }
 0x4a4   : > { %20590 = vmatmul.mubr.msk.f32.gmra.mrb[46].mxu1 %vm434_vm1, %v6465_v27 }
 0x4a5   : > { %20594 = vmatprep.mubr.msk.f32.mxu1 %vm434_vm1, %v6824_v2 }
 0x4a8   : > { %20595 = vmatmul.mubr.msk.f32.vlgmr.msra.gmra.mrb[16].mxu1 %vm434_vm1, %v6825_v31 }
 0x4a9   : > { %20643 = vmatpush3.msk.msra.mxu1 %vm772_vm0, %v17789_v59  ;;  %20597 = vmatprep.mubr.msk.f32.mxu1 %vm434_vm1, %v6826_v32  ;;  %v22684_v32 = vld [vmem:[%s22868_s13 + $0x28] sm:$0xff] }
 0x4ac   : > { %20598 = vmatmul.mubr.msk.f32.gmra.mrb[18].mxu1 %vm434_vm1, %v6827_v21 }
 0x4ad   : > { %20600 = vmatprep.mubr.msk.f32.mxu1 %vm434_vm1, %v6828_v18  ;;  %v484_v18 = vld [vmem:[%s24672_s16 + $0x20] sm:$0xff] }
 0x4b0   : > { %20601 = vmatmul.mubr.msk.f32.gmra.mrb[20].mxu1 %vm434_vm1, %v6829_v33  ;;  %v22685_v33 = vld [vmem:[%s22868_s13 + $0x20] sm:$0xff] }
 0x4b1   : > { %20603 = vmatprep.mubr.msk.f32.mxu1 %vm434_vm1, %v6830_v35 }
 0x4b4   : > { %20604 = vmatmul.mubr.msk.f32.gmra.mrb[22].mxu1 %vm434_vm1, %v6831_v20 }
 0x4b5   : > { %20606 = vmatprep.mubr.msk.f32.mxu1 %vm434_vm1, %v6832_v39 }
 0x4b8   : > { %20607 = vmatmul.mubr.msk.f32.gmra.mrb[24].mxu1 %vm434_vm1, %v6833_v41 }
 0x4b9   : > { %20609 = vmatprep.mubr.msk.f32.mxu1 %vm434_vm1, %v6834_v44 }
 0x4bc   : > { %20610 = vmatmul.mubr.msk.f32.gmra.mrb[26].mxu1 %vm434_vm1, %v6835_v56 }
 0x4bd   : > { %20612 = vmatprep.mubr.msk.f32.mxu1 %vm434_vm1, %v6836_v43 }
 0x4c0   : > { %20613 = vmatmul.mubr.msk.f32.gmra.mrb[28].mxu1 %vm434_vm1, %v6837_v48  ;;  %v487_v48 = vld [vmem:[%s24672_s16 + $0x38] sm:$0xff] }
 0x4c1   : > { %20615 = vmatprep.mubr.msk.f32.mxu1 %vm434_vm1, %v23899_v16  ;;  %v6854_v16 = vld [vmem:[#allocation2 + $0x199] sm:$0xff] }
 0x4c4   : > { %20616 = vmatmul.mubr.msk.f32.gmra.mrb[30].mxu1 %vm434_vm1, %v23905_v61  ;;  %v6855_v61 = vld [vmem:[#allocation2 + $0x1a1] sm:$0xff] }
 0x4c5   : > { %20618 = vmatprep.mubr.msk.f32.mxu1 %vm434_vm1, %v23913_v26  ;;  %v28221_v26 = vld [vmem:[#allocation26_spill] sm:$0xff] }
 0x4c8   : > { %20619 = vmatmul.mubr.msk.f32.gmra.mrb[32].mxu1 %vm434_vm1, %v23919_v19  ;;  %v28222_v19 = vld [vmem:[#allocation27_spill] sm:$0xff] }
 0x4c9   : > { %20621 = vmatprep.mubr.msk.f32.mxu1 %vm434_vm1, %v23927_v37  ;;  %v28223_v37 = vld [vmem:[#allocation30_spill] sm:$0xff] }
 0x4cc   : > { %20622 = vmatmul.mubr.msk.f32.gmra.mrb[34].mxu1 %vm434_vm1, %v23933_v55  ;;  %v28224_v55 = vld [vmem:[#allocation31_spill] sm:$0xff] }
 0x4cd   : > { %20624 = vmatprep.mubr.msk.f32.mxu1 %vm434_vm1, %v23941_v50  ;;  %v28225_v50 = vld [vmem:[#allocation10_spill] sm:$0xff] }
 0x4d0   : > { %20625 = vmatmul.mubr.msk.f32.gmra.mrb[36].mxu1 %vm434_vm1, %v23947_v57  ;;  %v28226_v57 = vld [vmem:[#allocation11_spill] sm:$0xff] }
 0x4d1   : > { %20627 = vmatprep.mubr.msk.f32.mxu1 %vm434_vm1, %v23955_v17  ;;  %v28227_v17 = vld [vmem:[#allocation12_spill] sm:$0xff] }
 0x4d4   : > { %20628 = vmatmul.mubr.msk.f32.gmra.mrb[38].mxu1 %vm434_vm1, %v23961_v0  ;;  %v28228_v0 = vld [vmem:[#allocation13_spill] sm:$0xff] }
 0x4d5   : > { %20630 = vmatprep.mubr.msk.f32.mxu1 %vm434_vm1, %v23966_v15  ;;  %v28229_v15 = vld [vmem:[#allocation14_spill] sm:$0xff] }
 0x4d8   : > { %20631 = vmatmul.mubr.msk.f32.gmra.mrb[40].mxu1 %vm434_vm1, %v23971_v10  ;;  %v28230_v10 = vld [vmem:[#allocation15_spill] sm:$0xff] }
 0x4d9   : > { %20633 = vmatprep.mubr.msk.f32.mxu1 %vm434_vm1, %v28193_v34 }
 0x4dc   : > { %20634 = vmatmul.mubr.msk.f32.gmra.mrb[42].mxu1 %vm434_vm1, %v28194_v36  ;;  %v480_v36 = vld [vmem:[%s24672_s16] sm:$0xff] }
 0x4dd   : > { %20636 = vmatprep.mubr.msk.f32.mxu1 %vm434_vm1, %v24384_v42  ;;  %v22681_v42 = vld [vmem:[%s22868_s13] sm:$0xff] }
 0x4e0   : > { %20637 = vmatmul.mubr.msk.f32.gmra.mrb[44].mxu1 %vm434_vm1, %v24388_v45 }
 0x4e1   : > { %20639 = vmatprep.mubr.msk.f32.mxu1 %vm434_vm1, %v6854_v16 }
 0x4e4   : > { %20640 = vmatmul.mubr.msk.f32.gmra.mrb[46].mxu1 %vm434_vm1, %v6855_v61 }
 0x4e5   : > { %20644 = vmatprep.mubr.msk.f32.mxu1 %vm434_vm1, %v28197_v14 }
 0x4e8   : > { %20645 = vmatmul.mubr.msk.f32.vlgmr.msra.gmra.mrb[16].mxu1 %vm434_vm1, %v28198_v63 }
 0x4e9   : > { %20647 = vmatprep.mubr.msk.f32.mxu1 %vm434_vm1, %v28199_v23 }
 0x4ec   : > { %20648 = vmatmul.mubr.msk.f32.gmra.mrb[18].mxu1 %vm434_vm1, %v28200_v28 }
 0x4ed   : > { %20650 = vmatprep.mubr.msk.f32.mxu1 %vm434_vm1, %v28201_v30  ;;  %v483_v30 = vld [vmem:[%s24672_s16 + $0x18] sm:$0xff] }
 0x4f0   : > { %20651 = vmatmul.mubr.msk.f32.gmra.mrb[20].mxu1 %vm434_vm1, %v28221_v26 }
 0x4f1   : > { %20653 = vmatprep.mubr.msk.f32.mxu1 %vm434_vm1, %v28222_v19  ;;  %v22686_v19 = vld [vmem:[%s22868_s13 + $0x38] sm:$0xff] }
 0x4f4   : > { %20654 = vmatmul.mubr.msk.f32.gmra.mrb[22].mxu1 %vm434_vm1, %v28223_v37 }
 0x4f5   : > { %20656 = vmatprep.mubr.msk.f32.mxu1 %vm434_vm1, %v28224_v55  ;;  %v486_v55 = vld [vmem:[%s24672_s16 + $0x30] sm:$0xff] }
 0x4f8   : > { %20657 = vmatmul.mubr.msk.f32.gmra.mrb[24].mxu1 %vm434_vm1, %v28225_v50 }
 0x4f9   : > { %20659 = vmatprep.mubr.msk.f32.mxu1 %vm434_vm1, %v28226_v57  ;;  %v22687_v57 = vld [vmem:[%s22868_s13 + $0x30] sm:$0xff] }
 0x4fc   : > { %20660 = vmatmul.mubr.msk.f32.gmra.mrb[26].mxu1 %vm434_vm1, %v28227_v17 }
 0x4fd   : > { %20662 = vmatprep.mubr.msk.f32.mxu1 %vm434_vm1, %v28228_v0 }
 0x500   : > { %20663 = vmatmul.mubr.msk.f32.gmra.mrb[28].mxu1 %vm434_vm1, %v28229_v15 }
 0x501   : > { %20665 = vmatprep.mubr.msk.f32.mxu1 %vm434_vm1, %v28230_v10 }
 0x504   : > { %20666 = vmatmul.mubr.msk.f32.gmra.mrb[30].mxu1 %vm434_vm1, %v28212_v51 }
 0x505   : > { %20668 = vmatprep.mubr.msk.f32.mxu1 %vm434_vm1, %v28231_v46 }
 0x508   : > { %20669 = vmatmul.mubr.msk.f32.gmra.mrb[32].mxu1 %vm434_vm1, %v28214_v13  ;;  %v22683_v13 = vld [vmem:[%s22868_s13 + $0x10] sm:$0xff] }
 0x509   : > { %20671 = vmatprep.mubr.msk.f32.mxu1 %vm434_vm1, %v28215_v22 }
 0x50c   : > { %20672 = vmatmul.mubr.msk.f32.gmra.mrb[34].mxu1 %vm434_vm1, %v28216_v3 }
 0x50d   : > { %20674 = vmatprep.mubr.msk.f32.mxu1 %vm434_vm1, %v28232_v52 }
 0x510   : > { %20675 = vmatmul.mubr.msk.f32.gmra.mrb[36].mxu1 %vm434_vm1, %v28218_v38 }
 0x511   : > { %20677 = vmatprep.mubr.msk.f32.mxu1 %vm434_vm1, %v28233_v58 }
 0x514   : > { %20678 = vmatmul.mubr.msk.f32.gmra.mrb[38].mxu1 %vm434_vm1, %v24225_v53  ;;  %v7245_v53 = vld [vmem:[#allocation2 + $0x1a2] sm:$0xff] }
 0x515   : > { %20680 = vmatprep.mubr.msk.f32.mxu1 %vm434_vm1, %v28220_v5  ;;  %v482_v5 = vld [vmem:[%s24672_s16 + $0x10] sm:$0xff] }
 0x518   : > { %20681 = vmatmul.mubr.msk.f32.gmra.mrb[40].mxu1 %vm434_vm1, %v24233_v60  ;;  %v7868_v60 = vld [vmem:[#allocation2 + $0x1] sm:$0xff] }
 0x519   : > { %20683 = vmatprep.mubr.msk.f32.mxu1 %vm434_vm1, %v28234_v9  ;;  %20694 = vmatprep.mubr.msk.f32.mxu0 %vm434_vm1, %v7868_v60  ;;  %v489_v9 = vld [vmem:[%s24672_s16 + $0x48] sm:$0xff] }
 0x51a   : > { %20695 = vmatmul.mubr.msk.f32.vlgmr.msra.gmra.mrb[32].mxu0 %vm434_vm1, %v7869_v62  ;;  %v22688_v62 = vld [vmem:[%s22868_s13 + $0x48] sm:$0xff] }
 0x51b   : > { %20743 = vmatpush3.msk.msra.mxu0 %vm772_vm0, %v7867_v11 }
 0x51c   : > { %20684 = vmatmul.mubr.msk.f32.gmra.mrb[42].mxu1 %vm434_vm1, %v24241_v54  ;;  %20792 = vmatprep.subr.msk.mxu0 %vm772_vm0, %v24658_v12  ;;  %v481_v54 = vld [vmem:[%s24672_s16 + $0x8] sm:$0xff] }
 0x51d   : > { %20686 = vmatprep.mubr.msk.f32.mxu1 %vm434_vm1, %v24457_v7 }
 0x520   : > { %20687 = vmatmul.mubr.msk.f32.gmra.mrb[44].mxu1 %vm434_vm1, %v24461_v40  ;;  %v22682_v40 = vld [vmem:[%s22868_s13 + $0x18] sm:$0xff] }
 0x521   : > { %20689 = vmatprep.mubr.msk.f32.mxu1 %vm434_vm1, %v7244_v47 }
 0x524   : > { %20690 = vmatmul.mubr.msk.f32.gmra.mrb[46].mxu1 %vm434_vm1, %v7245_v53 }
 0x5bb   : > { %v20646_v4 = vpop.f32.mrb[16].mxu1 }
 0x5bc   : > { %v7612_v1 = vadd.f32 %v20646_v4, %v24665_v49  ;;  %v7413_v59 = vpop.f32.mrb[17].mxu1  ;;  %v488_v4 = vld [vmem:[%s24672_s16 + $0x40] sm:$0xff] }
 0x5bd   : > { %v7611_v24 = vadd.f32 %v24665_v49, %v7413_v59  ;;  %v22689_v59 = vld [vmem:[%s22868_s13 + $0x40] sm:$0xff] }
 0x5be   : > { %v7644_v34 = vadd.f32 %v22680_v6, %v7612_v1 }
 0x5bf   : > { %v7643_v45 = vadd.f32 %v22681_v42, %v7611_v24  ;;  %v20649_v8 = vpop.f32.mrb[18].mxu1 }
 0x5c0   : > { %v7676_v14 = vadd.f32 %v7644_v34, %v481_v54  ;;  %v7614_v63 = vadd.f32 %v20649_v8, %v24665_v49  ;;  %v7423_v23 = vpop.f32.mrb[19].mxu1  ;;  %v491_v8 = vld [vmem:[%s24672_s16 + $0x58] sm:$0xff] }
 0x5c1   : > { %v7675_v28 = vadd.f32 %v7643_v45, %v480_v36  ;;  %v7613_v38 = vadd.f32 %v24665_v49, %v7423_v23 }
 0x5c2   : > { %7708 = vst.msk [vmem:[#allocation3 + $0x8] sm:$0xff] %vm434_vm1, %v7676_v14  ;;  %v7646_v51 = vadd.f32 %v22682_v40, %v7614_v63 }
 0x5c3   : > { %7707 = vst.msk [vmem:[#allocation3] sm:$0xff] %vm434_vm1, %v7675_v28  ;;  %v7645_v22 = vadd.f32 %v22683_v13, %v7613_v38  ;;  %v20652_v3 = vpop.f32.mrb[20].mxu1  ;;  %v22690_v28 = vld [vmem:[%s22868_s13 + $0x58] sm:$0xff]  ;;  %v490_v38 = vld [vmem:[%s24672_s16 + $0x50] sm:$0xff] }
 0x5c4   : > { %v7678_v7 = vadd.f32 %v7646_v51, %v483_v30  ;;  %v7616_v25 = vadd.f32 %v20652_v3, %v24665_v49  ;;  %v7433_v27 = vpop.f32.mrb[21].mxu1  ;;  %v22691_v51 = vld [vmem:[%s22868_s13 + $0x50] sm:$0xff] }
 0x5c5   : > { %v7677_v2 = vadd.f32 %v7645_v22, %v482_v5  ;;  %v7615_v31 = vadd.f32 %v24665_v49, %v7433_v27 }
 0x5c6   : > { %7710 = vst.msk [vmem:[#allocation3 + $0x18] sm:$0xff] %vm434_vm1, %v7678_v7  ;;  %v7648_v21 = vadd.f32 %v22684_v32, %v7616_v25 }
 0x5c7   : > { %7709 = vst.msk [vmem:[#allocation3 + $0x10] sm:$0xff] %vm434_vm1, %v7677_v2  ;;  %v7647_v35 = vadd.f32 %v22685_v33, %v7615_v31  ;;  %v20655_v20 = vpop.f32.mrb[22].mxu1  ;;  %v22692_v33 = vld [vmem:[%s22868_s13 + $0x68] sm:$0xff] }
 0x5c8   : > { %v7680_v39 = vadd.f32 %v7648_v21, %v485_v29  ;;  %v7618_v41 = vadd.f32 %v20655_v20, %v24665_v49  ;;  %v7443_v44 = vpop.f32.mrb[23].mxu1  ;;  %v493_v29 = vld [vmem:[%s24672_s16 + $0x68] sm:$0xff]  ;;  %v492_v20 = vld [vmem:[%s24672_s16 + $0x60] sm:$0xff] }
 0x5c9   : > { %v7740_v56 = vld [vmem:[#allocation3 + $0x8] sm:$0xff]  ;;  %v7679_v43 = vadd.f32 %v7647_v35, %v484_v18  ;;  %v7617_v16 = vadd.f32 %v24665_v49, %v7443_v44 }
 0x5ca   : > { %v7772_v61 = vmax.f32 %v7740_v56, 0.0  ;;  %v7739_v26 = vld [vmem:[#allocation3] sm:$0xff]  ;;  %7712 = vst.msk [vmem:[#allocation3 + $0x28] sm:$0xff] %vm434_vm1, %v7680_v39  ;;  %v7650_v37 = vadd.f32 %v22686_v19, %v7618_v41  ;;  %v22693_v41 = vld [vmem:[%s22868_s13 + $0x60] sm:$0xff] }
 0x5cb   : > { %v7771_v50 = vmax.f32 %v7739_v26, 0.0  ;;  %7711 = vst.msk [vmem:[#allocation3 + $0x20] sm:$0xff] %vm434_vm1, %v7679_v43  ;;  %v7649_v17 = vadd.f32 %v22687_v57, %v7617_v16  ;;  %v20658_v0 = vpop.f32.mrb[24].mxu1 }
 0x5cc   : > { %7804 = vst.msk [vmem:[#allocation2 + $0x21] sm:$0xff] %vm434_vm1, %v7772_v61  ;;  %v7682_v15 = vadd.f32 %v7650_v37, %v487_v48  ;;  %v7620_v10 = vadd.f32 %v20658_v0, %v24665_v49  ;;  %v7453_v46 = vpop.f32.mrb[25].mxu1  ;;  %v495_v37 = vld [vmem:[%s24672_s16 + $0x78] sm:$0xff] }
 0x5cd   : > { %7803 = vst.msk [vmem:[#allocation2 + $0x19] sm:$0xff] %vm434_vm1, %v7771_v50  ;;  %v7742_v52 = vld [vmem:[#allocation3 + $0x18] sm:$0xff]  ;;  %v7681_v58 = vadd.f32 %v7649_v17, %v486_v55  ;;  %v7619_v47 = vadd.f32 %v24665_v49, %v7453_v46  ;;  %v22694_v0 = vld [vmem:[%s22868_s13 + $0x78] sm:$0xff] }
 0x5ce   : > { %v7774_v53 = vmax.f32 %v7742_v52, 0.0  ;;  %v7741_v60 = vld [vmem:[#allocation3 + $0x10] sm:$0xff]  ;;  %7714 = vst.msk [vmem:[#allocation3 + $0x38] sm:$0xff] %vm434_vm1, %v7682_v15  ;;  %v7652_v11 = vadd.f32 %v22688_v62, %v7620_v10  ;;  %v494_v10 = vld [vmem:[%s24672_s16 + $0x70] sm:$0xff] }
 0x5cf   : > { %v7773_v1 = vmax.f32 %v7741_v60, 0.0  ;;  %7713 = vst.msk [vmem:[#allocation3 + $0x30] sm:$0xff] %vm434_vm1, %v7681_v58  ;;  %v7651_v54 = vadd.f32 %v22689_v59, %v7619_v47  ;;  %v20661_v24 = vpop.f32.mrb[26].mxu1  ;;  %v22695_v52 = vld [vmem:[%s22868_s13 + $0x70] sm:$0xff] }
 0x5d0   : > { %7806 = vst.msk [vmem:[#allocation2 + $0x39] sm:$0xff] %vm434_vm1, %v7774_v53  ;;  %v7684_v6 = vadd.f32 %v7652_v11, %v489_v9  ;;  %v7622_v34 = vadd.f32 %v20661_v24, %v24665_v49  ;;  %v7463_v36 = vpop.f32.mrb[27].mxu1 }
 0x5d1   : > { %7805 = vst.msk [vmem:[#allocation2 + $0x31] sm:$0xff] %vm434_vm1, %v7773_v1  ;;  %v7744_v42 = vld [vmem:[#allocation3 + $0x28] sm:$0xff]  ;;  %v7683_v45 = vadd.f32 %v7651_v54, %v488_v4  ;;  %v7621_v14 = vadd.f32 %v24665_v49, %v7463_v36  ;;  %v497_v1 = vld [vmem:[%s24672_s16 + $0x88] sm:$0xff] }
 0x5d2   : > { %v7776_v63 = vmax.f32 %v7744_v42, 0.0  ;;  %v7743_v23 = vld [vmem:[#allocation3 + $0x20] sm:$0xff]  ;;  %7716 = vst.msk [vmem:[#allocation3 + $0x48] sm:$0xff] %vm434_vm1, %v7684_v6  ;;  %v7654_v30 = vadd.f32 %v22690_v28, %v7622_v34  ;;  %v22696_v34 = vld [vmem:[%s22868_s13 + $0x88] sm:$0xff]  ;;  %v496_v42 = vld [vmem:[%s24672_s16 + $0x80] sm:$0xff] }
 0x5d3   : > { %v7775_v40 = vmax.f32 %v7743_v23, 0.0  ;;  %7715 = vst.msk [vmem:[#allocation3 + $0x40] sm:$0xff] %vm434_vm1, %v7683_v45  ;;  %v7653_v5 = vadd.f32 %v22691_v51, %v7621_v14  ;;  %v20664_v13 = vpop.f32.mrb[28].mxu1  ;;  %v24733_v32 = vld [vmem:[#allocation2 + $0x21] sm:$0xff] }
 0x5d4   : > { %7808 = vst.msk [vmem:[#allocation2 + $0x51] sm:$0xff] %vm434_vm1, %v7776_v63  ;;  %v7686_v22 = vadd.f32 %v7654_v30, %v491_v8  ;;  %v7624_v3 = vadd.f32 %v20664_v13, %v24665_v49  ;;  %v7473_v7 = vpop.f32.mrb[29].mxu1  ;;  %v24726_v25 = vld [vmem:[#allocation2 + $0x19] sm:$0xff] }
 0x5d5   : > { %7807 = vst.msk [vmem:[#allocation2 + $0x49] sm:$0xff] %vm434_vm1, %v7775_v40  ;;  %v7746_v27 = vld [vmem:[#allocation3 + $0x38] sm:$0xff]  ;;  %v7685_v2 = vadd.f32 %v7653_v5, %v490_v38  ;;  %v7623_v31 = vadd.f32 %v24665_v49, %v7473_v7  ;;  %20697 = vmatprep.mubr.msk.f32.mxu0 %vm434_vm1, %v24726_v25  ;;  %v22697_v8 = vld [vmem:[%s22868_s13 + $0x80] sm:$0xff]  ;;  %v499_v5 = vld [vmem:[%s24672_s16 + $0x98] sm:$0xff] }
 0x5d6   : > { %v7778_v21 = vmax.f32 %v7746_v27, 0.0  ;;  %v7745_v18 = vld [vmem:[#allocation3 + $0x30] sm:$0xff]  ;;  %7718 = vst.msk [vmem:[#allocation3 + $0x58] sm:$0xff] %vm434_vm1, %v7686_v22  ;;  %v7656_v35 = vadd.f32 %v22692_v33, %v7624_v3  ;;  %20698 = vmatmul.mubr.msk.f32.gmra.mrb[34].mxu0 %vm434_vm1, %v24733_v32  ;;  %v22698_v27 = vld [vmem:[%s22868_s13 + $0x98] sm:$0xff] }
 0x5d7   : > { %v7777_v39 = vmax.f32 %v7745_v18, 0.0  ;;  %7717 = vst.msk [vmem:[#allocation3 + $0x50] sm:$0xff] %vm434_vm1, %v7685_v2  ;;  %v7655_v44 = vadd.f32 %v22693_v41, %v7623_v31  ;;  %v20667_v56 = vpop.f32.mrb[30].mxu1  ;;  %v24751_v50 = vld [vmem:[#allocation2 + $0x39] sm:$0xff] }
 0x5d8   : > { %7810 = vst.msk [vmem:[#allocation2 + $0x69] sm:$0xff] %vm434_vm1, %v7778_v21  ;;  %v7688_v43 = vadd.f32 %v7656_v35, %v493_v29  ;;  %v7626_v48 = vadd.f32 %v20667_v56, %v24665_v49  ;;  %v7483_v16 = vpop.f32.mrb[31].mxu1  ;;  %v24744_v61 = vld [vmem:[#allocation2 + $0x31] sm:$0xff] }
 0x5d9   : > { %7809 = vst.msk [vmem:[#allocation2 + $0x61] sm:$0xff] %vm434_vm1, %v7777_v39  ;;  %v7748_v26 = vld [vmem:[#allocation3 + $0x48] sm:$0xff]  ;;  %v7687_v19 = vadd.f32 %v7655_v44, %v492_v20  ;;  %v7625_v55 = vadd.f32 %v24665_v49, %v7483_v16  ;;  %20700 = vmatprep.mubr.msk.f32.mxu0 %vm434_vm1, %v24744_v61  ;;  %v498_v29 = vld [vmem:[%s24672_s16 + $0x90] sm:$0xff] }
 0x5da   : > { %v7780_v57 = vmax.f32 %v7748_v26, 0.0  ;;  %v7747_v17 = vld [vmem:[#allocation3 + $0x40] sm:$0xff]  ;;  %7720 = vst.msk [vmem:[#allocation3 + $0x68] sm:$0xff] %vm434_vm1, %v7688_v43  ;;  %v7658_v15 = vadd.f32 %v22694_v0, %v7626_v48  ;;  %20701 = vmatmul.mubr.msk.f32.gmra.mrb[36].mxu0 %vm434_vm1, %v24751_v50  ;;  %v501_v43 = vld [vmem:[%s24672_s16 + $0xa8] sm:$0xff]  ;;  %v22701_v0 = vld [vmem:[%s22868_s13 + $0xa0] sm:$0xff] }
 0x5db   : > { %v7779_v46 = vmax.f32 %v7747_v17, 0.0  ;;  %7719 = vst.msk [vmem:[#allocation3 + $0x60] sm:$0xff] %vm434_vm1, %v7687_v19  ;;  %v7657_v58 = vadd.f32 %v22695_v52, %v7625_v55  ;;  %v20670_v9 = vpop.f32.mrb[32].mxu1  ;;  %v24769_v54 = vld [vmem:[#allocation2 + $0x51] sm:$0xff] }
 0x5dc   : > { %7812 = vst.msk [vmem:[#allocation2 + $0x81] sm:$0xff] %vm434_vm1, %v7780_v57  ;;  %v7690_v47 = vadd.f32 %v7658_v15, %v495_v37  ;;  %v7628_v53 = vadd.f32 %v20670_v9, %v24665_v49  ;;  %v7493_v60 = vpop.f32.mrb[33].mxu1  ;;  %v24762_v62 = vld [vmem:[#allocation2 + $0x49] sm:$0xff]  ;;  %v500_v57 = vld [vmem:[%s24672_s16 + $0xa0] sm:$0xff] }
 0x5dd   : > { %7811 = vst.msk [vmem:[#allocation2 + $0x79] sm:$0xff] %vm434_vm1, %v7779_v46  ;;  %v7750_v11 = vld [vmem:[#allocation3 + $0x58] sm:$0xff]  ;;  %v7689_v4 = vadd.f32 %v7657_v58, %v494_v10  ;;  %v7627_v59 = vadd.f32 %v24665_v49, %v7493_v60  ;;  %20703 = vmatprep.mubr.msk.f32.mxu0 %vm434_vm1, %v24762_v62  ;;  %v22699_v21 = vld [vmem:[%s22868_s13 + $0x90] sm:$0xff]  ;;  %v503_v60 = vld [vmem:[%s24672_s16 + $0xb8] sm:$0xff] }
 0x5de   : > { %v7782_v24 = vmax.f32 %v7750_v11, 0.0  ;;  %v7749_v6 = vld [vmem:[#allocation3 + $0x50] sm:$0xff]  ;;  %7722 = vst.msk [vmem:[#allocation3 + $0x78] sm:$0xff] %vm434_vm1, %v7690_v47  ;;  %v7660_v36 = vadd.f32 %v22696_v34, %v7628_v53  ;;  %20704 = vmatmul.mubr.msk.f32.gmra.mrb[38].mxu0 %vm434_vm1, %v24769_v54  ;;  %v22700_v37 = vld [vmem:[%s22868_s13 + $0xa8] sm:$0xff]  ;;  %v502_v34 = vld [vmem:[%s24672_s16 + $0xb0] sm:$0xff] }
 0x5df   : > { %v7781_v45 = vmax.f32 %v7749_v6, 0.0  ;;  %7721 = vst.msk [vmem:[#allocation3 + $0x70] sm:$0xff] %vm434_vm1, %v7689_v4  ;;  %v7659_v14 = vadd.f32 %v22697_v8, %v7627_v59  ;;  %v20673_v63 = vpop.f32.mrb[34].mxu1  ;;  %v24787_v22 = vld [vmem:[#allocation2 + $0x69] sm:$0xff] }
 0x5e0   : > { %7814 = vst.msk [vmem:[#allocation2 + $0x99] sm:$0xff] %vm434_vm1, %v7782_v24  ;;  %v7692_v23 = vadd.f32 %v7660_v36, %v497_v1  ;;  %v7630_v28 = vadd.f32 %v20673_v63, %v24665_v49  ;;  %v7503_v30 = vpop.f32.mrb[35].mxu1  ;;  %v24780_v38 = vld [vmem:[#allocation2 + $0x61] sm:$0xff]  ;;  %v22702_v24 = vld [vmem:[%s22868_s13 + $0xb8] sm:$0xff] }
 0x5e1   : > { %7813 = vst.msk [vmem:[#allocation2 + $0x91] sm:$0xff] %vm434_vm1, %v7781_v45  ;;  %v7752_v40 = vld [vmem:[#allocation3 + $0x68] sm:$0xff]  ;;  %v7691_v51 = vadd.f32 %v7659_v14, %v496_v42  ;;  %v7629_v13 = vadd.f32 %v24665_v49, %v7503_v30  ;;  %20706 = vmatprep.mubr.msk.f32.mxu0 %vm434_vm1, %v24780_v38  ;;  %v22703_v42 = vld [vmem:[%s22868_s13 + $0xb0] sm:$0xff] }
 0x5e2   : > { %v7784_v3 = vmax.f32 %v7752_v40, 0.0  ;;  %v7751_v7 = vld [vmem:[#allocation3 + $0x60] sm:$0xff]  ;;  %7724 = vst.msk [vmem:[#allocation3 + $0x88] sm:$0xff] %vm434_vm1, %v7692_v23  ;;  %v7662_v2 = vadd.f32 %v22698_v27, %v7630_v28  ;;  %20707 = vmatmul.mubr.msk.f32.gmra.mrb[40].mxu0 %vm434_vm1, %v24787_v22  ;;  %v22704_v27 = vld [vmem:[%s22868_s13 + $0xc8] sm:$0xff] }
 0x5e3   : > { %v7783_v31 = vmax.f32 %v7751_v7, 0.0  ;;  %7723 = vst.msk [vmem:[#allocation3 + $0x80] sm:$0xff] %vm434_vm1, %v7691_v51  ;;  %v7661_v18 = vadd.f32 %v22699_v21, %v7629_v13  ;;  %v20676_v33 = vpop.f32.mrb[36].mxu1  ;;  %v24805_v16 = vld [vmem:[#allocation2 + $0x81] sm:$0xff] }
 0x5e4   : > { %7816 = vst.msk [vmem:[#allocation2 + $0xb1] sm:$0xff] %vm434_vm1, %v7784_v3  ;;  %v7694_v35 = vadd.f32 %v7662_v2, %v499_v5  ;;  %v7632_v20 = vadd.f32 %v20676_v33, %v24665_v49  ;;  %v7513_v39 = vpop.f32.mrb[37].mxu1  ;;  %v24798_v41 = vld [vmem:[#allocation2 + $0x79] sm:$0xff]  ;;  %v505_v51 = vld [vmem:[%s24672_s16 + $0xc8] sm:$0xff] }
 0x5e5   : > { %7815 = vst.msk [vmem:[#allocation2 + $0xa9] sm:$0xff] %vm434_vm1, %v7783_v31  ;;  %v7754_v44 = vld [vmem:[#allocation3 + $0x78] sm:$0xff]  ;;  %v7693_v56 = vadd.f32 %v7661_v18, %v498_v29  ;;  %v7631_v48 = vadd.f32 %v24665_v49, %v7513_v39  ;;  %20709 = vmatprep.mubr.msk.f32.mxu0 %vm434_vm1, %v24798_v41  ;;  %v504_v29 = vld [vmem:[%s24672_s16 + $0xc0] sm:$0xff] }
 0x5e6   : > { %v7786_v26 = vmax.f32 %v7754_v44, 0.0  ;;  %v7753_v19 = vld [vmem:[#allocation3 + $0x70] sm:$0xff]  ;;  %7726 = vst.msk [vmem:[#allocation3 + $0x98] sm:$0xff] %vm434_vm1, %v7694_v35  ;;  %v7664_v55 = vadd.f32 %v22700_v37, %v7632_v20  ;;  %20710 = vmatmul.mubr.msk.f32.gmra.mrb[42].mxu0 %vm434_vm1, %v24805_v16 }
 0x5e7   : > { %v7785_v17 = vmax.f32 %v7753_v19, 0.0  ;;  %7725 = vst.msk [vmem:[#allocation3 + $0x90] sm:$0xff] %vm434_vm1, %v7693_v56  ;;  %v7663_v15 = vadd.f32 %v22701_v0, %v7631_v48  ;;  %v20679_v10 = vpop.f32.mrb[38].mxu1  ;;  %v24823_v4 = vld [vmem:[#allocation2 + $0x99] sm:$0xff]  ;;  %v506_v0 = vld [vmem:[%s24672_s16 + $0xd0] sm:$0xff] }
 0x5e8   : > { %7818 = vst.msk [vmem:[#allocation2 + $0xc9] sm:$0xff] %vm434_vm1, %v7786_v26  ;;  %v7696_v46 = vadd.f32 %v7664_v55, %v501_v43  ;;  %v7634_v52 = vadd.f32 %v20679_v10, %v24665_v49  ;;  %v7523_v58 = vpop.f32.mrb[39].mxu1  ;;  %v24816_v9 = vld [vmem:[#allocation2 + $0x91] sm:$0xff]  ;;  %v22705_v21 = vld [vmem:[%s22868_s13 + $0xc0] sm:$0xff] }
 0x5e9   : > { %7817 = vst.msk [vmem:[#allocation2 + $0xc1] sm:$0xff] %vm434_vm1, %v7785_v17  ;;  %v7756_v47 = vld [vmem:[#allocation3 + $0x88] sm:$0xff]  ;;  %v7695_v53 = vadd.f32 %v7663_v15, %v500_v57  ;;  %v7633_v11 = vadd.f32 %v24665_v49, %v7523_v58  ;;  %20712 = vmatprep.mubr.msk.f32.mxu0 %vm434_vm1, %v24816_v9  ;;  %v22707_v10 = vld [vmem:[%s22868_s13 + $0xd0] sm:$0xff] }
 0x5ea   : > { %v7788_v1 = vmax.f32 %v7756_v47, 0.0  ;;  %v7755_v59 = vld [vmem:[#allocation3 + $0x80] sm:$0xff]  ;;  %7728 = vst.msk [vmem:[#allocation3 + $0xa8] sm:$0xff] %vm434_vm1, %v7696_v46  ;;  %v7666_v6 = vadd.f32 %v22702_v24, %v7634_v52  ;;  %20713 = vmatmul.mubr.msk.f32.gmra.mrb[44].mxu0 %vm434_vm1, %v24823_v4  ;;  %v507_v48 = vld [vmem:[%s24672_s16 + $0xd8] sm:$0xff] }
 0x5eb   : > { %v7787_v36 = vmax.f32 %v7755_v59, 0.0  ;;  %7727 = vst.msk [vmem:[#allocation3 + $0xa0] sm:$0xff] %vm434_vm1, %v7695_v53  ;;  %v7665_v45 = vadd.f32 %v22703_v42, %v7633_v11  ;;  %v20682_v8 = vpop.f32.mrb[40].mxu1  ;;  %v24841_v13 = vld [vmem:[#allocation2 + $0xb1] sm:$0xff]  ;;  %v509_v59 = vld [vmem:[%s24672_s16 + $0xe8] sm:$0xff] }
 0x5ec   : > { %7820 = vst.msk [vmem:[#allocation2 + $0xe1] sm:$0xff] %vm434_vm1, %v7788_v1  ;;  %v7698_v14 = vadd.f32 %v7666_v6, %v503_v60  ;;  %v7636_v63 = vadd.f32 %v20682_v8, %v24665_v49  ;;  %v7533_v23 = vpop.f32.mrb[41].mxu1  ;;  %v24834_v28 = vld [vmem:[#allocation2 + $0xa9] sm:$0xff]  ;;  %v22706_v57 = vld [vmem:[%s22868_s13 + $0xd8] sm:$0xff]  ;;  %v508_v8 = vld [vmem:[%s24672_s16 + $0xe0] sm:$0xff] }
 0x5ed   : > { %7819 = vst.msk [vmem:[#allocation2 + $0xd9] sm:$0xff] %vm434_vm1, %v7787_v36  ;;  %v7758_v30 = vld [vmem:[#allocation3 + $0x98] sm:$0xff]  ;;  %v7697_v40 = vadd.f32 %v7665_v45, %v502_v34  ;;  %v7635_v5 = vadd.f32 %v24665_v49, %v7533_v23  ;;  %20715 = vmatprep.mubr.msk.f32.mxu0 %vm434_vm1, %v24834_v28 }
 0x5ee   : > { %v7790_v3 = vmax.f32 %v7758_v30, 0.0  ;;  %v7757_v7 = vld [vmem:[#allocation3 + $0x90] sm:$0xff]  ;;  %7730 = vst.msk [vmem:[#allocation3 + $0xb8] sm:$0xff] %vm434_vm1, %v7698_v14  ;;  %v7668_v2 = vadd.f32 %v22704_v27, %v7636_v63  ;;  %20716 = vmatmul.mubr.msk.f32.gmra.mrb[46].mxu0 %vm434_vm1, %v24841_v13  ;;  %v22708_v42 = vld [vmem:[%s22868_s13 + $0xe8] sm:$0xff] }
 0x5ef   : > { %v7789_v31 = vmax.f32 %v7757_v7, 0.0  ;;  %7729 = vst.msk [vmem:[#allocation3 + $0xb0] sm:$0xff] %vm434_vm1, %v7697_v40  ;;  %v7667_v18 = vadd.f32 %v22705_v21, %v7635_v5  ;;  %v20685_v33 = vpop.f32.mrb[42].mxu1  ;;  %v24859_v19 = vld [vmem:[#allocation2 + $0xc9] sm:$0xff]  ;;  %v22709_v63 = vld [vmem:[%s22868_s13 + $0xe0] sm:$0xff] }
 0x5f0   : > { %7822 = vst.msk [vmem:[#allocation2 + $0xf9] sm:$0xff] %vm434_vm1, %v7790_v3  ;;  %v7700_v35 = vadd.f32 %v7668_v2, %v505_v51  ;;  %v7638_v20 = vadd.f32 %v20685_v33, %v24665_v49  ;;  %v7543_v39 = vpop.f32.mrb[43].mxu1  ;;  %v24852_v44 = vld [vmem:[#allocation2 + $0xc1] sm:$0xff]  ;;  %v511_v2 = vld [vmem:[%s24672_s16 + $0xf8] sm:$0xff] }
 0x5f1   : > { %7821 = vst.msk [vmem:[#allocation2 + $0xf1] sm:$0xff] %vm434_vm1, %v7789_v31  ;;  %v7760_v56 = vld [vmem:[#allocation3 + $0xa8] sm:$0xff]  ;;  %v7699_v43 = vadd.f32 %v7667_v18, %v504_v29  ;;  %v7637_v26 = vadd.f32 %v24665_v49, %v7543_v39  ;;  %20718 = vmatprep.mubr.msk.f32.mxu0 %vm434_vm1, %v24852_v44 }
 0x5f2   : > { %v7792_v37 = vmax.f32 %v7760_v56, 0.0  ;;  %v7759_v55 = vld [vmem:[#allocation3 + $0xa0] sm:$0xff]  ;;  %7732 = vst.msk [vmem:[#allocation3 + $0xc8] sm:$0xff] %vm434_vm1, %v7700_v35  ;;  %v7670_v17 = vadd.f32 %v22706_v57, %v7638_v20  ;;  %20719 = vmatmul.mubr.msk.f32.gmra.mrb[48].mxu0 %vm434_vm1, %v24859_v19  ;;  %v22710_v33 = vld [vmem:[%s22868_s13 + $0xf8] sm:$0xff] }
 0x5f3   : > { %v7791_v15 = vmax.f32 %v7759_v55, 0.0  ;;  %7731 = vst.msk [vmem:[#allocation3 + $0xc0] sm:$0xff] %vm434_vm1, %v7699_v43  ;;  %v7669_v46 = vadd.f32 %v22707_v10, %v7637_v26  ;;  %v20688_v52 = vpop.f32.mrb[44].mxu1  ;;  %v24877_v6 = vld [vmem:[#allocation2 + $0xe1] sm:$0xff]  ;;  %v510_v20 = vld [vmem:[%s24672_s16 + $0xf0] sm:$0xff] }
 0x5f4   : > { %7824 = vst.msk [vmem:[#allocation2 + $0x111] sm:$0xff] %vm434_vm1, %v7792_v37  ;;  %v7702_v58 = vadd.f32 %v7670_v17, %v507_v48  ;;  %v7640_v47 = vadd.f32 %v20688_v52, %v24665_v49  ;;  %v7553_v53 = vpop.f32.mrb[45].mxu1  ;;  %v24870_v60 = vld [vmem:[#allocation2 + $0xd9] sm:$0xff]  ;;  %v22711_v56 = vld [vmem:[%s22868_s13 + $0xf0] sm:$0xff] }
 0x5f5   : > { %7823 = vst.msk [vmem:[#allocation2 + $0x109] sm:$0xff] %vm434_vm1, %v7791_v15  ;;  %v7762_v11 = vld [vmem:[#allocation3 + $0xb8] sm:$0xff]  ;;  %v7701_v1 = vadd.f32 %v7669_v46, %v506_v0  ;;  %v7639_v24 = vadd.f32 %v24665_v49, %v7553_v53  ;;  %20721 = vmatprep.mubr.msk.f32.mxu0 %vm434_vm1, %v24870_v60 }
 0x5f6   : > { %v7794_v34 = vmax.f32 %v7762_v11, 0.0  ;;  %v7761_v36 = vld [vmem:[#allocation3 + $0xb0] sm:$0xff]  ;;  %7734 = vst.msk [vmem:[#allocation3 + $0xd8] sm:$0xff] %vm434_vm1, %v7702_v58  ;;  %v7672_v45 = vadd.f32 %v22708_v42, %v7640_v47  ;;  %20722 = vmatmul.mubr.msk.f32.gmra.mrb[50].mxu0 %vm434_vm1, %v24877_v6 }
 0x5f7   : > { %v7793_v14 = vmax.f32 %v7761_v36, 0.0  ;;  %7733 = vst.msk [vmem:[#allocation3 + $0xd0] sm:$0xff] %vm434_vm1, %v7701_v1  ;;  %v7671_v23 = vadd.f32 %v22709_v63, %v7639_v24  ;;  %v20691_v30 = vpop.f32.mrb[46].mxu1  ;;  %v24895_v31 = vld [vmem:[#allocation2 + $0xf9] sm:$0xff]  ;;  %v7836_v63 = vld [vmem:[#allocation2 + $0x8] sm:$0xff] }
 0x5f8   : > { %7826 = vst.msk [vmem:[#allocation2 + $0x129] sm:$0xff] %vm434_vm1, %v7794_v34  ;;  %v7704_v40 = vadd.f32 %v7672_v45, %v509_v59  ;;  %v7642_v51 = vadd.f32 %v20691_v30, %v24665_v49  ;;  %v7563_v5 = vpop.f32.mrb[47].mxu1  ;;  %v24888_v3 = vld [vmem:[#allocation2 + $0xf1] sm:$0xff] }
 0x5f9   : > { %7825 = vst.msk [vmem:[#allocation2 + $0x121] sm:$0xff] %vm434_vm1, %v7793_v14  ;;  %v7764_v7 = vld [vmem:[#allocation3 + $0xc8] sm:$0xff]  ;;  %v7703_v27 = vadd.f32 %v7671_v23, %v508_v8  ;;  %v7641_v29 = vadd.f32 %v24665_v49, %v7563_v5  ;;  %20724 = vmatprep.mubr.msk.f32.mxu0 %vm434_vm1, %v24888_v3  ;;  %v7835_v8 = vld [vmem:[#allocation2] sm:$0xff]  ;;  %v24958_v23 = vld [vmem:[%s27827_s6 + $0xc] sm:$0xf] }
 0x5fa   : > { %v7796_v21 = vmax.f32 %v7764_v7, 0.0  ;;  %v7763_v18 = vld [vmem:[#allocation3 + $0xc0] sm:$0xff]  ;;  %7736 = vst.msk [vmem:[#allocation3 + $0xe8] sm:$0xff] %vm434_vm1, %v7704_v40  ;;  %v7674_v35 = vadd.f32 %v22710_v33, %v7642_v51  ;;  %20725 = vmatmul.mubr.msk.f32.gmra.mrb[52].mxu0 %vm434_vm1, %v24895_v31  ;;  %v24961_v30 = vld [vmem:[#allocation2 + $0x18] sm:$0xff]  ;;  %v24969_v40 = vld [vmem:[#allocation2 + $0x20] sm:$0xff] }
 0x5fb   : > { %v7795_v39 = vmax.f32 %v7763_v18, 0.0  ;;  %7735 = vst.msk [vmem:[#allocation3 + $0xe0] sm:$0xff] %vm434_vm1, %v7703_v27  ;;  %v7673_v49 = vadd.f32 %v22711_v56, %v7641_v29  ;;  %v24910_v55 = vld [vmem:[#allocation2 + $0x111] sm:$0xff]  ;;  %v24989_v27 = vld [vmem:[#allocation2 + $0x60] sm:$0xff]  ;;  %v25025_v56 = vld [vmem:[#allocation2 + $0xc8] sm:$0xff] }
 0x5fc   : > { %7828 = vst.msk [vmem:[#allocation2 + $0x141] sm:$0xff] %vm434_vm1, %v7796_v21  ;;  %v7706_v43 = vadd.f32 %v7674_v35, %v511_v2  ;;  %v24905_v48 = vld [vmem:[#allocation2 + $0x109] sm:$0xff]  ;;  %v24977_v5 = vld [vmem:[#allocation2 + $0x38] sm:$0xff]  ;;  %v25001_v21 = vld [vmem:[#allocation2 + $0x80] sm:$0xff] }
 0x5fd   : > { %7827 = vst.msk [vmem:[#allocation2 + $0x139] sm:$0xff] %vm434_vm1, %v7795_v39  ;;  %v7766_v26 = vld [vmem:[#allocation3 + $0xd8] sm:$0xff]  ;;  %v7705_v37 = vadd.f32 %v7673_v49, %v510_v20  ;;  %20727 = vmatprep.mubr.msk.f32.mxu0 %vm434_vm1, %v24905_v48  ;;  %v24973_v51 = vld [vmem:[#allocation2 + $0x30] sm:$0xff]  ;;  %v24997_v29 = vld [vmem:[#allocation2 + $0x78] sm:$0xff] }
 0x5fe   : > { %v7798_v57 = vmax.f32 %v7766_v26, 0.0  ;;  %v7765_v17 = vld [vmem:[#allocation3 + $0xd0] sm:$0xff]  ;;  %7738 = vst.msk [vmem:[#allocation3 + $0xf8] sm:$0xff] %vm434_vm1, %v7706_v43  ;;  %20728 = vmatmul.mubr.msk.f32.gmra.mrb[54].mxu0 %vm434_vm1, %v24910_v55  ;;  %v24985_v7 = vld [vmem:[#allocation2 + $0x50] sm:$0xff]  ;;  %v24993_v2 = vld [vmem:[#allocation2 + $0x68] sm:$0xff] }
 0x5ff   : > { %v7797_v0 = vmax.f32 %v7765_v17, 0.0  ;;  %7737 = vst.msk [vmem:[#allocation3 + $0xf0] sm:$0xff] %vm434_vm1, %v7705_v37  ;;  %v24922_v46 = vld [vmem:[#allocation2 + $0x129] sm:$0xff]  ;;  %v25009_v33 = vld [vmem:[#allocation2 + $0x98] sm:$0xff]  ;;  %v25021_v39 = vld [vmem:[#allocation2 + $0xc0] sm:$0xff] }
 0x600   : > { %7830 = vst.msk [vmem:[#allocation2 + $0x159] sm:$0xff] %vm434_vm1, %v7798_v57  ;;  %v24917_v15 = vld [vmem:[#allocation2 + $0x121] sm:$0xff]  ;;  %v25005_v18 = vld [vmem:[#allocation2 + $0x90] sm:$0xff]  ;;  %v25029_v49 = vld [vmem:[#allocation2 + $0xd8] sm:$0xff] }
 0x601   : > { %7829 = vst.msk [vmem:[#allocation2 + $0x151] sm:$0xff] %vm434_vm1, %v7797_v0  ;;  %v7768_v10 = vld [vmem:[#allocation3 + $0xe8] sm:$0xff]  ;;  %20730 = vmatprep.mubr.msk.f32.mxu0 %vm434_vm1, %v24917_v15  ;;  %v25013_v35 = vld [vmem:[#allocation2 + $0xa8] sm:$0xff]  ;;  %v25017_v20 = vld [vmem:[#allocation2 + $0xb0] sm:$0xff] }
 0x602   : > { %v7800_v52 = vmax.f32 %v7768_v10, 0.0  ;;  %v7767_v58 = vld [vmem:[#allocation3 + $0xe0] sm:$0xff]  ;;  %20731 = vmatmul.mubr.msk.f32.gmra.mrb[56].mxu0 %vm434_vm1, %v24922_v46  ;;  %v25033_v43 = vld [vmem:[#allocation2 + $0xe0] sm:$0xff]  ;;  %v25041_v37 = vld [vmem:[#allocation2 + $0xf8] sm:$0xff] }
 0x603   : > { %v7799_v47 = vmax.f32 %v7767_v58, 0.0  ;;  %v24932_v1 = vld [vmem:[#allocation2 + $0x141] sm:$0xff]  ;;  %v25037_v26 = vld [vmem:[#allocation2 + $0xf0] sm:$0xff] }
 0x604   : > { %7832 = vst.msk [vmem:[#allocation2 + $0x171] sm:$0xff] %vm434_vm1, %v7800_v52  ;;  %v24927_v53 = vld [vmem:[#allocation2 + $0x139] sm:$0xff]  ;;  %v25045_v57 = vld [vmem:[#allocation2 + $0x108] sm:$0xff]  ;;  %v25049_v17 = vld [vmem:[#allocation2 + $0x110] sm:$0xff] }
 0x605   : > { %7831 = vst.msk [vmem:[#allocation2 + $0x169] sm:$0xff] %vm434_vm1, %v7799_v47  ;;  %v7770_v11 = vld [vmem:[#allocation3 + $0xf8] sm:$0xff]  ;;  %20733 = vmatprep.mubr.msk.f32.mxu0 %vm434_vm1, %v24927_v53  ;;  %v25053_v0 = vld [vmem:[#allocation2 + $0x120] sm:$0xff]  ;;  %v25061_v52 = vld [vmem:[#allocation2 + $0x138] sm:$0xff] }
 0x606   : > { %v7802_v59 = vmax.f32 %v7770_v11, 0.0  ;;  %v7769_v24 = vld [vmem:[#allocation3 + $0xf0] sm:$0xff]  ;;  %20734 = vmatmul.mubr.msk.f32.gmra.mrb[58].mxu0 %vm434_vm1, %v24932_v1  ;;  %v25057_v10 = vld [vmem:[#allocation2 + $0x128] sm:$0xff] }
 0x607   : > { %v7801_v34 = vmax.f32 %v7769_v24, 0.0  ;;  %v24942_v42 = vld [vmem:[#allocation2 + $0x159] sm:$0xff]  ;;  %v8550_v24 = vld [vmem:[#allocation2 + $0x2] sm:$0xff] }
 0x608   : > { %7834 = vst.msk [vmem:[#allocation2 + $0x189] sm:$0xff] %vm434_vm1, %v7802_v59  ;;  %v24937_v36 = vld [vmem:[#allocation2 + $0x151] sm:$0xff]  ;;  %v25065_v58 = vld [vmem:[#allocation2 + $0x140] sm:$0xff] }
 0x609   : > { %7833 = vst.msk [vmem:[#allocation2 + $0x181] sm:$0xff] %vm434_vm1, %v7801_v34  ;;  %20736 = vmatprep.mubr.msk.f32.mxu0 %vm434_vm1, %v24937_v36  ;;  %v25069_v47 = vld [vmem:[#allocation2 + $0x150] sm:$0xff]  ;;  %v25073_v11 = vld [vmem:[#allocation2 + $0x158] sm:$0xff] }
 0x60a   : > { %20737 = vmatmul.mubr.msk.f32.gmra.mrb[60].mxu0 %vm434_vm1, %v24942_v42 }
 0x60b   : > { %v24950_v14 = vld [vmem:[#allocation2 + $0x171] sm:$0xff] }
 0x60c   : > { %v24946_v45 = vld [vmem:[#allocation2 + $0x169] sm:$0xff]  ;;  %28236 = vst [vmem:[#allocation4_spill] sm:$0xff] %v24950_v14 }
 0x60d   : > { %28235 = vst [vmem:[#allocation29_spill] sm:$0xff] %v24946_v45  ;;  %20739 = vmatprep.mubr.msk.f32.mxu0 %vm434_vm1, %v24946_v45  ;;  %v25077_v59 = vld [vmem:[#allocation2 + $0x168] sm:$0xff]  ;;  %v25081_v34 = vld [vmem:[#allocation2 + $0x170] sm:$0xff] }
 0x60e   : > { %20740 = vmatmul.mubr.msk.f32.gmra.mrb[62].mxu0 %vm434_vm1, %v24950_v14  ;;  %v25092_v14 = vld [vmem:[#allocation2 + $0x1a] sm:$0xff]  ;;  %v25104_v45 = vld [vmem:[#allocation2 + $0x32] sm:$0xff] }
 0x60f   : > { %20744 = vmatprep.mubr.msk.f32.mxu0 %vm434_vm1, %v7835_v8  ;;  %v8551_v8 = vld [vmem:[#allocation2 + $0xa] sm:$0xff]  ;;  %28237 = vst [vmem:[#allocation5_spill] sm:$0xff] %v25092_v14  ;;  %28239 = vst [vmem:[#allocation7_spill] sm:$0xff] %v25104_v45 }
 0x612   : > { %20745 = vmatmul.mubr.msk.f32.vlgmr.msra.gmra.mrb[32].mxu0 %vm434_vm1, %v7836_v63  ;;  %v25089_v63 = vld [vmem:[%s27827_s6 + $0x10] sm:$0xf] }
 0x613   : > { %20793 = vmatpush3.msk.msra.mxu0 %vm772_vm0, %v24658_v12  ;;  %20747 = vmatprep.mubr.msk.f32.mxu0 %vm434_vm1, %v24961_v30  ;;  %v24981_v12 = vld [vmem:[#allocation2 + $0x48] sm:$0xff] }
 0x614   : > { %20842 = vmatprep.subr.msk.mxu0 %vm772_vm0, %v24958_v23 }
 0x616   : > { %20748 = vmatmul.mubr.msk.f32.gmra.mrb[34].mxu0 %vm434_vm1, %v24969_v40 }
 0x617   : > { %20750 = vmatprep.mubr.msk.f32.mxu0 %vm434_vm1, %v24973_v51 }
 0x61a   : > { %20751 = vmatmul.mubr.msk.f32.gmra.mrb[36].mxu0 %vm434_vm1, %v24977_v5 }
 0x61b   : > { %20753 = vmatprep.mubr.msk.f32.mxu0 %vm434_vm1, %v24981_v12 }
 0x61e   : > { %20754 = vmatmul.mubr.msk.f32.gmra.mrb[38].mxu0 %vm434_vm1, %v24985_v7 }
 0x61f   : > { %20756 = vmatprep.mubr.msk.f32.mxu0 %vm434_vm1, %v24989_v27 }
 0x622   : > { %20757 = vmatmul.mubr.msk.f32.gmra.mrb[40].mxu0 %vm434_vm1, %v24993_v2 }
 0x623   : > { %20759 = vmatprep.mubr.msk.f32.mxu0 %vm434_vm1, %v24997_v29 }
 0x626   : > { %20760 = vmatmul.mubr.msk.f32.gmra.mrb[42].mxu0 %vm434_vm1, %v25001_v21 }
 0x627   : > { %20762 = vmatprep.mubr.msk.f32.mxu0 %vm434_vm1, %v25005_v18 }
 0x62a   : > { %20763 = vmatmul.mubr.msk.f32.gmra.mrb[44].mxu0 %vm434_vm1, %v25009_v33 }
 0x62b   : > { %20765 = vmatprep.mubr.msk.f32.mxu0 %vm434_vm1, %v25013_v35 }
 0x62e   : > { %20766 = vmatmul.mubr.msk.f32.gmra.mrb[46].mxu0 %vm434_vm1, %v25017_v20 }
 0x62f   : > { %20768 = vmatprep.mubr.msk.f32.mxu0 %vm434_vm1, %v25021_v39 }
 0x632   : > { %20769 = vmatmul.mubr.msk.f32.gmra.mrb[48].mxu0 %vm434_vm1, %v25025_v56 }
 0x633   : > { %20771 = vmatprep.mubr.msk.f32.mxu0 %vm434_vm1, %v25029_v49 }
 0x636   : > { %20772 = vmatmul.mubr.msk.f32.gmra.mrb[50].mxu0 %vm434_vm1, %v25033_v43 }
 0x637   : > { %20774 = vmatprep.mubr.msk.f32.mxu0 %vm434_vm1, %v25037_v26 }
 0x63a   : > { %20775 = vmatmul.mubr.msk.f32.gmra.mrb[52].mxu0 %vm434_vm1, %v25041_v37 }
 0x63b   : > { %20777 = vmatprep.mubr.msk.f32.mxu0 %vm434_vm1, %v25045_v57 }
 0x63e   : > { %20778 = vmatmul.mubr.msk.f32.gmra.mrb[54].mxu0 %vm434_vm1, %v25049_v17 }
 0x63f   : > { %20780 = vmatprep.mubr.msk.f32.mxu0 %vm434_vm1, %v25053_v0 }
 0x642   : > { %20781 = vmatmul.mubr.msk.f32.gmra.mrb[56].mxu0 %vm434_vm1, %v25057_v10 }
 0x643   : > { %20783 = vmatprep.mubr.msk.f32.mxu0 %vm434_vm1, %v25061_v52 }
 0x646   : > { %20784 = vmatmul.mubr.msk.f32.gmra.mrb[58].mxu0 %vm434_vm1, %v25065_v58 }
 0x647   : > { %20786 = vmatprep.mubr.msk.f32.mxu0 %vm434_vm1, %v25069_v47 }
 0x64a   : > { %20787 = vmatmul.mubr.msk.f32.gmra.mrb[60].mxu0 %vm434_vm1, %v25073_v11 }
 0x64b   : > { %20789 = vmatprep.mubr.msk.f32.mxu0 %vm434_vm1, %v25077_v59 }
 0x64e   : > { %20790 = vmatmul.mubr.msk.f32.gmra.mrb[62].mxu0 %vm434_vm1, %v25081_v34 }
 0x64f   : > { %20794 = vmatprep.mubr.msk.f32.mxu0 %vm434_vm1, %v8550_v24  ;;  %v25100_v24 = vld [vmem:[#allocation2 + $0x22] sm:$0xff] }
 0x650   : > { %28238 = vst [vmem:[#allocation6_spill] sm:$0xff] %v25100_v24 }
 0x652   : > { %20795 = vmatmul.mubr.msk.f32.vlgmr.msra.gmra.mrb[32].mxu0 %vm434_vm1, %v8551_v8  ;;  %v25108_v8 = vld [vmem:[#allocation2 + $0x3a] sm:$0xff] }
 0x653   : > { %20843 = vmatpush3.msk.msra.mxu0 %vm772_vm0, %v24958_v23  ;;  %20797 = vmatprep.mubr.msk.f32.mxu0 %vm434_vm1, %v25092_v14  ;;  %28240 = vst [vmem:[#allocation8_spill] sm:$0xff] %v25108_v8  ;;  %v25112_v23 = vld [vmem:[#allocation2 + $0x4a] sm:$0xff]  ;;  %v25116_v14 = vld [vmem:[#allocation2 + $0x52] sm:$0xff] }
 0x654   : > { %20892 = vmatprep.subr.msk.mxu0 %vm772_vm0, %v25089_v63  ;;  %28241 = vst [vmem:[#allocation9_spill] sm:$0xff] %v25112_v23  ;;  %28242 = vst [vmem:[#allocation23_spill] sm:$0xff] %v25116_v14 }
 0x656   : > { %20798 = vmatmul.mubr.msk.f32.gmra.mrb[34].mxu0 %vm434_vm1, %v25100_v24  ;;  %v25120_v24 = vld [vmem:[#allocation2 + $0x62] sm:$0xff] }
 0x657   : > { %20800 = vmatprep.mubr.msk.f32.mxu0 %vm434_vm1, %v25104_v45  ;;  %28243 = vst [vmem:[#allocation24_spill] sm:$0xff] %v25120_v24  ;;  %v25124_v45 = vld [vmem:[#allocation2 + $0x6a] sm:$0xff] }
 0x658   : > { %28244 = vst [vmem:[#allocation16_spill] sm:$0xff] %v25124_v45 }
 0x65a   : > { %20801 = vmatmul.mubr.msk.f32.gmra.mrb[36].mxu0 %vm434_vm1, %v25108_v8  ;;  %v25128_v8 = vld [vmem:[#allocation2 + $0x7a] sm:$0xff] }
 0x65b   : > { %20803 = vmatprep.mubr.msk.f32.mxu0 %vm434_vm1, %v25112_v23  ;;  %28245 = vst [vmem:[#allocation18_spill] sm:$0xff] %v25128_v8  ;;  %v25132_v23 = vld [vmem:[#allocation2 + $0x82] sm:$0xff] }
 0x65c   : > { %28246 = vst [vmem:[#allocation19_spill] sm:$0xff] %v25132_v23 }
 0x65e   : > { %20804 = vmatmul.mubr.msk.f32.gmra.mrb[38].mxu0 %vm434_vm1, %v25116_v14  ;;  %v25136_v14 = vld [vmem:[#allocation2 + $0x92] sm:$0xff] }
 0x65f   : > { %20806 = vmatprep.mubr.msk.f32.mxu0 %vm434_vm1, %v25120_v24  ;;  %28247 = vst [vmem:[#allocation20_spill] sm:$0xff] %v25136_v14  ;;  %v25140_v24 = vld [vmem:[#allocation2 + $0x9a] sm:$0xff] }
 0x660   : > { %28248 = vst [vmem:[#allocation22_spill] sm:$0xff] %v25140_v24 }
 0x662   : > { %20807 = vmatmul.mubr.msk.f32.gmra.mrb[40].mxu0 %vm434_vm1, %v25124_v45  ;;  %v25144_v45 = vld [vmem:[#allocation2 + $0xaa] sm:$0xff] }
 0x663   : > { %20809 = vmatprep.mubr.msk.f32.mxu0 %vm434_vm1, %v25128_v8  ;;  %28249 = vst [vmem:[#allocation28_spill] sm:$0xff] %v25144_v45  ;;  %v25148_v8 = vld [vmem:[#allocation2 + $0xb2] sm:$0xff] }
 0x664   : > { %28250 = vst [vmem:[#allocation26_spill] sm:$0xff] %v25148_v8 }
 0x666   : > { %20810 = vmatmul.mubr.msk.f32.gmra.mrb[42].mxu0 %vm434_vm1, %v25132_v23  ;;  %v25152_v23 = vld [vmem:[#allocation2 + $0xc2] sm:$0xff] }
 0x667   : > { %20812 = vmatprep.mubr.msk.f32.mxu0 %vm434_vm1, %v25136_v14  ;;  %28251 = vst [vmem:[#allocation27_spill] sm:$0xff] %v25152_v23  ;;  %v25156_v14 = vld [vmem:[#allocation2 + $0xca] sm:$0xff] }
 0x668   : > { %28252 = vst [vmem:[#allocation30_spill] sm:$0xff] %v25156_v14 }
 0x66a   : > { %20813 = vmatmul.mubr.msk.f32.gmra.mrb[44].mxu0 %vm434_vm1, %v25140_v24  ;;  %v25160_v24 = vld [vmem:[#allocation2 + $0xda] sm:$0xff] }
 0x66b   : > { %20815 = vmatprep.mubr.msk.f32.mxu0 %vm434_vm1, %v25144_v45  ;;  %28253 = vst [vmem:[#allocation31_spill] sm:$0xff] %v25160_v24  ;;  %v25164_v45 = vld [vmem:[#allocation2 + $0xe2] sm:$0xff] }
 0x66c   : > { %28254 = vst [vmem:[#allocation10_spill] sm:$0xff] %v25164_v45 }
 0x66e   : > { %20816 = vmatmul.mubr.msk.f32.gmra.mrb[46].mxu0 %vm434_vm1, %v25148_v8  ;;  %v25168_v8 = vld [vmem:[#allocation2 + $0xf2] sm:$0xff] }
 0x66f   : > { %20818 = vmatprep.mubr.msk.f32.mxu0 %vm434_vm1, %v25152_v23  ;;  %28255 = vst [vmem:[#allocation11_spill] sm:$0xff] %v25168_v8  ;;  %v25172_v23 = vld [vmem:[#allocation2 + $0xfa] sm:$0xff] }
 0x670   : > { %28256 = vst [vmem:[#allocation12_spill] sm:$0xff] %v25172_v23 }
 0x672   : > { %20819 = vmatmul.mubr.msk.f32.gmra.mrb[48].mxu0 %vm434_vm1, %v25156_v14  ;;  %v25176_v14 = vld [vmem:[#allocation2 + $0x10a] sm:$0xff] }
 0x673   : > { %20821 = vmatprep.mubr.msk.f32.mxu0 %vm434_vm1, %v25160_v24  ;;  %28257 = vst [vmem:[#allocation13_spill] sm:$0xff] %v25176_v14  ;;  %v25180_v24 = vld [vmem:[#allocation2 + $0x112] sm:$0xff] }
 0x674   : > { %28258 = vst [vmem:[#allocation14_spill] sm:$0xff] %v25180_v24 }
 0x676   : > { %20822 = vmatmul.mubr.msk.f32.gmra.mrb[50].mxu0 %vm434_vm1, %v25164_v45  ;;  %v25184_v45 = vld [vmem:[#allocation2 + $0x122] sm:$0xff] }
 0x677   : > { %20824 = vmatprep.mubr.msk.f32.mxu0 %vm434_vm1, %v25168_v8  ;;  %28259 = vst [vmem:[#allocation15_spill] sm:$0xff] %v25184_v45  ;;  %v25188_v8 = vld [vmem:[#allocation2 + $0x12a] sm:$0xff] }
 0x678   : > { %28260 = vst [vmem:[#allocation17_spill] sm:$0xff] %v25188_v8 }
 0x67a   : > { %20825 = vmatmul.mubr.msk.f32.gmra.mrb[52].mxu0 %vm434_vm1, %v25172_v23  ;;  %v25192_v23 = vld [vmem:[#allocation2 + $0x13a] sm:$0xff] }
 0x67b   : > { %20827 = vmatprep.mubr.msk.f32.mxu0 %vm434_vm1, %v25176_v14  ;;  %28261 = vst [vmem:[#allocation21_spill] sm:$0xff] %v25192_v23  ;;  %v25196_v14 = vld [vmem:[#allocation2 + $0x142] sm:$0xff] }
 0x67e   : > { %20828 = vmatmul.mubr.msk.f32.gmra.mrb[54].mxu0 %vm434_vm1, %v25180_v24  ;;  %v25200_v24 = vld [vmem:[#allocation2 + $0x152] sm:$0xff] }
 0x67f   : > { %20830 = vmatprep.mubr.msk.f32.mxu0 %vm434_vm1, %v25184_v45  ;;  %28262 = vst [vmem:[#allocation25_spill] sm:$0xff] %v25200_v24  ;;  %v25204_v45 = vld [vmem:[#allocation2 + $0x15a] sm:$0xff] }
 0x682   : > { %20831 = vmatmul.mubr.msk.f32.gmra.mrb[56].mxu0 %vm434_vm1, %v25188_v8  ;;  %v25208_v8 = vld [vmem:[#allocation2 + $0x16a] sm:$0xff] }
 0x683   : > { %20833 = vmatprep.mubr.msk.f32.mxu0 %vm434_vm1, %v25192_v23  ;;  %28263 = vst [vmem:[#allocation32_spill] sm:$0xff] %v25208_v8  ;;  %v25212_v23 = vld [vmem:[#allocation2 + $0x172] sm:$0xff] }
 0x686   : > { %20834 = vmatmul.mubr.msk.f32.gmra.mrb[58].mxu0 %vm434_vm1, %v25196_v14 }
 0x687   : > { %20836 = vmatprep.mubr.msk.f32.mxu0 %vm434_vm1, %v25200_v24  ;;  %v17993_v24 = vld [vmem:[%s27827_s6 + $0x14] sm:$0xf] }
 0x68a   : > { %20837 = vmatmul.mubr.msk.f32.gmra.mrb[60].mxu0 %vm434_vm1, %v25204_v45 }
 0x68b   : > { %20839 = vmatprep.mubr.msk.f32.mxu0 %vm434_vm1, %v25208_v8 }
 0x68e   : > { %20840 = vmatmul.mubr.msk.f32.gmra.mrb[62].mxu0 %vm434_vm1, %v25212_v23 }
 0x68f   : > { %20844 = vmatprep.mubr.msk.f32.mxu0 %vm434_vm1, %v24961_v30  ;;  %v25282_v30 = vld [vmem:[#allocation2 + $0x180] sm:$0xff] }
 0x692   : > { %20845 = vmatmul.mubr.msk.f32.vlgmr.msra.gmra.mrb[32].mxu0 %vm434_vm1, %v24969_v40  ;;  %v25286_v40 = vld [vmem:[#allocation2 + $0x188] sm:$0xff] }
 0x693   : > { %20893 = vmatpush3.msk.msra.mxu0 %vm772_vm0, %v25089_v63  ;;  %20847 = vmatprep.mubr.msk.f32.mxu0 %vm434_vm1, %v24973_v51  ;;  %v18027_v63 = vld [vmem:[%s27827_s6 + $0x18] sm:$0xf] }
 0x694   : > { %20942 = vmatprep.subr.msk.mxu0 %vm772_vm0, %v17993_v24 }
 0x696   : > { %20848 = vmatmul.mubr.msk.f32.gmra.mrb[34].mxu0 %vm434_vm1, %v24977_v5 }
 0x697   : > { %20850 = vmatprep.mubr.msk.f32.mxu0 %vm434_vm1, %v24981_v12 }
 0x69a   : > { %20851 = vmatmul.mubr.msk.f32.gmra.mrb[36].mxu0 %vm434_vm1, %v24985_v7 }
 0x69b   : > { %20853 = vmatprep.mubr.msk.f32.mxu0 %vm434_vm1, %v24989_v27 }
 0x69e   : > { %20854 = vmatmul.mubr.msk.f32.gmra.mrb[38].mxu0 %vm434_vm1, %v24993_v2 }
 0x69f   : > { %20856 = vmatprep.mubr.msk.f32.mxu0 %vm434_vm1, %v24997_v29 }
 0x6a2   : > { %20857 = vmatmul.mubr.msk.f32.gmra.mrb[40].mxu0 %vm434_vm1, %v25001_v21 }
 0x6a3   : > { %20859 = vmatprep.mubr.msk.f32.mxu0 %vm434_vm1, %v25005_v18 }
 0x6a6   : > { %20860 = vmatmul.mubr.msk.f32.gmra.mrb[42].mxu0 %vm434_vm1, %v25009_v33 }
 0x6a7   : > { %20862 = vmatprep.mubr.msk.f32.mxu0 %vm434_vm1, %v25013_v35 }
 0x6aa   : > { %20863 = vmatmul.mubr.msk.f32.gmra.mrb[44].mxu0 %vm434_vm1, %v25017_v20 }
 0x6ab   : > { %20865 = vmatprep.mubr.msk.f32.mxu0 %vm434_vm1, %v25021_v39 }
 0x6ae   : > { %20866 = vmatmul.mubr.msk.f32.gmra.mrb[46].mxu0 %vm434_vm1, %v25025_v56 }
 0x6af   : > { %20868 = vmatprep.mubr.msk.f32.mxu0 %vm434_vm1, %v25029_v49 }
 0x6b2   : > { %20869 = vmatmul.mubr.msk.f32.gmra.mrb[48].mxu0 %vm434_vm1, %v25033_v43 }
 0x6b3   : > { %20871 = vmatprep.mubr.msk.f32.mxu0 %vm434_vm1, %v25037_v26 }
 0x6b6   : > { %20872 = vmatmul.mubr.msk.f32.gmra.mrb[50].mxu0 %vm434_vm1, %v25041_v37 }
 0x6b7   : > { %20874 = vmatprep.mubr.msk.f32.mxu0 %vm434_vm1, %v25045_v57 }
 0x6ba   : > { %20875 = vmatmul.mubr.msk.f32.gmra.mrb[52].mxu0 %vm434_vm1, %v25049_v17 }
 0x6bb   : > { %20877 = vmatprep.mubr.msk.f32.mxu0 %vm434_vm1, %v25053_v0 }
 0x6be   : > { %20878 = vmatmul.mubr.msk.f32.gmra.mrb[54].mxu0 %vm434_vm1, %v25057_v10 }
 0x6bf   : > { %20880 = vmatprep.mubr.msk.f32.mxu0 %vm434_vm1, %v25061_v52 }
 0x6c2   : > { %20881 = vmatmul.mubr.msk.f32.gmra.mrb[56].mxu0 %vm434_vm1, %v25065_v58 }
 0x6c3   : > { %20883 = vmatprep.mubr.msk.f32.mxu0 %vm434_vm1, %v25069_v47 }
 0x6c6   : > { %20884 = vmatmul.mubr.msk.f32.gmra.mrb[58].mxu0 %vm434_vm1, %v25073_v11 }
 0x6c7   : > { %20886 = vmatprep.mubr.msk.f32.mxu0 %vm434_vm1, %v25077_v59 }
 0x6ca   : > { %20887 = vmatmul.mubr.msk.f32.gmra.mrb[60].mxu0 %vm434_vm1, %v25081_v34 }
 0x6cb   : > { %20889 = vmatprep.mubr.msk.f32.mxu0 %vm434_vm1, %v25282_v30 }
 0x6ce   : > { %20890 = vmatmul.mubr.msk.f32.gmra.mrb[62].mxu0 %vm434_vm1, %v25286_v40 }
 0x6cf   : > { %20894 = vmatprep.mubr.msk.f32.mxu0 %vm434_vm1, %v24726_v25  ;;  %v28264_v25 = vld [vmem:[#allocation29_spill] sm:$0xff] }
 0x6d2   : > { %20895 = vmatmul.mubr.msk.f32.vlgmr.msra.gmra.mrb[32].mxu0 %vm434_vm1, %v24733_v32  ;;  %v28265_v32 = vld [vmem:[#allocation4_spill] sm:$0xff] }
 0x6d3   : > { %20943 = vmatpush3.msk.msra.mxu0 %vm772_vm0, %v17993_v24  ;;  %20897 = vmatprep.mubr.msk.f32.mxu0 %vm434_vm1, %v24744_v61  ;;  %v25355_v61 = vld [vmem:[#allocation2 + $0x181] sm:$0xff] }
 0x6d4   : > { %20992 = vmatprep.subr.msk.mxu0 %vm772_vm0, %v18027_v63  ;;  %v28275_v24 = vld [vmem:[#allocation19_spill] sm:$0xff] }
 0x6d6   : > { %20898 = vmatmul.mubr.msk.f32.gmra.mrb[34].mxu0 %vm434_vm1, %v24751_v50  ;;  %v25359_v50 = vld [vmem:[#allocation2 + $0x189] sm:$0xff] }
 0x6d7   : > { %20900 = vmatprep.mubr.msk.f32.mxu0 %vm434_vm1, %v24762_v62  ;;  %v28266_v62 = vld [vmem:[#allocation5_spill] sm:$0xff] }
 0x6da   : > { %20901 = vmatmul.mubr.msk.f32.gmra.mrb[36].mxu0 %vm434_vm1, %v24769_v54  ;;  %v18061_v54 = vld [vmem:[%s27827_s6 + $0x1c] sm:$0xf] }
 0x6db   : > { %20903 = vmatprep.mubr.msk.f32.mxu0 %vm434_vm1, %v24780_v38  ;;  %v28267_v38 = vld [vmem:[#allocation6_spill] sm:$0xff] }
 0x6de   : > { %20904 = vmatmul.mubr.msk.f32.gmra.mrb[38].mxu0 %vm434_vm1, %v24787_v22  ;;  %v28268_v22 = vld [vmem:[#allocation7_spill] sm:$0xff] }
 0x6df   : > { %20906 = vmatprep.mubr.msk.f32.mxu0 %vm434_vm1, %v24798_v41  ;;  %v28269_v41 = vld [vmem:[#allocation8_spill] sm:$0xff] }
 0x6e2   : > { %20907 = vmatmul.mubr.msk.f32.gmra.mrb[40].mxu0 %vm434_vm1, %v24805_v16  ;;  %v28270_v16 = vld [vmem:[#allocation9_spill] sm:$0xff] }
 0x6e3   : > { %20909 = vmatprep.mubr.msk.f32.mxu0 %vm434_vm1, %v24816_v9  ;;  %v28271_v9 = vld [vmem:[#allocation23_spill] sm:$0xff] }
 0x6e6   : > { %20910 = vmatmul.mubr.msk.f32.gmra.mrb[42].mxu0 %vm434_vm1, %v24823_v4  ;;  %v28272_v4 = vld [vmem:[#allocation24_spill] sm:$0xff] }
 0x6e7   : > { %20912 = vmatprep.mubr.msk.f32.mxu0 %vm434_vm1, %v24834_v28  ;;  %v28273_v28 = vld [vmem:[#allocation16_spill] sm:$0xff] }
 0x6ea   : > { %20913 = vmatmul.mubr.msk.f32.gmra.mrb[44].mxu0 %vm434_vm1, %v24841_v13  ;;  %v28274_v13 = vld [vmem:[#allocation18_spill] sm:$0xff] }
 0x6eb   : > { %20915 = vmatprep.mubr.msk.f32.mxu0 %vm434_vm1, %v24852_v44 }
 0x6ee   : > { %20916 = vmatmul.mubr.msk.f32.gmra.mrb[46].mxu0 %vm434_vm1, %v24859_v19 }
 0x6ef   : > { %20918 = vmatprep.mubr.msk.f32.mxu0 %vm434_vm1, %v24870_v60 }
 0x6f2   : > { %20919 = vmatmul.mubr.msk.f32.gmra.mrb[48].mxu0 %vm434_vm1, %v24877_v6 }
 0x6f3   : > { %20921 = vmatprep.mubr.msk.f32.mxu0 %vm434_vm1, %v24888_v3 }
 0x6f6   : > { %20922 = vmatmul.mubr.msk.f32.gmra.mrb[50].mxu0 %vm434_vm1, %v24895_v31 }
 0x6f7   : > { %20924 = vmatprep.mubr.msk.f32.mxu0 %vm434_vm1, %v24905_v48 }
 0x6fa   : > { %20925 = vmatmul.mubr.msk.f32.gmra.mrb[52].mxu0 %vm434_vm1, %v24910_v55 }
 0x6fb   : > { %20927 = vmatprep.mubr.msk.f32.mxu0 %vm434_vm1, %v24917_v15 }
 0x6fe   : > { %20928 = vmatmul.mubr.msk.f32.gmra.mrb[54].mxu0 %vm434_vm1, %v24922_v46 }
 0x6ff   : > { %20930 = vmatprep.mubr.msk.f32.mxu0 %vm434_vm1, %v24927_v53 }
 0x702   : > { %20931 = vmatmul.mubr.msk.f32.gmra.mrb[56].mxu0 %vm434_vm1, %v24932_v1 }
 0x703   : > { %20933 = vmatprep.mubr.msk.f32.mxu0 %vm434_vm1, %v24937_v36 }
 0x706   : > { %20934 = vmatmul.mubr.msk.f32.gmra.mrb[58].mxu0 %vm434_vm1, %v24942_v42 }
 0x707   : > { %20936 = vmatprep.mubr.msk.f32.mxu0 %vm434_vm1, %v28264_v25 }
 0x70a   : > { %20937 = vmatmul.mubr.msk.f32.gmra.mrb[60].mxu0 %vm434_vm1, %v28265_v32 }
 0x70b   : > { %20939 = vmatprep.mubr.msk.f32.mxu0 %vm434_vm1, %v25355_v61 }
 0x70e   : > { %20940 = vmatmul.mubr.msk.f32.gmra.mrb[62].mxu0 %vm434_vm1, %v25359_v50 }
 0x70f   : > { %20944 = vmatprep.mubr.msk.f32.mxu0 %vm434_vm1, %v28266_v62  ;;  %v28277_v62 = vld [vmem:[#allocation22_spill] sm:$0xff] }
 0x712   : > { %20945 = vmatmul.mubr.msk.f32.vlgmr.msra.gmra.mrb[32].mxu0 %vm434_vm1, %v28267_v38  ;;  %v28278_v38 = vld [vmem:[#allocation28_spill] sm:$0xff] }
 0x713   : > { %20993 = vmatpush3.msk.msra.mxu0 %vm772_vm0, %v18027_v63  ;;  %20947 = vmatprep.mubr.msk.f32.mxu0 %vm434_vm1, %v28268_v22  ;;  %v28276_v63 = vld [vmem:[#allocation20_spill] sm:$0xff] }
 0x714   : > { %21042 = vmatprep.subr.msk.mxu0 %vm772_vm0, %v18061_v54 }
 0x716   : > { %20948 = vmatmul.mubr.msk.f32.gmra.mrb[34].mxu0 %vm434_vm1, %v28269_v41 }
 0x717   : > { %20950 = vmatprep.mubr.msk.f32.mxu0 %vm434_vm1, %v28270_v16 }
 0x71a   : > { %20951 = vmatmul.mubr.msk.f32.gmra.mrb[36].mxu0 %vm434_vm1, %v28271_v9  ;;  %v28279_v9 = vld [vmem:[#allocation26_spill] sm:$0xff] }
 0x71b   : > { %20953 = vmatprep.mubr.msk.f32.mxu0 %vm434_vm1, %v28272_v4  ;;  %v28280_v4 = vld [vmem:[#allocation27_spill] sm:$0xff] }
 0x71e   : > { %20954 = vmatmul.mubr.msk.f32.gmra.mrb[38].mxu0 %vm434_vm1, %v28273_v28  ;;  %v28281_v28 = vld [vmem:[#allocation30_spill] sm:$0xff] }
 0x71f   : > { %20956 = vmatprep.mubr.msk.f32.mxu0 %vm434_vm1, %v28274_v13  ;;  %v28282_v13 = vld [vmem:[#allocation31_spill] sm:$0xff] }
 0x722   : > { %20957 = vmatmul.mubr.msk.f32.gmra.mrb[40].mxu0 %vm434_vm1, %v28275_v24  ;;  %v28283_v24 = vld [vmem:[#allocation10_spill] sm:$0xff] }
 0x723   : > { %20959 = vmatprep.mubr.msk.f32.mxu0 %vm434_vm1, %v28276_v63  ;;  %v28284_v63 = vld [vmem:[#allocation11_spill] sm:$0xff] }
 0x726   : > { %20960 = vmatmul.mubr.msk.f32.gmra.mrb[42].mxu0 %vm434_vm1, %v28277_v62  ;;  %v28285_v62 = vld [vmem:[#allocation12_spill] sm:$0xff] }
 0x727   : > { %20962 = vmatprep.mubr.msk.f32.mxu0 %vm434_vm1, %v28278_v38  ;;  %v28286_v38 = vld [vmem:[#allocation13_spill] sm:$0xff] }
 0x72a   : > { %20963 = vmatmul.mubr.msk.f32.gmra.mrb[44].mxu0 %vm434_vm1, %v28279_v9  ;;  %v28287_v9 = vld [vmem:[#allocation14_spill] sm:$0xff] }
 0x72b   : > { %20965 = vmatprep.mubr.msk.f32.mxu0 %vm434_vm1, %v28280_v4  ;;  %v28288_v4 = vld [vmem:[#allocation15_spill] sm:$0xff] }
 0x72e   : > { %20966 = vmatmul.mubr.msk.f32.gmra.mrb[46].mxu0 %vm434_vm1, %v28281_v28  ;;  %v28289_v28 = vld [vmem:[#allocation17_spill] sm:$0xff] }
 0x72f   : > { %20968 = vmatprep.mubr.msk.f32.mxu0 %vm434_vm1, %v28282_v13  ;;  %v28290_v13 = vld [vmem:[#allocation21_spill] sm:$0xff] }
 0x732   : > { %20969 = vmatmul.mubr.msk.f32.gmra.mrb[48].mxu0 %vm434_vm1, %v28283_v24 }
 0x733   : > { %20971 = vmatprep.mubr.msk.f32.mxu0 %vm434_vm1, %v28284_v63  ;;  %v28291_v63 = vld [vmem:[#allocation25_spill] sm:$0xff] }
 0x736   : > { %20972 = vmatmul.mubr.msk.f32.gmra.mrb[50].mxu0 %vm434_vm1, %v28285_v62 }
 0x737   : > { %20974 = vmatprep.mubr.msk.f32.mxu0 %vm434_vm1, %v28286_v38 }
 0x73a   : > { %20975 = vmatmul.mubr.msk.f32.gmra.mrb[52].mxu0 %vm434_vm1, %v28287_v9 }
 0x73b   : > { %20977 = vmatprep.mubr.msk.f32.mxu0 %vm434_vm1, %v28288_v4  ;;  %v25428_v4 = vld [vmem:[#allocation2 + $0x182] sm:$0xff] }
 0x73e   : > { %20978 = vmatmul.mubr.msk.f32.gmra.mrb[54].mxu0 %vm434_vm1, %v28289_v28 }
 0x73f   : > { %20980 = vmatprep.mubr.msk.f32.mxu0 %vm434_vm1, %v28290_v13  ;;  %v25432_v13 = vld [vmem:[#allocation2 + $0x18a] sm:$0xff] }
 0x742   : > { %20981 = vmatmul.mubr.msk.f32.gmra.mrb[56].mxu0 %vm434_vm1, %v25196_v14 }
 0x743   : > { %20983 = vmatprep.mubr.msk.f32.mxu0 %vm434_vm1, %v28291_v63 }
 0x746   : > { %20984 = vmatmul.mubr.msk.f32.gmra.mrb[58].mxu0 %vm434_vm1, %v25204_v45 }
 0x747   : > { %20986 = vmatprep.mubr.msk.f32.mxu0 %vm434_vm1, %v25208_v8  ;;  %v18095_v8 = vld [vmem:[%s27827_s6 + $0x20] sm:$0xf] }
 0x74a   : > { %20987 = vmatmul.mubr.msk.f32.gmra.mrb[60].mxu0 %vm434_vm1, %v25212_v23 }
 0x74b   : > { %20989 = vmatprep.mubr.msk.f32.mxu0 %vm434_vm1, %v25428_v4 }
 0x74e   : > { %20990 = vmatmul.mubr.msk.f32.gmra.mrb[62].mxu0 %vm434_vm1, %v25432_v13 }
 0x74f   : > { %20994 = vmatprep.mubr.msk.f32.mxu0 %vm434_vm1, %v24973_v51  ;;  %v10140_v51 = vld [vmem:[#allocation2 + $0x198] sm:$0xff] }
 0x752   : > { %20995 = vmatmul.mubr.msk.f32.vlgmr.msra.gmra.mrb[32].mxu0 %vm434_vm1, %v24977_v5  ;;  %v10141_v5 = vld [vmem:[#allocation2 + $0x1a0] sm:$0xff] }
 0x753   : > { %21043 = vmatpush3.msk.msra.mxu0 %vm772_vm0, %v18061_v54  ;;  %20997 = vmatprep.mubr.msk.f32.mxu0 %vm434_vm1, %v24981_v12  ;;  %v10500_v12 = vld [vmem:[#allocation2 + $0x31] sm:$0xff] }
 0x754   : > { %21092 = vmatprep.subr.msk.mxu0 %vm772_vm0, %v18095_v8 }
 0x756   : > { %20998 = vmatmul.mubr.msk.f32.gmra.mrb[34].mxu0 %vm434_vm1, %v24985_v7  ;;  %v18130_v7 = vld [vmem:[%s27829_s8 + $0x4] sm:$0xf] }
 0x757   : > { %21000 = vmatprep.mubr.msk.f32.mxu0 %vm434_vm1, %v24989_v27  ;;  %21142 = vmatprep.subr.msk.mxu1 %vm772_vm0, %v18130_v7  ;;  %v10501_v27 = vld [vmem:[#allocation2 + $0x39] sm:$0xff] }
 0x758   : > { %21143 = vmatpush3.msk.msra.mxu1 %vm772_vm0, %v18130_v7 }
 0x75a   : > { %21001 = vmatmul.mubr.msk.f32.gmra.mrb[36].mxu0 %vm434_vm1, %v24993_v2  ;;  %v10502_v2 = vld [vmem:[#allocation2 + $0x49] sm:$0xff] }
 0x75b   : > { %21003 = vmatprep.mubr.msk.f32.mxu0 %vm434_vm1, %v24997_v29  ;;  %v10503_v29 = vld [vmem:[#allocation2 + $0x51] sm:$0xff] }
 0x75e   : > { %21004 = vmatmul.mubr.msk.f32.gmra.mrb[38].mxu0 %vm434_vm1, %v25001_v21  ;;  %v10504_v21 = vld [vmem:[#allocation2 + $0x61] sm:$0xff] }
 0x75f   : > { %21006 = vmatprep.mubr.msk.f32.mxu0 %vm434_vm1, %v25005_v18  ;;  %v10505_v18 = vld [vmem:[#allocation2 + $0x69] sm:$0xff] }
 0x762   : > { %21007 = vmatmul.mubr.msk.f32.gmra.mrb[40].mxu0 %vm434_vm1, %v25009_v33  ;;  %v10506_v33 = vld [vmem:[#allocation2 + $0x79] sm:$0xff] }
 0x763   : > { %21009 = vmatprep.mubr.msk.f32.mxu0 %vm434_vm1, %v25013_v35  ;;  %v10507_v35 = vld [vmem:[#allocation2 + $0x81] sm:$0xff] }
 0x766   : > { %21010 = vmatmul.mubr.msk.f32.gmra.mrb[42].mxu0 %vm434_vm1, %v25017_v20  ;;  %v10508_v20 = vld [vmem:[#allocation2 + $0x91] sm:$0xff] }
 0x767   : > { %21012 = vmatprep.mubr.msk.f32.mxu0 %vm434_vm1, %v25021_v39  ;;  %v10509_v39 = vld [vmem:[#allocation2 + $0x99] sm:$0xff] }
 0x76a   : > { %21013 = vmatmul.mubr.msk.f32.gmra.mrb[44].mxu0 %vm434_vm1, %v25025_v56  ;;  %v10510_v56 = vld [vmem:[#allocation2 + $0xa9] sm:$0xff] }
 0x76b   : > { %21015 = vmatprep.mubr.msk.f32.mxu0 %vm434_vm1, %v25029_v49  ;;  %v10511_v49 = vld [vmem:[#allocation2 + $0xb1] sm:$0xff] }
 0x76e   : > { %21016 = vmatmul.mubr.msk.f32.gmra.mrb[46].mxu0 %vm434_vm1, %v25033_v43  ;;  %v28304_v43 = vld [vmem:[#allocation11_spill] sm:$0xff] }
 0x76f   : > { %21018 = vmatprep.mubr.msk.f32.mxu0 %vm434_vm1, %v25037_v26  ;;  %v28305_v26 = vld [vmem:[#allocation15_spill] sm:$0xff] }
 0x772   : > { %21019 = vmatmul.mubr.msk.f32.gmra.mrb[48].mxu0 %vm434_vm1, %v25041_v37  ;;  %v28306_v37 = vld [vmem:[#allocation21_spill] sm:$0xff] }
 0x773   : > { %21021 = vmatprep.mubr.msk.f32.mxu0 %vm434_vm1, %v25045_v57  ;;  %v28307_v57 = vld [vmem:[#allocation32_spill] sm:$0xff] }
 0x776   : > { %21022 = vmatmul.mubr.msk.f32.gmra.mrb[50].mxu0 %vm434_vm1, %v25049_v17  ;;  %v10920_v17 = vld [vmem:[#allocation2 + $0x19a] sm:$0xff] }
 0x777   : > { %21024 = vmatprep.mubr.msk.f32.mxu0 %vm434_vm1, %v25053_v0  ;;  %v11416_v0 = vld [vmem:[#allocation2 + $0x1] sm:$0xff] }
 0x778   : > { %21144 = vmatprep.mubr.msk.f32.mxu1 %vm434_vm1, %v11416_v0 }
 0x77a   : > { %21025 = vmatmul.mubr.msk.f32.gmra.mrb[52].mxu0 %vm434_vm1, %v25057_v10  ;;  %v11415_v10 = vld [vmem:[%s27829_s8] sm:$0xf] }
 0x77b   : > { %21027 = vmatprep.mubr.msk.f32.mxu0 %vm434_vm1, %v25061_v52  ;;  %21192 = vmatprep.subr.msk.mxu1 %vm772_vm0, %v11415_v10  ;;  %v25631_v52 = vld [vmem:[%s27829_s8 + $0x8] sm:$0xf] }
 0x77e   : > { %21028 = vmatmul.mubr.msk.f32.gmra.mrb[54].mxu0 %vm434_vm1, %v25065_v58  ;;  %v25638_v58 = vld [vmem:[%s27828_s7] ss:$0 sm:$0xff] }
 0x77f   : > { %21030 = vmatprep.mubr.msk.f32.mxu0 %vm434_vm1, %v25069_v47 }
 0x782   : > { %21031 = vmatmul.mubr.msk.f32.gmra.mrb[56].mxu0 %vm434_vm1, %v25073_v11 }
 0x783   : > { %21033 = vmatprep.mubr.msk.f32.mxu0 %vm434_vm1, %v25077_v59 }
 0x786   : > { %21034 = vmatmul.mubr.msk.f32.gmra.mrb[58].mxu0 %vm434_vm1, %v25081_v34 }
 0x787   : > { %21036 = vmatprep.mubr.msk.f32.mxu0 %vm434_vm1, %v25282_v30 }
 0x78a   : > { %21037 = vmatmul.mubr.msk.f32.gmra.mrb[60].mxu0 %vm434_vm1, %v25286_v40 }
 0x78b   : > { %21039 = vmatprep.mubr.msk.f32.mxu0 %vm434_vm1, %v10140_v51 }
 0x78e   : > { %21040 = vmatmul.mubr.msk.f32.gmra.mrb[62].mxu0 %vm434_vm1, %v10141_v5 }
 0x78f   : > { %21044 = vmatprep.mubr.msk.f32.mxu0 %vm434_vm1, %v10500_v12 }
 0x792   : > { %21045 = vmatmul.mubr.msk.f32.vlgmr.msra.gmra.mrb[32].mxu0 %vm434_vm1, %v10501_v27 }
 0x793   : > { %21093 = vmatpush3.msk.msra.mxu0 %vm772_vm0, %v18095_v8  ;;  %21047 = vmatprep.mubr.msk.f32.mxu0 %vm434_vm1, %v10502_v2 }
 0x796   : > { %21048 = vmatmul.mubr.msk.f32.gmra.mrb[34].mxu0 %vm434_vm1, %v10503_v29 }
 0x797   : > { %21050 = vmatprep.mubr.msk.f32.mxu0 %vm434_vm1, %v10504_v21 }
 0x79a   : > { %21051 = vmatmul.mubr.msk.f32.gmra.mrb[36].mxu0 %vm434_vm1, %v10505_v18 }
 0x79b   : > { %21053 = vmatprep.mubr.msk.f32.mxu0 %vm434_vm1, %v10506_v33 }
 0x79e   : > { %21054 = vmatmul.mubr.msk.f32.gmra.mrb[38].mxu0 %vm434_vm1, %v10507_v35 }
 0x79f   : > { %21056 = vmatprep.mubr.msk.f32.mxu0 %vm434_vm1, %v10508_v20 }
 0x7a2   : > { %21057 = vmatmul.mubr.msk.f32.gmra.mrb[40].mxu0 %vm434_vm1, %v10509_v39 }
 0x7a3   : > { %21059 = vmatprep.mubr.msk.f32.mxu0 %vm434_vm1, %v10510_v56 }
 0x7a6   : > { %21060 = vmatmul.mubr.msk.f32.gmra.mrb[42].mxu0 %vm434_vm1, %v10511_v49 }
 0x7a7   : > { %21062 = vmatprep.mubr.msk.f32.mxu0 %vm434_vm1, %v24852_v44  ;;  %v10530_v44 = vld [vmem:[#allocation2 + $0x199] sm:$0xff] }
 0x7aa   : > { %21063 = vmatmul.mubr.msk.f32.gmra.mrb[44].mxu0 %vm434_vm1, %v24859_v19  ;;  %v10531_v19 = vld [vmem:[#allocation2 + $0x1a1] sm:$0xff] }
 0x7ab   : > { %21065 = vmatprep.mubr.msk.f32.mxu0 %vm434_vm1, %v24870_v60  ;;  %v28292_v60 = vld [vmem:[#allocation23_spill] sm:$0xff] }
 0x7ae   : > { %21066 = vmatmul.mubr.msk.f32.gmra.mrb[46].mxu0 %vm434_vm1, %v24877_v6  ;;  %v28293_v6 = vld [vmem:[#allocation24_spill] sm:$0xff] }
 0x7af   : > { %21068 = vmatprep.mubr.msk.f32.mxu0 %vm434_vm1, %v24888_v3  ;;  %v28294_v3 = vld [vmem:[#allocation16_spill] sm:$0xff] }
 0x7b2   : > { %21069 = vmatmul.mubr.msk.f32.gmra.mrb[48].mxu0 %vm434_vm1, %v24895_v31  ;;  %v28295_v31 = vld [vmem:[#allocation18_spill] sm:$0xff] }
 0x7b3   : > { %21071 = vmatprep.mubr.msk.f32.mxu0 %vm434_vm1, %v24905_v48  ;;  %v28296_v48 = vld [vmem:[#allocation19_spill] sm:$0xff] }
 0x7b6   : > { %21072 = vmatmul.mubr.msk.f32.gmra.mrb[50].mxu0 %vm434_vm1, %v24910_v55  ;;  %v28297_v55 = vld [vmem:[#allocation20_spill] sm:$0xff] }
 0x7b7   : > { %21074 = vmatprep.mubr.msk.f32.mxu0 %vm434_vm1, %v24917_v15  ;;  %v28298_v15 = vld [vmem:[#allocation22_spill] sm:$0xff] }
 0x7ba   : > { %21075 = vmatmul.mubr.msk.f32.gmra.mrb[52].mxu0 %vm434_vm1, %v24922_v46  ;;  %v28299_v46 = vld [vmem:[#allocation28_spill] sm:$0xff] }
 0x7bb   : > { %21077 = vmatprep.mubr.msk.f32.mxu0 %vm434_vm1, %v24927_v53  ;;  %v28300_v53 = vld [vmem:[#allocation26_spill] sm:$0xff] }
 0x7be   : > { %21078 = vmatmul.mubr.msk.f32.gmra.mrb[54].mxu0 %vm434_vm1, %v24932_v1  ;;  %v28301_v1 = vld [vmem:[#allocation27_spill] sm:$0xff] }
 0x7bf   : > { %21080 = vmatprep.mubr.msk.f32.mxu0 %vm434_vm1, %v24937_v36  ;;  %v28302_v36 = vld [vmem:[#allocation30_spill] sm:$0xff] }
 0x7c2   : > { %21081 = vmatmul.mubr.msk.f32.gmra.mrb[56].mxu0 %vm434_vm1, %v24942_v42  ;;  %v28303_v42 = vld [vmem:[#allocation31_spill] sm:$0xff] }
 0x7c3   : > { %21083 = vmatprep.mubr.msk.f32.mxu0 %vm434_vm1, %v28264_v25 }
 0x7c6   : > { %21084 = vmatmul.mubr.msk.f32.gmra.mrb[58].mxu0 %vm434_vm1, %v28265_v32 }
 0x7c7   : > { %21086 = vmatprep.mubr.msk.f32.mxu0 %vm434_vm1, %v25355_v61 }
 0x7ca   : > { %21087 = vmatmul.mubr.msk.f32.gmra.mrb[60].mxu0 %vm434_vm1, %v25359_v50 }
 0x7cb   : > { %21089 = vmatprep.mubr.msk.f32.mxu0 %vm434_vm1, %v10530_v44 }
 0x7ce   : > { %21090 = vmatmul.mubr.msk.f32.gmra.mrb[62].mxu0 %vm434_vm1, %v10531_v19 }
 0x7cf   : > { %21094 = vmatprep.mubr.msk.f32.mxu0 %vm434_vm1, %v28268_v22 }
 0x7d2   : > { %21095 = vmatmul.mubr.msk.f32.vlgmr.msra.gmra.mrb[32].mxu0 %vm434_vm1, %v28269_v41 }
 0x7d3   : > { %21097 = vmatprep.mubr.msk.f32.mxu0 %vm434_vm1, %v28270_v16 }
 0x7d6   : > { %21098 = vmatmul.mubr.msk.f32.gmra.mrb[34].mxu0 %vm434_vm1, %v28292_v60 }
 0x7d7   : > { %21100 = vmatprep.mubr.msk.f32.mxu0 %vm434_vm1, %v28293_v6 }
 0x7da   : > { %21101 = vmatmul.mubr.msk.f32.gmra.mrb[36].mxu0 %vm434_vm1, %v28294_v3 }
 0x7db   : > { %21103 = vmatprep.mubr.msk.f32.mxu0 %vm434_vm1, %v28295_v31 }
 0x7de   : > { %21104 = vmatmul.mubr.msk.f32.gmra.mrb[38].mxu0 %vm434_vm1, %v28296_v48 }
 0x7df   : > { %21106 = vmatprep.mubr.msk.f32.mxu0 %vm434_vm1, %v28297_v55 }
 0x7e2   : > { %21107 = vmatmul.mubr.msk.f32.gmra.mrb[40].mxu0 %vm434_vm1, %v28298_v15 }
 0x7e3   : > { %21109 = vmatprep.mubr.msk.f32.mxu0 %vm434_vm1, %v28299_v46 }
 0x7e6   : > { %21110 = vmatmul.mubr.msk.f32.gmra.mrb[42].mxu0 %vm434_vm1, %v28300_v53 }
 0x7e7   : > { %21112 = vmatprep.mubr.msk.f32.mxu0 %vm434_vm1, %v28301_v1 }
 0x7ea   : > { %21113 = vmatmul.mubr.msk.f32.gmra.mrb[44].mxu0 %vm434_vm1, %v28302_v36 }
 0x7eb   : > { %21115 = vmatprep.mubr.msk.f32.mxu0 %vm434_vm1, %v28303_v42 }
 0x7ee   : > { %21116 = vmatmul.mubr.msk.f32.gmra.mrb[46].mxu0 %vm434_vm1, %v28283_v24 }
 0x7ef   : > { %21118 = vmatprep.mubr.msk.f32.mxu0 %vm434_vm1, %v28304_v43 }
 0x7f2   : > { %21119 = vmatmul.mubr.msk.f32.gmra.mrb[48].mxu0 %vm434_vm1, %v28285_v62 }
 0x7f3   : > { %21121 = vmatprep.mubr.msk.f32.mxu0 %vm434_vm1, %v28286_v38 }
 0x7f6   : > { %21122 = vmatmul.mubr.msk.f32.gmra.mrb[50].mxu0 %vm434_vm1, %v28287_v9 }
 0x7f7   : > { %21124 = vmatprep.mubr.msk.f32.mxu0 %vm434_vm1, %v28305_v26 }
 0x7fa   : > { %21125 = vmatmul.mubr.msk.f32.gmra.mrb[52].mxu0 %vm434_vm1, %v28289_v28 }
 0x7fb   : > { %21127 = vmatprep.mubr.msk.f32.mxu0 %vm434_vm1, %v28306_v37 }
 0x7fe   : > { %21128 = vmatmul.mubr.msk.f32.gmra.mrb[54].mxu0 %vm434_vm1, %v25196_v14  ;;  %v10921_v14 = vld [vmem:[#allocation2 + $0x1a2] sm:$0xff] }
 0x7ff   : > { %21130 = vmatprep.mubr.msk.f32.mxu0 %vm434_vm1, %v28291_v63 }
 0x802   : > { %21131 = vmatmul.mubr.msk.f32.gmra.mrb[56].mxu0 %vm434_vm1, %v25204_v45  ;;  %v11417_v45 = vld [vmem:[#allocation2 + $0x9] sm:$0xff] }
 0x803   : > { %21133 = vmatprep.mubr.msk.f32.mxu0 %vm434_vm1, %v28307_v57  ;;  %21145 = vmatmul.mubr.msk.f32.vlgmr.msra.gmra.mrb[48].mxu1 %vm434_vm1, %v11417_v45 }
 0x804   : > { %21193 = vmatpush3.msk.msra.mxu1 %vm772_vm0, %v11415_v10 }
 0x805   : > { %21242 = vmatprep.subr.msk.mxu1 %vm772_vm0, %v25631_v52 }
 0x806   : > { %21134 = vmatmul.mubr.msk.f32.gmra.mrb[58].mxu0 %vm434_vm1, %v25212_v23 }
 0x807   : > { %21136 = vmatprep.mubr.msk.f32.mxu0 %vm434_vm1, %v25428_v4 }
 0x80a   : > { %21137 = vmatmul.mubr.msk.f32.gmra.mrb[60].mxu0 %vm434_vm1, %v25432_v13 }
 0x80b   : > { %21139 = vmatprep.mubr.msk.f32.mxu0 %vm434_vm1, %v10920_v17 }
 0x80e   : > { %21140 = vmatmul.mubr.msk.f32.gmra.mrb[62].mxu0 %vm434_vm1, %v10921_v14 }
 0x8a5   : > { %v21096_v47 = vpop.f32.mrb[32].mxu0 }
 0x8a6   : > { %v11288_v11 = vadd.f32 %v21096_v47, %v25638_v58  ;;  %v11089_v59 = vpop.f32.mrb[33].mxu0 }
 0x8a7   : > { %v11287_v34 = vadd.f32 %v25638_v58, %v11089_v59 }
 0x8a8   : > { %v11320_v8 = vmax.f32 %v11288_v11, 0.0 }
 0x8a9   : > { %v11319_v23 = vmax.f32 %v11287_v34, 0.0  ;;  %v21099_v30 = vpop.f32.mrb[34].mxu0 }
 0x8aa   : > { %11352 = vst.msk [vmem:[#allocation2 + $0x21] sm:$0xff] %vm434_vm1, %v11320_v8  ;;  %v11290_v40 = vadd.f32 %v21099_v30, %v25638_v58  ;;  %v11099_v25 = vpop.f32.mrb[35].mxu0 }
 0x8ab   : > { %11351 = vst.msk [vmem:[#allocation2 + $0x19] sm:$0xff] %vm434_vm1, %v11319_v23  ;;  %v11289_v32 = vadd.f32 %v25638_v58, %v11099_v25 }
 0x8ac   : > { %v11322_v61 = vmax.f32 %v11290_v40, 0.0 }
 0x8ad   : > { %v11321_v50 = vmax.f32 %v11289_v32, 0.0  ;;  %v21102_v54 = vpop.f32.mrb[36].mxu0 }
 0x8ae   : > { %11354 = vst.msk [vmem:[#allocation2 + $0x39] sm:$0xff] %vm434_vm1, %v11322_v61  ;;  %v11292_v22 = vadd.f32 %v21102_v54, %v25638_v58  ;;  %v11109_v41 = vpop.f32.mrb[37].mxu0 }
 0x8af   : > { %11353 = vst.msk [vmem:[#allocation2 + $0x31] sm:$0xff] %vm434_vm1, %v11321_v50  ;;  %v11291_v16 = vadd.f32 %v25638_v58, %v11109_v41 }
 0x8b0   : > { %v11324_v9 = vmax.f32 %v11292_v22, 0.0 }
 0x8b1   : > { %v11323_v4 = vmax.f32 %v11291_v16, 0.0  ;;  %v21105_v28 = vpop.f32.mrb[38].mxu0  ;;  %v25658_v38 = vld [vmem:[#allocation2 + $0x21] sm:$0xff] }
 0x8b2   : > { %11356 = vst.msk [vmem:[#allocation2 + $0x51] sm:$0xff] %vm434_vm1, %v11324_v9  ;;  %v11294_v13 = vadd.f32 %v21105_v28, %v25638_v58  ;;  %v11119_v24 = vpop.f32.mrb[39].mxu0  ;;  %v25652_v63 = vld [vmem:[#allocation2 + $0x19] sm:$0xff] }
 0x8b3   : > { %11355 = vst.msk [vmem:[#allocation2 + $0x49] sm:$0xff] %vm434_vm1, %v11323_v4  ;;  %v11293_v62 = vadd.f32 %v25638_v58, %v11119_v24  ;;  %21147 = vmatprep.mubr.msk.f32.mxu1 %vm434_vm1, %v25652_v63 }
 0x8b4   : > { %v11326_v51 = vmax.f32 %v11294_v13, 0.0  ;;  %21148 = vmatmul.mubr.msk.f32.gmra.mrb[50].mxu1 %vm434_vm1, %v25658_v38 }
 0x8b5   : > { %v11325_v5 = vmax.f32 %v11293_v62, 0.0  ;;  %v21108_v12 = vpop.f32.mrb[40].mxu0  ;;  %v25670_v21 = vld [vmem:[#allocation2 + $0x39] sm:$0xff] }
 0x8b6   : > { %11358 = vst.msk [vmem:[#allocation2 + $0x69] sm:$0xff] %vm434_vm1, %v11326_v51  ;;  %v11296_v7 = vadd.f32 %v21108_v12, %v25638_v58  ;;  %v11129_v27 = vpop.f32.mrb[41].mxu0  ;;  %v25664_v2 = vld [vmem:[#allocation2 + $0x31] sm:$0xff] }
 0x8b7   : > { %11357 = vst.msk [vmem:[#allocation2 + $0x61] sm:$0xff] %vm434_vm1, %v11325_v5  ;;  %v11295_v29 = vadd.f32 %v25638_v58, %v11129_v27  ;;  %21150 = vmatprep.mubr.msk.f32.mxu1 %vm434_vm1, %v25664_v2 }
 0x8b8   : > { %v11328_v18 = vmax.f32 %v11296_v7, 0.0  ;;  %21151 = vmatmul.mubr.msk.f32.gmra.mrb[52].mxu1 %vm434_vm1, %v25670_v21 }
 0x8b9   : > { %v11327_v33 = vmax.f32 %v11295_v29, 0.0  ;;  %v21111_v35 = vpop.f32.mrb[42].mxu0  ;;  %v25682_v44 = vld [vmem:[#allocation2 + $0x51] sm:$0xff] }
 0x8ba   : > { %11360 = vst.msk [vmem:[#allocation2 + $0x81] sm:$0xff] %vm434_vm1, %v11328_v18  ;;  %v11298_v20 = vadd.f32 %v21111_v35, %v25638_v58  ;;  %v11139_v39 = vpop.f32.mrb[43].mxu0  ;;  %v25676_v56 = vld [vmem:[#allocation2 + $0x49] sm:$0xff] }
 0x8bb   : > { %11359 = vst.msk [vmem:[#allocation2 + $0x79] sm:$0xff] %vm434_vm1, %v11327_v33  ;;  %v11297_v49 = vadd.f32 %v25638_v58, %v11139_v39  ;;  %21153 = vmatprep.mubr.msk.f32.mxu1 %vm434_vm1, %v25676_v56 }
 0x8bc   : > { %v11330_v19 = vmax.f32 %v11298_v20, 0.0  ;;  %21154 = vmatmul.mubr.msk.f32.gmra.mrb[54].mxu1 %vm434_vm1, %v25682_v44 }
 0x8bd   : > { %v11329_v60 = vmax.f32 %v11297_v49, 0.0  ;;  %v21114_v6 = vpop.f32.mrb[44].mxu0  ;;  %v25694_v15 = vld [vmem:[#allocation2 + $0x69] sm:$0xff] }
 0x8be   : > { %11362 = vst.msk [vmem:[#allocation2 + $0x99] sm:$0xff] %vm434_vm1, %v11330_v19  ;;  %v11300_v3 = vadd.f32 %v21114_v6, %v25638_v58  ;;  %v11149_v31 = vpop.f32.mrb[45].mxu0  ;;  %v25688_v48 = vld [vmem:[#allocation2 + $0x61] sm:$0xff] }
 0x8bf   : > { %11361 = vst.msk [vmem:[#allocation2 + $0x91] sm:$0xff] %vm434_vm1, %v11329_v60  ;;  %v11299_v55 = vadd.f32 %v25638_v58, %v11149_v31  ;;  %21156 = vmatprep.mubr.msk.f32.mxu1 %vm434_vm1, %v25688_v48 }
 0x8c0   : > { %v11332_v46 = vmax.f32 %v11300_v3, 0.0  ;;  %21157 = vmatmul.mubr.msk.f32.gmra.mrb[56].mxu1 %vm434_vm1, %v25694_v15 }
 0x8c1   : > { %v11331_v53 = vmax.f32 %v11299_v55, 0.0  ;;  %v21117_v1 = vpop.f32.mrb[46].mxu0  ;;  %v25706_v37 = vld [vmem:[#allocation2 + $0x81] sm:$0xff] }
 0x8c2   : > { %11364 = vst.msk [vmem:[#allocation2 + $0xb1] sm:$0xff] %vm434_vm1, %v11332_v46  ;;  %v11302_v36 = vadd.f32 %v21117_v1, %v25638_v58  ;;  %v11159_v42 = vpop.f32.mrb[47].mxu0  ;;  %v25700_v43 = vld [vmem:[#allocation2 + $0x79] sm:$0xff] }
 0x8c3   : > { %11363 = vst.msk [vmem:[#allocation2 + $0xa9] sm:$0xff] %vm434_vm1, %v11331_v53  ;;  %v11301_v26 = vadd.f32 %v25638_v58, %v11159_v42  ;;  %21159 = vmatprep.mubr.msk.f32.mxu1 %vm434_vm1, %v25700_v43 }
 0x8c4   : > { %v11334_v57 = vmax.f32 %v11302_v36, 0.0  ;;  %21160 = vmatmul.mubr.msk.f32.gmra.mrb[58].mxu1 %vm434_vm1, %v25706_v37 }
 0x8c5   : > { %v11333_v17 = vmax.f32 %v11301_v26, 0.0  ;;  %v21120_v14 = vpop.f32.mrb[48].mxu0  ;;  %v25718_v11 = vld [vmem:[#allocation2 + $0x99] sm:$0xff] }
 0x8c6   : > { %11366 = vst.msk [vmem:[#allocation2 + $0xc9] sm:$0xff] %vm434_vm1, %v11334_v57  ;;  %v11304_v0 = vadd.f32 %v21120_v14, %v25638_v58  ;;  %v11169_v45 = vpop.f32.mrb[49].mxu0  ;;  %v25712_v10 = vld [vmem:[#allocation2 + $0x91] sm:$0xff] }
 0x8c7   : > { %11365 = vst.msk [vmem:[#allocation2 + $0xc1] sm:$0xff] %vm434_vm1, %v11333_v17  ;;  %v11303_v47 = vadd.f32 %v25638_v58, %v11169_v45  ;;  %21162 = vmatprep.mubr.msk.f32.mxu1 %vm434_vm1, %v25712_v10 }
 0x8c8   : > { %v11336_v59 = vmax.f32 %v11304_v0, 0.0  ;;  %21163 = vmatmul.mubr.msk.f32.gmra.mrb[60].mxu1 %vm434_vm1, %v25718_v11 }
 0x8c9   : > { %v11335_v34 = vmax.f32 %v11303_v47, 0.0  ;;  %v21123_v8 = vpop.f32.mrb[50].mxu0  ;;  %v25730_v32 = vld [vmem:[#allocation2 + $0xb1] sm:$0xff] }
 0x8ca   : > { %11368 = vst.msk [vmem:[#allocation2 + $0xe1] sm:$0xff] %vm434_vm1, %v11336_v59  ;;  %v11306_v23 = vadd.f32 %v21123_v8, %v25638_v58  ;;  %v11179_v30 = vpop.f32.mrb[51].mxu0  ;;  %v25724_v40 = vld [vmem:[#allocation2 + $0xa9] sm:$0xff] }
 0x8cb   : > { %11367 = vst.msk [vmem:[#allocation2 + $0xd9] sm:$0xff] %vm434_vm1, %v11335_v34  ;;  %v11305_v25 = vadd.f32 %v25638_v58, %v11179_v30  ;;  %21165 = vmatprep.mubr.msk.f32.mxu1 %vm434_vm1, %v25724_v40 }
 0x8cc   : > { %v11338_v61 = vmax.f32 %v11306_v23, 0.0  ;;  %21166 = vmatmul.mubr.msk.f32.gmra.mrb[62].mxu1 %vm434_vm1, %v25730_v32 }
 0x8cd   : > { %v11337_v50 = vmax.f32 %v11305_v25, 0.0  ;;  %v21126_v54 = vpop.f32.mrb[52].mxu0  ;;  %v25742_v4 = vld [vmem:[#allocation2 + $0xc9] sm:$0xff] }
 0x8ce   : > { %11370 = vst.msk [vmem:[#allocation2 + $0xf9] sm:$0xff] %vm434_vm1, %v11338_v61  ;;  %v11308_v22 = vadd.f32 %v21126_v54, %v25638_v58  ;;  %v11189_v41 = vpop.f32.mrb[53].mxu0  ;;  %v25736_v16 = vld [vmem:[#allocation2 + $0xc1] sm:$0xff] }
 0x8cf   : > { %11369 = vst.msk [vmem:[#allocation2 + $0xf1] sm:$0xff] %vm434_vm1, %v11337_v50  ;;  %v11307_v9 = vadd.f32 %v25638_v58, %v11189_v41  ;;  %21168 = vmatprep.mubr.msk.f32.mxu1 %vm434_vm1, %v25736_v16  ;;  %v11383_v41 = vld [vmem:[#allocation2] sm:$0xff] }
 0x8d0   : > { %v11340_v28 = vmax.f32 %v11308_v22, 0.0  ;;  %21169 = vmatmul.mubr.msk.f32.gmra.mrb[64].mxu1 %vm434_vm1, %v25742_v4 }
 0x8d1   : > { %v11339_v13 = vmax.f32 %v11307_v9, 0.0  ;;  %v21129_v24 = vpop.f32.mrb[54].mxu0  ;;  %v25754_v7 = vld [vmem:[#allocation2 + $0xe1] sm:$0xff] }
 0x8d2   : > { %11372 = vst.msk [vmem:[#allocation2 + $0x111] sm:$0xff] %vm434_vm1, %v11340_v28  ;;  %v11310_v62 = vadd.f32 %v21129_v24, %v25638_v58  ;;  %v11199_v51 = vpop.f32.mrb[55].mxu0  ;;  %v25748_v5 = vld [vmem:[#allocation2 + $0xd9] sm:$0xff]  ;;  %v11384_v28 = vld [vmem:[#allocation2 + $0x8] sm:$0xff] }
 0x8d3   : > { %11371 = vst.msk [vmem:[#allocation2 + $0x109] sm:$0xff] %vm434_vm1, %v11339_v13  ;;  %v11309_v12 = vadd.f32 %v25638_v58, %v11199_v51  ;;  %21171 = vmatprep.mubr.msk.f32.mxu1 %vm434_vm1, %v25748_v5  ;;  %v25828_v13 = vld [vmem:[%s27829_s8 + $0xc] sm:$0xf]  ;;  %v25831_v24 = vld [vmem:[#allocation2 + $0x18] sm:$0xff]  ;;  %v25843_v51 = vld [vmem:[#allocation2 + $0x30] sm:$0xff] }
 0x8d4   : > { %v11342_v27 = vmax.f32 %v11310_v62, 0.0  ;;  %21172 = vmatmul.mubr.msk.f32.gmra.mrb[66].mxu1 %vm434_vm1, %v25754_v7  ;;  %v25839_v62 = vld [vmem:[#allocation2 + $0x20] sm:$0xff] }
 0x8d5   : > { %v11341_v29 = vmax.f32 %v11309_v12, 0.0  ;;  %v21132_v18 = vpop.f32.mrb[56].mxu0  ;;  %v25766_v49 = vld [vmem:[#allocation2 + $0xf9] sm:$0xff] }
 0x8d6   : > { %11374 = vst.msk [vmem:[#allocation2 + $0x129] sm:$0xff] %vm434_vm1, %v11342_v27  ;;  %v11312_v33 = vadd.f32 %v21132_v18, %v25638_v58  ;;  %v11209_v35 = vpop.f32.mrb[57].mxu0  ;;  %v25760_v20 = vld [vmem:[#allocation2 + $0xf1] sm:$0xff]  ;;  %v25863_v18 = vld [vmem:[#allocation2 + $0x68] sm:$0xff] }
 0x8d7   : > { %11373 = vst.msk [vmem:[#allocation2 + $0x121] sm:$0xff] %vm434_vm1, %v11341_v29  ;;  %v11311_v39 = vadd.f32 %v25638_v58, %v11209_v35  ;;  %21174 = vmatprep.mubr.msk.f32.mxu1 %vm434_vm1, %v25760_v20  ;;  %v25847_v12 = vld [vmem:[#allocation2 + $0x38] sm:$0xff]  ;;  %v25855_v27 = vld [vmem:[#allocation2 + $0x50] sm:$0xff]  ;;  %v25859_v29 = vld [vmem:[#allocation2 + $0x60] sm:$0xff] }
 0x8d8   : > { %v11344_v19 = vmax.f32 %v11312_v33, 0.0  ;;  %21175 = vmatmul.mubr.msk.f32.gmra.mrb[68].mxu1 %vm434_vm1, %v25766_v49  ;;  %v25867_v33 = vld [vmem:[#allocation2 + $0x78] sm:$0xff]  ;;  %v25871_v35 = vld [vmem:[#allocation2 + $0x80] sm:$0xff] }
 0x8d9   : > { %v11343_v60 = vmax.f32 %v11311_v39, 0.0  ;;  %v21135_v6 = vpop.f32.mrb[58].mxu0  ;;  %v25778_v53 = vld [vmem:[#allocation2 + $0x111] sm:$0xff] }
 0x8da   : > { %11376 = vst.msk [vmem:[#allocation2 + $0x141] sm:$0xff] %vm434_vm1, %v11344_v19  ;;  %v11314_v3 = vadd.f32 %v21135_v6, %v25638_v58  ;;  %v11219_v31 = vpop.f32.mrb[59].mxu0  ;;  %v25772_v55 = vld [vmem:[#allocation2 + $0x109] sm:$0xff]  ;;  %v25879_v19 = vld [vmem:[#allocation2 + $0x98] sm:$0xff] }
 0x8db   : > { %11375 = vst.msk [vmem:[#allocation2 + $0x139] sm:$0xff] %vm434_vm1, %v11343_v60  ;;  %v11313_v46 = vadd.f32 %v25638_v58, %v11219_v31  ;;  %21177 = vmatprep.mubr.msk.f32.mxu1 %vm434_vm1, %v25772_v55  ;;  %v25875_v39 = vld [vmem:[#allocation2 + $0x90] sm:$0xff]  ;;  %v25883_v60 = vld [vmem:[#allocation2 + $0xa8] sm:$0xff] }
 0x8dc   : > { %v11346_v1 = vmax.f32 %v11314_v3, 0.0  ;;  %21178 = vmatmul.mubr.msk.f32.gmra.mrb[70].mxu1 %vm434_vm1, %v25778_v53  ;;  %v25887_v6 = vld [vmem:[#allocation2 + $0xb0] sm:$0xff]  ;;  %v25891_v3 = vld [vmem:[#allocation2 + $0xc0] sm:$0xff]  ;;  %v25895_v31 = vld [vmem:[#allocation2 + $0xc8] sm:$0xff] }
 0x8dd   : > { %v11345_v36 = vmax.f32 %v11313_v46, 0.0  ;;  %v21138_v42 = vpop.f32.mrb[60].mxu0  ;;  %v25790_v0 = vld [vmem:[#allocation2 + $0x129] sm:$0xff]  ;;  %v25899_v46 = vld [vmem:[#allocation2 + $0xd8] sm:$0xff] }
 0x8de   : > { %11378 = vst.msk [vmem:[#allocation2 + $0x159] sm:$0xff] %vm434_vm1, %v11346_v1  ;;  %v11316_v26 = vadd.f32 %v21138_v42, %v25638_v58  ;;  %v11229_v57 = vpop.f32.mrb[61].mxu0  ;;  %v25784_v17 = vld [vmem:[#allocation2 + $0x121] sm:$0xff]  ;;  %v25911_v42 = vld [vmem:[#allocation2 + $0xf8] sm:$0xff] }
 0x8df   : > { %11377 = vst.msk [vmem:[#allocation2 + $0x151] sm:$0xff] %vm434_vm1, %v11345_v36  ;;  %v11315_v14 = vadd.f32 %v25638_v58, %v11229_v57  ;;  %21180 = vmatprep.mubr.msk.f32.mxu1 %vm434_vm1, %v25784_v17  ;;  %v25903_v1 = vld [vmem:[#allocation2 + $0xe0] sm:$0xff]  ;;  %v25907_v36 = vld [vmem:[#allocation2 + $0xf0] sm:$0xff] }
 0x8e0   : > { %v11348_v45 = vmax.f32 %v11316_v26, 0.0  ;;  %21181 = vmatmul.mubr.msk.f32.gmra.mrb[72].mxu1 %vm434_vm1, %v25790_v0  ;;  %v25915_v26 = vld [vmem:[#allocation2 + $0x108] sm:$0xff]  ;;  %v25919_v57 = vld [vmem:[#allocation2 + $0x110] sm:$0xff] }
 0x8e1   : > { %v11347_v47 = vmax.f32 %v11315_v14, 0.0  ;;  %v21141_v59 = vpop.f32.mrb[62].mxu0  ;;  %v25802_v25 = vld [vmem:[#allocation2 + $0x141] sm:$0xff] }
 0x8e2   : > { %11380 = vst.msk [vmem:[#allocation2 + $0x171] sm:$0xff] %vm434_vm1, %v11348_v45  ;;  %v11318_v34 = vadd.f32 %v21141_v59, %v25638_v58  ;;  %v11239_v8 = vpop.f32.mrb[63].mxu0  ;;  %v25796_v23 = vld [vmem:[#allocation2 + $0x139] sm:$0xff]  ;;  %v25927_v45 = vld [vmem:[#allocation2 + $0x128] sm:$0xff] }
 0x8e3   : > { %11379 = vst.msk [vmem:[#allocation2 + $0x169] sm:$0xff] %vm434_vm1, %v11347_v47  ;;  %v11317_v30 = vadd.f32 %v25638_v58, %v11239_v8  ;;  %21183 = vmatprep.mubr.msk.f32.mxu1 %vm434_vm1, %v25796_v23  ;;  %v25923_v14 = vld [vmem:[#allocation2 + $0x120] sm:$0xff]  ;;  %v25931_v47 = vld [vmem:[#allocation2 + $0x138] sm:$0xff] }
 0x8e4   : > { %v11350_v61 = vmax.f32 %v11318_v34, 0.0  ;;  %21184 = vmatmul.mubr.msk.f32.gmra.mrb[74].mxu1 %vm434_vm1, %v25802_v25  ;;  %v25935_v59 = vld [vmem:[#allocation2 + $0x140] sm:$0xff] }
 0x8e5   : > { %v11349_v50 = vmax.f32 %v11317_v30, 0.0  ;;  %v25812_v58 = vld [vmem:[#allocation2 + $0x159] sm:$0xff] }
 0x8e6   : > { %11382 = vst.msk [vmem:[#allocation2 + $0x189] sm:$0xff] %vm434_vm1, %v11350_v61  ;;  %v25807_v54 = vld [vmem:[#allocation2 + $0x151] sm:$0xff]  ;;  %v12098_v61 = vld [vmem:[#allocation2 + $0x2] sm:$0xff] }
 0x8e7   : > { %11381 = vst.msk [vmem:[#allocation2 + $0x181] sm:$0xff] %vm434_vm1, %v11349_v50  ;;  %21186 = vmatprep.mubr.msk.f32.mxu1 %vm434_vm1, %v25807_v54  ;;  %v25939_v34 = vld [vmem:[#allocation2 + $0x150] sm:$0xff]  ;;  %v25943_v8 = vld [vmem:[#allocation2 + $0x158] sm:$0xff] }
 0x8e8   : > { %21187 = vmatmul.mubr.msk.f32.gmra.mrb[76].mxu1 %vm434_vm1, %v25812_v58 }
 0x8e9   : > { %v25820_v9 = vld [vmem:[#allocation2 + $0x171] sm:$0xff] }
 0x8ea   : > { %v25816_v22 = vld [vmem:[#allocation2 + $0x169] sm:$0xff]  ;;  %28309 = vst [vmem:[#allocation4_spill] sm:$0xff] %v25820_v9 }
 0x8eb   : > { %28308 = vst [vmem:[#allocation29_spill] sm:$0xff] %v25816_v22  ;;  %21189 = vmatprep.mubr.msk.f32.mxu1 %vm434_vm1, %v25816_v22  ;;  %v25947_v30 = vld [vmem:[#allocation2 + $0x168] sm:$0xff]  ;;  %v25951_v50 = vld [vmem:[#allocation2 + $0x170] sm:$0xff] }
 0x8ec   : > { %21190 = vmatmul.mubr.msk.f32.gmra.mrb[78].mxu1 %vm434_vm1, %v25820_v9  ;;  %v25962_v9 = vld [vmem:[#allocation2 + $0x1a] sm:$0xff]  ;;  %v25974_v22 = vld [vmem:[#allocation2 + $0x32] sm:$0xff] }
 0x8ed   : > { %21194 = vmatprep.mubr.msk.f32.mxu1 %vm434_vm1, %v11383_v41  ;;  %v12099_v41 = vld [vmem:[#allocation2 + $0xa] sm:$0xff]  ;;  %28310 = vst [vmem:[#allocation5_spill] sm:$0xff] %v25962_v9  ;;  %28312 = vst [vmem:[#allocation7_spill] sm:$0xff] %v25974_v22 }
 0x8f0   : > { %21195 = vmatmul.mubr.msk.f32.vlgmr.msra.gmra.mrb[48].mxu1 %vm434_vm1, %v11384_v28  ;;  %v25959_v28 = vld [vmem:[%s27829_s8 + $0x10] sm:$0xf] }
 0x8f1   : > { %21243 = vmatpush3.msk.msra.mxu1 %vm772_vm0, %v25631_v52  ;;  %21197 = vmatprep.mubr.msk.f32.mxu1 %vm434_vm1, %v25831_v24  ;;  %v25851_v52 = vld [vmem:[#allocation2 + $0x48] sm:$0xff] }
 0x8f2   : > { %21292 = vmatprep.subr.msk.mxu1 %vm772_vm0, %v25828_v13 }
 0x8f4   : > { %21198 = vmatmul.mubr.msk.f32.gmra.mrb[50].mxu1 %vm434_vm1, %v25839_v62 }
 0x8f5   : > { %21200 = vmatprep.mubr.msk.f32.mxu1 %vm434_vm1, %v25843_v51 }
 0x8f8   : > { %21201 = vmatmul.mubr.msk.f32.gmra.mrb[52].mxu1 %vm434_vm1, %v25847_v12 }
 0x8f9   : > { %21203 = vmatprep.mubr.msk.f32.mxu1 %vm434_vm1, %v25851_v52 }
 0x8fc   : > { %21204 = vmatmul.mubr.msk.f32.gmra.mrb[54].mxu1 %vm434_vm1, %v25855_v27 }
 0x8fd   : > { %21206 = vmatprep.mubr.msk.f32.mxu1 %vm434_vm1, %v25859_v29 }
 0x900   : > { %21207 = vmatmul.mubr.msk.f32.gmra.mrb[56].mxu1 %vm434_vm1, %v25863_v18 }
 0x901   : > { %21209 = vmatprep.mubr.msk.f32.mxu1 %vm434_vm1, %v25867_v33 }
 0x904   : > { %21210 = vmatmul.mubr.msk.f32.gmra.mrb[58].mxu1 %vm434_vm1, %v25871_v35 }
 0x905   : > { %21212 = vmatprep.mubr.msk.f32.mxu1 %vm434_vm1, %v25875_v39 }
 0x908   : > { %21213 = vmatmul.mubr.msk.f32.gmra.mrb[60].mxu1 %vm434_vm1, %v25879_v19 }
 0x909   : > { %21215 = vmatprep.mubr.msk.f32.mxu1 %vm434_vm1, %v25883_v60 }
 0x90c   : > { %21216 = vmatmul.mubr.msk.f32.gmra.mrb[62].mxu1 %vm434_vm1, %v25887_v6 }
 0x90d   : > { %21218 = vmatprep.mubr.msk.f32.mxu1 %vm434_vm1, %v25891_v3 }
 0x910   : > { %21219 = vmatmul.mubr.msk.f32.gmra.mrb[64].mxu1 %vm434_vm1, %v25895_v31 }
 0x911   : > { %21221 = vmatprep.mubr.msk.f32.mxu1 %vm434_vm1, %v25899_v46 }
 0x914   : > { %21222 = vmatmul.mubr.msk.f32.gmra.mrb[66].mxu1 %vm434_vm1, %v25903_v1 }
 0x915   : > { %21224 = vmatprep.mubr.msk.f32.mxu1 %vm434_vm1, %v25907_v36 }
 0x918   : > { %21225 = vmatmul.mubr.msk.f32.gmra.mrb[68].mxu1 %vm434_vm1, %v25911_v42 }
 0x919   : > { %21227 = vmatprep.mubr.msk.f32.mxu1 %vm434_vm1, %v25915_v26 }
 0x91c   : > { %21228 = vmatmul.mubr.msk.f32.gmra.mrb[70].mxu1 %vm434_vm1, %v25919_v57 }
 0x91d   : > { %21230 = vmatprep.mubr.msk.f32.mxu1 %vm434_vm1, %v25923_v14 }
 0x920   : > { %21231 = vmatmul.mubr.msk.f32.gmra.mrb[72].mxu1 %vm434_vm1, %v25927_v45 }
 0x921   : > { %21233 = vmatprep.mubr.msk.f32.mxu1 %vm434_vm1, %v25931_v47 }
 0x924   : > { %21234 = vmatmul.mubr.msk.f32.gmra.mrb[74].mxu1 %vm434_vm1, %v25935_v59 }
 0x925   : > { %21236 = vmatprep.mubr.msk.f32.mxu1 %vm434_vm1, %v25939_v34 }
 0x928   : > { %21237 = vmatmul.mubr.msk.f32.gmra.mrb[76].mxu1 %vm434_vm1, %v25943_v8 }
 0x929   : > { %21239 = vmatprep.mubr.msk.f32.mxu1 %vm434_vm1, %v25947_v30 }
 0x92c   : > { %21240 = vmatmul.mubr.msk.f32.gmra.mrb[78].mxu1 %vm434_vm1, %v25951_v50 }
 0x92d   : > { %21244 = vmatprep.mubr.msk.f32.mxu1 %vm434_vm1, %v12098_v61  ;;  %v25970_v61 = vld [vmem:[#allocation2 + $0x22] sm:$0xff] }
 0x92e   : > { %28311 = vst [vmem:[#allocation6_spill] sm:$0xff] %v25970_v61 }
 0x930   : > { %21245 = vmatmul.mubr.msk.f32.vlgmr.msra.gmra.mrb[48].mxu1 %vm434_vm1, %v12099_v41  ;;  %v25978_v41 = vld [vmem:[#allocation2 + $0x3a] sm:$0xff] }
 0x931   : > { %21293 = vmatpush3.msk.msra.mxu1 %vm772_vm0, %v25828_v13  ;;  %21247 = vmatprep.mubr.msk.f32.mxu1 %vm434_vm1, %v25962_v9  ;;  %28313 = vst [vmem:[#allocation8_spill] sm:$0xff] %v25978_v41  ;;  %v25982_v13 = vld [vmem:[#allocation2 + $0x4a] sm:$0xff]  ;;  %v25986_v9 = vld [vmem:[#allocation2 + $0x52] sm:$0xff] }
 0x932   : > { %21342 = vmatprep.subr.msk.mxu1 %vm772_vm0, %v25959_v28  ;;  %28314 = vst [vmem:[#allocation9_spill] sm:$0xff] %v25982_v13  ;;  %28315 = vst [vmem:[#allocation10_spill] sm:$0xff] %v25986_v9 }
 0x934   : > { %21248 = vmatmul.mubr.msk.f32.gmra.mrb[50].mxu1 %vm434_vm1, %v25970_v61  ;;  %v25990_v61 = vld [vmem:[#allocation2 + $0x62] sm:$0xff] }
 0x935   : > { %21250 = vmatprep.mubr.msk.f32.mxu1 %vm434_vm1, %v25974_v22  ;;  %28316 = vst [vmem:[#allocation12_spill] sm:$0xff] %v25990_v61  ;;  %v25994_v22 = vld [vmem:[#allocation2 + $0x6a] sm:$0xff] }
 0x936   : > { %28317 = vst [vmem:[#allocation13_spill] sm:$0xff] %v25994_v22 }
 0x938   : > { %21251 = vmatmul.mubr.msk.f32.gmra.mrb[52].mxu1 %vm434_vm1, %v25978_v41  ;;  %v25998_v41 = vld [vmem:[#allocation2 + $0x7a] sm:$0xff] }
 0x939   : > { %21253 = vmatprep.mubr.msk.f32.mxu1 %vm434_vm1, %v25982_v13  ;;  %28318 = vst [vmem:[#allocation14_spill] sm:$0xff] %v25998_v41  ;;  %v26002_v13 = vld [vmem:[#allocation2 + $0x82] sm:$0xff] }
 0x93a   : > { %28319 = vst [vmem:[#allocation17_spill] sm:$0xff] %v26002_v13 }
 0x93c   : > { %21254 = vmatmul.mubr.msk.f32.gmra.mrb[54].mxu1 %vm434_vm1, %v25986_v9  ;;  %v26006_v9 = vld [vmem:[#allocation2 + $0x92] sm:$0xff] }
 0x93d   : > { %21256 = vmatprep.mubr.msk.f32.mxu1 %vm434_vm1, %v25990_v61  ;;  %28320 = vst [vmem:[#allocation25_spill] sm:$0xff] %v26006_v9  ;;  %v26010_v61 = vld [vmem:[#allocation2 + $0x9a] sm:$0xff] }
 0x93e   : > { %28321 = vst [vmem:[#allocation23_spill] sm:$0xff] %v26010_v61 }
 0x940   : > { %21257 = vmatmul.mubr.msk.f32.gmra.mrb[56].mxu1 %vm434_vm1, %v25994_v22  ;;  %v26014_v22 = vld [vmem:[#allocation2 + $0xaa] sm:$0xff] }
 0x941   : > { %21259 = vmatprep.mubr.msk.f32.mxu1 %vm434_vm1, %v25998_v41  ;;  %28322 = vst [vmem:[#allocation24_spill] sm:$0xff] %v26014_v22  ;;  %v26018_v41 = vld [vmem:[#allocation2 + $0xb2] sm:$0xff] }
 0x942   : > { %28323 = vst [vmem:[#allocation16_spill] sm:$0xff] %v26018_v41 }
 0x944   : > { %21260 = vmatmul.mubr.msk.f32.gmra.mrb[58].mxu1 %vm434_vm1, %v26002_v13  ;;  %v26022_v13 = vld [vmem:[#allocation2 + $0xc2] sm:$0xff] }
 0x945   : > { %21262 = vmatprep.mubr.msk.f32.mxu1 %vm434_vm1, %v26006_v9  ;;  %28324 = vst [vmem:[#allocation18_spill] sm:$0xff] %v26022_v13  ;;  %v26026_v9 = vld [vmem:[#allocation2 + $0xca] sm:$0xff] }
 0x946   : > { %28325 = vst [vmem:[#allocation19_spill] sm:$0xff] %v26026_v9 }
 0x948   : > { %21263 = vmatmul.mubr.msk.f32.gmra.mrb[60].mxu1 %vm434_vm1, %v26010_v61  ;;  %v26030_v61 = vld [vmem:[#allocation2 + $0xda] sm:$0xff] }
 0x949   : > { %21265 = vmatprep.mubr.msk.f32.mxu1 %vm434_vm1, %v26014_v22  ;;  %28326 = vst [vmem:[#allocation20_spill] sm:$0xff] %v26030_v61  ;;  %v26034_v22 = vld [vmem:[#allocation2 + $0xe2] sm:$0xff] }
 0x94a   : > { %28327 = vst [vmem:[#allocation22_spill] sm:$0xff] %v26034_v22 }
 0x94c   : > { %21266 = vmatmul.mubr.msk.f32.gmra.mrb[62].mxu1 %vm434_vm1, %v26018_v41  ;;  %v26038_v41 = vld [vmem:[#allocation2 + $0xf2] sm:$0xff] }
 0x94d   : > { %21268 = vmatprep.mubr.msk.f32.mxu1 %vm434_vm1, %v26022_v13  ;;  %28328 = vst [vmem:[#allocation28_spill] sm:$0xff] %v26038_v41  ;;  %v26042_v13 = vld [vmem:[#allocation2 + $0xfa] sm:$0xff] }
 0x94e   : > { %28329 = vst [vmem:[#allocation26_spill] sm:$0xff] %v26042_v13 }
 0x950   : > { %21269 = vmatmul.mubr.msk.f32.gmra.mrb[64].mxu1 %vm434_vm1, %v26026_v9  ;;  %v26046_v9 = vld [vmem:[#allocation2 + $0x10a] sm:$0xff] }
 0x951   : > { %21271 = vmatprep.mubr.msk.f32.mxu1 %vm434_vm1, %v26030_v61  ;;  %28330 = vst [vmem:[#allocation27_spill] sm:$0xff] %v26046_v9  ;;  %v26050_v61 = vld [vmem:[#allocation2 + $0x112] sm:$0xff] }
 0x952   : > { %28331 = vst [vmem:[#allocation30_spill] sm:$0xff] %v26050_v61 }
 0x954   : > { %21272 = vmatmul.mubr.msk.f32.gmra.mrb[66].mxu1 %vm434_vm1, %v26034_v22  ;;  %v26054_v22 = vld [vmem:[#allocation2 + $0x122] sm:$0xff] }
 0x955   : > { %21274 = vmatprep.mubr.msk.f32.mxu1 %vm434_vm1, %v26038_v41  ;;  %28332 = vst [vmem:[#allocation31_spill] sm:$0xff] %v26054_v22  ;;  %v26058_v41 = vld [vmem:[#allocation2 + $0x12a] sm:$0xff] }
 0x956   : > { %28333 = vst [vmem:[#allocation11_spill] sm:$0xff] %v26058_v41 }
 0x958   : > { %21275 = vmatmul.mubr.msk.f32.gmra.mrb[68].mxu1 %vm434_vm1, %v26042_v13  ;;  %v26062_v13 = vld [vmem:[#allocation2 + $0x13a] sm:$0xff] }
 0x959   : > { %21277 = vmatprep.mubr.msk.f32.mxu1 %vm434_vm1, %v26046_v9  ;;  %28334 = vst [vmem:[#allocation15_spill] sm:$0xff] %v26062_v13  ;;  %v26066_v9 = vld [vmem:[#allocation2 + $0x142] sm:$0xff] }
 0x95c   : > { %21278 = vmatmul.mubr.msk.f32.gmra.mrb[70].mxu1 %vm434_vm1, %v26050_v61  ;;  %v26070_v61 = vld [vmem:[#allocation2 + $0x152] sm:$0xff] }
 0x95d   : > { %21280 = vmatprep.mubr.msk.f32.mxu1 %vm434_vm1, %v26054_v22  ;;  %28335 = vst [vmem:[#allocation21_spill] sm:$0xff] %v26070_v61  ;;  %v26074_v22 = vld [vmem:[#allocation2 + $0x15a] sm:$0xff] }
 0x960   : > { %21281 = vmatmul.mubr.msk.f32.gmra.mrb[72].mxu1 %vm434_vm1, %v26058_v41  ;;  %v26078_v41 = vld [vmem:[#allocation2 + $0x16a] sm:$0xff] }
 0x961   : > { %21283 = vmatprep.mubr.msk.f32.mxu1 %vm434_vm1, %v26062_v13  ;;  %28336 = vst [vmem:[#allocation32_spill] sm:$0xff] %v26078_v41  ;;  %v26082_v13 = vld [vmem:[#allocation2 + $0x172] sm:$0xff] }
 0x964   : > { %21284 = vmatmul.mubr.msk.f32.gmra.mrb[74].mxu1 %vm434_vm1, %v26066_v9 }
 0x965   : > { %21286 = vmatprep.mubr.msk.f32.mxu1 %vm434_vm1, %v26070_v61  ;;  %v18299_v61 = vld [vmem:[%s27829_s8 + $0x14] sm:$0xf] }
 0x968   : > { %21287 = vmatmul.mubr.msk.f32.gmra.mrb[76].mxu1 %vm434_vm1, %v26074_v22 }
 0x969   : > { %21289 = vmatprep.mubr.msk.f32.mxu1 %vm434_vm1, %v26078_v41 }
 0x96c   : > { %21290 = vmatmul.mubr.msk.f32.gmra.mrb[78].mxu1 %vm434_vm1, %v26082_v13 }
 0x96d   : > { %21294 = vmatprep.mubr.msk.f32.mxu1 %vm434_vm1, %v25831_v24  ;;  %v26152_v24 = vld [vmem:[#allocation2 + $0x180] sm:$0xff] }
 0x970   : > { %21295 = vmatmul.mubr.msk.f32.vlgmr.msra.gmra.mrb[48].mxu1 %vm434_vm1, %v25839_v62  ;;  %v26156_v62 = vld [vmem:[#allocation2 + $0x188] sm:$0xff] }
 0x971   : > { %21343 = vmatpush3.msk.msra.mxu1 %vm772_vm0, %v25959_v28  ;;  %21297 = vmatprep.mubr.msk.f32.mxu1 %vm434_vm1, %v25843_v51  ;;  %v18333_v28 = vld [vmem:[%s27829_s8 + $0x18] sm:$0xf] }
 0x972   : > { %21392 = vmatprep.subr.msk.mxu1 %vm772_vm0, %v18299_v61 }
 0x974   : > { %21298 = vmatmul.mubr.msk.f32.gmra.mrb[50].mxu1 %vm434_vm1, %v25847_v12 }
 0x975   : > { %21300 = vmatprep.mubr.msk.f32.mxu1 %vm434_vm1, %v25851_v52 }
 0x978   : > { %21301 = vmatmul.mubr.msk.f32.gmra.mrb[52].mxu1 %vm434_vm1, %v25855_v27 }
 0x979   : > { %21303 = vmatprep.mubr.msk.f32.mxu1 %vm434_vm1, %v25859_v29 }
 0x97c   : > { %21304 = vmatmul.mubr.msk.f32.gmra.mrb[54].mxu1 %vm434_vm1, %v25863_v18 }
 0x97d   : > { %21306 = vmatprep.mubr.msk.f32.mxu1 %vm434_vm1, %v25867_v33 }
 0x980   : > { %21307 = vmatmul.mubr.msk.f32.gmra.mrb[56].mxu1 %vm434_vm1, %v25871_v35 }
 0x981   : > { %21309 = vmatprep.mubr.msk.f32.mxu1 %vm434_vm1, %v25875_v39 }
 0x984   : > { %21310 = vmatmul.mubr.msk.f32.gmra.mrb[58].mxu1 %vm434_vm1, %v25879_v19 }
 0x985   : > { %21312 = vmatprep.mubr.msk.f32.mxu1 %vm434_vm1, %v25883_v60 }
 0x988   : > { %21313 = vmatmul.mubr.msk.f32.gmra.mrb[60].mxu1 %vm434_vm1, %v25887_v6 }
 0x989   : > { %21315 = vmatprep.mubr.msk.f32.mxu1 %vm434_vm1, %v25891_v3 }
 0x98c   : > { %21316 = vmatmul.mubr.msk.f32.gmra.mrb[62].mxu1 %vm434_vm1, %v25895_v31 }
 0x98d   : > { %21318 = vmatprep.mubr.msk.f32.mxu1 %vm434_vm1, %v25899_v46 }
 0x990   : > { %21319 = vmatmul.mubr.msk.f32.gmra.mrb[64].mxu1 %vm434_vm1, %v25903_v1 }
 0x991   : > { %21321 = vmatprep.mubr.msk.f32.mxu1 %vm434_vm1, %v25907_v36 }
 0x994   : > { %21322 = vmatmul.mubr.msk.f32.gmra.mrb[66].mxu1 %vm434_vm1, %v25911_v42 }
 0x995   : > { %21324 = vmatprep.mubr.msk.f32.mxu1 %vm434_vm1, %v25915_v26 }
 0x998   : > { %21325 = vmatmul.mubr.msk.f32.gmra.mrb[68].mxu1 %vm434_vm1, %v25919_v57 }
 0x999   : > { %21327 = vmatprep.mubr.msk.f32.mxu1 %vm434_vm1, %v25923_v14 }
 0x99c   : > { %21328 = vmatmul.mubr.msk.f32.gmra.mrb[70].mxu1 %vm434_vm1, %v25927_v45 }
 0x99d   : > { %21330 = vmatprep.mubr.msk.f32.mxu1 %vm434_vm1, %v25931_v47 }
 0x9a0   : > { %21331 = vmatmul.mubr.msk.f32.gmra.mrb[72].mxu1 %vm434_vm1, %v25935_v59 }
 0x9a1   : > { %21333 = vmatprep.mubr.msk.f32.mxu1 %vm434_vm1, %v25939_v34 }
 0x9a4   : > { %21334 = vmatmul.mubr.msk.f32.gmra.mrb[74].mxu1 %vm434_vm1, %v25943_v8 }
 0x9a5   : > { %21336 = vmatprep.mubr.msk.f32.mxu1 %vm434_vm1, %v25947_v30 }
 0x9a8   : > { %21337 = vmatmul.mubr.msk.f32.gmra.mrb[76].mxu1 %vm434_vm1, %v25951_v50 }
 0x9a9   : > { %21339 = vmatprep.mubr.msk.f32.mxu1 %vm434_vm1, %v26152_v24 }
 0x9ac   : > { %21340 = vmatmul.mubr.msk.f32.gmra.mrb[78].mxu1 %vm434_vm1, %v26156_v62 }
 0x9ad   : > { %21344 = vmatprep.mubr.msk.f32.mxu1 %vm434_vm1, %v25652_v63  ;;  %v28337_v63 = vld [vmem:[#allocation29_spill] sm:$0xff] }
 0x9b0   : > { %21345 = vmatmul.mubr.msk.f32.vlgmr.msra.gmra.mrb[48].mxu1 %vm434_vm1, %v25658_v38  ;;  %v28338_v38 = vld [vmem:[#allocation4_spill] sm:$0xff] }
 0x9b1   : > { %21393 = vmatpush3.msk.msra.mxu1 %vm772_vm0, %v18299_v61  ;;  %21347 = vmatprep.mubr.msk.f32.mxu1 %vm434_vm1, %v25664_v2  ;;  %v26225_v2 = vld [vmem:[#allocation2 + $0x181] sm:$0xff]  ;;  %v28346_v61 = vld [vmem:[#allocation13_spill] sm:$0xff] }
 0x9b2   : > { %21442 = vmatprep.subr.msk.mxu1 %vm772_vm0, %v18333_v28 }
 0x9b4   : > { %21348 = vmatmul.mubr.msk.f32.gmra.mrb[50].mxu1 %vm434_vm1, %v25670_v21  ;;  %v26229_v21 = vld [vmem:[#allocation2 + $0x189] sm:$0xff] }
 0x9b5   : > { %21350 = vmatprep.mubr.msk.f32.mxu1 %vm434_vm1, %v25676_v56  ;;  %v28339_v56 = vld [vmem:[#allocation5_spill] sm:$0xff] }
 0x9b8   : > { %21351 = vmatmul.mubr.msk.f32.gmra.mrb[52].mxu1 %vm434_vm1, %v25682_v44  ;;  %v18367_v44 = vld [vmem:[%s27829_s8 + $0x1c] sm:$0xf] }
 0x9b9   : > { %21353 = vmatprep.mubr.msk.f32.mxu1 %vm434_vm1, %v25688_v48  ;;  %v28340_v48 = vld [vmem:[#allocation6_spill] sm:$0xff] }
 0x9bc   : > { %21354 = vmatmul.mubr.msk.f32.gmra.mrb[54].mxu1 %vm434_vm1, %v25694_v15  ;;  %v28341_v15 = vld [vmem:[#allocation7_spill] sm:$0xff] }
 0x9bd   : > { %21356 = vmatprep.mubr.msk.f32.mxu1 %vm434_vm1, %v25700_v43  ;;  %v28342_v43 = vld [vmem:[#allocation8_spill] sm:$0xff] }
 0x9c0   : > { %21357 = vmatmul.mubr.msk.f32.gmra.mrb[56].mxu1 %vm434_vm1, %v25706_v37  ;;  %v28343_v37 = vld [vmem:[#allocation9_spill] sm:$0xff] }
 0x9c1   : > { %21359 = vmatprep.mubr.msk.f32.mxu1 %vm434_vm1, %v25712_v10  ;;  %v28344_v10 = vld [vmem:[#allocation10_spill] sm:$0xff] }
 0x9c4   : > { %21360 = vmatmul.mubr.msk.f32.gmra.mrb[58].mxu1 %vm434_vm1, %v25718_v11  ;;  %v28345_v11 = vld [vmem:[#allocation12_spill] sm:$0xff] }
 0x9c5   : > { %21362 = vmatprep.mubr.msk.f32.mxu1 %vm434_vm1, %v25724_v40 }
 0x9c8   : > { %21363 = vmatmul.mubr.msk.f32.gmra.mrb[60].mxu1 %vm434_vm1, %v25730_v32 }
 0x9c9   : > { %21365 = vmatprep.mubr.msk.f32.mxu1 %vm434_vm1, %v25736_v16 }
 0x9cc   : > { %21366 = vmatmul.mubr.msk.f32.gmra.mrb[62].mxu1 %vm434_vm1, %v25742_v4 }
 0x9cd   : > { %21368 = vmatprep.mubr.msk.f32.mxu1 %vm434_vm1, %v25748_v5 }
 0x9d0   : > { %21369 = vmatmul.mubr.msk.f32.gmra.mrb[64].mxu1 %vm434_vm1, %v25754_v7 }
 0x9d1   : > { %21371 = vmatprep.mubr.msk.f32.mxu1 %vm434_vm1, %v25760_v20 }
 0x9d4   : > { %21372 = vmatmul.mubr.msk.f32.gmra.mrb[66].mxu1 %vm434_vm1, %v25766_v49 }
 0x9d5   : > { %21374 = vmatprep.mubr.msk.f32.mxu1 %vm434_vm1, %v25772_v55 }
 0x9d8   : > { %21375 = vmatmul.mubr.msk.f32.gmra.mrb[68].mxu1 %vm434_vm1, %v25778_v53 }
 0x9d9   : > { %21377 = vmatprep.mubr.msk.f32.mxu1 %vm434_vm1, %v25784_v17 }
 0x9dc   : > { %21378 = vmatmul.mubr.msk.f32.gmra.mrb[70].mxu1 %vm434_vm1, %v25790_v0 }
 0x9dd   : > { %21380 = vmatprep.mubr.msk.f32.mxu1 %vm434_vm1, %v25796_v23 }
 0x9e0   : > { %21381 = vmatmul.mubr.msk.f32.gmra.mrb[72].mxu1 %vm434_vm1, %v25802_v25 }
 0x9e1   : > { %21383 = vmatprep.mubr.msk.f32.mxu1 %vm434_vm1, %v25807_v54 }
 0x9e4   : > { %21384 = vmatmul.mubr.msk.f32.gmra.mrb[74].mxu1 %vm434_vm1, %v25812_v58 }
 0x9e5   : > { %21386 = vmatprep.mubr.msk.f32.mxu1 %vm434_vm1, %v28337_v63 }
 0x9e8   : > { %21387 = vmatmul.mubr.msk.f32.gmra.mrb[76].mxu1 %vm434_vm1, %v28338_v38 }
 0x9e9   : > { %21389 = vmatprep.mubr.msk.f32.mxu1 %vm434_vm1, %v26225_v2 }
 0x9ec   : > { %21390 = vmatmul.mubr.msk.f32.gmra.mrb[78].mxu1 %vm434_vm1, %v26229_v21 }
 0x9ed   : > { %21394 = vmatprep.mubr.msk.f32.mxu1 %vm434_vm1, %v28339_v56  ;;  %v28348_v56 = vld [vmem:[#allocation17_spill] sm:$0xff] }
 0x9f0   : > { %21395 = vmatmul.mubr.msk.f32.vlgmr.msra.gmra.mrb[48].mxu1 %vm434_vm1, %v28340_v48  ;;  %v28349_v48 = vld [vmem:[#allocation25_spill] sm:$0xff] }
 0x9f1   : > { %21443 = vmatpush3.msk.msra.mxu1 %vm772_vm0, %v18333_v28  ;;  %21397 = vmatprep.mubr.msk.f32.mxu1 %vm434_vm1, %v28341_v15  ;;  %v28347_v28 = vld [vmem:[#allocation14_spill] sm:$0xff] }
 0x9f2   : > { %21492 = vmatprep.subr.msk.mxu1 %vm772_vm0, %v18367_v44 }
 0x9f4   : > { %21398 = vmatmul.mubr.msk.f32.gmra.mrb[50].mxu1 %vm434_vm1, %v28342_v43  ;;  %v28350_v43 = vld [vmem:[#allocation23_spill] sm:$0xff] }
 0x9f5   : > { %21400 = vmatprep.mubr.msk.f32.mxu1 %vm434_vm1, %v28343_v37  ;;  %v28351_v37 = vld [vmem:[#allocation24_spill] sm:$0xff] }
 0x9f8   : > { %21401 = vmatmul.mubr.msk.f32.gmra.mrb[52].mxu1 %vm434_vm1, %v28344_v10  ;;  %v28352_v10 = vld [vmem:[#allocation16_spill] sm:$0xff] }
 0x9f9   : > { %21403 = vmatprep.mubr.msk.f32.mxu1 %vm434_vm1, %v28345_v11  ;;  %v28353_v11 = vld [vmem:[#allocation18_spill] sm:$0xff] }
 0x9fc   : > { %21404 = vmatmul.mubr.msk.f32.gmra.mrb[54].mxu1 %vm434_vm1, %v28346_v61  ;;  %v28354_v61 = vld [vmem:[#allocation19_spill] sm:$0xff] }
 0x9fd   : > { %21406 = vmatprep.mubr.msk.f32.mxu1 %vm434_vm1, %v28347_v28  ;;  %v28355_v28 = vld [vmem:[#allocation20_spill] sm:$0xff] }
 0xa00   : > { %21407 = vmatmul.mubr.msk.f32.gmra.mrb[56].mxu1 %vm434_vm1, %v28348_v56  ;;  %v28356_v56 = vld [vmem:[#allocation22_spill] sm:$0xff] }
 0xa01   : > { %21409 = vmatprep.mubr.msk.f32.mxu1 %vm434_vm1, %v28349_v48  ;;  %v28357_v48 = vld [vmem:[#allocation28_spill] sm:$0xff] }
 0xa04   : > { %21410 = vmatmul.mubr.msk.f32.gmra.mrb[58].mxu1 %vm434_vm1, %v28350_v43  ;;  %v28358_v43 = vld [vmem:[#allocation26_spill] sm:$0xff] }
 0xa05   : > { %21412 = vmatprep.mubr.msk.f32.mxu1 %vm434_vm1, %v28351_v37  ;;  %v28359_v37 = vld [vmem:[#allocation27_spill] sm:$0xff] }
 0xa08   : > { %21413 = vmatmul.mubr.msk.f32.gmra.mrb[60].mxu1 %vm434_vm1, %v28352_v10  ;;  %v28360_v10 = vld [vmem:[#allocation30_spill] sm:$0xff] }
 0xa09   : > { %21415 = vmatprep.mubr.msk.f32.mxu1 %vm434_vm1, %v28353_v11  ;;  %v28361_v11 = vld [vmem:[#allocation31_spill] sm:$0xff] }
 0xa0c   : > { %21416 = vmatmul.mubr.msk.f32.gmra.mrb[62].mxu1 %vm434_vm1, %v28354_v61  ;;  %v28362_v61 = vld [vmem:[#allocation11_spill] sm:$0xff] }
 0xa0d   : > { %21418 = vmatprep.mubr.msk.f32.mxu1 %vm434_vm1, %v28355_v28  ;;  %v28363_v28 = vld [vmem:[#allocation15_spill] sm:$0xff] }
 0xa10   : > { %21419 = vmatmul.mubr.msk.f32.gmra.mrb[64].mxu1 %vm434_vm1, %v28356_v56 }
 0xa11   : > { %21421 = vmatprep.mubr.msk.f32.mxu1 %vm434_vm1, %v28357_v48  ;;  %v28364_v48 = vld [vmem:[#allocation21_spill] sm:$0xff] }
 0xa14   : > { %21422 = vmatmul.mubr.msk.f32.gmra.mrb[66].mxu1 %vm434_vm1, %v28358_v43 }
 0xa15   : > { %21424 = vmatprep.mubr.msk.f32.mxu1 %vm434_vm1, %v28359_v37 }
 0xa18   : > { %21425 = vmatmul.mubr.msk.f32.gmra.mrb[68].mxu1 %vm434_vm1, %v28360_v10 }
 0xa19   : > { %21427 = vmatprep.mubr.msk.f32.mxu1 %vm434_vm1, %v28361_v11  ;;  %v26298_v11 = vld [vmem:[#allocation2 + $0x182] sm:$0xff] }
 0xa1c   : > { %21428 = vmatmul.mubr.msk.f32.gmra.mrb[70].mxu1 %vm434_vm1, %v28362_v61 }
 0xa1d   : > { %21430 = vmatprep.mubr.msk.f32.mxu1 %vm434_vm1, %v28363_v28  ;;  %v26302_v28 = vld [vmem:[#allocation2 + $0x18a] sm:$0xff] }
 0xa20   : > { %21431 = vmatmul.mubr.msk.f32.gmra.mrb[72].mxu1 %vm434_vm1, %v26066_v9 }
 0xa21   : > { %21433 = vmatprep.mubr.msk.f32.mxu1 %vm434_vm1, %v28364_v48 }
 0xa24   : > { %21434 = vmatmul.mubr.msk.f32.gmra.mrb[74].mxu1 %vm434_vm1, %v26074_v22 }
 0xa25   : > { %21436 = vmatprep.mubr.msk.f32.mxu1 %vm434_vm1, %v26078_v41  ;;  %v18401_v41 = vld [vmem:[%s27829_s8 + $0x20] sm:$0xf] }
 0xa28   : > { %21437 = vmatmul.mubr.msk.f32.gmra.mrb[76].mxu1 %vm434_vm1, %v26082_v13 }
 0xa29   : > { %21439 = vmatprep.mubr.msk.f32.mxu1 %vm434_vm1, %v26298_v11 }
 0xa2c   : > { %21440 = vmatmul.mubr.msk.f32.gmra.mrb[78].mxu1 %vm434_vm1, %v26302_v28 }
 0xa2d   : > { %21444 = vmatprep.mubr.msk.f32.mxu1 %vm434_vm1, %v25843_v51  ;;  %v13688_v51 = vld [vmem:[#allocation2 + $0x198] sm:$0xff] }
 0xa30   : > { %21445 = vmatmul.mubr.msk.f32.vlgmr.msra.gmra.mrb[48].mxu1 %vm434_vm1, %v25847_v12  ;;  %v13689_v12 = vld [vmem:[#allocation2 + $0x1a0] sm:$0xff] }
 0xa31   : > { %21493 = vmatpush3.msk.msra.mxu1 %vm772_vm0, %v18367_v44  ;;  %21447 = vmatprep.mubr.msk.f32.mxu1 %vm434_vm1, %v25851_v52  ;;  %v14048_v52 = vld [vmem:[#allocation2 + $0x31] sm:$0xff] }
 0xa32   : > { %21542 = vmatprep.subr.msk.mxu1 %vm772_vm0, %v18401_v41 }
 0xa34   : > { %21448 = vmatmul.mubr.msk.f32.gmra.mrb[50].mxu1 %vm434_vm1, %v25855_v27  ;;  %v15263_v27 = vlaneseq }
 0xa35   : > { %21450 = vmatprep.mubr.msk.f32.mxu1 %vm434_vm1, %v25859_v29  ;;  %v14931_v29 = vld [vmem:[%s27831_s10] sm:$0xf] }
 0xa36   : > { %21592 = vmatprep.subr.msk.mxu0 %vm772_vm0, %v14931_v29 }
 0xa37   : > { %21593 = vmatpush3.msk.msra.mxu0 %vm772_vm0, %v14931_v29  ;;  %v14055_v29 = vld [vmem:[#allocation2 + $0x81] sm:$0xff] }
 0xa38   : > { %21451 = vmatmul.mubr.msk.f32.gmra.mrb[52].mxu1 %vm434_vm1, %v25863_v18  ;;  %v22722_v18 = vmov 0  }
 0xa39   : > { %21453 = vmatprep.mubr.msk.f32.mxu1 %vm434_vm1, %v25867_v33  ;;  %22679 = vset.pattern.permute.xlu1 %v22722_v18  ;;  %v26377_v33 = vshrl.u32 %v15263_v27, 7 }
 0xa3a   : > { %22678 = vset.pattern.permute.xlu0 %v22722_v18 }
 0xa3c   : > { %21454 = vmatmul.mubr.msk.f32.gmra.mrb[54].mxu1 %vm434_vm1, %v25871_v35  ;;  %v14049_v35 = vld [vmem:[#allocation2 + $0x39] sm:$0xff] }
 0xa3d   : > { %21456 = vmatprep.mubr.msk.f32.mxu1 %vm434_vm1, %v25875_v39  ;;  %v14050_v39 = vld [vmem:[#allocation2 + $0x49] sm:$0xff] }
 0xa40   : > { %21457 = vmatmul.mubr.msk.f32.gmra.mrb[56].mxu1 %vm434_vm1, %v25879_v19  ;;  %v15281_v19 = vcvt.s32.f32 %v26377_v33 }
 0xa41   : > { %21459 = vmatprep.mubr.msk.f32.mxu1 %vm434_vm1, %v25883_v60  ;;  %v26384_v60 = vadd.s32 8, %v26377_v33 }
 0xa44   : > { %21460 = vmatmul.mubr.msk.f32.gmra.mrb[58].mxu1 %vm434_vm1, %v25887_v6  ;;  %v15266_v6 = vadd.s32 24, %v26377_v33 }
 0xa45   : > { %21462 = vmatprep.mubr.msk.f32.mxu1 %vm434_vm1, %v25891_v3  ;;  %v15360_v3 = vmul.f32 0.032258064, %v15281_v19 }
 0xa47   : > { %15590 = vperm.xlu0 %22678, %v15360_v3  }
 0xa48   : > { %21463 = vmatmul.mubr.msk.f32.gmra.mrb[60].mxu1 %vm434_vm1, %v25895_v31  ;;  %v15282_v31 = vcvt.s32.f32 %v26384_v60 }
 0xa49   : > { %21465 = vmatprep.mubr.msk.f32.mxu1 %vm434_vm1, %v25899_v46  ;;  %v15267_v46 = vadd.s32 40, %v26377_v33 }
 0xa4c   : > { %21466 = vmatmul.mubr.msk.f32.gmra.mrb[62].mxu1 %vm434_vm1, %v25903_v1  ;;  %v14051_v1 = vld [vmem:[#allocation2 + $0x51] sm:$0xff] }
 0xa4d   : > { %21468 = vmatprep.mubr.msk.f32.mxu1 %vm434_vm1, %v25907_v36  ;;  %v15268_v36 = vadd.s32 56, %v26377_v33 }
 0xa4f   : > { %v15285_v44 = vsub.s32 %v15268_v36, %v26384_v60 }
 0xa50   : > { %21469 = vmatmul.mubr.msk.f32.gmra.mrb[64].mxu1 %vm434_vm1, %v25911_v42  ;;  %v14052_v42 = vld [vmem:[#allocation2 + $0x61] sm:$0xff] }
 0xa51   : > { %21471 = vmatprep.mubr.msk.f32.mxu1 %vm434_vm1, %v25915_v26  ;;  %v15630_v26 = vsub.f32 1.0, %v15360_v3  ;;  %v15272_v3 = vadd.s32 120, %v26377_v33 }
 0xa53   : > { %15634 = vperm.xlu1 %22679, %v15630_v26   ;;  %v14057_v26 = vld [vmem:[#allocation2 + $0x99] sm:$0xff] }
 0xa54   : > { %21472 = vmatmul.mubr.msk.f32.gmra.mrb[66].mxu1 %vm434_vm1, %v25919_v57  ;;  %v15361_v57 = vmul.f32 0.032258064, %v15282_v31 }
 0xa55   : > { %21474 = vmatprep.mubr.msk.f32.mxu1 %vm434_vm1, %v25923_v14  ;;  %v15362_v14 = vsub.f32 15.0, %v15281_v19 }
 0xa56   : > { %15595 = vperm.xlu0 %22678, %v15361_v57  }
 0xa58   : > { %21475 = vmatmul.mubr.msk.f32.gmra.mrb[68].mxu1 %vm434_vm1, %v25927_v45  ;;  %v15283_v45 = vsub.s32 %v15266_v6, %v26384_v60  ;;  %v15304_v6 = vcvt.s32.f32 %v15285_v44 }
 0xa59   : > { %21477 = vmatprep.mubr.msk.f32.mxu1 %vm434_vm1, %v25931_v47  ;;  %v15631_v47 = vsub.f32 1.0, %v15361_v57 }
 0xa5b   : > { %15639 = vperm.xlu1 %22679, %v15631_v47   ;;  %v15289_v47 = vsub.s32 %v15272_v3, %v26384_v60 }
 0xa5c   : > { %21478 = vmatmul.mubr.msk.f32.gmra.mrb[70].mxu1 %vm434_vm1, %v25935_v59  ;;  %v15363_v59 = vsub.f32 15.0, %v15282_v31 }
 0xa5d   : > { %21480 = vmatprep.mubr.msk.f32.mxu1 %vm434_vm1, %v25939_v34  ;;  %v15284_v34 = vsub.s32 %v15267_v46, %v26384_v60 }
 0xa60   : > { %21481 = vmatmul.mubr.msk.f32.gmra.mrb[72].mxu1 %vm434_vm1, %v25943_v8  ;;  %v15269_v8 = vadd.s32 72, %v26377_v33 }
 0xa61   : > { %21483 = vmatprep.mubr.msk.f32.mxu1 %vm434_vm1, %v25947_v30  ;;  %v14053_v30 = vld [vmem:[#allocation2 + $0x69] sm:$0xff] }
 0xa62   : > { %v15286_v27 = vsub.s32 %v15269_v8, %v26384_v60 }
 0xa64   : > { %21484 = vmatmul.mubr.msk.f32.gmra.mrb[74].mxu1 %vm434_vm1, %v25951_v50  ;;  %v15270_v50 = vadd.s32 88, %v26377_v33  ;;  %v15306_v36 = vcvt.s32.f32 %v15286_v27 }
 0xa65   : > { %21486 = vmatprep.mubr.msk.f32.mxu1 %vm434_vm1, %v26152_v24  ;;  %v15364_v24 = vmul.f32 0.032258064, %v15362_v14 }
 0xa66   : > { %v15287_v18 = vsub.s32 %v15270_v50, %v26384_v60 }
 0xa67   : > { %15849 = vperm.xlu0 %22678, %v15364_v24  }
 0xa68   : > { %21487 = vmatmul.mubr.msk.f32.gmra.mrb[76].mxu1 %vm434_vm1, %v26156_v62  ;;  %v15300_v62 = vcvt.s32.f32 %v15283_v45  ;;  %v15308_v57 = vcvt.s32.f32 %v15287_v18  ;;  %v26417_v45 = vmul.f32 0.0625, %v15304_v6  ;;  %v15278_v18 = vadd.s32 216, %v26377_v33 }
 0xa69   : > { %21489 = vmatprep.mubr.msk.f32.mxu1 %vm434_vm1, %v13688_v51  ;;  %v15271_v51 = vadd.s32 104, %v26377_v33 }
 0xa6a   : > { %v26405_v19 = vmul.f32 0.0625, %v15300_v62  ;;  %v15312_v62 = vcvt.s32.f32 %v15289_v47  ;;  %v15280_v47 = vadd.s32 248, %v26377_v33 }
 0xa6b   : > { %v15288_v31 = vsub.s32 %v15271_v51, %v26384_v60  ;;  %v15276_v51 = vadd.s32 184, %v26377_v33 }
 0xa6c   : > { %21490 = vmatmul.mubr.msk.f32.gmra.mrb[78].mxu1 %vm434_vm1, %v13689_v12  ;;  %v15365_v12 = vmul.f32 0.032258064, %v15363_v59  ;;  %v26415_v14 = vmul.f32 0.032258064, %v26405_v19  ;;  %v15274_v59 = vadd.s32 152, %v26377_v33 }
 0xa6d   : > { %21494 = vmatprep.mubr.msk.f32.mxu1 %vm434_vm1, %v14048_v52  ;;  %v15302_v52 = vcvt.s32.f32 %v15284_v34  ;;  %v15310_v34 = vcvt.s32.f32 %v15288_v31  ;;  %v15293_v6 = vsub.s32 %v15276_v51, %v26384_v60 }
 0xa6e   : > { %15854 = vperm.xlu1 %22679, %v15365_v12   ;;  %v15707_v46 = vsub.f32 1.0, %v15365_v12  ;;  %v15291_v44 = vsub.s32 %v15274_v59, %v26384_v60 }
 0xa6f   : > { %v26442_v12 = vmul.f32 0.0625, %v15310_v34 }
 0xa70   : > { %21495 = vmatmul.mubr.msk.f32.vlgmr.msra.gmra.mrb[48].mxu1 %vm434_vm1, %v14049_v35  ;;  %v14056_v35 = vld [vmem:[#allocation2 + $0x91] sm:$0xff] }
 0xa71   : > { %21543 = vmatpush3.msk.msra.mxu1 %vm772_vm0, %v18401_v41  ;;  %21497 = vmatprep.mubr.msk.f32.mxu1 %vm434_vm1, %v14050_v39  ;;  %v14054_v41 = vld [vmem:[#allocation2 + $0x79] sm:$0xff]  ;;  %v15706_v39 = vsub.f32 1.0, %v15364_v24  ;;  %v26430_v24 = vmul.f32 0.0625, %v15308_v57  ;;  %v26463_v3 = vmul.f32 0.032258064, %v26442_v12  ;;  %v15320_v57 = vcvt.s32.f32 %v15293_v6 }
 0xa72   : > { %15715 = vperm.xlu1 %22679, %v15707_v46  }
 0xa73   : > { %15710 = vperm.xlu0 %22678, %v15706_v39   ;;  %v15316_v39 = vcvt.s32.f32 %v15291_v44 }
 0xa74   : > { %21498 = vmatmul.mubr.msk.f32.gmra.mrb[50].mxu1 %vm434_vm1, %v14051_v1  ;;  %v26410_v1 = vmul.f32 0.0625, %v15302_v52 }
 0xa75   : > { %21500 = vmatprep.mubr.msk.f32.mxu1 %vm434_vm1, %v14052_v42  ;;  %v15273_v42 = vadd.s32 136, %v26377_v33 }
 0xa76   : > { %v26424_v8 = vmul.f32 0.032258064, %v26410_v1 }
 0xa77   : > { %v15290_v50 = vsub.s32 %v15273_v42, %v26384_v60  ;;  %15937 = vperm.xlu0 %22678, %v26415_v14   ;;  %v15295_v42 = vsub.s32 %v15278_v18, %v26384_v60 }
 0xa78   : > { %21501 = vmatmul.mubr.msk.f32.gmra.mrb[52].mxu1 %vm434_vm1, %v14053_v30  ;;  %v26426_v30 = vmul.f32 0.0625, %v15306_v36  ;;  %15947 = vperm.xlu1 %22679, %v26424_v8   ;;  %v15279_v36 = vadd.s32 232, %v26377_v33 }
 0xa79   : > { %21503 = vmatprep.mubr.msk.f32.mxu1 %vm434_vm1, %v14054_v41  ;;  %v15275_v41 = vadd.s32 168, %v26377_v33 }
 0xa7a   : > { %v26446_v52 = vmul.f32 0.032258064, %v26426_v30 }
 0xa7b   : > { %v15292_v27 = vsub.s32 %v15275_v41, %v26384_v60  ;;  %v26493_v41 = vmul.f32 0.0625, %v15320_v57 }
 0xa7c   : > { %21504 = vmatmul.mubr.msk.f32.gmra.mrb[54].mxu1 %vm434_vm1, %v14055_v29  ;;  %v15277_v29 = vadd.s32 200, %v26377_v33  ;;  %15967 = vperm.xlu1 %22679, %v26446_v52  }
 0xa7d   : > { %21506 = vmatprep.mubr.msk.f32.mxu1 %vm434_vm1, %v14056_v35  ;;  %v26457_v35 = vmul.f32 0.0625, %v15312_v62  ;;  %v15297_v62 = vsub.s32 %v15280_v47, %v26384_v60 }
 0xa7e   : > { %v15294_v46 = vsub.s32 %v15277_v29, %v26384_v60 }
 0xa7f   : > { %v15328_v29 = vcvt.s32.f32 %v15297_v62 }
 0xa80   : > { %21507 = vmatmul.mubr.msk.f32.gmra.mrb[56].mxu1 %vm434_vm1, %v14057_v26  ;;  %v26477_v26 = vmul.f32 0.0625, %v15316_v39  ;;  %15987 = vperm.xlu1 %22679, %v26463_v3  }
 0xa81   : > { %21509 = vmatprep.mubr.msk.f32.mxu1 %vm434_vm1, %v25724_v40  ;;  %v26436_v40 = vmul.f32 0.032258064, %v26417_v45  ;;  %v26515_v18 = vmul.f32 0.0625, %v15328_v29  ;;  %v28373_v29 = vld [vmem:[#allocation23_spill] sm:$0xff] }
 0xa82   : > { %v15384_v33 = vmul.f32 0.032258064, %v26477_v26 }
 0xa83   : > { %15957 = vperm.xlu0 %22678, %v26436_v40  }
 0xa84   : > { %21510 = vmatmul.mubr.msk.f32.gmra.mrb[58].mxu1 %vm434_vm1, %v25730_v32  ;;  %v15314_v32 = vcvt.s32.f32 %v15290_v50  ;;  %v15296_v50 = vsub.s32 %v15279_v36, %v26384_v60 }
 0xa85   : > { %21512 = vmatprep.mubr.msk.f32.mxu1 %vm434_vm1, %v25736_v16  ;;  %v26455_v16 = vmul.f32 0.032258064, %v26430_v24 }
 0xa86   : > { %v26466_v31 = vmul.f32 0.0625, %v15314_v32  ;;  %v15326_v32 = vcvt.s32.f32 %v15296_v50 }
 0xa87   : > { %15977 = vperm.xlu0 %22678, %v26455_v16  }
 0xa88   : > { %21513 = vmatmul.mubr.msk.f32.gmra.mrb[60].mxu1 %vm434_vm1, %v25742_v4  ;;  %v15318_v4 = vcvt.s32.f32 %v15292_v27  ;;  %v26484_v59 = vmul.f32 0.032258064, %v26466_v31  ;;  %v26510_v60 = vmul.f32 0.0625, %v15326_v32 }
 0xa89   : > { %21515 = vmatprep.mubr.msk.f32.mxu1 %vm434_vm1, %v25748_v5  ;;  %v26475_v5 = vmul.f32 0.032258064, %v26457_v35 }
 0xa8a   : > { %v26486_v34 = vmul.f32 0.0625, %v15318_v4  ;;  %16007 = vperm.xlu1 %22679, %v26484_v59   ;;  %v15394_v39 = vmul.f32 0.032258064, %v26510_v60 }
 0xa8b   : > { %15997 = vperm.xlu0 %22678, %v26475_v5  }
 0xa8c   : > { %21516 = vmatmul.mubr.msk.f32.gmra.mrb[62].mxu1 %vm434_vm1, %v25754_v7  ;;  %v15322_v7 = vcvt.s32.f32 %v15294_v46  ;;  %v15386_v44 = vmul.f32 0.032258064, %v26486_v34  ;;  %v15399_v46 = vsub.f32 15.0, %v26405_v19  ;;  %v16140_v57 = vsub.f32 1.0, %v15394_v39 }
 0xa8d   : > { %21518 = vmatprep.mubr.msk.f32.mxu1 %vm434_vm1, %v25760_v20  ;;  %v15324_v20 = vcvt.s32.f32 %v15295_v42  ;;  %v15401_v42 = vsub.f32 15.0, %v26410_v1 }
 0xa8e   : > { %v26500_v51 = vmul.f32 0.0625, %v15322_v7  ;;  %16027 = vperm.xlu1 %22679, %v15386_v44   ;;  %v26559_v47 = vmul.f32 0.032258064, %v15399_v46  ;;  %v28370_v7 = vld [vmem:[#allocation14_spill] sm:$0xff] }
 0xa8f   : > { %16017 = vperm.xlu0 %22678, %v15384_v33   ;;  %v26505_v27 = vmul.f32 0.0625, %v15324_v20  ;;  %v26564_v50 = vmul.f32 0.032258064, %v15401_v42  ;;  %v28371_v20 = vld [vmem:[#allocation17_spill] sm:$0xff] }
 0xa90   : > { %21519 = vmatmul.mubr.msk.f32.gmra.mrb[64].mxu1 %vm434_vm1, %v25766_v49  ;;  %v15388_v49 = vmul.f32 0.032258064, %v26493_v41  ;;  %v16368_v1 = vsub.f32 1.0, %v26559_v47 }
 0xa91   : > { %21521 = vmatprep.mubr.msk.f32.mxu1 %vm434_vm1, %v25772_v55  ;;  %v15390_v55 = vmul.f32 0.032258064, %v26500_v51  ;;  %v16370_v32 = vsub.f32 1.0, %v26564_v50 }
 0xa92   : > { %v16134_v6 = vsub.f32 1.0, %v15388_v49 }
 0xa93   : > { %16037 = vperm.xlu0 %22678, %v15388_v49   ;;  %16047 = vperm.xlu1 %22679, %v15390_v55   ;;  %v16136_v4 = vsub.f32 1.0, %v15390_v55 }
 0xa94   : > { %21522 = vmatmul.mubr.msk.f32.gmra.mrb[66].mxu1 %vm434_vm1, %v25778_v53  ;;  %v15392_v53 = vmul.f32 0.032258064, %v26505_v27 }
 0xa95   : > { %21524 = vmatprep.mubr.msk.f32.mxu1 %vm434_vm1, %v25784_v17  ;;  %v15396_v17 = vmul.f32 0.032258064, %v26515_v18 }
 0xa96   : > { %v16138_v36 = vsub.f32 1.0, %v15392_v53 }
 0xa97   : > { %16057 = vperm.xlu0 %22678, %v15392_v53   ;;  %16067 = vperm.xlu1 %22679, %v15394_v39   ;;  %v16142_v19 = vsub.f32 1.0, %v15396_v17  ;;  %v28374_v39 = vld [vmem:[#allocation24_spill] sm:$0xff] }
 0xa98   : > { %21525 = vmatmul.mubr.msk.f32.gmra.mrb[68].mxu1 %vm434_vm1, %v25790_v0  ;;  %v16114_v0 = vsub.f32 1.0, %v26415_v14  ;;  %v14078_v14 = vld [vmem:[#allocation2 + $0x199] sm:$0xff] }
 0xa99   : > { %21527 = vmatprep.mubr.msk.f32.mxu1 %vm434_vm1, %v25796_v23  ;;  %v16116_v23 = vsub.f32 1.0, %v26424_v8  ;;  %v14079_v8 = vld [vmem:[#allocation2 + $0x1a1] sm:$0xff] }
 0xa9b   : > { %16077 = vperm.xlu0 %22678, %v15396_v17   ;;  %16159 = vperm.xlu1 %22679, %v16114_v0  }
 0xa9c   : > { %21528 = vmatmul.mubr.msk.f32.gmra.mrb[70].mxu1 %vm434_vm1, %v25802_v25  ;;  %v16118_v25 = vsub.f32 1.0, %v26436_v40  ;;  %v16130_v40 = vsub.f32 1.0, %v15384_v33  ;;  %v15405_v33 = vsub.f32 15.0, %v26426_v30  ;;  %v15409_v30 = vsub.f32 15.0, %v26442_v12 }
 0xa9d   : > { %21530 = vmatprep.mubr.msk.f32.mxu1 %vm434_vm1, %v25807_v54  ;;  %v16120_v54 = vsub.f32 1.0, %v26446_v52  ;;  %v16132_v52 = vsub.f32 1.0, %v15386_v44  ;;  %v15407_v44 = vsub.f32 15.0, %v26430_v24  ;;  %v15411_v24 = vsub.f32 15.0, %v26457_v35  ;;  %v28376_v35 = vld [vmem:[#allocation18_spill] sm:$0xff] }
 0xa9e   : > { %v26576_v49 = vmul.f32 0.032258064, %v15405_v33  ;;  %v26588_v0 = vmul.f32 0.032258064, %v15409_v30  ;;  %v15413_v12 = vsub.f32 15.0, %v26466_v31  ;;  %v28377_v31 = vld [vmem:[#allocation19_spill] sm:$0xff] }
 0xa9f   : > { %16169 = vperm.xlu0 %22678, %v16116_v23   ;;  %16179 = vperm.xlu1 %22679, %v16118_v25   ;;  %v26582_v53 = vmul.f32 0.032258064, %v15407_v44  ;;  %v28375_v23 = vld [vmem:[#allocation16_spill] sm:$0xff]  ;;  %v14870_v44 = vld [vmem:[#allocation3 + $0x18] sm:$0xff] }
 0xaa0   : > { %21531 = vmatmul.mubr.msk.f32.gmra.mrb[72].mxu1 %vm434_vm1, %v25812_v58  ;;  %v16122_v58 = vsub.f32 1.0, %v26455_v16  ;;  %v28366_v16 = vld [vmem:[#allocation9_spill] sm:$0xff]  ;;  %v16374_v17 = vsub.f32 1.0, %v26576_v49 }
 0xaa1   : > { %21533 = vmatprep.mubr.msk.f32.mxu1 %vm434_vm1, %v28337_v63  ;;  %v16124_v63 = vsub.f32 1.0, %v26463_v3  ;;  %v28367_v3 = vld [vmem:[#allocation10_spill] sm:$0xff]  ;;  %v16376_v25 = vsub.f32 1.0, %v26582_v53 }
 0xaa3   : > { %16189 = vperm.xlu0 %22678, %v16120_v54   ;;  %16199 = vperm.xlu1 %22679, %v16122_v58   ;;  %v15442_v54 = vmul.f32 0.032258064, %v15411_v24  ;;  %v16378_v58 = vsub.f32 1.0, %v26588_v0  ;;  %v14872_v24 = vld [vmem:[#allocation3 + $0x28] sm:$0xff] }
 0xaa4   : > { %21534 = vmatmul.mubr.msk.f32.gmra.mrb[74].mxu1 %vm434_vm1, %v28338_v38  ;;  %v16126_v38 = vsub.f32 1.0, %v26475_v5  ;;  %v28369_v5 = vld [vmem:[#allocation13_spill] sm:$0xff] }
 0xaa5   : > { %21536 = vmatprep.mubr.msk.f32.mxu1 %vm434_vm1, %v26225_v2  ;;  %v16128_v2 = vsub.f32 1.0, %v26484_v59  ;;  %v15403_v59 = vsub.f32 15.0, %v26417_v45  ;;  %v28372_v45 = vld [vmem:[#allocation25_spill] sm:$0xff] }
 0xaa7   : > { %16209 = vperm.xlu0 %22678, %v16124_v63   ;;  %16219 = vperm.xlu1 %22679, %v16126_v38   ;;  %v26570_v62 = vmul.f32 0.032258064, %v15403_v59  ;;  %v26598_v63 = vmul.f32 0.032258064, %v15413_v12  ;;  %v16380_v38 = vsub.f32 1.0, %v15442_v54  ;;  %v14868_v59 = vld [vmem:[#allocation3 + $0x8] sm:$0xff] }
 0xaa8   : > { %21537 = vmatmul.mubr.msk.f32.gmra.mrb[76].mxu1 %vm434_vm1, %v26229_v21  ;;  %v28365_v21 = vld [vmem:[#allocation8_spill] sm:$0xff] }
 0xaa9   : > { %21539 = vmatprep.mubr.msk.f32.mxu1 %vm434_vm1, %v14078_v14  ;;  %v16372_v55 = vsub.f32 1.0, %v26570_v62  ;;  %v15415_v14 = vsub.f32 15.0, %v26477_v26  ;;  %v16382_v26 = vsub.f32 1.0, %v26598_v63 }
 0xaab   : > { %16229 = vperm.xlu0 %22678, %v16128_v2   ;;  %16239 = vperm.xlu1 %22679, %v16130_v40   ;;  %v15446_v2 = vmul.f32 0.032258064, %v15415_v14  ;;  %v15419_v40 = vsub.f32 15.0, %v26493_v41  ;;  %v14874_v14 = vld [vmem:[#allocation3 + $0x38] sm:$0xff] }
 0xaac   : > { %21540 = vmatmul.mubr.msk.f32.gmra.mrb[78].mxu1 %vm434_vm1, %v14079_v8  ;;  %v15417_v8 = vsub.f32 15.0, %v26486_v34 }
 0xaad   : > { %21544 = vmatprep.mubr.msk.f32.mxu1 %vm434_vm1, %v28341_v15  ;;  %v28368_v15 = vld [vmem:[#allocation12_spill] sm:$0xff]  ;;  %v16384_v34 = vsub.f32 1.0, %v15446_v2 }
 0xaaf   : > { %16249 = vperm.xlu0 %22678, %v16132_v52   ;;  %16259 = vperm.xlu1 %22679, %v16134_v6   ;;  %v15448_v52 = vmul.f32 0.032258064, %v15417_v8  ;;  %v15450_v6 = vmul.f32 0.032258064, %v15419_v40  ;;  %v14876_v40 = vld [vmem:[#allocation3 + $0x48] sm:$0xff] }
 0xab0   : > { %21545 = vmatmul.mubr.msk.f32.vlgmr.msra.gmra.mrb[48].mxu1 %vm434_vm1, %v28365_v21  ;;  %v28378_v21 = vld [vmem:[#allocation20_spill] sm:$0xff] }
 0xab1   : > { %21547 = vmatprep.mubr.msk.f32.mxu1 %vm434_vm1, %v28366_v16  ;;  %v15421_v16 = vsub.f32 15.0, %v26500_v51  ;;  %v16386_v41 = vsub.f32 1.0, %v15448_v52  ;;  %v16388_v51 = vsub.f32 1.0, %v15450_v6 }
 0xab3   : > { %16269 = vperm.xlu0 %22678, %v16136_v4   ;;  %16279 = vperm.xlu1 %22679, %v16138_v36   ;;  %v28379_v4 = vld [vmem:[#allocation28_spill] sm:$0xff]  ;;  %v15452_v46 = vmul.f32 0.032258064, %v15421_v16 }
 0xab4   : > { %21548 = vmatmul.mubr.msk.f32.gmra.mrb[50].mxu1 %vm434_vm1, %v28367_v3  ;;  %v15423_v3 = vsub.f32 15.0, %v26505_v27 }
 0xab5   : > { %21550 = vmatprep.mubr.msk.f32.mxu1 %vm434_vm1, %v28368_v15  ;;  %v15425_v15 = vsub.f32 15.0, %v26510_v60 }
 0xab6   : > { %v15454_v36 = vmul.f32 0.032258064, %v15423_v3  ;;  %v14877_v3 = vld [vmem:[#allocation3 + $0x50] sm:$0xff] }
 0xab7   : > { %16289 = vperm.xlu0 %22678, %v16140_v57   ;;  %16299 = vperm.xlu1 %22679, %v16142_v19   ;;  %v15456_v27 = vmul.f32 0.032258064, %v15425_v15 }
 0xab8   : > { %21551 = vmatmul.mubr.msk.f32.gmra.mrb[52].mxu1 %vm434_vm1, %v28369_v5  ;;  %v16392_v42 = vsub.f32 1.0, %v15454_v36  ;;  %v28380_v5 = vld [vmem:[#allocation31_spill] sm:$0xff] }
 0xab9   : > { %21553 = vmatprep.mubr.msk.f32.mxu1 %vm434_vm1, %v28370_v7  ;;  %v16394_v60 = vsub.f32 1.0, %v15456_v27 }
 0xabb   : > { %16413 = vperm.xlu0 %22678, %v16368_v1   ;;  %16423 = vperm.xlu1 %22679, %v16370_v32  }
 0xabc   : > { %21554 = vmatmul.mubr.msk.f32.gmra.mrb[54].mxu1 %vm434_vm1, %v28371_v20 }
 0xabd   : > { %21556 = vmatprep.mubr.msk.f32.mxu1 %vm434_vm1, %v28372_v45 }
 0xabf   : > { %16433 = vperm.xlu0 %22678, %v16372_v55   ;;  %16443 = vperm.xlu1 %22679, %v16374_v17  }
 0xac0   : > { %21557 = vmatmul.mubr.msk.f32.gmra.mrb[56].mxu1 %vm434_vm1, %v28373_v29 }
 0xac1   : > { %21559 = vmatprep.mubr.msk.f32.mxu1 %vm434_vm1, %v28374_v39 }
 0xac3   : > { %16453 = vperm.xlu0 %22678, %v16376_v25   ;;  %16463 = vperm.xlu1 %22679, %v16378_v58  }
 0xac4   : > { %21560 = vmatmul.mubr.msk.f32.gmra.mrb[58].mxu1 %vm434_vm1, %v28375_v23 }
 0xac5   : > { %21562 = vmatprep.mubr.msk.f32.mxu1 %vm434_vm1, %v28376_v35 }
 0xac7   : > { %16473 = vperm.xlu0 %22678, %v16380_v38   ;;  %16483 = vperm.xlu1 %22679, %v16382_v26  }
 0xac8   : > { %21563 = vmatmul.mubr.msk.f32.gmra.mrb[60].mxu1 %vm434_vm1, %v28377_v31 }
 0xac9   : > { %21565 = vmatprep.mubr.msk.f32.mxu1 %vm434_vm1, %v28378_v21 }
 0xacb   : > { %16493 = vperm.xlu0 %22678, %v16384_v34   ;;  %16503 = vperm.xlu1 %22679, %v16386_v41  }
 0xacc   : > { %21566 = vmatmul.mubr.msk.f32.gmra.mrb[62].mxu1 %vm434_vm1, %v28356_v56  ;;  %v16390_v56 = vsub.f32 1.0, %v15452_v46 }
 0xacd   : > { %21568 = vmatprep.mubr.msk.f32.mxu1 %vm434_vm1, %v28379_v4  ;;  %v14878_v4 = vld [vmem:[#allocation3 + $0x58] sm:$0xff] }
 0xacf   : > { %16513 = vperm.xlu0 %22678, %v16388_v51   ;;  %16523 = vperm.xlu1 %22679, %v16390_v56  }
 0xad0   : > { %21569 = vmatmul.mubr.msk.f32.gmra.mrb[64].mxu1 %vm434_vm1, %v28358_v43  ;;  %v28381_v43 = vld [vmem:[#allocation15_spill] sm:$0xff] }
 0xad1   : > { %21571 = vmatprep.mubr.msk.f32.mxu1 %vm434_vm1, %v28359_v37  ;;  %v28382_v37 = vld [vmem:[#allocation32_spill] sm:$0xff] }
 0xad3   : > { %16533 = vperm.xlu0 %22678, %v16392_v42   ;;  %16543 = vperm.xlu1 %22679, %v16394_v60   ;;  %v14880_v42 = vld [vmem:[#allocation3 + $0x68] sm:$0xff] }
 0xad4   : > { %21572 = vmatmul.mubr.msk.f32.gmra.mrb[66].mxu1 %vm434_vm1, %v28360_v10 }
 0xad5   : > { %21574 = vmatprep.mubr.msk.f32.mxu1 %vm434_vm1, %v28380_v5 }
 0xad7   : > { %16604 = vperm.xlu1 %22679, %v26559_v47   ;;  %v14867_v47 = vld [vmem:[#allocation3] sm:$0xff] }
 0xad8   : > { %21575 = vmatmul.mubr.msk.f32.gmra.mrb[68].mxu1 %vm434_vm1, %v28362_v61 }
 0xad9   : > { %21577 = vmatprep.mubr.msk.f32.mxu1 %vm434_vm1, %v28381_v43 }
 0xadb   : > { %16624 = vperm.xlu1 %22679, %v26570_v62   ;;  %v14869_v62 = vld [vmem:[#allocation3 + $0x10] sm:$0xff] }
 0xadc   : > { %21578 = vmatmul.mubr.msk.f32.gmra.mrb[70].mxu1 %vm434_vm1, %v26066_v9  ;;  %v14468_v9 = vld [vmem:[#allocation2 + $0x19a] sm:$0xff] }
 0xadd   : > { %21580 = vmatprep.mubr.msk.f32.mxu1 %vm434_vm1, %v28364_v48 }
 0xadf   : > { %16644 = vperm.xlu1 %22679, %v26582_v53   ;;  %v14871_v53 = vld [vmem:[#allocation3 + $0x20] sm:$0xff] }
 0xae0   : > { %21581 = vmatmul.mubr.msk.f32.gmra.mrb[72].mxu1 %vm434_vm1, %v26074_v22  ;;  %v14469_v22 = vld [vmem:[#allocation2 + $0x1a2] sm:$0xff] }
 0xae1   : > { %21583 = vmatprep.mubr.msk.f32.mxu1 %vm434_vm1, %v28382_v37 }
 0xae3   : > { %16664 = vperm.xlu1 %22679, %v15442_v54   ;;  %v14873_v54 = vld [vmem:[#allocation3 + $0x30] sm:$0xff] }
 0xae4   : > { %21584 = vmatmul.mubr.msk.f32.gmra.mrb[74].mxu1 %vm434_vm1, %v26082_v13  ;;  %v15427_v13 = vsub.f32 15.0, %v26515_v18 }
 0xae5   : > { %21586 = vmatprep.mubr.msk.f32.mxu1 %vm434_vm1, %v26298_v11  ;;  %v26653_v11 = vld [vmem:[%s27830_s9] ss:$0 sm:$0xff] }
 0xae6   : > { %v15458_v10 = vmul.f32 0.032258064, %v15427_v13  ;;  %v14881_v13 = vld [vmem:[#allocation3 + $0x70] sm:$0xff] }
 0xae7   : > { %16684 = vperm.xlu1 %22679, %v15446_v2   ;;  %v14875_v2 = vld [vmem:[#allocation3 + $0x40] sm:$0xff] }
 0xae8   : > { %21587 = vmatmul.mubr.msk.f32.gmra.mrb[76].mxu1 %vm434_vm1, %v26302_v28  ;;  %v16396_v61 = vsub.f32 1.0, %v15458_v10 }
 0xae9   : > { %21589 = vmatprep.mubr.msk.f32.mxu1 %vm434_vm1, %v14468_v9 }
 0xaea   : > { %16553 = vperm.xlu0 %22678, %v16396_v61  }
 0xaeb   : > { %16704 = vperm.xlu1 %22679, %v15450_v6  }
 0xaec   : > { %21590 = vmatmul.mubr.msk.f32.gmra.mrb[78].mxu1 %vm434_vm1, %v14469_v22 }
 0xaee   : > { %16614 = vperm.xlu0 %22678, %v26564_v50  }
 0xaef   : > { %16724 = vperm.xlu1 %22679, %v15454_v36  }
 0xaf2   : > { %16634 = vperm.xlu0 %22678, %v26576_v49  }
 0xaf3   : > { %16744 = vperm.xlu1 %22679, %v15458_v10   ;;  %v14882_v10 = vld [vmem:[#allocation3 + $0x78] sm:$0xff] }
 0xaf6   : > { %16654 = vperm.xlu0 %22678, %v26588_v0  }
 0xafa   : > { %16674 = vperm.xlu0 %22678, %v26598_v63  }
 0xafe   : > { %16694 = vperm.xlu0 %22678, %v15448_v52  }
 0xb02   : > { %16714 = vperm.xlu0 %22678, %v15452_v46  }
 0xb06   : > { %16734 = vperm.xlu0 %22678, %v15456_v27   ;;  %v14879_v27 = vld [vmem:[#allocation3 + $0x60] sm:$0xff] }
 0xb83   : > { %v21546_v28 = vpop.f32.mrb[48].mxu1 }
 0xb84   : > { %v14836_v48 = vadd.f32 %v21546_v28, %v26653_v11  ;;  %v14637_v18 = vpop.f32.mrb[49].mxu1 }
 0xb85   : > { %v14835_v57 = vadd.f32 %v26653_v11, %v14637_v18 }
 0xb86   : > { %v14900_v50 = vadd.f32 %v14868_v59, %v14836_v48  ;;  %v14883_v59 = vld [vmem:[#allocation3 + $0x80] sm:$0xff] }
 0xb87   : > { %v14899_v7 = vadd.f32 %v14867_v47, %v14835_v57  ;;  %v21549_v19 = vpop.f32.mrb[50].mxu1 }
 0xb88   : > { %v14838_v33 = vadd.f32 %v21549_v19, %v26653_v11  ;;  %v14647_v20 = vpop.f32.mrb[51].mxu1 }
 0xb89   : > { %v14837_v1 = vadd.f32 %v26653_v11, %v14647_v20  ;;  %21594 = vmatprep.mubr.msk.f32.mxu0 %vm434_vm1, %v14899_v7  ;;  %v14884_v7 = vld [vmem:[#allocation3 + $0x88] sm:$0xff] }
 0xb8a   : > { %21595 = vmatmul.mubr.msk.f32.vlgmr.msra.gmra.mrb[64].mxu0 %vm434_vm1, %v14900_v50  ;;  %v14902_v49 = vadd.f32 %v14870_v44, %v14838_v33  ;;  %v14885_v44 = vld [vmem:[#allocation3 + $0x90] sm:$0xff] }
 0xb8b   : > { %v14901_v45 = vadd.f32 %v14869_v62, %v14837_v1  ;;  %v21552_v32 = vpop.f32.mrb[52].mxu1 }
 0xb8c   : > { %v14840_v30 = vadd.f32 %v21552_v32, %v26653_v11  ;;  %v14657_v29 = vpop.f32.mrb[53].mxu1 }
 0xb8d   : > { %v14839_v55 = vadd.f32 %v26653_v11, %v14657_v29  ;;  %21597 = vmatprep.mubr.msk.f32.mxu0 %vm434_vm1, %v14901_v45  ;;  %v14886_v45 = vld [vmem:[#allocation3 + $0x98] sm:$0xff] }
 0xb8e   : > { %21598 = vmatmul.mubr.msk.f32.gmra.mrb[66].mxu0 %vm434_vm1, %v14902_v49  ;;  %v14904_v0 = vadd.f32 %v14872_v24, %v14840_v30  ;;  %v14887_v24 = vld [vmem:[#allocation3 + $0xa0] sm:$0xff] }
 0xb8f   : > { %v14903_v39 = vadd.f32 %v14871_v53, %v14839_v55  ;;  %v21555_v17 = vpop.f32.mrb[54].mxu1 }
 0xb90   : > { %v14842_v12 = vadd.f32 %v21555_v17, %v26653_v11  ;;  %v14667_v23 = vpop.f32.mrb[55].mxu1 }
 0xb91   : > { %v14841_v25 = vadd.f32 %v26653_v11, %v14667_v23  ;;  %21600 = vmatprep.mubr.msk.f32.mxu0 %vm434_vm1, %v14903_v39  ;;  %v14888_v39 = vld [vmem:[#allocation3 + $0xa8] sm:$0xff] }
 0xb92   : > { %21601 = vmatmul.mubr.msk.f32.gmra.mrb[68].mxu0 %vm434_vm1, %v14904_v0  ;;  %v14906_v63 = vadd.f32 %v14874_v14, %v14842_v12  ;;  %v14889_v14 = vld [vmem:[#allocation3 + $0xb0] sm:$0xff] }
 0xb93   : > { %v14905_v35 = vadd.f32 %v14873_v54, %v14841_v25  ;;  %v21558_v58 = vpop.f32.mrb[56].mxu1 }
 0xb94   : > { %v14844_v8 = vadd.f32 %v21558_v58, %v26653_v11  ;;  %v14677_v31 = vpop.f32.mrb[57].mxu1 }
 0xb95   : > { %v14843_v38 = vadd.f32 %v26653_v11, %v14677_v31  ;;  %21603 = vmatprep.mubr.msk.f32.mxu0 %vm434_vm1, %v14905_v35  ;;  %v14890_v35 = vld [vmem:[#allocation3 + $0xb8] sm:$0xff] }
 0xb96   : > { %21604 = vmatmul.mubr.msk.f32.gmra.mrb[70].mxu0 %vm434_vm1, %v14906_v63  ;;  %v14908_v52 = vadd.f32 %v14876_v40, %v14844_v8  ;;  %v14891_v40 = vld [vmem:[#allocation3 + $0xc0] sm:$0xff] }
 0xb97   : > { %v14907_v21 = vadd.f32 %v14875_v2, %v14843_v38  ;;  %v21561_v26 = vpop.f32.mrb[58].mxu1 }
 0xb98   : > { %v14846_v16 = vadd.f32 %v21561_v26, %v26653_v11  ;;  %v14687_v34 = vpop.f32.mrb[59].mxu1 }
 0xb99   : > { %v14845_v6 = vadd.f32 %v26653_v11, %v14687_v34  ;;  %21606 = vmatprep.mubr.msk.f32.mxu0 %vm434_vm1, %v14907_v21  ;;  %v14892_v21 = vld [vmem:[#allocation3 + $0xc8] sm:$0xff] }
 0xb9a   : > { %21607 = vmatmul.mubr.msk.f32.gmra.mrb[72].mxu0 %vm434_vm1, %v14908_v52  ;;  %v14910_v15 = vadd.f32 %v14878_v4, %v14846_v16  ;;  %v14893_v4 = vld [vmem:[#allocation3 + $0xd0] sm:$0xff] }
 0xb9b   : > { %v14909_v41 = vadd.f32 %v14877_v3, %v14845_v6  ;;  %v21564_v46 = vpop.f32.mrb[60].mxu1 }
 0xb9c   : > { %v14848_v51 = vadd.f32 %v21564_v46, %v26653_v11  ;;  %v14697_v36 = vpop.f32.mrb[61].mxu1 }
 0xb9d   : > { %v14847_v56 = vadd.f32 %v26653_v11, %v14697_v36  ;;  %21609 = vmatprep.mubr.msk.f32.mxu0 %vm434_vm1, %v14909_v41  ;;  %v14894_v41 = vld [vmem:[#allocation3 + $0xd8] sm:$0xff] }
 0xb9e   : > { %21610 = vmatmul.mubr.msk.f32.gmra.mrb[74].mxu0 %vm434_vm1, %v14910_v15  ;;  %v14912_v43 = vadd.f32 %v14880_v42, %v14848_v51  ;;  %v14895_v42 = vld [vmem:[#allocation3 + $0xe0] sm:$0xff] }
 0xb9f   : > { %v14911_v5 = vadd.f32 %v14879_v27, %v14847_v56  ;;  %v21567_v60 = vpop.f32.mrb[62].mxu1 }
 0xba0   : > { %v14850_v37 = vadd.f32 %v21567_v60, %v26653_v11  ;;  %v14707_v9 = vpop.f32.mrb[63].mxu1 }
 0xba1   : > { %v14849_v22 = vadd.f32 %v26653_v11, %v14707_v9  ;;  %21612 = vmatprep.mubr.msk.f32.mxu0 %vm434_vm1, %v14911_v5  ;;  %v14896_v5 = vld [vmem:[#allocation3 + $0xe8] sm:$0xff] }
 0xba2   : > { %21613 = vmatmul.mubr.msk.f32.gmra.mrb[76].mxu0 %vm434_vm1, %v14912_v43  ;;  %v14914_v48 = vadd.f32 %v14882_v10, %v14850_v37  ;;  %v14897_v10 = vld [vmem:[#allocation3 + $0xf0] sm:$0xff] }
 0xba3   : > { %v14913_v61 = vadd.f32 %v14881_v13, %v14849_v22  ;;  %v21570_v28 = vpop.f32.mrb[64].mxu1 }
 0xba4   : > { %v14852_v18 = vadd.f32 %v21570_v28, %v26653_v11  ;;  %v14717_v57 = vpop.f32.mrb[65].mxu1 }
 0xba5   : > { %v14851_v47 = vadd.f32 %v26653_v11, %v14717_v57  ;;  %21615 = vmatprep.mubr.msk.f32.mxu0 %vm434_vm1, %v14913_v61  ;;  %v14898_v61 = vld [vmem:[#allocation3 + $0xf8] sm:$0xff]  ;;  %v26721_v57 = vpop.permute.xlu0 %15590 }
 0xba6   : > { %21616 = vmatmul.mubr.msk.f32.gmra.mrb[78].mxu0 %vm434_vm1, %v14914_v48  ;;  %v14916_v33 = vadd.f32 %v14884_v7, %v14852_v18  ;;  %v26719_v18 = vpop.permute.xlu1 %15634 }
 0xba7   : > { %v14915_v19 = vadd.f32 %v14883_v59, %v14851_v47  ;;  %v21573_v50 = vpop.f32.mrb[66].mxu1 }
 0xba8   : > { %v14854_v20 = vadd.f32 %v21573_v50, %v26653_v11  ;;  %v14727_v1 = vpop.f32.mrb[67].mxu1 }
 0xba9   : > { %v14853_v62 = vadd.f32 %v26653_v11, %v14727_v1  ;;  %21618 = vmatprep.mubr.msk.f32.mxu0 %vm434_vm1, %v14915_v19  ;;  %v26725_v59 = vpop.permute.xlu0 %15595 }
 0xbaa   : > { %21619 = vmatmul.mubr.msk.f32.gmra.mrb[80].mxu0 %vm434_vm1, %v14916_v33  ;;  %v14918_v30 = vadd.f32 %v14886_v45, %v14854_v20  ;;  %v26723_v47 = vpop.permute.xlu1 %15639 }
 0xbab   : > { %v14917_v32 = vadd.f32 %v14885_v44, %v14853_v62  ;;  %v21576_v49 = vpop.f32.mrb[68].mxu1 }
 0xbac   : > { %v14856_v29 = vadd.f32 %v21576_v49, %v26653_v11  ;;  %v14737_v55 = vpop.f32.mrb[69].mxu1 }
 0xbad   : > { %v14855_v53 = vadd.f32 %v26653_v11, %v14737_v55  ;;  %21621 = vmatprep.mubr.msk.f32.mxu0 %vm434_vm1, %v14917_v32  ;;  %v26729_v7 = vpop.permute.xlu0 %15849 }
 0xbae   : > { %21622 = vmatmul.mubr.msk.f32.gmra.mrb[82].mxu0 %vm434_vm1, %v14918_v30  ;;  %v14920_v12 = vadd.f32 %v14888_v39, %v14856_v29 }
 0xbaf   : > { %v14919_v17 = vadd.f32 %v14887_v24, %v14855_v53  ;;  %v21579_v0 = vpop.f32.mrb[70].mxu1 }
 0xbb0   : > { %v14858_v23 = vadd.f32 %v21579_v0, %v26653_v11  ;;  %v14747_v25 = vpop.f32.mrb[71].mxu1 }
 0xbb1   : > { %v14857_v54 = vadd.f32 %v26653_v11, %v14747_v25  ;;  %21624 = vmatprep.mubr.msk.f32.mxu0 %vm434_vm1, %v14919_v17  ;;  %v26733_v50 = vpop.permute.xlu0 %15710 }
 0xbb2   : > { %21625 = vmatmul.mubr.msk.f32.gmra.mrb[84].mxu0 %vm434_vm1, %v14920_v12  ;;  %v14922_v8 = vadd.f32 %v14890_v35, %v14858_v23 }
 0xbb3   : > { %v14921_v58 = vadd.f32 %v14889_v14, %v14857_v54  ;;  %v21582_v63 = vpop.f32.mrb[72].mxu1 }
 0xbb4   : > { %v14860_v31 = vadd.f32 %v21582_v63, %v26653_v11  ;;  %v14757_v38 = vpop.f32.mrb[73].mxu1 }
 0xbb5   : > { %v14859_v2 = vadd.f32 %v26653_v11, %v14757_v38  ;;  %21627 = vmatprep.mubr.msk.f32.mxu0 %vm434_vm1, %v14921_v58  ;;  %v26737_v20 = vpop.permute.xlu0 %15937 }
 0xbb6   : > { %21628 = vmatmul.mubr.msk.f32.gmra.mrb[86].mxu0 %vm434_vm1, %v14922_v8  ;;  %v14924_v16 = vadd.f32 %v14892_v21, %v14860_v31 }
 0xbb7   : > { %v14923_v26 = vadd.f32 %v14891_v40, %v14859_v2  ;;  %v21585_v52 = vpop.f32.mrb[74].mxu1 }
 0xbb8   : > { %v14862_v34 = vadd.f32 %v21585_v52, %v26653_v11  ;;  %v14767_v6 = vpop.f32.mrb[75].mxu1 }
 0xbb9   : > { %v14861_v3 = vadd.f32 %v26653_v11, %v14767_v6  ;;  %21630 = vmatprep.mubr.msk.f32.mxu0 %vm434_vm1, %v14923_v26  ;;  %v26741_v62 = vpop.permute.xlu0 %15957 }
 0xbba   : > { %21631 = vmatmul.mubr.msk.f32.gmra.mrb[88].mxu0 %vm434_vm1, %v14924_v16  ;;  %v14926_v51 = vadd.f32 %v14894_v41, %v14862_v34  ;;  %v26804_v34 = vld [vmem:[%s27832_s11] ss:$0 sm:$0xff] }
 0xbbb   : > { %v14925_v46 = vadd.f32 %v14893_v4, %v14861_v3  ;;  %v21588_v15 = vpop.f32.mrb[76].mxu1 }
 0xbbc   : > { %v14864_v36 = vadd.f32 %v21588_v15, %v26653_v11  ;;  %v14777_v56 = vpop.f32.mrb[77].mxu1 }
 0xbbd   : > { %v14863_v27 = vadd.f32 %v26653_v11, %v14777_v56  ;;  %21633 = vmatprep.mubr.msk.f32.mxu0 %vm434_vm1, %v14925_v46  ;;  %v26745_v45 = vpop.permute.xlu0 %15977 }
 0xbbe   : > { %21634 = vmatmul.mubr.msk.f32.gmra.mrb[90].mxu0 %vm434_vm1, %v14926_v51  ;;  %v14928_v37 = vadd.f32 %v14896_v5, %v14864_v36 }
 0xbbf   : > { %v14927_v60 = vadd.f32 %v14895_v42, %v14863_v27  ;;  %v21591_v43 = vpop.f32.mrb[78].mxu1 }
 0xbc0   : > { %v14866_v9 = vadd.f32 %v21591_v43, %v26653_v11  ;;  %v14787_v22 = vpop.f32.mrb[79].mxu1 }
 0xbc1   : > { %v14865_v13 = vadd.f32 %v26653_v11, %v14787_v22  ;;  %21636 = vmatprep.mubr.msk.f32.mxu0 %vm434_vm1, %v14927_v60  ;;  %v26727_v11 = vpop.permute.xlu1 %15854  ;;  %v26749_v49 = vpop.permute.xlu0 %15997 }
 0xbc2   : > { %21637 = vmatmul.mubr.msk.f32.gmra.mrb[92].mxu0 %vm434_vm1, %v14928_v37  ;;  %v14930_v48 = vadd.f32 %v14898_v61, %v14866_v9  ;;  %28385 = vst [vmem:[#allocation5_spill] sm:$0xff] %v26749_v49 }
 0xbc3   : > { %v14929_v28 = vadd.f32 %v14897_v10, %v14865_v13 }
 0xbc5   : > { %21639 = vmatprep.mubr.msk.f32.mxu0 %vm434_vm1, %v14929_v28  ;;  %v26731_v19 = vpop.permute.xlu1 %15715  ;;  %v26753_v29 = vpop.permute.xlu0 %16017 }
 0xbc6   : > { %21640 = vmatmul.mubr.msk.f32.gmra.mrb[94].mxu0 %vm434_vm1, %v14930_v48  ;;  %28387 = vst [vmem:[#allocation7_spill] sm:$0xff] %v26753_v29 }
 0xbc9   : > { %v26735_v33 = vpop.permute.xlu1 %15947  ;;  %v26757_v53 = vpop.permute.xlu0 %16037 }
 0xbca   : > { %28389 = vst [vmem:[#allocation26_spill] sm:$0xff] %v26757_v53 }
 0xbcd   : > { %v26739_v1 = vpop.permute.xlu1 %15967  ;;  %v26761_v39 = vpop.permute.xlu0 %16057 }
 0xbce   : > { %28391 = vst [vmem:[#allocation30_spill] sm:$0xff] %v26761_v39 }
 0xbd1   : > { %v26743_v44 = vpop.permute.xlu1 %15987  ;;  %v26765_v0 = vpop.permute.xlu0 %16077 }
 0xbd2   : > { %28383 = vst [vmem:[#allocation29_spill] sm:$0xff] %v26743_v44  ;;  %28392 = vst [vmem:[#allocation11_spill] sm:$0xff] %v26765_v0 }
 0xbd5   : > { %v26747_v32 = vpop.permute.xlu1 %16007  ;;  %v26769_v23 = vpop.permute.xlu0 %16169 }
 0xbd6   : > { %28384 = vst [vmem:[#allocation4_spill] sm:$0xff] %v26747_v32 }
 0xbd9   : > { %v26751_v30 = vpop.permute.xlu1 %16027  ;;  %v26773_v54 = vpop.permute.xlu0 %16189 }
 0xbda   : > { %28386 = vst [vmem:[#allocation6_spill] sm:$0xff] %v26751_v30 }
 0xbdd   : > { %v26755_v55 = vpop.permute.xlu1 %16047  ;;  %v26777_v35 = vpop.permute.xlu0 %16209 }
 0xbde   : > { %28388 = vst [vmem:[#allocation22_spill] sm:$0xff] %v26755_v55  ;;  %28395 = vst [vmem:[#allocation9_spill] sm:$0xff] %v26777_v35 }
 0xbe1   : > { %v26759_v24 = vpop.permute.xlu1 %16067  ;;  %v26781_v63 = vpop.permute.xlu0 %16229 }
 0xbe2   : > { %28390 = vst [vmem:[#allocation27_spill] sm:$0xff] %v26759_v24  ;;  %28397 = vst [vmem:[#allocation12_spill] sm:$0xff] %v26781_v63 }
 0xbe5   : > { %v26763_v17 = vpop.permute.xlu1 %16159  ;;  %v26785_v31 = vpop.permute.xlu0 %16249 }
 0xbe6   : > { %28399 = vst [vmem:[#allocation14_spill] sm:$0xff] %v26785_v31 }
 0xbe9   : > { %v26767_v12 = vpop.permute.xlu1 %16179  ;;  %v26789_v2 = vpop.permute.xlu0 %16269 }
 0xbea   : > { %28401 = vst [vmem:[#allocation25_spill] sm:$0xff] %v26789_v2 }
 0xbed   : > { %v26771_v25 = vpop.permute.xlu1 %16199  ;;  %v26793_v21 = vpop.permute.xlu0 %16289 }
 0xbee   : > { %28393 = vst [vmem:[#allocation21_spill] sm:$0xff] %v26771_v25  ;;  %28403 = vst [vmem:[#allocation24_spill] sm:$0xff] %v26793_v21 }
 0xbf1   : > { %v26775_v14 = vpop.permute.xlu1 %16219  ;;  %v26797_v52 = vpop.permute.xlu0 %16413 }
 0xbf2   : > { %28394 = vst [vmem:[#allocation8_spill] sm:$0xff] %v26775_v14 }
 0xbf5   : > { %v26779_v58 = vpop.permute.xlu1 %16239  ;;  %v26806_v6 = vpop.permute.xlu0 %16433 }
 0xbf6   : > { %28396 = vst [vmem:[#allocation10_spill] sm:$0xff] %v26779_v58 }
 0xbf9   : > { %v26783_v8 = vpop.permute.xlu1 %16259  ;;  %v26812_v5 = vpop.permute.xlu0 %16453 }
 0xbfa   : > { %28398 = vst [vmem:[#allocation13_spill] sm:$0xff] %v26783_v8  ;;  %28405 = vst [vmem:[#allocation18_spill] sm:$0xff] %v26812_v5 }
 0xbfd   : > { %v26787_v38 = vpop.permute.xlu1 %16279 }
 0xbfe   : > { %28400 = vst [vmem:[#allocation17_spill] sm:$0xff] %v26787_v38 }
 0xc01   : > { %v26791_v40 = vpop.permute.xlu1 %16299 }
 0xc02   : > { %28402 = vst [vmem:[#allocation23_spill] sm:$0xff] %v26791_v40 }
 0xc05   : > { %v26795_v26 = vpop.permute.xlu1 %16423 }
 0xc09   : > { %v26799_v16 = vpop.permute.xlu1 %16443 }
 0xc0d   : > { %v26809_v46 = vpop.permute.xlu1 %16463 }
 0xc0e   : > { %28404 = vst [vmem:[#allocation16_spill] sm:$0xff] %v26809_v46 }
 0xc11   : > { %v26828_v0 = vpop.permute.xlu1 %16483 }
 0xc12   : > { %28406 = vst [vmem:[#allocation19_spill] sm:$0xff] %v26828_v0 }
 0xc15   : > { %v26857_v31 = vpop.permute.xlu1 %16503 }
 0xc16   : > { %28409 = vst [vmem:[#allocation28_spill] sm:$0xff] %v26857_v31 }
 0xc5d   : > { %v21596_v3 = vpop.f32.mrb[64].mxu0 }
 0xc5e   : > { %v15110_v4 = vadd.f32 %v21596_v3, %v26804_v34  ;;  %v15104_v41 = vpop.f32.mrb[65].mxu0 }
 0xc5f   : > { %v15105_v15 = vadd.f32 %v26804_v34, %v15104_v41 }
 0xc60   : > { %v15493_v51 = vrot.slane %v15110_v4, 7  ;;  %v15752_v36 = vrot.slane %v15110_v4, 1  ;;  %v15643_v60 = vmul.f32 %v26723_v47, %v15110_v4 }
 0xc61   : > { %v15492_v56 = vrot.slane %v15105_v15, 7  ;;  %v15751_v27 = vrot.slane %v15105_v15, 1  ;;  %v21599_v42 = vpop.f32.mrb[66].mxu0  ;;  %v15642_v43 = vmul.f32 %v26719_v18, %v15105_v15  ;;  %v15718_v37 = vmul.f32 %v26733_v50, %v15105_v15 }
 0xc62   : > { %v26818_v9 = vadd.f32 %v21599_v42, %v26804_v34  ;;  %v15114_v22 = vpop.f32.mrb[67].mxu0  ;;  %v26840_v42 = vpop.permute.xlu0 %16473 }
 0xc63   : > { %v15494_v13 = vsel %vm15491_vm4, %v15492_v56, %v15493_v51  ;;  %v15587_v10 = vsel %vm15491_vm4, %v15105_v15, %v15492_v56  ;;  %v15753_v61 = vsel %vm15750_vm5, %v15751_v27, %v15752_v36  ;;  %v15115_v28 = vadd.f32 %v26804_v34, %v15114_v22  ;;  %28407 = vst [vmem:[#allocation20_spill] sm:$0xff] %v26840_v42 }
 0xc64   : > { %v15598_v48 = vmul.f32 %v26721_v57, %v15587_v10  ;;  %v15599_v3 = vmul.f32 %v26725_v59, %v15494_v13  ;;  %v15857_v41 = vmul.f32 %v26729_v7, %v15753_v61  ;;  %v28063_v40 = vrot.slane %v26818_v9, 7 }
 0xc65   : > { %v15495_v21 = vrot.slane %v15115_v28, 7  ;;  %v21602_v24 = vpop.f32.mrb[68].mxu0  ;;  %v15719_v15 = vmul.f32 %v26731_v19, %v15110_v4  ;;  %v15644_v61 = vmul.f32 %v26719_v18, %v15115_v28  ;;  %v15754_v39 = vrot.slane %v15115_v28, 1 }
 0xc66   : > { %v15674_v56 = vadd.f32 %v15642_v43, %v15598_v48  ;;  %v15675_v27 = vadd.f32 %v15643_v60, %v15599_v3  ;;  %v15889_v22 = vadd.f32 %v15857_v41, %v15718_v37  ;;  %v26833_v38 = vpop.f32.mrb[69].mxu0  ;;  %v28408_v43 = vrot.slane %v26818_v9, 1 }
 0xc67   : > { %v15496_v13 = vsel %vm15491_vm4, %v15493_v51, %v15495_v21  ;;  %v15498_v10 = vsel %vm15491_vm4, %v15495_v21, %v28063_v40  ;;  %v15645_v51 = vmul.f32 %v26723_v47, %v26818_v9  ;;  %v15755_v60 = vsel %vm15750_vm5, %v15752_v36, %v15754_v39 }
 0xc68   : > { %v16080_v2 = vmul.f32 0.0, %v15674_v56  ;;  %v16081_v55 = vmul.f32 0.0, %v15675_v27  ;;  %v16811_v8 = vmul.f32 0.0, %v15889_v22  ;;  %v15600_v4 = vmul.f32 %v26721_v57, %v15496_v13 }
 0xc69   : > { %v15601_v21 = vmul.f32 %v26725_v59, %v15498_v10  ;;  %v15757_v37 = vsel %vm15750_vm5, %v15754_v39, %v28408_v43  ;;  %v21605_v48 = vpop.f32.mrb[70].mxu0  ;;  %v15720_v58 = vmul.f32 %v26733_v50, %v15115_v28  ;;  %v15858_v10 = vmul.f32 %v26727_v11, %v15755_v60 }
 0xc6a   : > { %v16334_v3 = vadd.f32 %v16080_v2, %v15674_v56  ;;  %v16335_v41 = vadd.f32 %v16081_v55, %v15675_v27  ;;  %v16875_v13 = vadd.f32 %v16811_v8, %v15889_v22  ;;  %v15676_v40 = vadd.f32 %v15644_v61, %v15600_v4  ;;  %v26855_v53 = vpop.f32.mrb[71].mxu0 }
 0xc6b   : > { %v15677_v30 = vadd.f32 %v15645_v51, %v15601_v21  ;;  %v15859_v36 = vmul.f32 %v26729_v7, %v15757_v37  ;;  %v16082_v55 = vmul.f32 0.032258064, %v15674_v56  ;;  %v15890_v8 = vadd.f32 %v15858_v10, %v15719_v15  ;;  %v26870_v51 = vpop.permute.xlu0 %16493 }
 0xc6c   : > { %17003 = vst.msk [vmem:[%s26846_s25] sm:$0xff] %vm434_vm1, %v16334_v3  ;;  %17004 = vst.msk [vmem:[%s26846_s25 + $0x8] sm:$0xff] %vm434_vm1, %v16335_v41  ;;  %v16304_v39 = vmul.f32 0.96774197, %v15676_v40  ;;  %v16083_v61 = vmul.f32 %v26737_v20, %v15675_v27  ;;  %v16556_v60 = vmul.f32 0.516129, %v15674_v56  ;;  %v26873_v37 = vadd.f32 %v21602_v24, %v26804_v34  ;;  %v26885_v24 = vpop.permute.xlu1 %16523 }
 0xc6d   : > { %18470 = vst.msk [vmem:[%s26846_s25 + $0x10] sm:$0xff] %vm434_vm1, %v16875_v13  ;;  %v15891_v2 = vadd.f32 %v15859_v36, %v15720_v58  ;;  %v16305_v4 = vmul.f32 %v26763_v17, %v15677_v30  ;;  %v21608_v28 = vpop.f32.mrb[72].mxu0  ;;  %28410 = vst [vmem:[#allocation31_spill] sm:$0xff] %v26870_v51  ;;  %v16557_v43 = vmul.f32 0.516129, %v15675_v27  ;;  %v16812_v13 = vmul.f32 0.0, %v15890_v8 }
 0xc6e   : > { %v16336_v21 = vadd.f32 %v16304_v39, %v16082_v55  ;;  %v26875_v3 = vpop.f32.mrb[73].mxu0  ;;  %v16747_v15 = vmul.f32 0.48387095, %v15676_v40  ;;  %v16748_v58 = vmul.f32 0.48387095, %v15677_v30  ;;  %v26879_v10 = vmul.f32 %v26731_v19, %v26818_v9  ;;  %28411 = vst [vmem:[#allocation15_spill] sm:$0xff] %v26885_v24 }
 0xc6f   : > { %v16337_v41 = vadd.f32 %v16305_v4, %v16083_v61  ;;  %v26881_v36 = vmul.f32 0.06451613, %v15676_v40  ;;  %v16813_v31 = vmul.f32 0.032258064, %v15889_v22  ;;  %v16845_v55 = vmul.f32 0.96774197, %v15891_v2 }
 0xc70   : > { %17005 = vst.msk [vmem:[%s26846_s25 + $0x20] sm:$0xff] %vm434_vm1, %v16336_v21  ;;  %v26888_v56 = vmul.f32 %v26735_v33, %v15677_v30  ;;  %v16779_v27 = vadd.f32 %v16747_v15, %v16556_v60  ;;  %v16780_v39 = vadd.f32 %v16748_v58, %v16557_v43  ;;  %v16876_v61 = vadd.f32 %v16812_v13, %v15890_v8  ;;  %v26940_v13 = vpop.permute.xlu1 %16543 }
 0xc71   : > { %17006 = vst.msk [vmem:[%s26846_s25 + $0x28] sm:$0xff] %vm434_vm1, %v16337_v41  ;;  %v21611_v4 = vpop.f32.mrb[74].mxu0  ;;  %v26892_v51 = vmul.f32 0.5483871, %v15676_v40  ;;  %v16877_v0 = vadd.f32 %v16845_v55, %v16813_v31  ;;  %v26895_v21 = vmul.f32 %v26797_v52, %v15677_v30  ;;  %v26898_v24 = vmul.f32 %v26737_v20, %v15890_v8  ;;  %28415 = vst [vmem:[#allocation35_spill] sm:$0xff] %v26940_v13 }
 0xc72   : > { %v16907_v29 = vmul.f32 0.516129, %v15889_v22  ;;  %v16939_v63 = vmul.f32 0.48387095, %v15891_v2  ;;  %v26900_v42 = vmul.f32 0.06451613, %v15891_v2  ;;  %v26909_v22 = vpop.permute.xlu0 %16513  ;;  %v15125_v30 = vadd.f32 %v26804_v34, %v26833_v38 }
 0xc73   : > { %18471 = vst.msk [vmem:[%s26846_s25 + $0x18] sm:$0xff] %vm434_vm1, %v16876_v61  ;;  %18502 = vst.msk [vmem:[%s26846_s25 + $0x200] sm:$0xff] %vm434_vm1, %v16779_v27  ;;  %v15501_v40 = vrot.slane %v26873_v37, 7  ;;  %v15154_v31 = vpop.f32.mrb[75].mxu0  ;;  %v15760_v20 = vrot.slane %v26873_v37, 1  ;;  %v26917_v43 = vadd.f32 %v21605_v48, %v26804_v34  ;;  %v15647_v58 = vmul.f32 %v26723_v47, %v26873_v37 }
 0xc74   : > { %18503 = vst.msk [vmem:[%s26846_s25 + $0x208] sm:$0xff] %vm434_vm1, %v16780_v39  ;;  %28412 = vst [vmem:[#allocation32_spill] sm:$0xff] %v26909_v22  ;;  %v16971_v60 = vadd.f32 %v16939_v63, %v16907_v29  ;;  %v26919_v41 = vmul.f32 0.516129, %v15890_v8  ;;  %v26921_v15 = vmul.f32 0.5483871, %v15891_v2  ;;  %v26927_v29 = vmul.f32 %v26731_v19, %v26873_v37 }
 0xc75   : > { %18472 = vst.msk [vmem:[%s26846_s25 + $0x30] sm:$0xff] %vm434_vm1, %v16877_v0  ;;  %v26929_v0 = vpop.f32.mrb[76].mxu0  ;;  %v15499_v63 = vrot.slane %v15125_v30, 7  ;;  %v15758_v38 = vrot.slane %v15125_v30, 1  ;;  %v15135_v48 = vadd.f32 %v26804_v34, %v26855_v53  ;;  %v26936_v8 = vadd.f32 %v21608_v28, %v26804_v34 }
 0xc76   : > { %28413 = vst [vmem:[#allocation33_spill] sm:$0xff] %v26929_v0  ;;  %18534 = vst.msk [vmem:[%s26846_s25 + $0x210] sm:$0xff] %vm434_vm1, %v16971_v60  ;;  %v26938_v2 = vpop.f32.mrb[77].mxu0  ;;  %v15646_v55 = vmul.f32 %v26719_v18, %v15125_v30  ;;  %v15722_v37 = vmul.f32 %v26733_v50, %v15125_v30  ;;  %v28416_v61 = vrot.slane %v26818_v9, 7  ;;  %v28417_v28 = vrot.slane %v26818_v9, 1  ;;  %v26960_v46 = vpop.permute.xlu0 %16533 }
 0xc77   : > { %28414 = vst [vmem:[#allocation34_spill] sm:$0xff] %v26938_v2  ;;  %v15502_v53 = vsel %vm15491_vm4, %v15499_v63, %v15501_v40  ;;  %v15761_v13 = vsel %vm15750_vm5, %v15758_v38, %v15760_v20  ;;  %28419 = vst [vmem:[#allocation37_spill] sm:$0xff] %v26960_v46  ;;  %v26964_v9 = vadd.f32 %v26804_v34, %v26875_v3  ;;  %v28421_v46 = vrot.slane %v26917_v43, 7 }
 0xc78   : > { %v15500_v60 = vsel %vm15491_vm4, %v28416_v61, %v15499_v63  ;;  %v15759_v22 = vsel %vm15750_vm5, %v28417_v28, %v15758_v38  ;;  %v15603_v30 = vmul.f32 %v26725_v59, %v15502_v53  ;;  %v15861_v39 = vmul.f32 %v26729_v7, %v15761_v13 }
 0xc79   : > { %v15602_v32 = vmul.f32 %v26721_v57, %v15500_v60  ;;  %v15860_v27 = vmul.f32 %v26727_v11, %v15759_v22  ;;  %v26958_v14 = vpop.f32.mrb[78].mxu0  ;;  %v15503_v61 = vrot.slane %v15135_v48, 7  ;;  %v15762_v63 = vrot.slane %v15135_v48, 1 }
 0xc7a   : > { %28418 = vst [vmem:[#allocation36_spill] sm:$0xff] %v26958_v14  ;;  %v26967_v38 = vadd.f32 %v21611_v4, %v26804_v34  ;;  %v26969_v60 = vpop.f32.mrb[79].mxu0  ;;  %v15679_v28 = vadd.f32 %v15647_v58, %v15603_v30  ;;  %v15893_v13 = vadd.f32 %v15861_v39, %v15722_v37  ;;  %v28422_v3 = vrot.slane %v26917_v43, 1  ;;  %v26980_v14 = vpop.permute.xlu1 %16604 }
 0xc7b   : > { %28420 = vst [vmem:[#allocation38_spill] sm:$0xff] %v26969_v60  ;;  %v15678_v53 = vadd.f32 %v15646_v55, %v15602_v32  ;;  %v15892_v22 = vadd.f32 %v15860_v27, %v26879_v10  ;;  %v15504_v49 = vsel %vm15491_vm4, %v15501_v40, %v15503_v61  ;;  %v15506_v35 = vsel %vm15491_vm4, %v15503_v61, %v28421_v46 }
 0xc7c   : > { %v15763_v5 = vsel %vm15750_vm5, %v15760_v20, %v15762_v63  ;;  %v15765_v4 = vsel %vm15750_vm5, %v15762_v63, %v28422_v3  ;;  %v16307_v32 = vmul.f32 %v26769_v23, %v15679_v28  ;;  %v15649_v10 = vmul.f32 %v26723_v47, %v26917_v43  ;;  %v27001_v63 = vpop.permute.xlu0 %16553 }
 0xc7d   : > { %v16306_v60 = vmul.f32 0.9354839, %v15678_v53  ;;  %v26986_v40 = vadd.f32 %v26804_v34, %v15154_v31  ;;  %v26988_v58 = vpop.f32.mrb[80].mxu0  ;;  %v16749_v46 = vmul.f32 0.4516129, %v15678_v53  ;;  %v16750_v20 = vmul.f32 %v26980_v14, %v15679_v28  ;;  %28425 = vst [vmem:[#allocation41_spill] sm:$0xff] %v27001_v63 }
 0xc7e   : > { %28423 = vst [vmem:[#allocation39_spill] sm:$0xff] %v26988_v58  ;;  %v26993_v55 = vmul.f32 %v26731_v19, %v26917_v43  ;;  %v15648_v37 = vmul.f32 %v26719_v18, %v15135_v48  ;;  %v26996_v27 = vpop.f32.mrb[81].mxu0  ;;  %v16086_v39 = vmul.f32 0.09677419, %v15678_v53  ;;  %v16339_v31 = vadd.f32 %v16307_v32, %v26888_v56 }
 0xc7f   : > { %28424 = vst [vmem:[#allocation40_spill] sm:$0xff] %v26996_v27  ;;  %v16338_v30 = vadd.f32 %v16306_v60, %v26881_v36  ;;  %v15724_v61 = vmul.f32 %v26733_v50, %v15135_v48  ;;  %v16781_v3 = vadd.f32 %v16749_v46, %v26892_v51  ;;  %v16782_v58 = vadd.f32 %v16750_v20, %v26895_v21 }
 0xc80   : > { %v16846_v44 = vmul.f32 %v26763_v17, %v15892_v22  ;;  %v16847_v25 = vmul.f32 0.9354839, %v15893_v13  ;;  %v16087_v27 = vmul.f32 %v26741_v62, %v15679_v28  ;;  %v16560_v2 = vmul.f32 0.5806452, %v15678_v53  ;;  %17008 = vst.msk [vmem:[%s26846_s25 + $0x48] sm:$0xff] %vm434_vm1, %v16339_v31 }
 0xc81   : > { %v16940_v0 = vmul.f32 0.48387095, %v15892_v22  ;;  %v16941_v36 = vmul.f32 0.4516129, %v15893_v13  ;;  %17007 = vst.msk [vmem:[%s26846_s25 + $0x40] sm:$0xff] %vm434_vm1, %v16338_v30  ;;  %18504 = vst.msk [vmem:[%s26846_s25 + $0x220] sm:$0xff] %vm434_vm1, %v16781_v3  ;;  %v15604_v17 = vmul.f32 %v26721_v57, %v15504_v49  ;;  %v15605_v21 = vmul.f32 %v26725_v59, %v15506_v35 }
 0xc82   : > { %v16878_v56 = vadd.f32 %v16846_v44, %v26898_v24  ;;  %v16879_v51 = vadd.f32 %v16847_v25, %v26900_v42  ;;  %18505 = vst.msk [vmem:[%s26846_s25 + $0x228] sm:$0xff] %vm434_vm1, %v16782_v58  ;;  %v27019_v48 = vpop.f32.mrb[82].mxu0  ;;  %v15862_v44 = vmul.f32 %v26727_v11, %v15763_v5  ;;  %v15863_v25 = vmul.f32 %v26729_v7, %v15765_v4 }
 0xc83   : > { %v16972_v60 = vadd.f32 %v16940_v0, %v26919_v41  ;;  %v16973_v53 = vadd.f32 %v16941_v36, %v26921_v15  ;;  %v27025_v42 = vpop.f32.mrb[83].mxu0  ;;  %v16561_v24 = vmul.f32 %v26795_v26, %v15679_v28  ;;  %v16816_v49 = vmul.f32 %v26735_v33, %v15892_v22  ;;  %v27041_v28 = vpop.permute.xlu0 %16614 }
 0xc84   : > { %18473 = vst.msk [vmem:[%s26846_s25 + $0x38] sm:$0xff] %vm434_vm1, %v16878_v56  ;;  %18474 = vst.msk [vmem:[%s26846_s25 + $0x50] sm:$0xff] %vm434_vm1, %v16879_v51  ;;  %v15680_v35 = vadd.f32 %v15648_v37, %v15604_v17  ;;  %v15681_v32 = vadd.f32 %v15649_v10, %v15605_v21  ;;  %v16817_v58 = vmul.f32 0.09677419, %v15893_v13  ;;  %v16910_v41 = vmul.f32 %v26797_v52, %v15892_v22 }
 0xc85   : > { %18535 = vst.msk [vmem:[%s26846_s25 + $0x218] sm:$0xff] %vm434_vm1, %v16972_v60  ;;  %18536 = vst.msk [vmem:[%s26846_s25 + $0x230] sm:$0xff] %vm434_vm1, %v16973_v53  ;;  %v15894_v5 = vadd.f32 %v15862_v44, %v26927_v29  ;;  %v15895_v15 = vadd.f32 %v15863_v25, %v15724_v61  ;;  %v27039_v0 = vpop.f32.mrb[84].mxu0  ;;  %v16911_v33 = vmul.f32 0.5806452, %v15893_v13  ;;  %v28087_v10 = vrot.slane %v26936_v8, 7 }
 0xc86   : > { %v16308_v4 = vmul.f32 0.9032258, %v15680_v35  ;;  %v16309_v46 = vmul.f32 %v26767_v12, %v15681_v32  ;;  %v27045_v20 = vpop.f32.mrb[85].mxu0  ;;  %v16751_v52 = vmul.f32 0.41935483, %v15680_v35  ;;  %v16752_v22 = vmul.f32 %v27041_v28, %v15681_v32 }
 0xc87   : > { %v15651_v29 = vmul.f32 %v26723_v47, %v26936_v8  ;;  %v27052_v37 = vmul.f32 %v26731_v19, %v26936_v8  ;;  %v27054_v13 = vmul.f32 0.12903225, %v15680_v35  ;;  %v28086_v61 = vrot.slane %v26936_v8, 1 }
 0xc88   : > { %v16340_v30 = vadd.f32 %v16308_v4, %v16086_v39  ;;  %v16341_v31 = vadd.f32 %v16309_v46, %v16087_v27  ;;  %v16783_v3 = vadd.f32 %v16751_v52, %v16560_v2  ;;  %v16784_v36 = vadd.f32 %v16752_v22, %v16561_v24 }
 0xc89   : > { %v16848_v56 = vmul.f32 %v26769_v23, %v15894_v5  ;;  %v16849_v51 = vmul.f32 0.9032258, %v15895_v15  ;;  %v27058_v17 = vpop.f32.mrb[86].mxu0  ;;  %v16089_v21 = vmul.f32 %v26739_v1, %v15681_v32  ;;  %v16562_v60 = vmul.f32 0.61290324, %v15680_v35 }
 0xc8a   : > { %v16942_v53 = vmul.f32 %v26980_v14, %v15894_v5  ;;  %v16943_v44 = vmul.f32 0.41935483, %v15895_v15  ;;  %17009 = vst.msk [vmem:[%s26846_s25 + $0x60] sm:$0xff] %vm434_vm1, %v16340_v30  ;;  %17010 = vst.msk [vmem:[%s26846_s25 + $0x68] sm:$0xff] %vm434_vm1, %v16341_v31  ;;  %v27066_v2 = vpop.f32.mrb[87].mxu0  ;;  %v16563_v27 = vmul.f32 %v26806_v6, %v15681_v32  ;;  %v15507_v14 = vrot.slane %v26964_v9, 7 }
 0xc8b   : > { %v16880_v23 = vadd.f32 %v16848_v56, %v16816_v49  ;;  %v16881_v39 = vadd.f32 %v16849_v51, %v16817_v58  ;;  %18506 = vst.msk [vmem:[%s26846_s25 + $0x240] sm:$0xff] %vm434_vm1, %v16783_v3  ;;  %18507 = vst.msk [vmem:[%s26846_s25 + $0x248] sm:$0xff] %vm434_vm1, %v16784_v36  ;;  %v16818_v25 = vmul.f32 %v26741_v62, %v15894_v5  ;;  %v15766_v4 = vrot.slane %v26964_v9, 1 }
 0xc8c   : > { %v16974_v24 = vadd.f32 %v16942_v53, %v16910_v41  ;;  %v16975_v35 = vadd.f32 %v16943_v44, %v16911_v33  ;;  %v16819_v46 = vmul.f32 0.12903225, %v15895_v15  ;;  %v28426_v49 = vrot.slane %v26917_v43, 7 }
 0xc8d   : > { %18475 = vst.msk [vmem:[%s26846_s25 + $0x58] sm:$0xff] %vm434_vm1, %v16880_v23  ;;  %18476 = vst.msk [vmem:[%s26846_s25 + $0x70] sm:$0xff] %vm434_vm1, %v16881_v39  ;;  %v15510_v58 = vsel %vm15491_vm4, %v15507_v14, %v28087_v10  ;;  %v15650_v62 = vmul.f32 %v26719_v18, %v26964_v9  ;;  %v27088_v41 = vpop.f32.mrb[88].mxu0  ;;  %v28427_v22 = vrot.slane %v26917_v43, 1  ;;  %v15769_v31 = vsel %vm15750_vm5, %v15766_v4, %v28086_v61 }
 0xc8e   : > { %v15508_v32 = vsel %vm15491_vm4, %v28426_v49, %v15507_v14  ;;  %18537 = vst.msk [vmem:[%s26846_s25 + $0x238] sm:$0xff] %vm434_vm1, %v16974_v24  ;;  %18538 = vst.msk [vmem:[%s26846_s25 + $0x250] sm:$0xff] %vm434_vm1, %v16975_v35  ;;  %v15607_v52 = vmul.f32 %v26725_v59, %v15510_v58  ;;  %v27102_v3 = vpop.f32.mrb[89].mxu0  ;;  %v16912_v36 = vmul.f32 %v26795_v26, %v15894_v5  ;;  %v16913_v44 = vmul.f32 0.61290324, %v15895_v15  ;;  %v27119_v5 = vpop.permute.xlu1 %16624 }
 0xc8f   : > { %v15606_v33 = vmul.f32 %v26721_v57, %v15508_v32  ;;  %v15767_v30 = vsel %vm15750_vm5, %v28427_v22, %v15766_v4  ;;  %v15726_v56 = vmul.f32 %v26733_v50, %v26964_v9  ;;  %v15865_v53 = vmul.f32 %v26729_v7, %v15769_v31 }
 0xc90   : > { %v15864_v51 = vmul.f32 %v26727_v11, %v15767_v30  ;;  %v15683_v43 = vadd.f32 %v15651_v29, %v15607_v52  ;;  %v15653_v35 = vmul.f32 %v26723_v47, %v26967_v38  ;;  %v27115_v26 = vmul.f32 %v26731_v19, %v26967_v38 }
 0xc91   : > { %v15682_v23 = vadd.f32 %v15650_v62, %v15606_v33  ;;  %v15897_v24 = vadd.f32 %v15865_v53, %v15726_v56  ;;  %v27117_v9 = vpop.f32.mrb[90].mxu0  ;;  %v15511_v49 = vrot.slane %v26986_v40, 7  ;;  %v15652_v62 = vmul.f32 %v26719_v18, %v26986_v40 }
 0xc92   : > { %v15896_v14 = vadd.f32 %v15864_v51, %v26993_v55  ;;  %v16311_v15 = vmul.f32 %v26773_v54, %v15683_v43  ;;  %v27124_v55 = vpop.f32.mrb[91].mxu0  ;;  %v16754_v58 = vmul.f32 %v27119_v5, %v15683_v43  ;;  %v15728_v33 = vmul.f32 %v26733_v50, %v26986_v40 }
 0xc93   : > { %v16310_v4 = vmul.f32 0.87096775, %v15682_v23  ;;  %28428 = vst [vmem:[#allocation42_spill] sm:$0xff] %v27124_v55  ;;  %v16753_v32 = vmul.f32 0.38709676, %v15682_v23  ;;  %v15770_v31 = vrot.slane %v26986_v40, 1  ;;  %v16091_v39 = vmul.f32 %v26745_v45, %v15683_v43 }
 0xc94   : > { %v16090_v52 = vmul.f32 0.16129032, %v15682_v23  ;;  %v16343_v30 = vadd.f32 %v16311_v15, %v16089_v21  ;;  %v16786_v51 = vadd.f32 %v16754_v58, %v16563_v27  ;;  %v16850_v53 = vmul.f32 %v26767_v12, %v15896_v14 }
 0xc95   : > { %v16342_v22 = vadd.f32 %v16310_v4, %v27054_v13  ;;  %v16785_v56 = vadd.f32 %v16753_v32, %v16562_v60  ;;  %v16851_v29 = vmul.f32 0.87096775, %v15897_v24  ;;  %v27134_v61 = vpop.f32.mrb[92].mxu0  ;;  %v16564_v10 = vmul.f32 0.6451613, %v15682_v23 }
 0xc96   : > { %v16944_v63 = vmul.f32 %v27041_v28, %v15896_v14  ;;  %v16945_v55 = vmul.f32 0.38709676, %v15897_v24  ;;  %17012 = vst.msk [vmem:[%s26846_s25 + $0x88] sm:$0xff] %vm434_vm1, %v16343_v30  ;;  %v27142_v40 = vpop.f32.mrb[93].mxu0  ;;  %v16882_v13 = vadd.f32 %v16850_v53, %v16818_v25  ;;  %18509 = vst.msk [vmem:[%s26846_s25 + $0x268] sm:$0xff] %vm434_vm1, %v16786_v51  ;;  %v28429_v12 = vrot.slane %v26936_v8, 7 }
 0xc97   : > { %17011 = vst.msk [vmem:[%s26846_s25 + $0x80] sm:$0xff] %vm434_vm1, %v16342_v22  ;;  %v16883_v21 = vadd.f32 %v16851_v29, %v16819_v46  ;;  %18508 = vst.msk [vmem:[%s26846_s25 + $0x260] sm:$0xff] %vm434_vm1, %v16785_v56  ;;  %v28430_v60 = vrot.slane %v26967_v38, 7  ;;  %v16565_v46 = vmul.f32 %v26799_v16, %v15683_v43  ;;  %v28431_v29 = vrot.slane %v26936_v8, 1 }
 0xc98   : > { %v15512_v28 = vsel %vm15491_vm4, %v28429_v12, %v15511_v49  ;;  %v16976_v23 = vadd.f32 %v16944_v63, %v16912_v36  ;;  %v16977_v4 = vadd.f32 %v16945_v55, %v16913_v44  ;;  %18477 = vst.msk [vmem:[%s26846_s25 + $0x78] sm:$0xff] %vm434_vm1, %v16882_v13  ;;  %v28432_v58 = vrot.slane %v26967_v38, 1  ;;  %v28433_v63 = vld [vmem:[#allocation33_spill] sm:$0xff] }
 0xc99   : > { %v15514_v27 = vsel %vm15491_vm4, %v15511_v49, %v28430_v60  ;;  %v15608_v15 = vmul.f32 %v26721_v57, %v15512_v28  ;;  %18478 = vst.msk [vmem:[%s26846_s25 + $0x90] sm:$0xff] %vm434_vm1, %v16883_v21  ;;  %v15771_v32 = vsel %vm15750_vm5, %v28431_v29, %v15770_v31  ;;  %v27169_v36 = vadd.f32 %v28433_v63, %v26804_v34  ;;  %v27171_v44 = vpop.f32.mrb[94].mxu0  ;;  %v28436_v28 = vld [vmem:[#allocation34_spill] sm:$0xff] }
 0xc9a   : > { %v15609_v25 = vmul.f32 %v26725_v59, %v15514_v27  ;;  %v15773_v49 = vsel %vm15750_vm5, %v15770_v31, %v28432_v58  ;;  %28434 = vst [vmem:[#allocation33_spill] sm:$0xff] %v27171_v44  ;;  %18539 = vst.msk [vmem:[%s26846_s25 + $0x258] sm:$0xff] %vm434_vm1, %v16976_v23  ;;  %v15866_v8 = vmul.f32 %v26727_v11, %v15771_v32  ;;  %v27179_v30 = vpop.f32.mrb[95].mxu0  ;;  %v16821_v56 = vmul.f32 0.16129032, %v15897_v24  ;;  %v28437_v27 = vld [vmem:[#allocation21_spill] sm:$0xff] }
 0xc9b   : > { %18540 = vst.msk [vmem:[%s26846_s25 + $0x270] sm:$0xff] %vm434_vm1, %v16977_v4  ;;  %v15684_v43 = vadd.f32 %v15652_v62, %v15608_v15  ;;  %v15867_v22 = vmul.f32 %v26729_v7, %v15773_v49  ;;  %28435 = vst [vmem:[#allocation43_spill] sm:$0xff] %v27179_v30  ;;  %v16820_v31 = vmul.f32 %v26739_v1, %v15896_v14  ;;  %v16915_v53 = vmul.f32 0.6451613, %v15897_v24  ;;  %v27187_v62 = vpop.permute.xlu0 %16634  ;;  %v28438_v32 = vld [vmem:[#allocation29_spill] sm:$0xff] }
 0xc9c   : > { %v15685_v55 = vadd.f32 %v15653_v35, %v15609_v25  ;;  %v16914_v51 = vmul.f32 %v26806_v6, %v15896_v14  ;;  %v15898_v13 = vadd.f32 %v15866_v8, %v27052_v37  ;;  %v15165_v35 = vadd.f32 %v26804_v34, %v28436_v28 }
 0xc9d   : > { %v15899_v21 = vadd.f32 %v15867_v22, %v15728_v33  ;;  %v16312_v60 = vmul.f32 0.8387097, %v15684_v43  ;;  %v15655_v1 = vmul.f32 %v26723_v47, %v27169_v36  ;;  %v27194_v6 = vmul.f32 %v26731_v19, %v27169_v36 }
 0xc9e   : > { %v16313_v23 = vmul.f32 %v28437_v27, %v15685_v55  ;;  %v16092_v14 = vmul.f32 0.19354838, %v15684_v43  ;;  %v16755_v37 = vmul.f32 0.3548387, %v15684_v43  ;;  %v16756_v24 = vmul.f32 %v27187_v62, %v15685_v55 }
 0xc9f   : > { %v28089_v33 = vrot.slane %v27169_v36, 1  ;;  %v16344_v4 = vadd.f32 %v16312_v60, %v16090_v52  ;;  %v16852_v25 = vmul.f32 %v26773_v54, %v15898_v13  ;;  %v16853_v29 = vmul.f32 0.8387097, %v15899_v21 }
 0xca0   : > { %v16345_v15 = vadd.f32 %v16313_v23, %v16091_v39  ;;  %v16093_v58 = vmul.f32 %v28438_v32, %v15685_v55  ;;  %v16566_v49 = vmul.f32 0.67741936, %v15684_v43  ;;  %v16787_v63 = vadd.f32 %v16755_v37, %v16564_v10 }
 0xca1   : > { %v16788_v8 = vadd.f32 %v16756_v24, %v16565_v46  ;;  %v16884_v22 = vadd.f32 %v16852_v25, %v16820_v31  ;;  %v16885_v28 = vadd.f32 %v16853_v29, %v16821_v56  ;;  %v16946_v12 = vmul.f32 %v27119_v5, %v15898_v13  ;;  %17013 = vst.msk [vmem:[%s26846_s25 + $0xa0] sm:$0xff] %vm434_vm1, %v16344_v4  ;;  %v28439_v5 = vld [vmem:[#allocation36_spill] sm:$0xff]  ;;  %v28440_v56 = vld [vmem:[#allocation38_spill] sm:$0xff] }
 0xca2   : > { %v16947_v30 = vmul.f32 0.3548387, %v15899_v21  ;;  %17014 = vst.msk [vmem:[%s26846_s25 + $0xa8] sm:$0xff] %vm434_vm1, %v16345_v15  ;;  %18510 = vst.msk [vmem:[%s26846_s25 + $0x280] sm:$0xff] %vm434_vm1, %v16787_v63  ;;  %v15515_v54 = vrot.slane %v15165_v35, 7  ;;  %v15654_v10 = vmul.f32 %v26719_v18, %v15165_v35  ;;  %v15730_v39 = vmul.f32 %v26733_v50, %v15165_v35  ;;  %v28444_v29 = vld [vmem:[#allocation18_spill] sm:$0xff] }
 0xca3   : > { %18511 = vst.msk [vmem:[%s26846_s25 + $0x288] sm:$0xff] %vm434_vm1, %v16788_v8  ;;  %v15774_v52 = vrot.slane %v15165_v35, 1  ;;  %v16978_v46 = vadd.f32 %v16946_v12, %v16914_v51  ;;  %18479 = vst.msk [vmem:[%s26846_s25 + $0x98] sm:$0xff] %vm434_vm1, %v16884_v22  ;;  %v27217_v31 = vadd.f32 %v28439_v5, %v26804_v34  ;;  %v15175_v60 = vadd.f32 %v26804_v34, %v28440_v56 }
 0xca4   : > { %v16979_v43 = vadd.f32 %v16947_v30, %v16915_v53  ;;  %18480 = vst.msk [vmem:[%s26846_s25 + $0xb0] sm:$0xff] %vm434_vm1, %v16885_v28  ;;  %v28441_v23 = vrot.slane %v26967_v38, 7  ;;  %v28442_v24 = vrot.slane %v27169_v36, 7  ;;  %v28443_v30 = vrot.slane %v26967_v38, 1 }
 0xca5   : > { %v15777_v12 = vsel %vm15750_vm5, %v15774_v52, %v28089_v33  ;;  %18541 = vst.msk [vmem:[%s26846_s25 + $0x278] sm:$0xff] %vm434_vm1, %v16978_v46  ;;  %v16567_v38 = vmul.f32 %v28444_v29, %v15685_v55  ;;  %v16822_v63 = vmul.f32 %v26745_v45, %v15898_v13  ;;  %v16823_v8 = vmul.f32 0.19354838, %v15899_v21  ;;  %v27252_v55 = vpop.permute.xlu1 %16644 }
 0xca6   : > { %v15516_v37 = vsel %vm15491_vm4, %v28441_v23, %v15515_v54  ;;  %v15518_v51 = vsel %vm15491_vm4, %v15515_v54, %v28442_v24  ;;  %v15775_v53 = vsel %vm15750_vm5, %v28443_v30, %v15774_v52  ;;  %18542 = vst.msk [vmem:[%s26846_s25 + $0x290] sm:$0xff] %vm434_vm1, %v16979_v43  ;;  %v15869_v25 = vmul.f32 %v26729_v7, %v15777_v12 }
 0xca7   : > { %v15610_v35 = vmul.f32 %v26721_v57, %v15516_v37  ;;  %v15611_v4 = vmul.f32 %v26725_v59, %v15518_v51  ;;  %v15868_v15 = vmul.f32 %v26727_v11, %v15775_v53  ;;  %v16916_v22 = vmul.f32 %v26799_v16, %v15898_v13  ;;  %v28445_v37 = vld [vmem:[#allocation9_spill] sm:$0xff] }
 0xca8   : > { %v15901_v46 = vadd.f32 %v15869_v25, %v15730_v39  ;;  %v16917_v43 = vmul.f32 0.67741936, %v15899_v21  ;;  %v15657_v56 = vmul.f32 %v26723_v47, %v27217_v31  ;;  %v27250_v23 = vmul.f32 %v26731_v19, %v27217_v31  ;;  %v28446_v25 = vld [vmem:[#allocation5_spill] sm:$0xff] }
 0xca9   : > { %v15686_v28 = vadd.f32 %v15654_v10, %v15610_v35  ;;  %v15687_v54 = vadd.f32 %v15655_v1, %v15611_v4  ;;  %v15900_v52 = vadd.f32 %v15868_v15, %v27115_v26  ;;  %v15519_v1 = vrot.slane %v15175_v60, 7 }
 0xcaa   : > { %v15656_v10 = vmul.f32 %v26719_v18, %v15175_v60  ;;  %v15732_v39 = vmul.f32 %v26733_v50, %v15175_v60  ;;  %v15778_v53 = vrot.slane %v15175_v60, 1  ;;  %v16855_v15 = vmul.f32 0.8064516, %v15901_v46 }
 0xcab   : > { %v16314_v45 = vmul.f32 0.8064516, %v15686_v28  ;;  %v16315_v16 = vmul.f32 %v28445_v37, %v15687_v54  ;;  %v16757_v26 = vmul.f32 0.32258064, %v15686_v28  ;;  %v16758_v21 = vmul.f32 %v27252_v55, %v15687_v54 }
 0xcac   : > { %v16094_v24 = vmul.f32 0.22580644, %v15686_v28  ;;  %v16854_v4 = vmul.f32 %v28437_v27, %v15900_v52  ;;  %v16095_v13 = vmul.f32 %v28446_v25, %v15687_v54  ;;  %v16568_v33 = vmul.f32 0.70967746, %v15686_v28 }
 0xcad   : > { %v16346_v51 = vadd.f32 %v16314_v45, %v16092_v14  ;;  %v16347_v30 = vadd.f32 %v16315_v16, %v16093_v58  ;;  %v16789_v12 = vadd.f32 %v16757_v26, %v16566_v49  ;;  %v16790_v35 = vadd.f32 %v16758_v21, %v16567_v38 }
 0xcae   : > { %v16948_v5 = vmul.f32 %v27187_v62, %v15900_v52  ;;  %v16949_v44 = vmul.f32 0.32258064, %v15901_v46  ;;  %v16886_v14 = vadd.f32 %v16854_v4, %v16822_v63  ;;  %v16887_v58 = vadd.f32 %v16855_v15, %v16823_v8  ;;  %v28449_v8 = vld [vmem:[#allocation16_spill] sm:$0xff] }
 0xcaf   : > { %17015 = vst.msk [vmem:[%s26846_s25 + $0xc0] sm:$0xff] %vm434_vm1, %v16346_v51  ;;  %17016 = vst.msk [vmem:[%s26846_s25 + $0xc8] sm:$0xff] %vm434_vm1, %v16347_v30  ;;  %v28447_v27 = vrot.slane %v27169_v36, 7  ;;  %v28448_v62 = vrot.slane %v27217_v31, 7  ;;  %v16569_v16 = vmul.f32 %v28449_v8, %v15687_v54  ;;  %v28450_v26 = vrot.slane %v27169_v36, 1 }
 0xcb0   : > { %18512 = vst.msk [vmem:[%s26846_s25 + $0x2a0] sm:$0xff] %vm434_vm1, %v16789_v12  ;;  %18513 = vst.msk [vmem:[%s26846_s25 + $0x2a8] sm:$0xff] %vm434_vm1, %v16790_v35  ;;  %v16980_v38 = vadd.f32 %v16948_v5, %v16916_v22  ;;  %v16981_v28 = vadd.f32 %v16949_v44, %v16917_v43  ;;  %v28451_v51 = vrot.slane %v27217_v31, 1  ;;  %v28452_v44 = vld [vmem:[#allocation39_spill] sm:$0xff]  ;;  %v16824_v30 = vmul.f32 %v28438_v32, %v15900_v52 }
 0xcb1   : > { %v15520_v49 = vsel %vm15491_vm4, %v28447_v27, %v15519_v1  ;;  %v15522_v60 = vsel %vm15491_vm4, %v15519_v1, %v28448_v62  ;;  %18481 = vst.msk [vmem:[%s26846_s25 + $0xb8] sm:$0xff] %vm434_vm1, %v16886_v14  ;;  %18482 = vst.msk [vmem:[%s26846_s25 + $0xd0] sm:$0xff] %vm434_vm1, %v16887_v58  ;;  %v15779_v21 = vsel %vm15750_vm5, %v28450_v26, %v15778_v53  ;;  %v16825_v12 = vmul.f32 0.22580644, %v15901_v46  ;;  %v28453_v58 = vld [vmem:[#allocation40_spill] sm:$0xff] }
 0xcb2   : > { %v15612_v45 = vmul.f32 %v26721_v57, %v15520_v49  ;;  %v15613_v63 = vmul.f32 %v26725_v59, %v15522_v60  ;;  %v15781_v1 = vsel %vm15750_vm5, %v15778_v53, %v28451_v51  ;;  %v27291_v22 = vadd.f32 %v28452_v44, %v26804_v34  ;;  %18543 = vst.msk [vmem:[%s26846_s25 + $0x298] sm:$0xff] %vm434_vm1, %v16980_v38  ;;  %v28454_v49 = vld [vmem:[#allocation8_spill] sm:$0xff] }
 0xcb3   : > { %18544 = vst.msk [vmem:[%s26846_s25 + $0x2b0] sm:$0xff] %vm434_vm1, %v16981_v28  ;;  %v15870_v5 = vmul.f32 %v26727_v11, %v15779_v21  ;;  %v15871_v36 = vmul.f32 %v26729_v7, %v15781_v1  ;;  %v16918_v35 = vmul.f32 %v28444_v29, %v15900_v52  ;;  %v16919_v53 = vmul.f32 0.70967746, %v15901_v46 }
 0xcb4   : > { %v15688_v54 = vadd.f32 %v15656_v10, %v15612_v45  ;;  %v15689_v43 = vadd.f32 %v15657_v56, %v15613_v63  ;;  %v15525_v14 = vrot.slane %v27291_v22, 7  ;;  %v15185_v27 = vadd.f32 %v26804_v34, %v28453_v58  ;;  %v27305_v10 = vpop.permute.xlu0 %16654  ;;  %v28455_v63 = vld [vmem:[#allocation4_spill] sm:$0xff] }
 0xcb5   : > { %v15902_v4 = vadd.f32 %v15870_v5, %v27194_v6  ;;  %v15903_v15 = vadd.f32 %v15871_v36, %v15732_v39  ;;  %v15659_v32 = vmul.f32 %v26723_v47, %v27291_v22  ;;  %v27312_v29 = vmul.f32 %v26731_v19, %v27291_v22 }
 0xcb6   : > { %v16316_v56 = vmul.f32 0.7741935, %v15688_v54  ;;  %v16317_v62 = vmul.f32 %v28454_v49, %v15689_v43  ;;  %v16096_v52 = vmul.f32 0.2580645, %v15688_v54  ;;  %v16759_v6 = vmul.f32 0.29032257, %v15688_v54 }
 0xcb7   : > { %v16760_v46 = vmul.f32 %v27305_v10, %v15689_v43  ;;  %v15784_v39 = vrot.slane %v27291_v22, 1  ;;  %v16856_v28 = vmul.f32 %v28445_v37, %v15902_v4  ;;  %v16857_v45 = vmul.f32 0.7741935, %v15903_v15 }
 0xcb8   : > { %v16348_v60 = vadd.f32 %v16316_v56, %v16094_v24  ;;  %v16349_v38 = vadd.f32 %v16317_v62, %v16095_v13  ;;  %v16097_v26 = vmul.f32 %v28455_v63, %v15689_v43  ;;  %v16570_v21 = vmul.f32 0.7419355, %v15688_v54 }
 0xcb9   : > { %v16791_v51 = vadd.f32 %v16759_v6, %v16568_v33  ;;  %v16792_v1 = vadd.f32 %v16760_v46, %v16569_v16  ;;  %v16888_v44 = vadd.f32 %v16856_v28, %v16824_v30  ;;  %v16889_v5 = vadd.f32 %v16857_v45, %v16825_v12  ;;  %v28458_v46 = vld [vmem:[#allocation20_spill] sm:$0xff] }
 0xcba   : > { %v16950_v36 = vmul.f32 %v27252_v55, %v15902_v4  ;;  %v16951_v58 = vmul.f32 0.29032257, %v15903_v15  ;;  %17017 = vst.msk [vmem:[%s26846_s25 + $0xe0] sm:$0xff] %vm434_vm1, %v16348_v60  ;;  %17018 = vst.msk [vmem:[%s26846_s25 + $0xe8] sm:$0xff] %vm434_vm1, %v16349_v38  ;;  %v15523_v37 = vrot.slane %v15185_v27, 7  ;;  %v15658_v33 = vmul.f32 %v26719_v18, %v15185_v27 }
 0xcbb   : > { %18514 = vst.msk [vmem:[%s26846_s25 + $0x2c0] sm:$0xff] %vm434_vm1, %v16791_v51  ;;  %18515 = vst.msk [vmem:[%s26846_s25 + $0x2c8] sm:$0xff] %vm434_vm1, %v16792_v1  ;;  %v15734_v13 = vmul.f32 %v26733_v50, %v15185_v27  ;;  %v15782_v24 = vrot.slane %v15185_v27, 1  ;;  %v27335_v55 = vadd.f32 %v27019_v48, %v26804_v34  ;;  %v15195_v30 = vadd.f32 %v26804_v34, %v27025_v42 }
 0xcbc   : > { %v16982_v16 = vadd.f32 %v16950_v36, %v16918_v35  ;;  %v16983_v54 = vadd.f32 %v16951_v58, %v16919_v53  ;;  %18483 = vst.msk [vmem:[%s26846_s25 + $0xd8] sm:$0xff] %vm434_vm1, %v16888_v44  ;;  %18484 = vst.msk [vmem:[%s26846_s25 + $0xf0] sm:$0xff] %vm434_vm1, %v16889_v5  ;;  %v28456_v12 = vrot.slane %v27217_v31, 7  ;;  %v15526_v35 = vsel %vm15491_vm4, %v15523_v37, %v15525_v14 }
 0xcbd   : > { %v28457_v53 = vrot.slane %v27217_v31, 1  ;;  %v15785_v48 = vsel %vm15750_vm5, %v15782_v24, %v15784_v39  ;;  %v15615_v42 = vmul.f32 %v26725_v59, %v15526_v35  ;;  %v16571_v31 = vmul.f32 %v28458_v46, %v15689_v43  ;;  %v27370_v43 = vpop.permute.xlu1 %16664 }
 0xcbe   : > { %v15524_v56 = vsel %vm15491_vm4, %v28456_v12, %v15523_v37  ;;  %18545 = vst.msk [vmem:[%s26846_s25 + $0x2b8] sm:$0xff] %vm434_vm1, %v16982_v16  ;;  %18546 = vst.msk [vmem:[%s26846_s25 + $0x2d0] sm:$0xff] %vm434_vm1, %v16983_v54  ;;  %v15873_v6 = vmul.f32 %v26729_v7, %v15785_v48  ;;  %v16826_v60 = vmul.f32 %v28446_v25, %v15902_v4  ;;  %v16827_v38 = vmul.f32 0.2580645, %v15903_v15 }
 0xcbf   : > { %v15783_v27 = vsel %vm15750_vm5, %v28457_v53, %v15782_v24  ;;  %v15614_v34 = vmul.f32 %v26721_v57, %v15524_v56  ;;  %v16920_v28 = vmul.f32 %v28449_v8, %v15902_v4  ;;  %v15691_v51 = vadd.f32 %v15659_v32, %v15615_v42  ;;  %v28459_v24 = vld [vmem:[#allocation12_spill] sm:$0xff] }
 0xcc0   : > { %v15872_v62 = vmul.f32 %v26727_v11, %v15783_v27  ;;  %v15905_v44 = vadd.f32 %v15873_v6, %v15734_v13  ;;  %v16921_v5 = vmul.f32 0.7419355, %v15903_v15  ;;  %v15529_v36 = vrot.slane %v27335_v55, 7 }
 0xcc1   : > { %v15690_v45 = vadd.f32 %v15658_v33, %v15614_v34  ;;  %v15661_v58 = vmul.f32 %v26723_v47, %v27335_v55  ;;  %v27368_v37 = vmul.f32 %v26731_v19, %v27335_v55  ;;  %v16319_v8 = vmul.f32 %v28459_v24, %v15691_v51  ;;  %v28460_v34 = vld [vmem:[#allocation7_spill] sm:$0xff] }
 0xcc2   : > { %v15904_v1 = vadd.f32 %v15872_v62, %v27250_v23  ;;  %v15527_v32 = vrot.slane %v15195_v30, 7  ;;  %v16762_v15 = vmul.f32 %v27370_v43, %v15691_v51  ;;  %v15660_v33 = vmul.f32 %v26719_v18, %v15195_v30 }
 0xcc3   : > { %v16318_v25 = vmul.f32 0.7419355, %v15690_v45  ;;  %v16761_v23 = vmul.f32 0.2580645, %v15690_v45  ;;  %v15736_v13 = vmul.f32 %v26733_v50, %v15195_v30  ;;  %v16098_v16 = vmul.f32 0.29032257, %v15690_v45 }
 0xcc4   : > { %v16351_v12 = vadd.f32 %v16319_v8, %v16097_v26  ;;  %v15786_v56 = vrot.slane %v15195_v30, 1  ;;  %v16794_v53 = vadd.f32 %v16762_v15, %v16571_v31  ;;  %v16858_v27 = vmul.f32 %v28454_v49, %v15904_v1 }
 0xcc5   : > { %v16350_v54 = vadd.f32 %v16318_v25, %v16096_v52  ;;  %v16793_v35 = vadd.f32 %v16761_v23, %v16570_v21  ;;  %v16859_v48 = vmul.f32 0.7419355, %v15905_v44  ;;  %v16099_v42 = vmul.f32 %v28460_v34, %v15691_v51 }
 0xcc6   : > { %v16572_v62 = vmul.f32 0.7741935, %v15690_v45  ;;  %v16952_v6 = vmul.f32 %v27305_v10, %v15904_v1  ;;  %v16953_v4 = vmul.f32 0.2580645, %v15905_v44  ;;  %17020 = vst.msk [vmem:[%s26846_s25 + $0x108] sm:$0xff] %vm434_vm1, %v16351_v12  ;;  %v16890_v52 = vadd.f32 %v16858_v27, %v16826_v60  ;;  %18517 = vst.msk [vmem:[%s26846_s25 + $0x2e8] sm:$0xff] %vm434_vm1, %v16794_v53 }
 0xcc7   : > { %17019 = vst.msk [vmem:[%s26846_s25 + $0x100] sm:$0xff] %vm434_vm1, %v16350_v54  ;;  %v16891_v26 = vadd.f32 %v16859_v48, %v16827_v38  ;;  %18516 = vst.msk [vmem:[%s26846_s25 + $0x2e0] sm:$0xff] %vm434_vm1, %v16793_v35  ;;  %v15528_v49 = vsel %vm15491_vm4, %v15525_v14, %v15527_v32  ;;  %v15530_v10 = vsel %vm15491_vm4, %v15527_v32, %v15529_v36  ;;  %v28461_v38 = vld [vmem:[#allocation19_spill] sm:$0xff]  ;;  %v28462_v25 = vrot.slane %v27335_v55, 1  ;;  %v28463_v53 = vld [vmem:[#allocation10_spill] sm:$0xff] }
 0xcc8   : > { %v16984_v21 = vadd.f32 %v16952_v6, %v16920_v28  ;;  %v16985_v30 = vadd.f32 %v16953_v4, %v16921_v5  ;;  %v15616_v31 = vmul.f32 %v26721_v57, %v15528_v49  ;;  %v15617_v60 = vmul.f32 %v26725_v59, %v15530_v10  ;;  %18485 = vst.msk [vmem:[%s26846_s25 + $0xf8] sm:$0xff] %vm434_vm1, %v16890_v52  ;;  %v27410_v28 = vld [vmem:[%s27832_s11] ss:$0 sm:$0xff] }
 0xcc9   : > { %v16573_v45 = vmul.f32 %v28461_v38, %v15691_v51  ;;  %18486 = vst.msk [vmem:[%s26846_s25 + $0x110] sm:$0xff] %vm434_vm1, %v16891_v26  ;;  %v15787_v14 = vsel %vm15750_vm5, %v15784_v39, %v15786_v56  ;;  %v15789_v8 = vsel %vm15750_vm5, %v15786_v56, %v28462_v25  ;;  %v27414_v51 = vadd.f32 %v27410_v28, %v27039_v0  ;;  %v28464_v26 = vld [vmem:[#allocation6_spill] sm:$0xff] }
 0xcca   : > { %18547 = vst.msk [vmem:[%s26846_s25 + $0x2d8] sm:$0xff] %vm434_vm1, %v16984_v21  ;;  %18548 = vst.msk [vmem:[%s26846_s25 + $0x2f0] sm:$0xff] %vm434_vm1, %v16985_v30  ;;  %v15692_v22 = vadd.f32 %v15660_v33, %v15616_v31  ;;  %v15693_v5 = vadd.f32 %v15661_v58, %v15617_v60  ;;  %v15874_v39 = vmul.f32 %v26727_v11, %v15787_v14  ;;  %v16829_v23 = vmul.f32 0.29032257, %v15905_v44  ;;  %v27428_v33 = vpop.permute.xlu0 %16674 }
 0xccb   : > { %v15875_v4 = vmul.f32 %v26729_v7, %v15789_v8  ;;  %v16828_v32 = vmul.f32 %v28455_v63, %v15904_v1  ;;  %v16922_v15 = vmul.f32 %v28458_v46, %v15904_v1  ;;  %v16923_v54 = vmul.f32 0.7741935, %v15905_v44 }
 0xccc   : > { %v15906_v12 = vadd.f32 %v15874_v39, %v27312_v29  ;;  %v15533_v56 = vrot.slane %v27414_v51, 7  ;;  %v15205_v35 = vadd.f32 %v27410_v28, %v27045_v20  ;;  %v16320_v58 = vmul.f32 0.70967746, %v15692_v22 }
 0xccd   : > { %v15907_v0 = vadd.f32 %v15875_v4, %v15736_v13  ;;  %v16321_v27 = vmul.f32 %v28463_v53, %v15693_v5  ;;  %v15663_v63 = vmul.f32 %v26723_v47, %v27414_v51  ;;  %v27435_v46 = vmul.f32 %v26731_v19, %v27414_v51 }
 0xcce   : > { %v16100_v1 = vmul.f32 0.32258064, %v15692_v22  ;;  %v16763_v29 = vmul.f32 0.22580644, %v15692_v22  ;;  %v16764_v44 = vmul.f32 %v27428_v33, %v15693_v5  ;;  %v15792_v20 = vrot.slane %v27414_v51, 1 }
 0xccf   : > { %v16352_v13 = vadd.f32 %v16320_v58, %v16098_v16  ;;  %v16353_v48 = vadd.f32 %v16321_v27, %v16099_v42  ;;  %v16860_v6 = vmul.f32 %v28459_v24, %v15906_v12  ;;  %v16861_v52 = vmul.f32 0.70967746, %v15907_v0 }
 0xcd0   : > { %v16101_v49 = vmul.f32 %v28464_v26, %v15693_v5  ;;  %v16574_v10 = vmul.f32 0.8064516, %v15692_v22  ;;  %v16795_v21 = vadd.f32 %v16763_v29, %v16572_v62  ;;  %v16796_v30 = vadd.f32 %v16764_v44, %v16573_v45 }
 0xcd1   : > { %v16892_v31 = vadd.f32 %v16860_v6, %v16828_v32  ;;  %v16893_v60 = vadd.f32 %v16861_v52, %v16829_v23  ;;  %v16954_v14 = vmul.f32 %v27370_v43, %v15906_v12  ;;  %v16955_v25 = vmul.f32 0.22580644, %v15907_v0  ;;  %17021 = vst.msk [vmem:[%s26846_s25 + $0x120] sm:$0xff] %vm434_vm1, %v16352_v13  ;;  %17022 = vst.msk [vmem:[%s26846_s25 + $0x128] sm:$0xff] %vm434_vm1, %v16353_v48 }
 0xcd2   : > { %18518 = vst.msk [vmem:[%s26846_s25 + $0x300] sm:$0xff] %vm434_vm1, %v16795_v21  ;;  %18519 = vst.msk [vmem:[%s26846_s25 + $0x308] sm:$0xff] %vm434_vm1, %v16796_v30  ;;  %v15531_v24 = vrot.slane %v15205_v35, 7  ;;  %v15662_v16 = vmul.f32 %v26719_v18, %v15205_v35  ;;  %v15738_v42 = vmul.f32 %v26733_v50, %v15205_v35  ;;  %v15790_v62 = vrot.slane %v15205_v35, 1  ;;  %v28466_v35 = vld [vmem:[#allocation31_spill] sm:$0xff] }
 0xcd3   : > { %v16986_v45 = vadd.f32 %v16954_v14, %v16922_v15  ;;  %v16987_v8 = vadd.f32 %v16955_v25, %v16923_v54  ;;  %18487 = vst.msk [vmem:[%s26846_s25 + $0x118] sm:$0xff] %vm434_vm1, %v16892_v31  ;;  %18488 = vst.msk [vmem:[%s26846_s25 + $0x130] sm:$0xff] %vm434_vm1, %v16893_v60  ;;  %v27458_v43 = vadd.f32 %v27410_v28, %v27058_v17  ;;  %v28465_v32 = vrot.slane %v27335_v55, 1  ;;  %v28467_v60 = vld [vmem:[#allocation14_spill] sm:$0xff] }
 0xcd4   : > { %v15215_v22 = vadd.f32 %v27410_v28, %v27066_v2  ;;  %v15532_v39 = vsel %vm15491_vm4, %v15529_v36, %v15531_v24  ;;  %v15534_v4 = vsel %vm15491_vm4, %v15531_v24, %v15533_v56  ;;  %v15793_v17 = vsel %vm15750_vm5, %v15790_v62, %v15792_v20 }
 0xcd5   : > { %v15791_v23 = vsel %vm15750_vm5, %v28465_v32, %v15790_v62  ;;  %18549 = vst.msk [vmem:[%s26846_s25 + $0x2f8] sm:$0xff] %vm434_vm1, %v16986_v45  ;;  %18550 = vst.msk [vmem:[%s26846_s25 + $0x310] sm:$0xff] %vm434_vm1, %v16987_v8  ;;  %v15618_v2 = vmul.f32 %v26721_v57, %v15532_v39  ;;  %v15619_v36 = vmul.f32 %v26725_v59, %v15534_v4  ;;  %v16831_v27 = vmul.f32 0.32258064, %v15907_v0  ;;  %v28468_v32 = vld [vmem:[#allocation26_spill] sm:$0xff] }
 0xcd6   : > { %v15876_v15 = vmul.f32 %v26727_v11, %v15791_v23  ;;  %v15877_v54 = vmul.f32 %v26729_v7, %v15793_v17  ;;  %v16575_v55 = vmul.f32 %v28466_v35, %v15693_v5  ;;  %v16830_v58 = vmul.f32 %v28460_v34, %v15906_v12  ;;  %v27493_v5 = vpop.permute.xlu1 %16684 }
 0xcd7   : > { %v16924_v29 = vmul.f32 %v28461_v38, %v15906_v12  ;;  %v15694_v44 = vadd.f32 %v15662_v16, %v15618_v2  ;;  %v15695_v13 = vadd.f32 %v15663_v63, %v15619_v36  ;;  %v16925_v52 = vmul.f32 0.8064516, %v15907_v0 }
 0xcd8   : > { %v15908_v48 = vadd.f32 %v15876_v15, %v27368_v37  ;;  %v15909_v6 = vadd.f32 %v15877_v54, %v15738_v42  ;;  %v15537_v21 = vrot.slane %v27458_v43, 7  ;;  %v15665_v30 = vmul.f32 %v26723_v47, %v27458_v43 }
 0xcd9   : > { %v27491_v31 = vmul.f32 %v26731_v19, %v27458_v43  ;;  %v16322_v34 = vmul.f32 0.67741936, %v15694_v44  ;;  %v16323_v38 = vmul.f32 %v28467_v60, %v15695_v13  ;;  %v15796_v12 = vrot.slane %v27458_v43, 1 }
 0xcda   : > { %v15535_v63 = vrot.slane %v15215_v22, 7  ;;  %v16765_v37 = vmul.f32 0.19354838, %v15694_v44  ;;  %v16766_v0 = vmul.f32 %v27493_v5, %v15695_v13  ;;  %v15664_v14 = vmul.f32 %v26719_v18, %v15215_v22 }
 0xcdb   : > { %v15740_v25 = vmul.f32 %v26733_v50, %v15215_v22  ;;  %v16102_v24 = vmul.f32 0.3548387, %v15694_v44  ;;  %v16354_v16 = vadd.f32 %v16322_v34, %v16100_v1  ;;  %v16355_v42 = vadd.f32 %v16323_v38, %v16101_v49 }
 0xcdc   : > { %v15794_v62 = vrot.slane %v15215_v22, 1  ;;  %v16797_v45 = vadd.f32 %v16765_v37, %v16574_v10  ;;  %v16798_v8 = vadd.f32 %v16766_v0, %v16575_v55  ;;  %v16862_v39 = vmul.f32 %v28463_v53, %v15908_v48  ;;  %v28469_v55 = vld [vmem:[#allocation28_spill] sm:$0xff] }
 0xcdd   : > { %v16863_v4 = vmul.f32 0.67741936, %v15909_v6  ;;  %v16103_v23 = vmul.f32 %v28468_v32, %v15695_v13  ;;  %v16576_v17 = vmul.f32 0.8387097, %v15694_v44  ;;  %v16956_v2 = vmul.f32 %v27428_v33, %v15908_v48  ;;  %17023 = vst.msk [vmem:[%s26846_s25 + $0x140] sm:$0xff] %vm434_vm1, %v16354_v16  ;;  %17024 = vst.msk [vmem:[%s26846_s25 + $0x148] sm:$0xff] %vm434_vm1, %v16355_v42 }
 0xcde   : > { %v16957_v36 = vmul.f32 0.19354838, %v15909_v6  ;;  %v16894_v1 = vadd.f32 %v16862_v39, %v16830_v58  ;;  %18520 = vst.msk [vmem:[%s26846_s25 + $0x320] sm:$0xff] %vm434_vm1, %v16797_v45  ;;  %18521 = vst.msk [vmem:[%s26846_s25 + $0x328] sm:$0xff] %vm434_vm1, %v16798_v8  ;;  %v15536_v53 = vsel %vm15491_vm4, %v15533_v56, %v15535_v63  ;;  %v15538_v33 = vsel %vm15491_vm4, %v15535_v63, %v15537_v21  ;;  %v28470_v42 = vld [vmem:[#allocation13_spill] sm:$0xff] }
 0xcdf   : > { %v16895_v49 = vadd.f32 %v16863_v4, %v16831_v27  ;;  %v16988_v10 = vadd.f32 %v16956_v2, %v16924_v29  ;;  %v15620_v15 = vmul.f32 %v26721_v57, %v15536_v53  ;;  %v15621_v54 = vmul.f32 %v26725_v59, %v15538_v33  ;;  %v28471_v4 = vld [vmem:[#allocation22_spill] sm:$0xff] }
 0xce0   : > { %v16989_v22 = vadd.f32 %v16957_v36, %v16925_v52  ;;  %v16577_v58 = vmul.f32 %v28469_v55, %v15695_v13  ;;  %18489 = vst.msk [vmem:[%s26846_s25 + $0x138] sm:$0xff] %vm434_vm1, %v16894_v1  ;;  %v15795_v56 = vsel %vm15750_vm5, %v15792_v20, %v15794_v62  ;;  %v15797_v27 = vsel %vm15750_vm5, %v15794_v62, %v15796_v12 }
 0xce1   : > { %18490 = vst.msk [vmem:[%s26846_s25 + $0x150] sm:$0xff] %vm434_vm1, %v16895_v49  ;;  %v27532_v29 = vadd.f32 %v27410_v28, %v27088_v41  ;;  %18551 = vst.msk [vmem:[%s26846_s25 + $0x318] sm:$0xff] %vm434_vm1, %v16988_v10  ;;  %v15696_v44 = vadd.f32 %v15664_v14, %v15620_v15  ;;  %v15697_v13 = vadd.f32 %v15665_v30, %v15621_v54  ;;  %v16833_v34 = vmul.f32 0.3548387, %v15909_v6  ;;  %v27546_v14 = vpop.permute.xlu0 %16694 }
 0xce2   : > { %18552 = vst.msk [vmem:[%s26846_s25 + $0x330] sm:$0xff] %vm434_vm1, %v16989_v22  ;;  %v15878_v52 = vmul.f32 %v26727_v11, %v15795_v56  ;;  %v15879_v51 = vmul.f32 %v26729_v7, %v15797_v27  ;;  %v16832_v20 = vmul.f32 %v28464_v26, %v15908_v48  ;;  %v16926_v38 = vmul.f32 %v28466_v35, %v15908_v48 }
 0xce3   : > { %v16927_v63 = vmul.f32 0.8387097, %v15909_v6  ;;  %v15541_v0 = vrot.slane %v27532_v29, 7  ;;  %v15225_v16 = vadd.f32 %v27410_v28, %v27102_v3  ;;  %v16324_v30 = vmul.f32 0.6451613, %v15696_v44 }
 0xce4   : > { %v15910_v37 = vadd.f32 %v15878_v52, %v27435_v46  ;;  %v15911_v41 = vadd.f32 %v15879_v51, %v15740_v25  ;;  %v16325_v62 = vmul.f32 %v28470_v42, %v15697_v13  ;;  %v15667_v26 = vmul.f32 %v26723_v47, %v27532_v29 }
 0xce5   : > { %v27553_v35 = vmul.f32 %v26731_v19, %v27532_v29  ;;  %v16104_v48 = vmul.f32 0.38709676, %v15696_v44  ;;  %v16767_v46 = vmul.f32 0.16129032, %v15696_v44  ;;  %v16768_v6 = vmul.f32 %v27546_v14, %v15697_v13 }
 0xce6   : > { %v15800_v3 = vrot.slane %v27532_v29, 1  ;;  %v16356_v25 = vadd.f32 %v16324_v30, %v16102_v24  ;;  %v16357_v45 = vadd.f32 %v16325_v62, %v16103_v23  ;;  %v16864_v8 = vmul.f32 %v28467_v60, %v15910_v37 }
 0xce7   : > { %v16865_v39 = vmul.f32 0.6451613, %v15911_v41  ;;  %v16105_v2 = vmul.f32 %v28471_v4, %v15697_v13  ;;  %v16578_v36 = vmul.f32 0.87096775, %v15696_v44  ;;  %v16799_v1 = vadd.f32 %v16767_v46, %v16576_v17 }
 0xce8   : > { %v16800_v49 = vadd.f32 %v16768_v6, %v16577_v58  ;;  %v16896_v53 = vadd.f32 %v16864_v8, %v16832_v20  ;;  %v16958_v10 = vmul.f32 %v27493_v5, %v15910_v37  ;;  %v16959_v22 = vmul.f32 0.16129032, %v15911_v41  ;;  %17025 = vst.msk [vmem:[%s26846_s25 + $0x160] sm:$0xff] %vm434_vm1, %v16356_v25  ;;  %17026 = vst.msk [vmem:[%s26846_s25 + $0x168] sm:$0xff] %vm434_vm1, %v16357_v45  ;;  %v28472_v58 = vld [vmem:[#allocation42_spill] sm:$0xff] }
 0xce9   : > { %v16897_v33 = vadd.f32 %v16865_v39, %v16833_v34  ;;  %18522 = vst.msk [vmem:[%s26846_s25 + $0x340] sm:$0xff] %vm434_vm1, %v16799_v1  ;;  %v15539_v60 = vrot.slane %v15225_v16, 7  ;;  %v15666_v24 = vmul.f32 %v26719_v18, %v15225_v16  ;;  %v15742_v23 = vmul.f32 %v26733_v50, %v15225_v16  ;;  %v28474_v1 = vld [vmem:[#allocation25_spill] sm:$0xff] }
 0xcea   : > { %18523 = vst.msk [vmem:[%s26846_s25 + $0x348] sm:$0xff] %vm434_vm1, %v16800_v49  ;;  %v15798_v17 = vrot.slane %v15225_v16, 1  ;;  %v16990_v15 = vadd.f32 %v16958_v10, %v16926_v38  ;;  %v16991_v54 = vadd.f32 %v16959_v22, %v16927_v63  ;;  %18491 = vst.msk [vmem:[%s26846_s25 + $0x158] sm:$0xff] %vm434_vm1, %v16896_v53  ;;  %v27576_v5 = vadd.f32 %v27410_v28, %v27117_v9  ;;  %v28473_v38 = vld [vmem:[#allocation32_spill] sm:$0xff] }
 0xceb   : > { %18492 = vst.msk [vmem:[%s26846_s25 + $0x170] sm:$0xff] %vm434_vm1, %v16897_v33  ;;  %v15235_v56 = vadd.f32 %v27410_v28, %v28472_v58  ;;  %v15540_v27 = vsel %vm15491_vm4, %v15537_v21, %v15539_v60  ;;  %v15542_v44 = vsel %vm15491_vm4, %v15539_v60, %v15541_v0  ;;  %v16579_v43 = vmul.f32 %v28473_v38, %v15697_v13  ;;  %v27611_v13 = vpop.permute.xlu1 %16704 }
 0xcec   : > { %v15799_v52 = vsel %vm15750_vm5, %v15796_v12, %v15798_v17  ;;  %v15801_v9 = vsel %vm15750_vm5, %v15798_v17, %v15800_v3  ;;  %18553 = vst.msk [vmem:[%s26846_s25 + $0x338] sm:$0xff] %vm434_vm1, %v16990_v15  ;;  %18554 = vst.msk [vmem:[%s26846_s25 + $0x350] sm:$0xff] %vm434_vm1, %v16991_v54  ;;  %v15622_v51 = vmul.f32 %v26721_v57, %v15540_v27  ;;  %v16835_v63 = vmul.f32 0.38709676, %v15911_v41  ;;  %v28475_v54 = vld [vmem:[#allocation30_spill] sm:$0xff] }
 0xced   : > { %v15623_v21 = vmul.f32 %v26725_v59, %v15542_v44  ;;  %v15880_v20 = vmul.f32 %v26727_v11, %v15799_v52  ;;  %v15881_v34 = vmul.f32 %v26729_v7, %v15801_v9  ;;  %v16834_v12 = vmul.f32 %v28468_v32, %v15910_v37 }
 0xcee   : > { %v16928_v16 = vmul.f32 %v28469_v55, %v15910_v37  ;;  %v15698_v30 = vadd.f32 %v15666_v24, %v15622_v51  ;;  %v16929_v25 = vmul.f32 0.87096775, %v15911_v41  ;;  %v15545_v45 = vrot.slane %v27576_v5, 7 }
 0xcef   : > { %v15699_v62 = vadd.f32 %v15667_v26, %v15623_v21  ;;  %v15912_v46 = vadd.f32 %v15880_v20, %v27491_v31  ;;  %v15913_v6 = vadd.f32 %v15881_v34, %v15742_v23  ;;  %v15669_v8 = vmul.f32 %v26723_v47, %v27576_v5  ;;  %v28476_v21 = vld [vmem:[#allocation15_spill] sm:$0xff] }
 0xcf0   : > { %v27609_v39 = vmul.f32 %v26731_v19, %v27576_v5  ;;  %v16326_v32 = vmul.f32 0.61290324, %v15698_v30  ;;  %v15804_v37 = vrot.slane %v27576_v5, 1  ;;  %v15543_v26 = vrot.slane %v15235_v56, 7 }
 0xcf1   : > { %v16327_v55 = vmul.f32 %v28474_v1, %v15699_v62  ;;  %v16769_v31 = vmul.f32 0.12903225, %v15698_v30  ;;  %v16770_v41 = vmul.f32 %v27611_v13, %v15699_v62  ;;  %v15668_v49 = vmul.f32 %v26719_v18, %v15235_v56 }
 0xcf2   : > { %v15744_v53 = vmul.f32 %v26733_v50, %v15235_v56  ;;  %v16106_v33 = vmul.f32 0.41935483, %v15698_v30  ;;  %v16358_v10 = vadd.f32 %v16326_v32, %v16104_v48  ;;  %v15802_v60 = vrot.slane %v15235_v56, 1 }
 0xcf3   : > { %v16359_v22 = vadd.f32 %v16327_v55, %v16105_v2  ;;  %v16801_v24 = vadd.f32 %v16769_v31, %v16578_v36  ;;  %v16802_v23 = vadd.f32 %v16770_v41, %v16579_v43  ;;  %v16866_v17 = vmul.f32 %v28470_v42, %v15912_v46  ;;  %v27664_v31 = vpop.permute.xlu0 %16714  ;;  %v28477_v41 = vld [vmem:[#allocation17_spill] sm:$0xff] }
 0xcf4   : > { %v16867_v15 = vmul.f32 0.61290324, %v15913_v6  ;;  %v16107_v58 = vmul.f32 %v28475_v54, %v15699_v62  ;;  %v16580_v27 = vmul.f32 0.9032258, %v15698_v30  ;;  %v16960_v44 = vmul.f32 %v27546_v14, %v15912_v46  ;;  %17027 = vst.msk [vmem:[%s26846_s25 + $0x180] sm:$0xff] %vm434_vm1, %v16358_v10 }
 0xcf5   : > { %v16961_v52 = vmul.f32 0.12903225, %v15913_v6  ;;  %17028 = vst.msk [vmem:[%s26846_s25 + $0x188] sm:$0xff] %vm434_vm1, %v16359_v22  ;;  %v16898_v48 = vadd.f32 %v16866_v17, %v16834_v12  ;;  %18524 = vst.msk [vmem:[%s26846_s25 + $0x360] sm:$0xff] %vm434_vm1, %v16801_v24  ;;  %v15544_v42 = vsel %vm15491_vm4, %v15541_v0, %v15543_v26  ;;  %v15546_v14 = vsel %vm15491_vm4, %v15543_v26, %v15545_v45  ;;  %v28478_v24 = vld [vmem:[#allocation27_spill] sm:$0xff] }
 0xcf6   : > { %v16899_v2 = vadd.f32 %v16867_v15, %v16835_v63  ;;  %18525 = vst.msk [vmem:[%s26846_s25 + $0x368] sm:$0xff] %vm434_vm1, %v16802_v23  ;;  %v16992_v36 = vadd.f32 %v16960_v44, %v16928_v16  ;;  %v15624_v9 = vmul.f32 %v26721_v57, %v15544_v42  ;;  %v15625_v51 = vmul.f32 %v26725_v59, %v15546_v14 }
 0xcf7   : > { %v16993_v56 = vadd.f32 %v16961_v52, %v16929_v25  ;;  %v16581_v20 = vmul.f32 %v28476_v21, %v15699_v62  ;;  %18493 = vst.msk [vmem:[%s26846_s25 + $0x178] sm:$0xff] %vm434_vm1, %v16898_v48  ;;  %v15803_v0 = vsel %vm15750_vm5, %v15800_v3, %v15802_v60  ;;  %v15805_v34 = vsel %vm15750_vm5, %v15802_v60, %v15804_v37 }
 0xcf8   : > { %18494 = vst.msk [vmem:[%s26846_s25 + $0x190] sm:$0xff] %vm434_vm1, %v16899_v2  ;;  %v27650_v43 = vadd.f32 %v27410_v28, %v27134_v61  ;;  %18555 = vst.msk [vmem:[%s26846_s25 + $0x358] sm:$0xff] %vm434_vm1, %v16992_v36  ;;  %v15700_v12 = vadd.f32 %v15668_v49, %v15624_v9  ;;  %v15701_v63 = vadd.f32 %v15669_v8, %v15625_v51  ;;  %v16837_v30 = vmul.f32 0.41935483, %v15913_v6  ;;  %v28480_v9 = vld [vmem:[#allocation33_spill] sm:$0xff] }
 0xcf9   : > { %18556 = vst.msk [vmem:[%s26846_s25 + $0x370] sm:$0xff] %vm434_vm1, %v16993_v56  ;;  %v15882_v16 = vmul.f32 %v26727_v11, %v15803_v0  ;;  %v15883_v29 = vmul.f32 %v26729_v7, %v15805_v34  ;;  %v16836_v3 = vmul.f32 %v28471_v4, %v15912_v46  ;;  %v16930_v62 = vmul.f32 %v28473_v38, %v15912_v46 }
 0xcfa   : > { %v16931_v25 = vmul.f32 0.9032258, %v15913_v6  ;;  %v15549_v55 = vrot.slane %v27650_v43, 7  ;;  %v15245_v26 = vadd.f32 %v27410_v28, %v27142_v40  ;;  %v16328_v8 = vmul.f32 0.5806452, %v15700_v12 }
 0xcfb   : > { %v15914_v32 = vadd.f32 %v15882_v16, %v27553_v35  ;;  %v15915_v61 = vadd.f32 %v15883_v29, %v15744_v53  ;;  %v16329_v49 = vmul.f32 %v28477_v41, %v15701_v63  ;;  %v15671_v4 = vmul.f32 %v26723_v47, %v27650_v43 }
 0xcfc   : > { %v27671_v38 = vmul.f32 %v26731_v19, %v27650_v43  ;;  %v16108_v46 = vmul.f32 0.4516129, %v15700_v12  ;;  %v16771_v35 = vmul.f32 0.09677419, %v15700_v12  ;;  %v16772_v6 = vmul.f32 %v27664_v31, %v15701_v63 }
 0xcfd   : > { %v15808_v40 = vrot.slane %v27650_v43, 1  ;;  %v16360_v53 = vadd.f32 %v16328_v8, %v16106_v33  ;;  %v16361_v10 = vadd.f32 %v16329_v49, %v16107_v58  ;;  %v16868_v22 = vmul.f32 %v28474_v1, %v15914_v32  ;;  %v28479_v33 = vld [vmem:[#allocation37_spill] sm:$0xff] }
 0xcfe   : > { %v16869_v60 = vmul.f32 0.5806452, %v15915_v61  ;;  %v16109_v23 = vmul.f32 %v28478_v24, %v15701_v63  ;;  %v16582_v17 = vmul.f32 0.9354839, %v15700_v12  ;;  %v16803_v15 = vadd.f32 %v16771_v35, %v16580_v27 }
 0xcff   : > { %v16804_v44 = vadd.f32 %v16772_v6, %v16581_v20  ;;  %v16900_v52 = vadd.f32 %v16868_v22, %v16836_v3  ;;  %v16962_v2 = vmul.f32 %v27611_v13, %v15914_v32  ;;  %v16963_v42 = vmul.f32 0.09677419, %v15915_v61  ;;  %17029 = vst.msk [vmem:[%s26846_s25 + $0x1a0] sm:$0xff] %vm434_vm1, %v16360_v53  ;;  %17030 = vst.msk [vmem:[%s26846_s25 + $0x1a8] sm:$0xff] %vm434_vm1, %v16361_v10  ;;  %v27728_v10 = vpop.permute.xlu1 %16724 }
 0xd00   : > { %v16901_v48 = vadd.f32 %v16869_v60, %v16837_v30  ;;  %v16583_v58 = vmul.f32 %v28479_v33, %v15701_v63  ;;  %18526 = vst.msk [vmem:[%s26846_s25 + $0x380] sm:$0xff] %vm434_vm1, %v16803_v15  ;;  %v15547_v1 = vrot.slane %v15245_v26, 7  ;;  %v15670_v27 = vmul.f32 %v26719_v18, %v15245_v26  ;;  %v28481_v30 = vld [vmem:[#allocation43_spill] sm:$0xff]  ;;  %v28482_v60 = vld [vmem:[#allocation24_spill] sm:$0xff] }
 0xd01   : > { %18527 = vst.msk [vmem:[%s26846_s25 + $0x388] sm:$0xff] %vm434_vm1, %v16804_v44  ;;  %v15806_v14 = vrot.slane %v15245_v26, 1  ;;  %v16994_v36 = vadd.f32 %v16962_v2, %v16930_v62  ;;  %v16995_v56 = vadd.f32 %v16963_v42, %v16931_v25  ;;  %18495 = vst.msk [vmem:[%s26846_s25 + $0x198] sm:$0xff] %vm434_vm1, %v16900_v52  ;;  %v15746_v13 = vmul.f32 %v26733_v50, %v15245_v26 }
 0xd02   : > { %18496 = vst.msk [vmem:[%s26846_s25 + $0x1b0] sm:$0xff] %vm434_vm1, %v16901_v48  ;;  %v27695_v51 = vadd.f32 %v27410_v28, %v28480_v9  ;;  %v15548_v20 = vsel %vm15491_vm4, %v15545_v45, %v15547_v1  ;;  %v15550_v0 = vsel %vm15491_vm4, %v15547_v1, %v15549_v55  ;;  %v16838_v5 = vmul.f32 %v28475_v54, %v15914_v32  ;;  %v28484_v9 = vld [vmem:[#allocation35_spill] sm:$0xff] }
 0xd03   : > { %v15807_v34 = vsel %vm15750_vm5, %v15804_v37, %v15806_v14  ;;  %v15809_v12 = vsel %vm15750_vm5, %v15806_v14, %v15808_v40  ;;  %18557 = vst.msk [vmem:[%s26846_s25 + $0x378] sm:$0xff] %vm434_vm1, %v16994_v36  ;;  %18558 = vst.msk [vmem:[%s26846_s25 + $0x390] sm:$0xff] %vm434_vm1, %v16995_v56  ;;  %v15626_v63 = vmul.f32 %v26721_v57, %v15548_v20  ;;  %v16839_v3 = vmul.f32 0.4516129, %v15915_v61 }
 0xd04   : > { %v15627_v45 = vmul.f32 %v26725_v59, %v15550_v0  ;;  %v15884_v16 = vmul.f32 %v26727_v11, %v15807_v34  ;;  %v15885_v29 = vmul.f32 %v26729_v7, %v15809_v12  ;;  %v15812_v37 = vrot.slane %v27695_v51, 1 }
 0xd05   : > { %v27721_v62 = vadd.f32 %v27410_v28, %v28481_v30  ;;  %v15702_v25 = vadd.f32 %v15670_v27, %v15626_v63  ;;  %v16932_v35 = vmul.f32 %v28476_v21, %v15914_v32  ;;  %v16933_v6 = vmul.f32 0.9354839, %v15915_v61  ;;  %v28483_v27 = vld [vmem:[#allocation11_spill] sm:$0xff]  ;;  %v16745_v63 = vpop.permute.xlu1 %16744  ;;  %v28486_v30 = vld [vmem:[#allocation41_spill] sm:$0xff] }
 0xd06   : > { %v15703_v26 = vadd.f32 %v15671_v4, %v15627_v45  ;;  %v15916_v8 = vadd.f32 %v15884_v16, %v27609_v39  ;;  %v15917_v49 = vadd.f32 %v15885_v29, %v15746_v13  ;;  %v15553_v53 = vrot.slane %v27695_v51, 7 }
 0xd07   : > { %v15673_v54 = vmul.f32 %v26723_v47, %v27695_v51  ;;  %v16330_v22 = vmul.f32 0.5483871, %v15702_v25  ;;  %v15749_v28 = vmul.f32 %v26731_v19, %v27695_v51  ;;  %v15846_v39 = vsel %vm15750_vm5, %v15812_v37, %v27695_v51 }
 0xd08   : > { %v16331_v15 = vmul.f32 %v28482_v60, %v15703_v26  ;;  %v16773_v21 = vmul.f32 0.06451613, %v15702_v25  ;;  %v16774_v32 = vmul.f32 %v27728_v10, %v15703_v26  ;;  %v15551_v47 = vrot.slane %v27721_v62, 7 }
 0xd09   : > { %v15672_v61 = vmul.f32 %v26719_v18, %v27721_v62  ;;  %v16110_v4 = vmul.f32 0.48387095, %v15702_v25  ;;  %v16362_v44 = vadd.f32 %v16330_v22, %v16108_v46  ;;  %v15748_v52 = vmul.f32 %v26733_v50, %v27721_v62 }
 0xd0a   : > { %v16363_v19 = vadd.f32 %v16331_v15, %v16109_v23  ;;  %v16805_v48 = vadd.f32 %v16773_v21, %v16582_v17  ;;  %v16806_v2 = vadd.f32 %v16774_v32, %v16583_v58  ;;  %v16870_v42 = vmul.f32 %v28477_v41, %v15916_v8 }
 0xd0b   : > { %v16871_v1 = vmul.f32 0.5483871, %v15917_v49  ;;  %v16111_v14 = vmul.f32 %v28483_v27, %v15703_v26  ;;  %v16584_v36 = vmul.f32 0.96774197, %v15702_v25  ;;  %v16964_v56 = vmul.f32 %v27664_v31, %v15916_v8  ;;  %17031 = vst.msk [vmem:[%s26846_s25 + $0x1c0] sm:$0xff] %vm434_vm1, %v16362_v44 }
 0xd0c   : > { %v16965_v18 = vmul.f32 0.06451613, %v15917_v49  ;;  %17032 = vst.msk [vmem:[%s26846_s25 + $0x1c8] sm:$0xff] %vm434_vm1, %v16363_v19  ;;  %v16902_v46 = vadd.f32 %v16870_v42, %v16838_v5  ;;  %18528 = vst.msk [vmem:[%s26846_s25 + $0x3a0] sm:$0xff] %vm434_vm1, %v16805_v48  ;;  %v15888_v50 = vmul.f32 %v26727_v11, %v15846_v39  ;;  %v15552_v41 = vsel %vm15491_vm4, %v15549_v55, %v15551_v47  ;;  %v28485_v5 = vld [vmem:[#allocation23_spill] sm:$0xff] }
 0xd0d   : > { %v16903_v23 = vadd.f32 %v16871_v1, %v16839_v3  ;;  %18529 = vst.msk [vmem:[%s26846_s25 + $0x3a8] sm:$0xff] %vm434_vm1, %v16806_v2  ;;  %v16996_v31 = vadd.f32 %v16964_v56, %v16932_v35  ;;  %v15554_v58 = vsel %vm15491_vm4, %v15551_v47, %v15553_v53  ;;  %v15628_v13 = vmul.f32 %v26721_v57, %v15552_v41 }
 0xd0e   : > { %v16997_v17 = vadd.f32 %v16965_v18, %v16933_v6  ;;  %v16585_v20 = vmul.f32 %v28484_v9, %v15703_v26  ;;  %18497 = vst.msk [vmem:[%s26846_s25 + $0x1b8] sm:$0xff] %vm434_vm1, %v16902_v46  ;;  %v15920_v0 = vadd.f32 %v15888_v50, %v15749_v28  ;;  %v15629_v34 = vmul.f32 %v26725_v59, %v15554_v58 }
 0xd0f   : > { %18498 = vst.msk [vmem:[%s26846_s25 + $0x1d0] sm:$0xff] %vm434_vm1, %v16903_v23  ;;  %v15810_v12 = vrot.slane %v27721_v62, 1  ;;  %v16840_v55 = vmul.f32 %v28478_v24, %v15916_v8  ;;  %v16841_v45 = vmul.f32 0.48387095, %v15917_v49  ;;  %v16934_v16 = vmul.f32 %v28479_v33, %v15916_v8  ;;  %18559 = vst.msk [vmem:[%s26846_s25 + $0x398] sm:$0xff] %vm434_vm1, %v16996_v31  ;;  %v16735_v8 = vpop.permute.xlu0 %16734 }
 0xd10   : > { %18560 = vst.msk [vmem:[%s26846_s25 + $0x3b0] sm:$0xff] %vm434_vm1, %v16997_v17  ;;  %v15704_v57 = vadd.f32 %v15672_v61, %v15628_v13  ;;  %v16935_v29 = vmul.f32 0.96774197, %v15917_v49  ;;  %v16874_v3 = vmul.f32 %v28485_v5, %v15920_v0  ;;  %v16938_v25 = vmul.f32 %v28486_v30, %v15920_v0 }
 0xd11   : > { %v16970_v59 = vmul.f32 %v16745_v63, %v15920_v0  ;;  %v15705_v26 = vadd.f32 %v15673_v54, %v15629_v34  ;;  %v15811_v24 = vsel %vm15750_vm5, %v15808_v40, %v15810_v12  ;;  %v15813_v33 = vsel %vm15750_vm5, %v15810_v12, %v15812_v37 }
 0xd12   : > { %v16332_v62 = vmul.f32 0.516129, %v15704_v57  ;;  %v15886_v49 = vmul.f32 %v26727_v11, %v15811_v24  ;;  %v15887_v6 = vmul.f32 %v26729_v7, %v15813_v33  ;;  %v16775_v53 = vmul.f32 0.032258064, %v15704_v57 }
 0xd13   : > { %v17002_v35 = vadd.f32 %v16970_v59, %v16938_v25  ;;  %v16333_v22 = vmul.f32 %v28485_v5, %v15705_v26  ;;  %v16587_v43 = vmul.f32 %v28486_v30, %v15705_v26  ;;  %v16776_v15 = vmul.f32 %v16735_v8, %v15705_v26 }
 0xd14   : > { %v16364_v54 = vadd.f32 %v16332_v62, %v16110_v4  ;;  %v15918_v40 = vadd.f32 %v15886_v49, %v27671_v38  ;;  %v15919_v51 = vadd.f32 %v15887_v6, %v15748_v52  ;;  %v16777_v37 = vmul.f32 0.0, %v15704_v57 }
 0xd15   : > { %18565 = vst.msk [vmem:[%s26846_s25 + $0x3f8] sm:$0xff] %vm434_vm1, %v17002_v35  ;;  %v16778_v28 = vmul.f32 %v16745_v63, %v15705_v26  ;;  %v16968_v11 = vmul.f32 %v16735_v8, %v15920_v0  ;;  %v16365_v39 = vadd.f32 %v16333_v22, %v16111_v14  ;;  %v16807_v7 = vadd.f32 %v16775_v53, %v16584_v36 }
 0xd16   : > { %v16808_v21 = vadd.f32 %v16776_v15, %v16585_v20  ;;  %17033 = vst.msk [vmem:[%s26846_s25 + $0x1e0] sm:$0xff] %vm434_vm1, %v16364_v54  ;;  %v16809_v32 = vadd.f32 %v16777_v37, %v15704_v57  ;;  %v16842_v61 = vmul.f32 %v28483_v27, %v15918_v40  ;;  %v16872_v38 = vmul.f32 %v28482_v60, %v15918_v40 }
 0xd17   : > { %v16810_v47 = vadd.f32 %v16778_v28, %v16587_v43  ;;  %v16873_v4 = vmul.f32 0.516129, %v15919_v51  ;;  %v16936_v44 = vmul.f32 %v28484_v9, %v15918_v40  ;;  %v16966_v19 = vmul.f32 %v27728_v10, %v15918_v40  ;;  %17034 = vst.msk [vmem:[%s26846_s25 + $0x1e8] sm:$0xff] %vm434_vm1, %v16365_v39  ;;  %18530 = vst.msk [vmem:[%s26846_s25 + $0x3c0] sm:$0xff] %vm434_vm1, %v16807_v7 }
 0xd18   : > { %v16967_v52 = vmul.f32 0.032258064, %v15919_v51  ;;  %18531 = vst.msk [vmem:[%s26846_s25 + $0x3c8] sm:$0xff] %vm434_vm1, %v16808_v21  ;;  %v16904_v48 = vadd.f32 %v16872_v38, %v16840_v55  ;;  %v16906_v60 = vadd.f32 %v16874_v3, %v16842_v61  ;;  %v16969_v2 = vmul.f32 0.0, %v15919_v51  ;;  %18532 = vst.msk [vmem:[%s26846_s25 + $0x3e0] sm:$0xff] %vm434_vm1, %v16809_v32 }
 0xd19   : > { %18533 = vst.msk [vmem:[%s26846_s25 + $0x3e8] sm:$0xff] %vm434_vm1, %v16810_v47  ;;  %v16905_v10 = vadd.f32 %v16873_v4, %v16841_v45  ;;  %v16998_v42 = vadd.f32 %v16966_v19, %v16934_v16  ;;  %v17000_v27 = vadd.f32 %v16968_v11, %v16936_v44 }
 0xd1a   : > { %v16999_v1 = vadd.f32 %v16967_v52, %v16935_v29  ;;  %v17001_v14 = vadd.f32 %v16969_v2, %v15919_v51  ;;  %18499 = vst.msk [vmem:[%s26846_s25 + $0x1d8] sm:$0xff] %vm434_vm1, %v16904_v48  ;;  %18501 = vst.msk [vmem:[%s26846_s25 + $0x1f8] sm:$0xff] %vm434_vm1, %v16906_v60 }
 0xd1b   : > { %18500 = vst.msk [vmem:[%s26846_s25 + $0x1f0] sm:$0xff] %vm434_vm1, %v16905_v10  ;;  %18561 = vst.msk [vmem:[%s26846_s25 + $0x3b8] sm:$0xff] %vm434_vm1, %v16998_v42 }
 0xd1c   : > { %18562 = vst.msk [vmem:[%s26846_s25 + $0x3d0] sm:$0xff] %vm434_vm1, %v16999_v1  ;;  %18563 = vst.msk [vmem:[%s26846_s25 + $0x3d8] sm:$0xff] %vm434_vm1, %v17000_v27 }
 0xd1d   : > { %18564 = vst.msk [vmem:[%s26846_s25 + $0x3f0] sm:$0xff] %vm434_vm1, %v17001_v14 }
 0xd1e PF: > { %s22_s21 = sadd.s32 1, %s22719_s21  }
 0xd1f   : > { %p19_p4 = scmp.ge.s32.totalorder %s22_s21, 4  }
 0xd21   :  { %21 = sbr.rel (!%p19_p4) target bundleno = 1 (0x1), region = 139 }

</bundles_post_ra>
